<compile_context>
chip_gen: v7x
topology: tpu7x:2x2x1
jax: 0.10.0
libtpu: 0.0.40
codegen_flags: <defaults>
</compile_context>

<pallas_src>
import functools
import numpy as np
import jax
import jax.numpy as jnp
from jax.experimental import pallas as pl
from jax.experimental.pallas import tpu as pltpu

# ---- hyper-parameters mirroring QuantumEEGNet.__init__ ----------------------
F1, D, F2 = 8, 2, 16            # C2 = F1*D == F2 == 16
C2 = F1 * D
NQ, NL = 4, 2                   # n_qubits, n_layers
DIM = 2 ** NQ                   # statevector dimension = 16
NUM_CLASSES = 2
BN_EPS = 1e-5

# ---- geometry (chosen so flattened conv output per channel == n_qubits) -----
H_EEG = 2                       # conv2 kernel is (2,1) -> needs H >= 2
T_IN = 127
KT1 = 64                        # conv1 temporal kernel, pad 32
KT3 = 16                        # conv3 temporal kernel, pad 8
PAD3 = KT3 // 2                 # 8
T_PAD = T_IN + KT1              # 191  padded input length for conv1
T1 = T_IN + 1                   # 128  after conv1
T_P4 = T1 // 4                  # 32   after avg_pool(1,4)
T_ZP = T_P4 + 2 * PAD3          # 48   pooled + zero halo for conv3
T3 = T_P4 + 1                   # 33   after conv3/conv4
T_Q = T3 // 8                   # 4    after avg_pool(1,8)
assert T_Q == NQ

# ---- batching: BB samples per Pallas grid step ------------------------------
BB = 8                          # batch block (kept at 8; kron scheme is O(BB^2))
BC2 = BB * C2                   # 128 rows after conv2/3 (b, c)
BF2 = BB * F2                   # 128 rows after conv4   (b, c)


def _elu(v):
    # F.elu with alpha=1; clamp exp arg to avoid inf in the unselected branch.
    return jnp.where(v > 0, v, jnp.exp(jnp.minimum(v, 0.0)) - 1.0)


# ===================== single fused kernel (one batch block) =================
def qeegnet_kernel(x_ref, a1_ref, bn1_ref, m2_ref, p4_ref, w3_ref, w4_ref,
                   p8_ref, bn_ref, ut_ref, bm_ref, zs_ref, cm_ref, gs_ref,
                   fcw_ref, fcb_ref, expv_ref, logit_ref):
    f32, bf16 = jnp.float32, jnp.bfloat16
    bn = bn_ref[...]                                              # (128, 6) f32

    # conv1 (1,64), pad 32: one dense bf16 matmul on the raw padded samples
    # (A[s, f*T1+t] = w1[f, s-t]); no HBM im2col, no block-diag zeros.
    y = jnp.dot(x_ref[...], a1_ref[...], preferred_element_type=f32)  # (16,1024)
    y = _elu(y * bn1_ref[0:1, :] + bn1_ref[1:2, :])               # BN1 + ELU
    yb = y.astype(bf16)

    # regroup lanes (f, t) -> rows (f, b, h): 8 lane-tile-aligned slices +
    # sublane concat (no sublane<->lane reshape).
    y2 = jnp.concatenate([yb[:, f * T1:(f + 1) * T1] for f in range(F1)],
                         axis=0)                                   # (128, 128)

    # depthwise conv2 (2,1) + BN2 + ELU (block matrix maps cols (f,b,h)->rows (b,c)).
    z = jnp.dot(m2_ref[...], y2, preferred_element_type=f32)       # (128, 128)
    z = _elu(z * bn[:, 0:1] + bn[:, 1:2]).astype(bf16)

    # avg_pool(1,4) with conv3's zero halo baked into the pooling matrix.
    zp = jnp.dot(z, p4_ref[...],
                 preferred_element_type=f32).astype(bf16)          # (128, 48)

    # conv3 (1,16): time-axis im2col of the pooled activations (16 lane-shifted
    # slices, rows ordered (k, b, ci)) + ONE matmul -- no post-matmul shift/adds.
    zstk = jnp.concatenate([zp[:, k:k + T3] for k in range(KT3)],
                           axis=0)                                  # (2048, 33)
    a3 = jnp.dot(w3_ref[...], zstk, preferred_element_type=f32)     # (128, 33)
    a3 = _elu(a3 * bn[:, 2:3] + bn[:, 3:4]).astype(bf16)

    # conv4 1x1 + BN4 + ELU.
    a4 = jnp.dot(w4_ref[...], a3, preferred_element_type=f32)       # (128, 33)
    a4 = _elu(a4 * bn[:, 4:5] + bn[:, 5:6])

    # avg_pool(1,8) (floor: first 32 cols) -> RY input angles, rows = (b, chan).
    ang = jnp.dot(a4[:, :T_Q * 8], p8_ref[...],
                  preferred_element_type=f32)                       # (128, 4)

    # ----- quantum circuit, fully in f32 so PauliZ expvals stay in [-1, 1] ---
    ch = jnp.cos(0.5 * ang)                                         # EUP
    sh = jnp.sin(0.5 * ang)
    # RY-embedding product state: state[r, b] = prod_i (bit_i(b)? sin : cos).
    state = jnp.ones((BF2, DIM), f32)
    for i in range(NQ):
        bit = bm_ref[i:i + 1, :]                                    # (1, DIM)
        state = state * (bit * sh[:, i:i + 1] + (1.0 - bit) * ch[:, i:i + 1])
    # fixed (input-independent) real circuit unitary, then PauliZ expvals.
    psi = jnp.dot(state, ut_ref[...], preferred_element_type=f32)   # (128, 16)
    e = jnp.dot(psi * psi, zs_ref[...], preferred_element_type=f32)  # (128, 4)

    # rows (b, chan) -> lane-dense (b, chan*NQ + q) via mask + one matmul
    # (avoids a sublane->lane reshape and masked 4-lane stores).
    edense = jnp.dot(gs_ref[...], jnp.tile(e, (1, F2)) * cm_ref[...],
                     preferred_element_type=f32)                    # (8, 64)
    expv_ref[...] = edense

    # fc1 as one matmul (no per-class loop / single-lane stores).
    logit_ref[...] = (jnp.dot(edense, fcw_ref[...],
                              preferred_element_type=f32) + fcb_ref[...])


# =========================== parameter preparation ===========================
def init_params(key):
    ks = jax.random.split(key, 11)
    p = {
        "w1": 0.3 * jax.random.normal(ks[0], (F1, 1, 1, KT1), jnp.float32),
        "w2": 0.3 * jax.random.normal(ks[1], (C2, 1, 2, 1), jnp.float32),
        "w3": 0.15 * jax.random.normal(ks[2], (C2, C2, 1, KT3), jnp.float32),
        "w4": 0.3 * jax.random.normal(ks[3], (F2, C2, 1, 1), jnp.float32),
        "q_weights": jax.random.uniform(ks[8], (NL, NQ), jnp.float32, 0.0,
                                        2.0 * np.pi),
        "fc_w": 0.2 * jax.random.normal(ks[9], (NUM_CLASSES, F2 * NQ), jnp.float32),
        "fc_b": 0.1 * jax.random.normal(ks[10], (NUM_CLASSES,), jnp.float32),
    }
    for li, c in enumerate((F1, C2, C2, F2)):
        kk = jax.random.split(ks[4 + li], 4)
        p[f"bn{li + 1}"] = dict(
            gamma=1.0 + 0.1 * jax.random.normal(kk[0], (c,), jnp.float32),
            beta=0.1 * jax.random.normal(kk[1], (c,), jnp.float32),
            mean=0.1 * jax.random.normal(kk[2], (c,), jnp.float32),
            var=1.0 + 0.1 * jnp.abs(jax.random.normal(kk[3], (c,), jnp.float32)),
        )
    return p


def _bn_fold(bn):
    g = np.asarray(bn["gamma"], np.float32)
    b = np.asarray(bn["beta"], np.float32)
    m = np.asarray(bn["mean"], np.float32)
    v = np.asarray(bn["var"], np.float32)
    scale = g / np.sqrt(v + BN_EPS)
    return scale, b - m * scale


def _build_quantum_mats(q_weights):
    """Input-independent part of the circuit as a real 16x16 unitary (wire0=MSB).

    Gate order matches the spec's explicit qnode: per layer, ring CNOTs FIRST,
    then RY(weights[j, i]).
    """
    wq = np.asarray(q_weights, dtype=np.float64)

    def ry(t):
        c, s = np.cos(t / 2.0), np.sin(t / 2.0)
        return np.array([[c, -s], [s, c]])

    def cnot(ctrl, targ):
        m = np.zeros((DIM, DIM))
        for xx in range(DIM):
            yy = xx ^ (1 << (NQ - 1 - targ)) if (xx >> (NQ - 1 - ctrl)) & 1 else xx
            m[yy, xx] = 1.0
        return m

    ring = np.eye(DIM)
    for a, b in [(i, (i + 1) % NQ) for i in range(NQ)]:            # pattern='ring'
        ring = cnot(a, b) @ ring
    u = np.eye(DIM)
    for j in range(NL):
        layer = functools.reduce(np.kron, [ry(wq[j, i]) for i in range(NQ)])
        u = layer @ ring @ u
    bm = np.array([[(bv >> (NQ - 1 - i)) & 1 for bv in range(DIM)]
                   for i in range(NQ)], dtype=np.float32)           # (NQ, DIM)
    zs = (1.0 - 2.0 * bm.T).astype(np.float32)                      # (DIM, NQ)
    return u.T.astype(np.float32), bm, zs


def prepare_params(params):
    """Fold / tile / pre-layout all parameters once (hoisted out of the hot path).

    Conv-stack matrices are stored in bf16 (MXU-native); everything touching the
    quantum statevector / fc stays f32.
    """
    # conv1 as a dense right-multiply matrix: A[s, f*T1 + t] = w1[f, s - t].
    w1m = np.asarray(params["w1"], np.float32)[:, 0, 0, :]          # (F1, KT1)
    a1 = np.zeros((T_PAD, F1, T1), np.float32)
    tt = np.arange(T1)
    for f in range(F1):
        for k in range(KT1):
            a1[tt + k, f, tt] = w1m[f, k]
    a1 = a1.reshape(T_PAD, F1 * T1)                                 # (191, 1024)

    # conv2: depthwise (2,1); maps columns (f, b, h) -> rows (b, c).
    w2m = np.asarray(params["w2"], np.float32)[:, 0, :, 0]          # (C2, 2)
    m2 = np.zeros((BC2, F1 * BB * H_EEG), np.float32)
    for b in range(BB):
        for c in range(C2):
            for h in range(H_EEG):
                m2[b * C2 + c, (c // D) * BB * H_EEG + b * H_EEG + h] = w2m[c, h]

    # conv3: per-tap (C2,C2) blocks, block-diag over batch, stacked over taps
    # along COLUMNS (matches the in-kernel time-axis im2col row order (k,b,ci)).
    eye_b = np.eye(BB, dtype=np.float32)
    w3 = np.asarray(params["w3"], np.float32)[:, :, 0, :]           # (C2, C2, KT3)
    w3row = np.concatenate([np.kron(eye_b, w3[:, :, k]) for k in range(KT3)],
                           axis=1)                                  # (128, 2048)

    # conv4 1x1, block-diag over batch.
    w4big = np.kron(eye_b, np.asarray(params["w4"], np.float32)[:, :, 0, 0])

    # pooling matrices: avg_pool(1,4) with conv3 zero halo; avg_pool(1,8).
    pool4 = (np.arange(T1)[:, None] // 4 ==
             np.arange(T_P4)[None, :]).astype(np.float32) / 4.0     # (128, 32)
    p4pad = np.concatenate([np.zeros((T1, PAD3), np.float32), pool4,
                            np.zeros((T1, PAD3), np.float32)], axis=1)  # (128,48)
    p8m = (np.arange(T_Q * 8)[:, None] // 8 ==
           np.arange(T_Q)[None, :]).astype(np.float32) / 8.0        # (32, 4)

    # folded BN scale/shift. BN1 works on lanes (f, t): one (2, 1024) row pair.
    # BN2/3/4 work on rows (b, c): pack as columns of one (128, 6) matrix.
    s1, b1 = _bn_fold(params["bn1"])
    s2, b2 = _bn_fold(params["bn2"])
    s3, b3 = _bn_fold(params["bn3"])
    s4, b4 = _bn_fold(params["bn4"])
    bn1row = np.stack([np.repeat(s1, T1), np.repeat(b1, T1)], axis=0)   # (2, 1024)
    bnmat = np.stack([np.tile(s2, BB), np.tile(b2, BB),
                      np.tile(s3, BB), np.tile(b3, BB),
                      np.tile(s4, BB), np.tile(b4, BB)], axis=1)        # (128, 6)

    # quantum circuit constants + row->lane relayout mask / group-select matrix.
    ut, bm, zs = _build_quantum_mats(params["q_weights"])
    rows = np.arange(BF2)
    chanmask = (rows[:, None] % F2 ==
                np.arange(F2 * NQ)[None, :] // NQ).astype(np.float32)   # (128, 64)
    gsel = (rows[None, :] // F2 ==
            np.arange(BB)[:, None]).astype(np.float32)                  # (8, 128)

    # fc1: (64, 2) weight + bias.
    fcw = np.asarray(params["fc_w"], np.float32).T                  # (64, 2)
    fcb = np.asarray(params["fc_b"], np.float32).reshape(1, NUM_CLASSES)

    bf16, f32 = jnp.bfloat16, jnp.float32
    return dict(
        a1=jnp.asarray(a1, bf16), bn1=jnp.asarray(bn1row, f32),
        m2=jnp.asarray(m2, bf16), p4pad=jnp.asarray(p4pad, bf16),
        w3row=jnp.asarray(w3row, bf16), w4big=jnp.asarray(w4big, bf16),
        p8m=jnp.asarray(p8m, f32), bnmat=jnp.asarray(bnmat, f32),
        ut=jnp.asarray(ut, f32), bm=jnp.asarray(bm, f32), zs=jnp.asarray(zs, f32),
        chanmask=jnp.asarray(chanmask, f32), gsel=jnp.asarray(gsel, f32),
        fcw=jnp.asarray(fcw, f32), fcb=jnp.asarray(fcb, f32),
    )


_CONST_KEYS = ("a1", "bn1", "m2", "p4pad", "w3row", "w4big", "p8m", "bnmat",
               "ut", "bm", "zs", "chanmask", "gsel", "fcw", "fcb")


# ================================= forward ===================================
def quantum_eegnet_forward(x, prep):
    """x: (B, 1, H_EEG, T_IN) NCHW like the PyTorch module -> (logits, expv).

    TODO(synk): dropout layers are identity (inference semantics); training-mode
    dropout is not implemented.
    """
    f32 = jnp.float32
    B = x.shape[0]
    bpad = ((B + BB - 1) // BB) * BB
    nblk = bpad // BB

    # squeeze C=1, pad batch to a BB multiple and time for conv1's padding=32;
    # the kernel consumes the raw padded samples (no HBM im2col), in bf16.
    xr = jnp.pad(x[:, 0].astype(f32),
                 ((0, bpad - B), (0, 0), (KT1 // 2, KT1 // 2)))     # (bpad,H,191)
    x2d = xr.reshape(bpad * H_EEG, T_PAD).astype(jnp.bfloat16)

    def const_spec(arr):
        # Constant index_map -> the Pallas pipeline fetches these blocks once,
        # not per grid step.
        return pl.BlockSpec(arr.shape, lambda i: (0, 0))

    expv_d, logits_pad = pl.pallas_call(
        qeegnet_kernel,
        out_shape=(jax.ShapeDtypeStruct((bpad, F2 * NQ), f32),
                   jax.ShapeDtypeStruct((bpad, NUM_CLASSES), f32)),
        grid=(nblk,),
        in_specs=[pl.BlockSpec((BB * H_EEG, T_PAD), lambda i: (i, 0))]
                 + [const_spec(prep[k]) for k in _CONST_KEYS],
        out_specs=(pl.BlockSpec((BB, F2 * NQ), lambda i: (i, 0)),
                   pl.BlockSpec((BB, NUM_CLASSES), lambda i: (i, 0))),
        compiler_params=pltpu.CompilerParams(
            dimension_semantics=("parallel",)),
    )(x2d, *[prep[k] for k in _CONST_KEYS])

    logits = logits_pad[:B]
    expv = expv_d[:B].reshape(B, F2, NQ)
    return logits, expv


# ==================================== main ===================================
if __name__ == "__main__":
    key = jax.random.PRNGKey(0)
    kx, kp = jax.random.split(key)
    B = 16                      # 2 batch blocks -> both v7x TensorCores get work
    x = jax.random.normal(kx, (B, 1, H_EEG, T_IN), jnp.float32)  # NCHW like PyTorch
    params = init_params(kp)

    prep = prepare_params(params)          # hoisted: runs once, not per forward
    fwd = jax.jit(quantum_eegnet_forward)

    logits, expv = fwd(x, prep)
    logits = jax.block_until_ready(logits)
    expv = jax.block_until_ready(expv)

    assert logits.shape == (B, NUM_CLASSES)
    assert expv.shape == (B, F2, NQ)
    assert bool(jnp.all(jnp.isfinite(logits)))
    # PauliZ expectation values must lie in [-1, 1] (norm-preserving real circuit,
    # evaluated in f32).
    assert bool(jnp.all(jnp.abs(expv) <= 1.0 + 1e-4))
    print("KERNEL_OK")
</pallas_src>

<mosaic_0001>
module attributes {stable_mosaic.version = 11 : i64} {
  func.func @qeegnet_kernel(%arg0: i32, %arg1: memref<16x191xbf16, #tpu.memory_space<vmem>>, %arg2: memref<191x1024xbf16, #tpu.memory_space<vmem>>, %arg3: memref<2x1024xf32, #tpu.memory_space<vmem>>, %arg4: memref<128x128xbf16, #tpu.memory_space<vmem>>, %arg5: memref<128x48xbf16, #tpu.memory_space<vmem>>, %arg6: memref<128x2048xbf16, #tpu.memory_space<vmem>>, %arg7: memref<128x128xbf16, #tpu.memory_space<vmem>>, %arg8: memref<32x4xf32, #tpu.memory_space<vmem>>, %arg9: memref<128x6xf32, #tpu.memory_space<vmem>>, %arg10: memref<16x16xf32, #tpu.memory_space<vmem>>, %arg11: memref<4x16xf32, #tpu.memory_space<vmem>>, %arg12: memref<16x4xf32, #tpu.memory_space<vmem>>, %arg13: memref<128x64xf32, #tpu.memory_space<vmem>>, %arg14: memref<8x128xf32, #tpu.memory_space<vmem>>, %arg15: memref<64x2xf32, #tpu.memory_space<vmem>>, %arg16: memref<1x2xf32, #tpu.memory_space<vmem>>, %arg17: memref<8x64xf32, #tpu.memory_space<vmem>>, %arg18: memref<8x2xf32, #tpu.memory_space<vmem>>) attributes {dimension_semantics = [#tpu.dimension_semantics<parallel>], iteration_bounds = array<i64: 2>, scalar_prefetch = 0 : i64, scratch_operands = 0 : i64, tpu.core_type = #tpu.core_type<tc>, window_params = [{transform_indices = @transform_0, window_bounds = array<i64: 16, 191>}, {pipeline_mode = #tpu.pipeline_mode<synchronous>, transform_indices = @transform_1, window_bounds = array<i64: 191, 1024>}, {pipeline_mode = #tpu.pipeline_mode<synchronous>, transform_indices = @transform_2, window_bounds = array<i64: 2, 1024>}, {pipeline_mode = #tpu.pipeline_mode<synchronous>, transform_indices = @transform_3, window_bounds = array<i64: 128, 128>}, {pipeline_mode = #tpu.pipeline_mode<synchronous>, transform_indices = @transform_4, window_bounds = array<i64: 128, 48>}, {pipeline_mode = #tpu.pipeline_mode<synchronous>, transform_indices = @transform_5, window_bounds = array<i64: 128, 2048>}, {pipeline_mode = #tpu.pipeline_mode<synchronous>, transform_indices = @transform_6, window_bounds = array<i64: 128, 128>}, {pipeline_mode = #tpu.pipeline_mode<synchronous>, transform_indices = @transform_7, window_bounds = array<i64: 32, 4>}, {pipeline_mode = #tpu.pipeline_mode<synchronous>, transform_indices = @transform_8, window_bounds = array<i64: 128, 6>}, {pipeline_mode = #tpu.pipeline_mode<synchronous>, transform_indices = @transform_9, window_bounds = array<i64: 16, 16>}, {pipeline_mode = #tpu.pipeline_mode<synchronous>, transform_indices = @transform_10, window_bounds = array<i64: 4, 16>}, {pipeline_mode = #tpu.pipeline_mode<synchronous>, transform_indices = @transform_11, window_bounds = array<i64: 16, 4>}, {pipeline_mode = #tpu.pipeline_mode<synchronous>, transform_indices = @transform_12, window_bounds = array<i64: 128, 64>}, {pipeline_mode = #tpu.pipeline_mode<synchronous>, transform_indices = @transform_13, window_bounds = array<i64: 8, 128>}, {pipeline_mode = #tpu.pipeline_mode<synchronous>, transform_indices = @transform_14, window_bounds = array<i64: 64, 2>}, {pipeline_mode = #tpu.pipeline_mode<synchronous>, transform_indices = @transform_15, window_bounds = array<i64: 1, 2>}, {transform_indices = @transform_16, window_bounds = array<i64: 8, 64>}, {transform_indices = @transform_17, window_bounds = array<i64: 8, 2>}]} {
    %c0 = arith.constant 0 : index
    %c0_0 = arith.constant 0 : index
    %0 = vector.load %arg9[%c0, %c0_0] : memref<128x6xf32, #tpu.memory_space<vmem>>, vector<128x6xf32>
    %c0_1 = arith.constant 0 : index
    %c0_2 = arith.constant 0 : index
    %1 = vector.load %arg1[%c0_1, %c0_2] : memref<16x191xbf16, #tpu.memory_space<vmem>>, vector<16x191xbf16>
    %c0_3 = arith.constant 0 : index
    %c0_4 = arith.constant 0 : index
    %2 = vector.load %arg2[%c0_3, %c0_4] : memref<191x1024xbf16, #tpu.memory_space<vmem>>, vector<191x1024xbf16>
    %cst = arith.constant dense<0.000000e+00> : vector<16x1024xf32>
    %3 = tpu.matmul %1, %2, %cst {dimension_numbers = #tpu.dot_dimension_numbers<[1], [0], [0], [1], [0, 0, 1, 1], [], []>} : vector<16x191xbf16>, vector<191x1024xbf16>, vector<16x1024xf32> -> vector<16x1024xf32>
    %c0_5 = arith.constant 0 : index
    %c0_6 = arith.constant 0 : index
    %4 = vector.load %arg3[%c0_5, %c0_6] : memref<2x1024xf32, #tpu.memory_space<vmem>>, vector<1x1024xf32>
    %5 = vector.broadcast %4 : vector<1x1024xf32> to vector<16x1024xf32>
    %6 = arith.mulf %3, %5 : vector<16x1024xf32>
    %c1 = arith.constant 1 : index
    %c0_7 = arith.constant 0 : index
    %7 = vector.load %arg3[%c1, %c0_7] : memref<2x1024xf32, #tpu.memory_space<vmem>>, vector<1x1024xf32>
    %8 = vector.broadcast %7 : vector<1x1024xf32> to vector<16x1024xf32>
    %9 = arith.addf %6, %8 : vector<16x1024xf32>
    %cst_8 = arith.constant 0.000000e+00 : f32
    %10 = vector.broadcast %cst_8 : f32 to vector<16x1024xf32>
    %11 = arith.cmpf ogt, %9, %10 : vector<16x1024xf32>
    %cst_9 = arith.constant 0.000000e+00 : f32
    %12 = vector.broadcast %cst_9 : f32 to vector<16x1024xf32>
    %13 = arith.minimumf %9, %12 : vector<16x1024xf32>
    %14 = math.exp %13 : vector<16x1024xf32>
    %cst_10 = arith.constant 1.000000e+00 : f32
    %15 = vector.broadcast %cst_10 : f32 to vector<16x1024xf32>
    %16 = arith.subf %14, %15 : vector<16x1024xf32>
    %17 = arith.select %11, %9, %16 : vector<16x1024xi1>, vector<16x1024xf32>
    %18 = arith.truncf %17 : vector<16x1024xf32> to vector<16x1024xbf16>
    %19 = vector.extract_strided_slice %18 {offsets = [0, 0], sizes = [16, 128], strides = [1, 1]} : vector<16x1024xbf16> to vector<16x128xbf16>
    %20 = vector.extract_strided_slice %18 {offsets = [0, 128], sizes = [16, 128], strides = [1, 1]} : vector<16x1024xbf16> to vector<16x128xbf16>
    %21 = vector.extract_strided_slice %18 {offsets = [0, 256], sizes = [16, 128], strides = [1, 1]} : vector<16x1024xbf16> to vector<16x128xbf16>
    %22 = vector.extract_strided_slice %18 {offsets = [0, 384], sizes = [16, 128], strides = [1, 1]} : vector<16x1024xbf16> to vector<16x128xbf16>
    %23 = vector.extract_strided_slice %18 {offsets = [0, 512], sizes = [16, 128], strides = [1, 1]} : vector<16x1024xbf16> to vector<16x128xbf16>
    %24 = vector.extract_strided_slice %18 {offsets = [0, 640], sizes = [16, 128], strides = [1, 1]} : vector<16x1024xbf16> to vector<16x128xbf16>
    %25 = vector.extract_strided_slice %18 {offsets = [0, 768], sizes = [16, 128], strides = [1, 1]} : vector<16x1024xbf16> to vector<16x128xbf16>
    %26 = vector.extract_strided_slice %18 {offsets = [0, 896], sizes = [16, 128], strides = [1, 1]} : vector<16x1024xbf16> to vector<16x128xbf16>
    %27 = tpu.concatenate %19, %20, %21, %22, %23, %24, %25, %26 in 0 : vector<16x128xbf16>, vector<16x128xbf16>, vector<16x128xbf16>, vector<16x128xbf16>, vector<16x128xbf16>, vector<16x128xbf16>, vector<16x128xbf16>, vector<16x128xbf16> -> vector<128x128xbf16>
    %c0_11 = arith.constant 0 : index
    %c0_12 = arith.constant 0 : index
    %28 = vector.load %arg4[%c0_11, %c0_12] : memref<128x128xbf16, #tpu.memory_space<vmem>>, vector<128x128xbf16>
    %cst_13 = arith.constant dense<0.000000e+00> : vector<128x128xf32>
    %29 = tpu.matmul %28, %27, %cst_13 {dimension_numbers = #tpu.dot_dimension_numbers<[1], [0], [0], [1], [0, 0, 1, 1], [], []>} : vector<128x128xbf16>, vector<128x128xbf16>, vector<128x128xf32> -> vector<128x128xf32>
    %30 = vector.extract_strided_slice %0 {offsets = [0, 0], sizes = [128, 1], strides = [1, 1]} : vector<128x6xf32> to vector<128x1xf32>
    %31 = vector.broadcast %30 : vector<128x1xf32> to vector<128x128xf32>
    %32 = arith.mulf %29, %31 : vector<128x128xf32>
    %33 = vector.extract_strided_slice %0 {offsets = [0, 1], sizes = [128, 1], strides = [1, 1]} : vector<128x6xf32> to vector<128x1xf32>
    %34 = vector.broadcast %33 : vector<128x1xf32> to vector<128x128xf32>
    %35 = arith.addf %32, %34 : vector<128x128xf32>
    %cst_14 = arith.constant 0.000000e+00 : f32
    %36 = vector.broadcast %cst_14 : f32 to vector<128x128xf32>
    %37 = arith.cmpf ogt, %35, %36 : vector<128x128xf32>
    %cst_15 = arith.constant 0.000000e+00 : f32
    %38 = vector.broadcast %cst_15 : f32 to vector<128x128xf32>
    %39 = arith.minimumf %35, %38 : vector<128x128xf32>
    %40 = math.exp %39 : vector<128x128xf32>
    %cst_16 = arith.constant 1.000000e+00 : f32
    %41 = vector.broadcast %cst_16 : f32 to vector<128x128xf32>
    %42 = arith.subf %40, %41 : vector<128x128xf32>
    %43 = arith.select %37, %35, %42 : vector<128x128xi1>, vector<128x128xf32>
    %44 = arith.truncf %43 : vector<128x128xf32> to vector<128x128xbf16>
    %c0_17 = arith.constant 0 : index
    %c0_18 = arith.constant 0 : index
    %45 = vector.load %arg5[%c0_17, %c0_18] : memref<128x48xbf16, #tpu.memory_space<vmem>>, vector<128x48xbf16>
    %cst_19 = arith.constant dense<0.000000e+00> : vector<128x48xf32>
    %46 = tpu.matmul %44, %45, %cst_19 {dimension_numbers = #tpu.dot_dimension_numbers<[1], [0], [0], [1], [0, 0, 1, 1], [], []>} : vector<128x128xbf16>, vector<128x48xbf16>, vector<128x48xf32> -> vector<128x48xf32>
    %47 = arith.truncf %46 : vector<128x48xf32> to vector<128x48xbf16>
    %48 = vector.extract_strided_slice %47 {offsets = [0, 0], sizes = [128, 33], strides = [1, 1]} : vector<128x48xbf16> to vector<128x33xbf16>
    %49 = vector.extract_strided_slice %47 {offsets = [0, 1], sizes = [128, 33], strides = [1, 1]} : vector<128x48xbf16> to vector<128x33xbf16>
    %50 = vector.extract_strided_slice %47 {offsets = [0, 2], sizes = [128, 33], strides = [1, 1]} : vector<128x48xbf16> to vector<128x33xbf16>
    %51 = vector.extract_strided_slice %47 {offsets = [0, 3], sizes = [128, 33], strides = [1, 1]} : vector<128x48xbf16> to vector<128x33xbf16>
    %52 = vector.extract_strided_slice %47 {offsets = [0, 4], sizes = [128, 33], strides = [1, 1]} : vector<128x48xbf16> to vector<128x33xbf16>
    %53 = vector.extract_strided_slice %47 {offsets = [0, 5], sizes = [128, 33], strides = [1, 1]} : vector<128x48xbf16> to vector<128x33xbf16>
    %54 = vector.extract_strided_slice %47 {offsets = [0, 6], sizes = [128, 33], strides = [1, 1]} : vector<128x48xbf16> to vector<128x33xbf16>
    %55 = vector.extract_strided_slice %47 {offsets = [0, 7], sizes = [128, 33], strides = [1, 1]} : vector<128x48xbf16> to vector<128x33xbf16>
    %56 = vector.extract_strided_slice %47 {offsets = [0, 8], sizes = [128, 33], strides = [1, 1]} : vector<128x48xbf16> to vector<128x33xbf16>
    %57 = vector.extract_strided_slice %47 {offsets = [0, 9], sizes = [128, 33], strides = [1, 1]} : vector<128x48xbf16> to vector<128x33xbf16>
    %58 = vector.extract_strided_slice %47 {offsets = [0, 10], sizes = [128, 33], strides = [1, 1]} : vector<128x48xbf16> to vector<128x33xbf16>
    %59 = vector.extract_strided_slice %47 {offsets = [0, 11], sizes = [128, 33], strides = [1, 1]} : vector<128x48xbf16> to vector<128x33xbf16>
    %60 = vector.extract_strided_slice %47 {offsets = [0, 12], sizes = [128, 33], strides = [1, 1]} : vector<128x48xbf16> to vector<128x33xbf16>
    %61 = vector.extract_strided_slice %47 {offsets = [0, 13], sizes = [128, 33], strides = [1, 1]} : vector<128x48xbf16> to vector<128x33xbf16>
    %62 = vector.extract_strided_slice %47 {offsets = [0, 14], sizes = [128, 33], strides = [1, 1]} : vector<128x48xbf16> to vector<128x33xbf16>
    %63 = vector.extract_strided_slice %47 {offsets = [0, 15], sizes = [128, 33], strides = [1, 1]} : vector<128x48xbf16> to vector<128x33xbf16>
    %64 = tpu.concatenate %48, %49, %50, %51, %52, %53, %54, %55, %56, %57, %58, %59, %60, %61, %62, %63 in 0 : vector<128x33xbf16>, vector<128x33xbf16>, vector<128x33xbf16>, vector<128x33xbf16>, vector<128x33xbf16>, vector<128x33xbf16>, vector<128x33xbf16>, vector<128x33xbf16>, vector<128x33xbf16>, vector<128x33xbf16>, vector<128x33xbf16>, vector<128x33xbf16>, vector<128x33xbf16>, vector<128x33xbf16>, vector<128x33xbf16>, vector<128x33xbf16> -> vector<2048x33xbf16>
    %c0_20 = arith.constant 0 : index
    %c0_21 = arith.constant 0 : index
    %65 = vector.load %arg6[%c0_20, %c0_21] : memref<128x2048xbf16, #tpu.memory_space<vmem>>, vector<128x2048xbf16>
    %cst_22 = arith.constant dense<0.000000e+00> : vector<128x33xf32>
    %66 = tpu.matmul %65, %64, %cst_22 {dimension_numbers = #tpu.dot_dimension_numbers<[1], [0], [0], [1], [0, 0, 1, 1], [], []>} : vector<128x2048xbf16>, vector<2048x33xbf16>, vector<128x33xf32> -> vector<128x33xf32>
    %67 = vector.extract_strided_slice %0 {offsets = [0, 2], sizes = [128, 1], strides = [1, 1]} : vector<128x6xf32> to vector<128x1xf32>
    %68 = vector.broadcast %67 : vector<128x1xf32> to vector<128x33xf32>
    %69 = arith.mulf %66, %68 : vector<128x33xf32>
    %70 = vector.extract_strided_slice %0 {offsets = [0, 3], sizes = [128, 1], strides = [1, 1]} : vector<128x6xf32> to vector<128x1xf32>
    %71 = vector.broadcast %70 : vector<128x1xf32> to vector<128x33xf32>
    %72 = arith.addf %69, %71 : vector<128x33xf32>
    %cst_23 = arith.constant 0.000000e+00 : f32
    %73 = vector.broadcast %cst_23 : f32 to vector<128x33xf32>
    %74 = arith.cmpf ogt, %72, %73 : vector<128x33xf32>
    %cst_24 = arith.constant 0.000000e+00 : f32
    %75 = vector.broadcast %cst_24 : f32 to vector<128x33xf32>
    %76 = arith.minimumf %72, %75 : vector<128x33xf32>
    %77 = math.exp %76 : vector<128x33xf32>
    %cst_25 = arith.constant 1.000000e+00 : f32
    %78 = vector.broadcast %cst_25 : f32 to vector<128x33xf32>
    %79 = arith.subf %77, %78 : vector<128x33xf32>
    %80 = arith.select %74, %72, %79 : vector<128x33xi1>, vector<128x33xf32>
    %81 = arith.truncf %80 : vector<128x33xf32> to vector<128x33xbf16>
    %c0_26 = arith.constant 0 : index
    %c0_27 = arith.constant 0 : index
    %82 = vector.load %arg7[%c0_26, %c0_27] : memref<128x128xbf16, #tpu.memory_space<vmem>>, vector<128x128xbf16>
    %cst_28 = arith.constant dense<0.000000e+00> : vector<128x33xf32>
    %83 = tpu.matmul %82, %81, %cst_28 {dimension_numbers = #tpu.dot_dimension_numbers<[1], [0], [0], [1], [0, 0, 1, 1], [], []>} : vector<128x128xbf16>, vector<128x33xbf16>, vector<128x33xf32> -> vector<128x33xf32>
    %84 = vector.extract_strided_slice %0 {offsets = [0, 4], sizes = [128, 1], strides = [1, 1]} : vector<128x6xf32> to vector<128x1xf32>
    %85 = vector.broadcast %84 : vector<128x1xf32> to vector<128x33xf32>
    %86 = arith.mulf %83, %85 : vector<128x33xf32>
    %87 = vector.extract_strided_slice %0 {offsets = [0, 5], sizes = [128, 1], strides = [1, 1]} : vector<128x6xf32> to vector<128x1xf32>
    %88 = vector.broadcast %87 : vector<128x1xf32> to vector<128x33xf32>
    %89 = arith.addf %86, %88 : vector<128x33xf32>
    %cst_29 = arith.constant 0.000000e+00 : f32
    %90 = vector.broadcast %cst_29 : f32 to vector<128x33xf32>
    %91 = arith.cmpf ogt, %89, %90 : vector<128x33xf32>
    %cst_30 = arith.constant 0.000000e+00 : f32
    %92 = vector.broadcast %cst_30 : f32 to vector<128x33xf32>
    %93 = arith.minimumf %89, %92 : vector<128x33xf32>
    %94 = math.exp %93 : vector<128x33xf32>
    %cst_31 = arith.constant 1.000000e+00 : f32
    %95 = vector.broadcast %cst_31 : f32 to vector<128x33xf32>
    %96 = arith.subf %94, %95 : vector<128x33xf32>
    %97 = arith.select %91, %89, %96 : vector<128x33xi1>, vector<128x33xf32>
    %98 = vector.extract_strided_slice %97 {offsets = [0, 0], sizes = [128, 32], strides = [1, 1]} : vector<128x33xf32> to vector<128x32xf32>
    %c0_32 = arith.constant 0 : index
    %c0_33 = arith.constant 0 : index
    %99 = vector.load %arg8[%c0_32, %c0_33] : memref<32x4xf32, #tpu.memory_space<vmem>>, vector<32x4xf32>
    %cst_34 = arith.constant dense<0.000000e+00> : vector<128x4xf32>
    %100 = tpu.matmul %98, %99, %cst_34 {dimension_numbers = #tpu.dot_dimension_numbers<[1], [0], [0], [1], [0, 0, 1, 1], [], []>} : vector<128x32xf32>, vector<32x4xf32>, vector<128x4xf32> -> vector<128x4xf32>
    %cst_35 = arith.constant 5.000000e-01 : f32
    %101 = vector.broadcast %cst_35 : f32 to vector<128x4xf32>
    %102 = arith.mulf %101, %100 : vector<128x4xf32>
    %103 = math.cos %102 : vector<128x4xf32>
    %cst_36 = arith.constant 5.000000e-01 : f32
    %104 = vector.broadcast %cst_36 : f32 to vector<128x4xf32>
    %105 = arith.mulf %104, %100 : vector<128x4xf32>
    %106 = math.sin %105 : vector<128x4xf32>
    %cst_37 = arith.constant 1.000000e+00 : f32
    %107 = vector.broadcast %cst_37 : f32 to vector<128x16xf32>
    %c0_38 = arith.constant 0 : index
    %c0_39 = arith.constant 0 : index
    %108 = vector.load %arg11[%c0_38, %c0_39] : memref<4x16xf32, #tpu.memory_space<vmem>>, vector<1x16xf32>
    %109 = vector.extract_strided_slice %106 {offsets = [0, 0], sizes = [128, 1], strides = [1, 1]} : vector<128x4xf32> to vector<128x1xf32>
    %110 = vector.broadcast %108 : vector<1x16xf32> to vector<128x16xf32>
    %111 = vector.broadcast %109 : vector<128x1xf32> to vector<128x16xf32>
    %112 = arith.mulf %110, %111 : vector<128x16xf32>
    %cst_40 = arith.constant 1.000000e+00 : f32
    %113 = vector.broadcast %cst_40 : f32 to vector<1x16xf32>
    %114 = arith.subf %113, %108 : vector<1x16xf32>
    %115 = vector.extract_strided_slice %103 {offsets = [0, 0], sizes = [128, 1], strides = [1, 1]} : vector<128x4xf32> to vector<128x1xf32>
    %116 = vector.broadcast %114 : vector<1x16xf32> to vector<128x16xf32>
    %117 = vector.broadcast %115 : vector<128x1xf32> to vector<128x16xf32>
    %118 = arith.mulf %116, %117 : vector<128x16xf32>
    %119 = arith.addf %112, %118 : vector<128x16xf32>
    %120 = arith.mulf %107, %119 : vector<128x16xf32>
    %c1_41 = arith.constant 1 : index
    %c0_42 = arith.constant 0 : index
    %121 = vector.load %arg11[%c1_41, %c0_42] : memref<4x16xf32, #tpu.memory_space<vmem>>, vector<1x16xf32>
    %122 = vector.extract_strided_slice %106 {offsets = [0, 1], sizes = [128, 1], strides = [1, 1]} : vector<128x4xf32> to vector<128x1xf32>
    %123 = vector.broadcast %121 : vector<1x16xf32> to vector<128x16xf32>
    %124 = vector.broadcast %122 : vector<128x1xf32> to vector<128x16xf32>
    %125 = arith.mulf %123, %124 : vector<128x16xf32>
    %cst_43 = arith.constant 1.000000e+00 : f32
    %126 = vector.broadcast %cst_43 : f32 to vector<1x16xf32>
    %127 = arith.subf %126, %121 : vector<1x16xf32>
    %128 = vector.extract_strided_slice %103 {offsets = [0, 1], sizes = [128, 1], strides = [1, 1]} : vector<128x4xf32> to vector<128x1xf32>
    %129 = vector.broadcast %127 : vector<1x16xf32> to vector<128x16xf32>
    %130 = vector.broadcast %128 : vector<128x1xf32> to vector<128x16xf32>
    %131 = arith.mulf %129, %130 : vector<128x16xf32>
    %132 = arith.addf %125, %131 : vector<128x16xf32>
    %133 = arith.mulf %120, %132 : vector<128x16xf32>
    %c2 = arith.constant 2 : index
    %c0_44 = arith.constant 0 : index
    %134 = vector.load %arg11[%c2, %c0_44] : memref<4x16xf32, #tpu.memory_space<vmem>>, vector<1x16xf32>
    %135 = vector.extract_strided_slice %106 {offsets = [0, 2], sizes = [128, 1], strides = [1, 1]} : vector<128x4xf32> to vector<128x1xf32>
    %136 = vector.broadcast %134 : vector<1x16xf32> to vector<128x16xf32>
    %137 = vector.broadcast %135 : vector<128x1xf32> to vector<128x16xf32>
    %138 = arith.mulf %136, %137 : vector<128x16xf32>
    %cst_45 = arith.constant 1.000000e+00 : f32
    %139 = vector.broadcast %cst_45 : f32 to vector<1x16xf32>
    %140 = arith.subf %139, %134 : vector<1x16xf32>
    %141 = vector.extract_strided_slice %103 {offsets = [0, 2], sizes = [128, 1], strides = [1, 1]} : vector<128x4xf32> to vector<128x1xf32>
    %142 = vector.broadcast %140 : vector<1x16xf32> to vector<128x16xf32>
    %143 = vector.broadcast %141 : vector<128x1xf32> to vector<128x16xf32>
    %144 = arith.mulf %142, %143 : vector<128x16xf32>
    %145 = arith.addf %138, %144 : vector<128x16xf32>
    %146 = arith.mulf %133, %145 : vector<128x16xf32>
    %c3 = arith.constant 3 : index
    %c0_46 = arith.constant 0 : index
    %147 = vector.load %arg11[%c3, %c0_46] : memref<4x16xf32, #tpu.memory_space<vmem>>, vector<1x16xf32>
    %148 = vector.extract_strided_slice %106 {offsets = [0, 3], sizes = [128, 1], strides = [1, 1]} : vector<128x4xf32> to vector<128x1xf32>
    %149 = vector.broadcast %147 : vector<1x16xf32> to vector<128x16xf32>
    %150 = vector.broadcast %148 : vector<128x1xf32> to vector<128x16xf32>
    %151 = arith.mulf %149, %150 : vector<128x16xf32>
    %cst_47 = arith.constant 1.000000e+00 : f32
    %152 = vector.broadcast %cst_47 : f32 to vector<1x16xf32>
    %153 = arith.subf %152, %147 : vector<1x16xf32>
    %154 = vector.extract_strided_slice %103 {offsets = [0, 3], sizes = [128, 1], strides = [1, 1]} : vector<128x4xf32> to vector<128x1xf32>
    %155 = vector.broadcast %153 : vector<1x16xf32> to vector<128x16xf32>
    %156 = vector.broadcast %154 : vector<128x1xf32> to vector<128x16xf32>
    %157 = arith.mulf %155, %156 : vector<128x16xf32>
    %158 = arith.addf %151, %157 : vector<128x16xf32>
    %159 = arith.mulf %146, %158 : vector<128x16xf32>
    %c0_48 = arith.constant 0 : index
    %c0_49 = arith.constant 0 : index
    %160 = vector.load %arg10[%c0_48, %c0_49] : memref<16x16xf32, #tpu.memory_space<vmem>>, vector<16x16xf32>
    %cst_50 = arith.constant dense<0.000000e+00> : vector<128x16xf32>
    %161 = tpu.matmul %159, %160, %cst_50 {dimension_numbers = #tpu.dot_dimension_numbers<[1], [0], [0], [1], [0, 0, 1, 1], [], []>} : vector<128x16xf32>, vector<16x16xf32>, vector<128x16xf32> -> vector<128x16xf32>
    %162 = arith.mulf %161, %161 : vector<128x16xf32>
    %c0_51 = arith.constant 0 : index
    %c0_52 = arith.constant 0 : index
    %163 = vector.load %arg12[%c0_51, %c0_52] : memref<16x4xf32, #tpu.memory_space<vmem>>, vector<16x4xf32>
    %cst_53 = arith.constant dense<0.000000e+00> : vector<128x4xf32>
    %164 = tpu.matmul %162, %163, %cst_53 {dimension_numbers = #tpu.dot_dimension_numbers<[1], [0], [0], [1], [0, 0, 1, 1], [], []>} : vector<128x16xf32>, vector<16x4xf32>, vector<128x4xf32> -> vector<128x4xf32>
    %c0_54 = arith.constant 0 : index
    %c0_55 = arith.constant 0 : index
    %165 = vector.load %arg14[%c0_54, %c0_55] : memref<8x128xf32, #tpu.memory_space<vmem>>, vector<8x128xf32>
    %166 = tpu.concatenate %164, %164, %164, %164, %164, %164, %164, %164, %164, %164, %164, %164, %164, %164, %164, %164 in 1 : vector<128x4xf32>, vector<128x4xf32>, vector<128x4xf32>, vector<128x4xf32>, vector<128x4xf32>, vector<128x4xf32>, vector<128x4xf32>, vector<128x4xf32>, vector<128x4xf32>, vector<128x4xf32>, vector<128x4xf32>, vector<128x4xf32>, vector<128x4xf32>, vector<128x4xf32>, vector<128x4xf32>, vector<128x4xf32> -> vector<128x64xf32>
    %c0_56 = arith.constant 0 : index
    %c0_57 = arith.constant 0 : index
    %167 = vector.load %arg13[%c0_56, %c0_57] : memref<128x64xf32, #tpu.memory_space<vmem>>, vector<128x64xf32>
    %168 = arith.mulf %166, %167 : vector<128x64xf32>
    %cst_58 = arith.constant dense<0.000000e+00> : vector<8x64xf32>
    %169 = tpu.matmul %165, %168, %cst_58 {dimension_numbers = #tpu.dot_dimension_numbers<[1], [0], [0], [1], [0, 0, 1, 1], [], []>} : vector<8x128xf32>, vector<128x64xf32>, vector<8x64xf32> -> vector<8x64xf32>
    %c0_59 = arith.constant 0 : index
    %c0_60 = arith.constant 0 : index
    %170 = vector.load %arg17[%c0_59, %c0_60] : memref<8x64xf32, #tpu.memory_space<vmem>>, vector<8x64xf32>
    tpu.vector_store %arg17[%c0_59, %c0_60], %169 {strides = array<i32>} : memref<8x64xf32, #tpu.memory_space<vmem>>, vector<8x64xf32>,
    %c0_61 = arith.constant 0 : index
    %c0_62 = arith.constant 0 : index
    %171 = vector.load %arg15[%c0_61, %c0_62] : memref<64x2xf32, #tpu.memory_space<vmem>>, vector<64x2xf32>
    %cst_63 = arith.constant dense<0.000000e+00> : vector<8x2xf32>
    %172 = tpu.matmul %169, %171, %cst_63 {dimension_numbers = #tpu.dot_dimension_numbers<[1], [0], [0], [1], [0, 0, 1, 1], [], []>} : vector<8x64xf32>, vector<64x2xf32>, vector<8x2xf32> -> vector<8x2xf32>
    %c0_64 = arith.constant 0 : index
    %c0_65 = arith.constant 0 : index
    %173 = vector.load %arg16[%c0_64, %c0_65] : memref<1x2xf32, #tpu.memory_space<vmem>>, vector<1x2xf32>
    %174 = vector.broadcast %173 : vector<1x2xf32> to vector<8x2xf32>
    %175 = arith.addf %172, %174 : vector<8x2xf32>
    %c0_66 = arith.constant 0 : index
    %c0_67 = arith.constant 0 : index
    %176 = vector.load %arg18[%c0_66, %c0_67] : memref<8x2xf32, #tpu.memory_space<vmem>>, vector<8x2xf32>
    tpu.vector_store %arg18[%c0_66, %c0_67], %175 {strides = array<i32>} : memref<8x2xf32, #tpu.memory_space<vmem>>, vector<8x2xf32>,
    return
  }
  func.func @transform_0(%arg0: i32) -> (i32, i32) {
    %c0_i32 = arith.constant 0 : i32
    %c0_i32_0 = arith.constant 0 : i32
    return %arg0, %c0_i32 : i32, i32
  }
  func.func @transform_1(%arg0: i32) -> (i32, i32) {
    %c0_i32 = arith.constant 0 : i32
    %c0_i32_0 = arith.constant 0 : i32
    %c0_i32_1 = arith.constant 0 : i32
    return %c0_i32, %c0_i32_0 : i32, i32
  }
  func.func @transform_2(%arg0: i32) -> (i32, i32) {
    %c0_i32 = arith.constant 0 : i32
    %c0_i32_0 = arith.constant 0 : i32
    %c0_i32_1 = arith.constant 0 : i32
    return %c0_i32, %c0_i32_0 : i32, i32
  }
  func.func @transform_3(%arg0: i32) -> (i32, i32) {
    %c0_i32 = arith.constant 0 : i32
    %c0_i32_0 = arith.constant 0 : i32
    %c0_i32_1 = arith.constant 0 : i32
    return %c0_i32, %c0_i32_0 : i32, i32
  }
  func.func @transform_4(%arg0: i32) -> (i32, i32) {
    %c0_i32 = arith.constant 0 : i32
    %c0_i32_0 = arith.constant 0 : i32
    %c0_i32_1 = arith.constant 0 : i32
    return %c0_i32, %c0_i32_0 : i32, i32
  }
  func.func @transform_5(%arg0: i32) -> (i32, i32) {
    %c0_i32 = arith.constant 0 : i32
    %c0_i32_0 = arith.constant 0 : i32
    %c0_i32_1 = arith.constant 0 : i32
    return %c0_i32, %c0_i32_0 : i32, i32
  }
  func.func @transform_6(%arg0: i32) -> (i32, i32) {
    %c0_i32 = arith.constant 0 : i32
    %c0_i32_0 = arith.constant 0 : i32
    %c0_i32_1 = arith.constant 0 : i32
    return %c0_i32, %c0_i32_0 : i32, i32
  }
  func.func @transform_7(%arg0: i32) -> (i32, i32) {
    %c0_i32 = arith.constant 0 : i32
    %c0_i32_0 = arith.constant 0 : i32
    %c0_i32_1 = arith.constant 0 : i32
    return %c0_i32, %c0_i32_0 : i32, i32
  }
  func.func @transform_8(%arg0: i32) -> (i32, i32) {
    %c0_i32 = arith.constant 0 : i32
    %c0_i32_0 = arith.constant 0 : i32
    %c0_i32_1 = arith.constant 0 : i32
    return %c0_i32, %c0_i32_0 : i32, i32
  }
  func.func @transform_9(%arg0: i32) -> (i32, i32) {
    %c0_i32 = arith.constant 0 : i32
    %c0_i32_0 = arith.constant 0 : i32
    %c0_i32_1 = arith.constant 0 : i32
    return %c0_i32, %c0_i32_0 : i32, i32
  }
  func.func @transform_10(%arg0: i32) -> (i32, i32) {
    %c0_i32 = arith.constant 0 : i32
    %c0_i32_0 = arith.constant 0 : i32
    %c0_i32_1 = arith.constant 0 : i32
    return %c0_i32, %c0_i32_0 : i32, i32
  }
  func.func @transform_11(%arg0: i32) -> (i32, i32) {
    %c0_i32 = arith.constant 0 : i32
    %c0_i32_0 = arith.constant 0 : i32
    %c0_i32_1 = arith.constant 0 : i32
    return %c0_i32, %c0_i32_0 : i32, i32
  }
  func.func @transform_12(%arg0: i32) -> (i32, i32) {
    %c0_i32 = arith.constant 0 : i32
    %c0_i32_0 = arith.constant 0 : i32
    %c0_i32_1 = arith.constant 0 : i32
    return %c0_i32, %c0_i32_0 : i32, i32
  }
  func.func @transform_13(%arg0: i32) -> (i32, i32) {
    %c0_i32 = arith.constant 0 : i32
    %c0_i32_0 = arith.constant 0 : i32
    %c0_i32_1 = arith.constant 0 : i32
    return %c0_i32, %c0_i32_0 : i32, i32
  }
  func.func @transform_14(%arg0: i32) -> (i32, i32) {
    %c0_i32 = arith.constant 0 : i32
    %c0_i32_0 = arith.constant 0 : i32
    %c0_i32_1 = arith.constant 0 : i32
    return %c0_i32, %c0_i32_0 : i32, i32
  }
  func.func @transform_15(%arg0: i32) -> (i32, i32) {
    %c0_i32 = arith.constant 0 : i32
    %c0_i32_0 = arith.constant 0 : i32
    %c0_i32_1 = arith.constant 0 : i32
    return %c0_i32, %c0_i32_0 : i32, i32
  }
  func.func @transform_16(%arg0: i32) -> (i32, i32) {
    %c0_i32 = arith.constant 0 : i32
    %c0_i32_0 = arith.constant 0 : i32
    return %arg0, %c0_i32 : i32, i32
  }
  func.func @transform_17(%arg0: i32) -> (i32, i32) {
    %c0_i32 = arith.constant 0 : i32
    %c0_i32_0 = arith.constant 0 : i32
    return %arg0, %c0_i32 : i32, i32
  }
}

</mosaic_0001>

<bundles_post_ra>
// kernel: quantum_eegnet_forward.1
= control target key start
LH: loop header
LB: loop body
LE: loop exit
PB: predicated region body
PF: predicated region fallthrough
CT: control target
= control target key end

     0   :  { %s17896_s0 = inlined_call_operand.vmem [shape: bf16[32,191], index: 0, kind: input, shape index: {}]   ;;  %s17897_s1 = inlined_call_operand.hbm [shape: bf16[191,1024], index: 1, kind: input, shape index: {}]   ;;  %s17898_s2 = inlined_call_operand.vmem [shape: f32[2,1024], index: 2, kind: input, shape index: {}]   ;;  %s17899_s3 = inlined_call_operand.vmem [shape: bf16[128,128], index: 3, kind: input, shape index: {}]   ;;  %s17900_s4 = inlined_call_operand.vmem [shape: bf16[128,48], index: 4, kind: input, shape index: {}]   ;;  %s17901_s5 = inlined_call_operand.hbm [shape: bf16[128,2048], index: 5, kind: input, shape index: {}]   ;;  %s17902_s6 = inlined_call_operand.vmem [shape: bf16[128,128], index: 6, kind: input, shape index: {}]   ;;  %s17903_s7 = inlined_call_operand.vmem [shape: f32[32,4], index: 7, kind: input, shape index: {}]   ;;  %s17904_s8 = inlined_call_operand.vmem [shape: f32[128,6], index: 8, kind: input, shape index: {}]   ;;  %s17905_s9 = inlined_call_operand.vmem [shape: f32[16,16], index: 9, kind: input, shape index: {}]   ;;  %s17906_s10 = inlined_call_operand.vmem [shape: f32[4,16], index: 10, kind: input, shape index: {}]   ;;  %s17907_s11 = inlined_call_operand.vmem [shape: f32[16,4], index: 11, kind: input, shape index: {}]   ;;  %s17908_s12 = inlined_call_operand.vmem [shape: f32[128,64], index: 12, kind: input, shape index: {}]   ;;  %s17909_s13 = inlined_call_operand.vmem [shape: f32[8,128], index: 13, kind: input, shape index: {}]   ;;  %s17910_s14 = inlined_call_operand.vmem [shape: f32[64,2], index: 14, kind: input, shape index: {}]   ;;  %s17911_s15 = inlined_call_operand.vmem [shape: f32[1,2], index: 15, kind: input, shape index: {}]   ;;  %s17912_s16 = inlined_call_operand.vmem [shape: f32[16,64], index: 16, kind: output, shape index: {0}]   ;;  %s17913_s17 = inlined_call_operand.vmem [shape: f32[16,2], index: 17, kind: output, shape index: {1}]  }
   0x1   :  { %18081 = sst [smem:[#allocation44_spill]] %s17896_s0 }
   0x2   :  { %18082 = sst [smem:[#allocation45_spill]] %s17897_s1 }
   0x3   :  { %18083 = sst [smem:[#allocation46_spill]] %s17898_s2 }
   0x4   :  { %18084 = sst [smem:[#allocation47_spill]] %s17899_s3 }
   0x5   :  { %18085 = sst [smem:[#allocation48_spill]] %s17900_s4 }
   0x6   :  { %18086 = sst [smem:[#allocation49_spill]] %s17911_s15 }
   0x7   :  { %18087 = sst [smem:[#allocation50_spill]] %s17913_s17 }
   0x8   :  { %23 = vsyncpa [#allocation3], 0 }
   0x9   :  { %24 = vsyncpa [#allocation5], 0  ;;  %s13070_s24 = smov 0  }
   0xa LB: > { %18088 = sst [smem:[#allocation8_spill]] %s12926_s24  ;;  %s12928_s25 = smov [#allocation2]   ;;  %s12926_s24 = sphi %s13070_s24, %s30_s24  }
   0xb   : > { %s440_s26 = sshll.u32 %s12928_s25, 4  ;;  %s13076_s27 = sadd.s32 4294967295, %s12926_s24   ;;  %s441_s26 = int_to_ptr.vmem [resolvable:$true] %s440_s26 }
   0xc   : > { %p10866_p0 = scmp.ge.s32.totalorder %s12926_s24, 1  ;;  %p428_p1 = scmp.lt.s32.totalorder %s12926_s24, 3 }
   0xd   : > { %p17915_p3 = scmp.eq.s32.totalorder %s13076_s27, 0  ;;  %s12929_s29 = smov [#allocation4]  }
   0xe   : > { %p13080_p2 = pnand %p10866_p0, %p428_p1  ;;  %s462_s0 = sshll.u32 %s12929_s29, 4  ;;  %s13093_s0 = int_to_ptr.vmem [resolvable:$true] %s462_s0 }
   0xf   : > { %s18091_s1 = sld [smem:[#allocation45_spill]] }
  0x10   : > { %s18089_s28 = scalar_select %p13080_p2, 1, 0 }
  0x11   : > { %p12382_p4 = pneg %p13080_p2 }
  0x13   : > { %p13089_p5 = pnand %p17915_p3, %p12382_p4 }
  0x15   : > { %s12856_s20 = scalar_lea.hbm %s18091_s1, 12288  ;;  %p12858_p7 = pneg %p13089_p5 }
  0x16   : > { %p12857_p6 = scmp.ne.s32.totalorder %s18091_s1, %s12856_s20  ;;  %p12863_p10 = scmp.lt.u32.totalorder %s12856_s20, %s18091_s1 }
  0x18   : > { %p12859_p8 = pnand %p12858_p7, %p12857_p6 }
  0x1a   : > { %p12860_p9 = pneg %p12859_p8 }
  0x1c   : > { %p12865_p11 = pnand %p12863_p10, %p12860_p9 }
  0x1e   : > { %12868 = shalt.err (!%p12865_p11)
}
  0x1f   : > { %s12869_s29 = scalar_lea.vmem %s441_s26, 12288  ;;  %p12877_p1 = scmp.lt.s32.totalorder %s441_s26, %s441_s26 }
  0x20   : > { %p12870_p12 = scmp.ne.s32.totalorder %s441_s26, %s12869_s29  ;;  %p12878_p4 = scmp.lt.s32.totalorder %s12869_s29, %s12869_s29 }
  0x22   : > { %p12872_p13 = pnand %p12870_p12, %p12858_p7  ;;  %p12879_p3 = por %p12878_p4, %p12877_p1 }
  0x24   : > { %p12873_p0 = pneg %p12872_p13 }
  0x26   : > { %p12880_p2 = pnand %p12879_p3, %p12873_p0 }
  0x28   : > { %12883 = shalt.err (!%p12880_p2)
}
  0x29   : > { %s12930_s18 = smov 512   ;;  %s12931_s19 = smov 32  }
  0x2a   : > { %12385 = dma.hbm_to_vmem [thread:$0]  (!%p13089_p5), %s18091_s1, 12288, %s441_s26, [#allocation3], %s12930_s18, %s12930_s18, %s12931_s19  }
  0x2b   : > { %s12884_s25 = scalar_lea.hbm %s17901_s5, 16384 }
  0x2c   : > { %p12885_p6 = scmp.ne.s32.totalorder %s17901_s5, %s12884_s25  ;;  %p12891_p8 = scmp.lt.u32.totalorder %s12884_s25, %s17901_s5 }
  0x2e   : > { %p12887_p2 = pnand %p12885_p6, %p12858_p7 }
  0x30   : > { %p12888_p3 = pneg %p12887_p2 }
  0x32   : > { %p12893_p9 = pnand %p12891_p8, %p12888_p3 }
  0x34   : > { %12896 = shalt.err (!%p12893_p9)
}
  0x35   : > { %s12897_s26 = scalar_lea.vmem %s13093_s0, 16384  ;;  %p12905_p13 = scmp.lt.s32.totalorder %s13093_s0, %s13093_s0 }
  0x36   : > { %p12898_p10 = scmp.ne.s32.totalorder %s13093_s0, %s12897_s26  ;;  %p12906_p0 = scmp.lt.s32.totalorder %s12897_s26, %s12897_s26 }
  0x38   : > { %p12900_p11 = pnand %p12898_p10, %p12858_p7  ;;  %p12907_p1 = por %p12906_p0, %p12905_p13 }
  0x3a   : > { %p12901_p12 = pneg %p12900_p11 }
  0x3c   : > { %p12908_p4 = pnand %p12907_p1, %p12901_p12 }
  0x3e   : > { %12911 = shalt.err (!%p12908_p4)
}
  0x3f   : > { %s12932_s15 = smov 1024   ;;  %s12933_s17 = smov 64  }
  0x40   : > { %12388 = dma.hbm_to_vmem [thread:$0]  (!%p13089_p5), %s17901_s5, 16384, %s13093_s0, [#allocation5], %s12932_s15, %s12932_s15, %s12933_s17  }
  0x41   : > { %p18092_p6 = scmp.ne.s32.totalorder %s18089_s28, 0 }
  0x43   : > { %518 = sbr.rel (%p18092_p6) target bundleno = 3916 (0xf4c), region = 84 }
  0x4a   : > { %p18093_p7 = scmp.eq.s32.totalorder %s13076_s27, 0 }
  0x4c   : > { %12917 = dma.done.wait (%p18093_p7), [#allocation3], 12288   ;;  %p18094_p2 = pmov %p18093_p7 }
  0x4e   : > { %12919 = vsyncadd (%p18094_p2), [#allocation3], 4294955008  ;;  %p18095_p3 = pmov %p18094_p2 }
  0x4f   : > { %p18096_p8 = pmov %p18094_p2 }
  0x50   : > { %12921 = dma.done.wait (%p18095_p3), [#allocation5], 16384  }
  0x51   : > { %12923 = vsyncadd (%p18096_p8), [#allocation5], 4294950912  ;;  %s10873_s30 = sshll.u32 %s13076_s27, 1  ;;  %v612_v0 = vld [vmem:[#allocation2] sm:$0xff]  ;;  %v613_v2 = vld [vmem:[#allocation2 + $0x8] sm:$0xff]  ;;  %s18098_s21 = sld [smem:[#allocation44_spill]] }
  0x52   : > { %v616_v1 = vld [vmem:[#allocation2 + $0x20] sm:$0xff]  ;;  %v617_v4 = vld [vmem:[#allocation2 + $0x28] sm:$0xff]  ;;  %p13155_p5 = scmp.lt.s32.totalorder %s10873_s30, 3  ;;  %vm1189_vm0 = vcmask 515072   ;;  %vm1193_vm1 = vcmask 1046528   ;;  %vm1194_vm2 = vcmask 1047552  }
  0x53   : > { %v10881_v3 = vcombine.high %v612_v0, %v616_v1  ;;  %v10880_v5 = vcombine.low %v612_v0, %v616_v1  ;;  %v620_v6 = vld [vmem:[#allocation2 + $0x40] sm:$0xff]  ;;  %v10883_v8 = vcombine.high %v613_v2, %v617_v4  ;;  %v10882_v9 = vcombine.low %v613_v2, %v617_v4  ;;  %v621_v11 = vld [vmem:[#allocation2 + $0x48] sm:$0xff]  ;;  %s18099_s3 = sld [smem:[#allocation47_spill]]  ;;  %s18101_s2 = sld [smem:[#allocation46_spill]] }
  0x54   : > { %v624_v7 = vld [vmem:[#allocation2 + $0x60] sm:$0xff]  ;;  %v625_v12 = vld [vmem:[#allocation2 + $0x68] sm:$0xff]  ;;  %s18320_s30 = smov (!%p13155_p5, %s10873_s30), 3  ;;  %s18102_s4 = sld [smem:[#allocation48_spill]] }
  0x55   : > { %v10889_v10 = vcombine.high %v620_v6, %v624_v7  ;;  %v628_v13 = vld [vmem:[#allocation2 + $0x80] sm:$0xff]  ;;  %1221 = vmatprep.subr.bf16.mxu0 %v10881_v3  ;;  %v10891_v14 = vcombine.high %v621_v11, %v625_v12  ;;  %v629_v16 = vld [vmem:[#allocation2 + $0x88] sm:$0xff]  ;;  %1264 = vmatprep.subr.bf16.mxu1 %v10883_v8  ;;  %v10888_v18 = vcombine.low %v620_v6, %v624_v7  ;;  %s11377_s0 = sshll.u32 %s18320_s30, 3  ;;  %s12937_s30 = smov 125  }
  0x56   : > { %v632_v15 = vld [vmem:[#allocation2 + $0xa0] sm:$0xff]  ;;  %v633_v17 = vld [vmem:[#allocation2 + $0xa8] sm:$0xff]  ;;  %1222 = vmatpush1.bf16.msra.mxu0 %v10880_v5  ;;  %1265 = vmatpush1.bf16.msra.mxu1 %v10882_v9  ;;  %v10890_v19 = vcombine.low %v621_v11, %v625_v12  ;;  %v12934_v9 = vmov 65535   ;;  %s12938_s28 = smov 127   ;;  %s12940_s19 = smov 124  }
  0x57   : > { %1223 = vmatprep.subr.bf16.mxu0 %v10889_v10  ;;  %v10897_v20 = vcombine.high %v628_v13, %v632_v15  ;;  %1266 = vmatprep.subr.bf16.mxu1 %v10891_v14  ;;  %v10899_v21 = vcombine.high %v629_v16, %v633_v17  ;;  %v636_v22 = vld [vmem:[#allocation2 + $0xc0] sm:$0xff]  ;;  %v637_v24 = vld [vmem:[#allocation2 + $0xc8] sm:$0xff]  ;;  %v10896_v26 = vcombine.low %v628_v13, %v632_v15  ;;  %s13166_s22 = scalar_lea.vmem %s18098_s21, %s11377_s0  ;;  %v1195_v10 = vsel %vm1193_vm1, 4294967295, %v12934_v9  ;;  %v650_v9 = vld [vmem:[#allocation2 + $0x130] sm:$0xff]  ;;  %s12939_s0 = smov 126  }
  0x58   : > { %v640_v23 = vld [vmem:[#allocation2 + $0xe0] sm:$0xff]  ;;  %v641_v25 = vld [vmem:[#allocation2 + $0xe8] sm:$0xff]  ;;  %v10898_v27 = vcombine.low %v629_v16, %v633_v17  ;;  %s12941_s20 = smov 123   ;;  %s12942_s21 = smov 122  }
  0x59   : > { %v10905_v28 = vcombine.high %v636_v22, %v640_v23  ;;  %v10907_v29 = vcombine.high %v637_v24, %v641_v25  ;;  %v644_v30 = vld [vmem:[#allocation2 + $0x100] sm:$0xff]  ;;  %v645_v32 = vld [vmem:[#allocation2 + $0x108] sm:$0xff]  ;;  %v10904_v34 = vcombine.low %v636_v22, %v640_v23  ;;  %v10906_v35 = vcombine.low %v637_v24, %v641_v25  ;;  %s12944_s23 = smov 120   ;;  %s12945_s25 = smov 119  }
  0x5a   : > { %1224 = vmatpush1.bf16.msra.mxu0 %v10888_v18  ;;  %1267 = vmatpush1.bf16.msra.mxu1 %v10890_v19  ;;  %v648_v31 = vld [vmem:[#allocation2 + $0x120] sm:$0xff]  ;;  %v649_v33 = vld [vmem:[#allocation2 + $0x128] sm:$0xff]  ;;  %v13176_v22 = vsel %vm1194_vm2, %v1195_v10, 0  ;;  %v647_v10 = vld [vmem:[#allocation2 + $0x118] sm:$0xff]  ;;  %s12946_s29 = smov 118   ;;  %s12947_s26 = smov 117  }
  0x5b   : > { %1225 = vmatprep.subr.bf16.mxu0 %v10897_v20  ;;  %1268 = vmatprep.subr.bf16.mxu1 %v10899_v21  ;;  %v10913_v36 = vcombine.high %v644_v30, %v648_v31  ;;  %v10915_v37 = vcombine.high %v645_v32, %v649_v33  ;;  %v652_v38 = vld [vmem:[#allocation2 + $0x140] sm:$0xff]  ;;  %v653_v40 = vld [vmem:[#allocation2 + $0x148] sm:$0xff]  ;;  %v10912_v42 = vcombine.low %v644_v30, %v648_v31  ;;  %s12948_s15 = smov 116   ;;  %s12949_s17 = smov 115  }
  0x5c   : > { %v656_v39 = vld [vmem:[#allocation2 + $0x160] sm:$0xff]  ;;  %v657_v41 = vld [vmem:[#allocation2 + $0x168] sm:$0xff]  ;;  %v10914_v44 = vcombine.low %v645_v32, %v649_v33  ;;  %s12950_s24 = smov 114   ;;  %s12951_s18 = smov 113  }
  0x5d   : > { %v13169_v43 = vld [vmem:[%s13166_s22 + $0x4] ss:$8 sps:$4 sm:$0xff]   ;;  %v10921_v45 = vcombine.high %v652_v38, %v656_v39  ;;  %v10923_v46 = vcombine.high %v653_v40, %v657_v41  ;;  %v10920_v51 = vcombine.low %v652_v38, %v656_v39  ;;  %v10922_v52 = vcombine.low %v653_v40, %v657_v41  ;;  %v615_v39 = vld [vmem:[#allocation2 + $0x18] sm:$0xff]  ;;  %s18311_s1 = smov 52   ;;  %p585_p9 = scmp.lt.s32.totalorder %s13076_s27, 1 }
  0x5e   : > { %1226 = vmatpush1.bf16.msra.mxu0 %v10896_v26  ;;  %1269 = vmatpush1.bf16.msra.mxu1 %v10898_v27  ;;  %v660_v47 = vld [vmem:[#allocation2 + $0x180] sm:$0xff]  ;;  %v661_v49 = vld [vmem:[#allocation2 + $0x188] sm:$0xff]  ;;  %v619_v40 = vld [vmem:[#allocation2 + $0x38] sm:$0xff] }
  0x5f   : > { %1227 = vmatprep.subr.bf16.mxu0 %v10905_v28  ;;  %1270 = vmatprep.subr.bf16.mxu1 %v10907_v29  ;;  %v664_v48 = vld [vmem:[#allocation2 + $0x1a0] sm:$0xff]  ;;  %v665_v50 = vld [vmem:[#allocation2 + $0x1a8] sm:$0xff]  ;;  %s18322_s27 = smov (!%p585_p9, %s13076_s27), 1 }
  0x60   : > { %10976 = vmatprep.mubr.msk.bf16.mxu0 %vm1189_vm0, %v13169_v43  ;;  %10977 = vmatprep.mubr.msk.bf16.mxu1 %vm1189_vm0, %v13169_v43  ;;  %v10929_v53 = vcombine.high %v660_v47, %v664_v48  ;;  %v10931_v54 = vcombine.high %v661_v49, %v665_v50  ;;  %v668_v55 = vld [vmem:[#allocation2 + $0x1c0] sm:$0xff]  ;;  %v669_v57 = vld [vmem:[#allocation2 + $0x1c8] sm:$0xff]  ;;  %v10928_v59 = vcombine.low %v660_v47, %v664_v48 }
  0x61   : > { %v672_v56 = vld [vmem:[#allocation2 + $0x1e0] sm:$0xff]  ;;  %v673_v58 = vld [vmem:[#allocation2 + $0x1e8] sm:$0xff]  ;;  %v10930_v60 = vcombine.low %v661_v49, %v665_v50  ;;  %v623_v49 = vld [vmem:[#allocation2 + $0x58] sm:$0xff] }
  0x62   : > { %1228 = vmatpush1.bf16.msra.mxu0 %v10904_v34  ;;  %1271 = vmatpush1.bf16.msra.mxu1 %v10906_v35  ;;  %v10937_v61 = vcombine.high %v668_v55, %v672_v56  ;;  %v10939_v62 = vcombine.high %v669_v57, %v673_v58  ;;  %v676_v63 = vld [vmem:[#allocation2 + $0x200] sm:$0xff]  ;;  %v677_v1 = vld [vmem:[#allocation2 + $0x208] sm:$0xff]  ;;  %v10936_v3 = vcombine.low %v668_v55, %v672_v56  ;;  %v614_v34 = vld [vmem:[#allocation2 + $0x10] sm:$0xff] }
  0x63   : > { %1229 = vmatprep.subr.bf16.mxu0 %v10913_v36  ;;  %1272 = vmatprep.subr.bf16.mxu1 %v10915_v37  ;;  %v680_v0 = vld [vmem:[#allocation2 + $0x220] sm:$0xff]  ;;  %v681_v2 = vld [vmem:[#allocation2 + $0x228] sm:$0xff]  ;;  %v10938_v4 = vcombine.low %v669_v57, %v673_v58  ;;  %v618_v35 = vld [vmem:[#allocation2 + $0x30] sm:$0xff] }
  0x64   : > { %v10945_v5 = vcombine.high %v676_v63, %v680_v0  ;;  %v10947_v6 = vcombine.high %v677_v1, %v681_v2  ;;  %v684_v7 = vld [vmem:[#allocation2 + $0x240] sm:$0xff]  ;;  %v685_v11 = vld [vmem:[#allocation2 + $0x248] sm:$0xff]  ;;  %v10944_v13 = vcombine.low %v676_v63, %v680_v0  ;;  %v10946_v18 = vcombine.low %v677_v1, %v681_v2  ;;  %v627_v50 = vld [vmem:[#allocation2 + $0x78] sm:$0xff] }
  0x65   : > { %v688_v8 = vld [vmem:[#allocation2 + $0x260] sm:$0xff]  ;;  %v689_v12 = vld [vmem:[#allocation2 + $0x268] sm:$0xff]  ;;  %v10885_v48 = vcombine.high %v614_v34, %v618_v35  ;;  %v10895_v55 = vcombine.high %v623_v49, %v627_v50  ;;  %v630_v56 = vld [vmem:[#allocation2 + $0x90] sm:$0xff] }
  0x66   : > { %1230 = vmatpush1.bf16.msra.mxu0 %v10912_v42  ;;  %1273 = vmatpush1.bf16.msra.mxu1 %v10914_v44  ;;  %v692_v14 = vld [vmem:[#allocation2 + $0x280] sm:$0xff]  ;;  %v10953_v19 = vcombine.high %v684_v7, %v688_v8  ;;  %v693_v20 = vld [vmem:[#allocation2 + $0x288] sm:$0xff]  ;;  %v10955_v25 = vcombine.high %v685_v11, %v689_v12  ;;  %v10952_v26 = vcombine.low %v684_v7, %v688_v8  ;;  %v622_v44 = vld [vmem:[#allocation2 + $0x50] sm:$0xff] }
  0x67   : > { %1231 = vmatprep.subr.bf16.mxu0 %v10921_v45  ;;  %1274 = vmatprep.subr.bf16.mxu1 %v10923_v46  ;;  %v696_v15 = vld [vmem:[#allocation2 + $0x2a0] sm:$0xff]  ;;  %v697_v21 = vld [vmem:[#allocation2 + $0x2a8] sm:$0xff]  ;;  %v10954_v27 = vcombine.low %v685_v11, %v689_v12  ;;  %v626_v45 = vld [vmem:[#allocation2 + $0x70] sm:$0xff] }
  0x68   : > { %v700_v16 = vld [vmem:[#allocation2 + $0x2c0] sm:$0xff]  ;;  %v701_v23 = vld [vmem:[#allocation2 + $0x2c8] sm:$0xff]  ;;  %v10961_v28 = vcombine.high %v692_v14, %v696_v15  ;;  %v10963_v30 = vcombine.high %v693_v20, %v697_v21  ;;  %v10960_v32 = vcombine.low %v692_v14, %v696_v15  ;;  %v10962_v36 = vcombine.low %v693_v20, %v697_v21  ;;  %v634_v57 = vld [vmem:[#allocation2 + $0xb0] sm:$0xff] }
  0x69   : > { %v704_v17 = vld [vmem:[#allocation2 + $0x2e0] sm:$0xff]  ;;  %v705_v24 = vld [vmem:[#allocation2 + $0x2e8] sm:$0xff]  ;;  %v631_v58 = vld [vmem:[#allocation2 + $0x98] sm:$0xff] }
  0x6a   : > { %1232 = vmatpush1.bf16.msra.mxu0 %v10920_v51  ;;  %1275 = vmatpush1.bf16.msra.mxu1 %v10922_v52  ;;  %v10969_v29 = vcombine.high %v700_v16, %v704_v17  ;;  %v10971_v31 = vcombine.high %v701_v23, %v705_v24  ;;  %v10968_v33 = vcombine.low %v700_v16, %v704_v17  ;;  %v13183_v47 = vld [vmem:[%s13166_s22] ss:$8 sps:$4 sm:$0xff]   ;;  %v638_v0 = vld [vmem:[#allocation2 + $0xd0] sm:$0xff]  ;;  %v639_v2 = vld [vmem:[#allocation2 + $0xd8] sm:$0xff]  ;;  %s12943_s22 = smov 121  }
  0x6b   : > { %1233 = vmatprep.subr.bf16.mxu0 %v10929_v53  ;;  %1276 = vmatprep.subr.bf16.mxu1 %v10931_v54  ;;  %v10970_v38 = vcombine.low %v701_v23, %v705_v24  ;;  %v10887_v51 = vcombine.high %v615_v39, %v619_v40  ;;  %v10884_v52 = vcombine.low %v614_v34, %v618_v35  ;;  %v642_v1 = vld [vmem:[#allocation2 + $0xf0] sm:$0xff]  ;;  %v651_v11 = vld [vmem:[#allocation2 + $0x138] sm:$0xff] }
  0x6c   : > { %v1201_v37 = vand.u32 %v10969_v29, %v13176_v22  ;;  %v1207_v41 = vand.u32 %v10971_v31, %v13176_v22  ;;  %v1198_v42 = vand.u32 %v10968_v33, %v13176_v22  ;;  %v10886_v53 = vcombine.low %v615_v39, %v619_v40  ;;  %v646_v8 = vld [vmem:[#allocation2 + $0x110] sm:$0xff]  ;;  %v655_v17 = vld [vmem:[#allocation2 + $0x158] sm:$0xff] }
  0x6d   : > { %v1204_v46 = vand.u32 %v10970_v38, %v13176_v22  ;;  %v10893_v54 = vcombine.high %v622_v44, %v626_v45  ;;  %v10908_v12 = vcombine.low %v638_v0, %v642_v1  ;;  %v10917_v14 = vcombine.high %v646_v8, %v650_v9  ;;  %v654_v15 = vld [vmem:[#allocation2 + $0x150] sm:$0xff]  ;;  %v671_v34 = vld [vmem:[#allocation2 + $0x1d8] sm:$0xff] }
  0x6e   : > { %1234 = vmatpush1.bf16.msra.mxu0 %v10928_v59  ;;  %1277 = vmatpush1.bf16.msra.mxu1 %v10930_v60  ;;  %v635_v59 = vld [vmem:[#allocation2 + $0xb8] sm:$0xff]  ;;  %v10892_v60 = vcombine.low %v622_v44, %v626_v45  ;;  %v658_v16 = vld [vmem:[#allocation2 + $0x170] sm:$0xff]  ;;  %v10918_v20 = vcombine.low %v647_v10, %v651_v11 }
  0x6f   : > { %1235 = vmatprep.subr.bf16.mxu0 %v10937_v61  ;;  %1278 = vmatprep.subr.bf16.mxu1 %v10939_v62  ;;  %v10894_v61 = vcombine.low %v623_v49, %v627_v50  ;;  %v10901_v62 = vcombine.high %v630_v56, %v634_v57  ;;  %v10903_v63 = vcombine.high %v631_v58, %v635_v59  ;;  %v662_v24 = vld [vmem:[#allocation2 + $0x190] sm:$0xff]  ;;  %v675_v35 = vld [vmem:[#allocation2 + $0x1f8] sm:$0xff] }
  0x70   : > { %v10925_v21 = vcombine.high %v654_v15, %v658_v16  ;;  %v674_v33 = vld [vmem:[#allocation2 + $0x1f0] sm:$0xff]  ;;  %v10943_v39 = vcombine.high %v671_v34, %v675_v35  ;;  %v683_v44 = vld [vmem:[#allocation2 + $0x238] sm:$0xff] }
  0x71   : > { %v678_v40 = vld [vmem:[#allocation2 + $0x210] sm:$0xff] }
  0x72   : > { %1236 = vmatpush1.bf16.msra.mxu0 %v10936_v3  ;;  %1279 = vmatpush1.bf16.msra.mxu1 %v10938_v4  ;;  %v643_v3 = vld [vmem:[#allocation2 + $0xf8] sm:$0xff]  ;;  %v10900_v4 = vcombine.low %v630_v56, %v634_v57  ;;  %v686_v50 = vld [vmem:[#allocation2 + $0x250] sm:$0xff] }
  0x73   : > { %1237 = vmatprep.subr.bf16.mxu0 %v10945_v5  ;;  %1280 = vmatprep.subr.bf16.mxu1 %v10947_v6  ;;  %v10902_v5 = vcombine.low %v631_v58, %v635_v59  ;;  %v10909_v6 = vcombine.high %v638_v0, %v642_v1  ;;  %v10911_v7 = vcombine.high %v639_v2, %v643_v3  ;;  %v694_v57 = vld [vmem:[#allocation2 + $0x290] sm:$0xff]  ;;  %v703_v0 = vld [vmem:[#allocation2 + $0x2d8] sm:$0xff] }
  0x74   : > { %v698_v58 = vld [vmem:[#allocation2 + $0x2b0] sm:$0xff]  ;;  %v707_v1 = vld [vmem:[#allocation2 + $0x2f8] sm:$0xff] }
  0x76   : > { %1238 = vmatpush1.bf16.msra.mxu0 %v10944_v13  ;;  %1281 = vmatpush1.bf16.msra.mxu1 %v10946_v18  ;;  %v10910_v13 = vcombine.low %v639_v2, %v643_v3  ;;  %v659_v18 = vld [vmem:[#allocation2 + $0x178] sm:$0xff] }
  0x77   : > { %1239 = vmatprep.subr.bf16.mxu0 %v10953_v19  ;;  %1282 = vmatprep.subr.bf16.mxu1 %v10955_v25  ;;  %v10916_v19 = vcombine.low %v646_v8, %v650_v9  ;;  %v10927_v23 = vcombine.high %v655_v17, %v659_v18  ;;  %v666_v25 = vld [vmem:[#allocation2 + $0x1b0] sm:$0xff]  ;;  %v10926_v29 = vcombine.low %v655_v17, %v659_v18 }
  0x78   : > { %v10964_v8 = vcombine.low %v694_v57, %v698_v58  ;;  %v596_v18 = vld [vmem:[%s17904_s8 + $0x10] sm:$0xff] }
  0x7a   : > { %1240 = vmatpush1.bf16.msra.mxu0 %v10952_v26  ;;  %1283 = vmatpush1.bf16.msra.mxu1 %v10954_v27  ;;  %v663_v26 = vld [vmem:[#allocation2 + $0x198] sm:$0xff] }
  0x7b   : > { %1241 = vmatprep.subr.bf16.mxu0 %v10961_v28  ;;  %1284 = vmatprep.subr.bf16.mxu1 %v10963_v30  ;;  %v667_v27 = vld [vmem:[#allocation2 + $0x1b8] sm:$0xff]  ;;  %v10924_v28 = vcombine.low %v654_v15, %v658_v16  ;;  %v10933_v30 = vcombine.high %v662_v24, %v666_v25  ;;  %v12608_v15 = vld [vmem:[%s18099_s3] sm:$0xff]   ;;  %v1395_v16 = vlaneseq }
  0x7c   : > { %v10935_v31 = vcombine.high %v663_v26, %v667_v27 }
  0x7d   : > { %v13200_v17 = vshrl.u32 %v1395_v16, 7 }
  0x7e   : > { %1242 = vmatpush1.bf16.msra.mxu0 %v10960_v32  ;;  %1285 = vmatpush1.bf16.msra.mxu1 %v10962_v36  ;;  %v670_v32 = vld [vmem:[#allocation2 + $0x1d0] sm:$0xff]  ;;  %v10932_v36 = vcombine.low %v662_v24, %v666_v25 }
  0x7f   : > { %1243 = vmatprep.subr.bf16.mxu0 %v1201_v37  ;;  %1286 = vmatprep.subr.bf16.mxu1 %v1207_v41  ;;  %v10934_v37 = vcombine.low %v663_v26, %v667_v27  ;;  %v10941_v38 = vcombine.high %v670_v32, %v674_v33  ;;  %v682_v41 = vld [vmem:[#allocation2 + $0x230] sm:$0xff]  ;;  %v10940_v45 = vcombine.low %v670_v32, %v674_v33  ;;  %v1405_v24 = vsub.s32 2, %v13200_v17  ;;  %v13236_v27 = vld [vmem:[%s18101_s2 + $0x1] ss:$2 sm:$0xff] }
  0x80   : > { %v1401_v25 = vsub.s32 1, %v13200_v17  ;;  %v1409_v26 = vsub.s32 3, %v13200_v17 }
  0x82   : > { %1244 = vmatpush1.bf16.msra.mxu0 %v1198_v42  ;;  %1287 = vmatpush1.bf16.msra.mxu1 %v1204_v46  ;;  %v679_v42 = vld [vmem:[#allocation2 + $0x218] sm:$0xff]  ;;  %v10942_v46 = vcombine.low %v671_v34, %v675_v35  ;;  %v17924_v34 = vmov 1  }
  0x83   : > { %1307 = vmatprep.subr.bf16.mxu0 %v10885_v48  ;;  %1350 = vmatprep.subr.bf16.mxu1 %v10887_v51  ;;  %v10949_v48 = vcombine.high %v678_v40, %v682_v41  ;;  %v10951_v49 = vcombine.high %v679_v42, %v683_v44  ;;  %v690_v51 = vld [vmem:[#allocation2 + $0x270] sm:$0xff] }
  0x84   : > { %v10957_v56 = vcombine.high %v686_v50, %v690_v51  ;;  %v10956_v2 = vcombine.low %v686_v50, %v690_v51 }
  0x85   : > { %1254 = vmatmul.mubr.bf16.vlgmr.msra.gmra.mrb[0].mxu0 %v13183_v47  ;;  %1297 = vmatmul.mubr.bf16.vlgmr.msra.gmra.mrb[0].mxu1 %v13183_v47 }
  0x86   : > { %1308 = vmatpush1.bf16.msra.mxu0 %v10884_v52  ;;  %1351 = vmatpush1.bf16.msra.mxu1 %v10886_v53  ;;  %v687_v52 = vld [vmem:[#allocation2 + $0x258] sm:$0xff] }
  0x87   : > { %1309 = vmatprep.subr.bf16.mxu0 %v10893_v54  ;;  %1352 = vmatprep.subr.bf16.mxu1 %v10895_v55  ;;  %v691_v53 = vld [vmem:[#allocation2 + $0x278] sm:$0xff]  ;;  %v10948_v54 = vcombine.low %v678_v40, %v682_v41  ;;  %v10950_v55 = vcombine.low %v679_v42, %v683_v44  ;;  %v1469_v42 = vrot.slane %v13236_v27, %v1409_v26 }
  0x88   : > { %10978 = vmatprep.mubr.msk.bf16.mxu0 %vm1189_vm0, %v13169_v43  ;;  %10979 = vmatprep.mubr.msk.bf16.mxu1 %vm1189_vm0, %v13169_v43  ;;  %v10919_v43 = vcombine.high %v647_v10, %v651_v11  ;;  %v10959_v59 = vcombine.high %v687_v52, %v691_v53  ;;  %v10958_v3 = vcombine.low %v687_v52, %v691_v53 }
  0x8a   : > { %1310 = vmatpush1.bf16.msra.mxu0 %v10892_v60  ;;  %1353 = vmatpush1.bf16.msra.mxu1 %v10894_v61  ;;  %v695_v60 = vld [vmem:[#allocation2 + $0x298] sm:$0xff]  ;;  %v702_v61 = vld [vmem:[#allocation2 + $0x2d0] sm:$0xff] }
  0x8b   : > { %1311 = vmatprep.subr.bf16.mxu0 %v10901_v62  ;;  %1354 = vmatprep.subr.bf16.mxu1 %v10903_v63  ;;  %v706_v62 = vld [vmem:[#allocation2 + $0x2f0] sm:$0xff]  ;;  %v699_v63 = vld [vmem:[#allocation2 + $0x2b8] sm:$0xff] }
  0x8c   : > { %v10972_v9 = vcombine.low %v702_v61, %v706_v62  ;;  %v10966_v10 = vcombine.low %v695_v60, %v699_v63 }
  0x8e   : > { %1312 = vmatpush1.bf16.msra.mxu0 %v10900_v4  ;;  %1355 = vmatpush1.bf16.msra.mxu1 %v10902_v5  ;;  %v10965_v4 = vcombine.high %v694_v57, %v698_v58  ;;  %v10973_v5 = vcombine.high %v702_v61, %v706_v62  ;;  %v13270_v58 = vld [vmem:[%s17904_s8 + $0x68] sm:$0xff] }
  0x8f   : > { %1313 = vmatprep.subr.bf16.mxu0 %v10909_v6  ;;  %1356 = vmatprep.subr.bf16.mxu1 %v10911_v7  ;;  %v10967_v6 = vcombine.high %v695_v60, %v699_v63  ;;  %v10975_v7 = vcombine.high %v703_v0, %v707_v1 }
  0x90   : > { %v1213_v11 = vand.u32 %v10973_v5, %v13176_v22 }
  0x92   : > { %1314 = vmatpush1.bf16.msra.mxu0 %v10908_v12  ;;  %1357 = vmatpush1.bf16.msra.mxu1 %v10910_v13  ;;  %v10974_v12 = vcombine.low %v703_v0, %v707_v1  ;;  %v1219_v13 = vand.u32 %v10975_v7, %v13176_v22  ;;  %v598_v1 = vld [vmem:[%s17904_s8 + $0x20] sm:$0xff] }
  0x93   : > { %1315 = vmatprep.subr.bf16.mxu0 %v10917_v14  ;;  %1358 = vmatprep.subr.bf16.mxu1 %v10919_v43  ;;  %v1210_v14 = vand.u32 %v10972_v9, %v13176_v22 }
  0x94   : > { %v1216_v43 = vand.u32 %v10974_v12, %v13176_v22  ;;  %v13208_v22 = vld [vmem:[%s17904_s8] sm:$0xff] }
  0x96   : > { %1316 = vmatpush1.bf16.msra.mxu0 %v10916_v19  ;;  %1359 = vmatpush1.bf16.msra.mxu1 %v10918_v20  ;;  %v17922_v19 = vmov 0   ;;  %v595_v20 = vld [vmem:[%s17904_s8 + $0x8] sm:$0xff] }
  0x97   : > { %1317 = vmatprep.subr.bf16.mxu0 %v10925_v21  ;;  %1360 = vmatprep.subr.bf16.mxu1 %v10927_v23  ;;  %v13222_v21 = vsub.s32 0, %v13200_v17  ;;  %v13227_v23 = vld [vmem:[%s18101_s2] ss:$2 sm:$0xff]  ;;  %s18309_s2 = smov 60  }
  0x98   : > { %12454 = vset.pattern.permute.xlu1 %v17922_v19  ;;  %12453 = vset.pattern.permute.xlu0 %v17922_v19  ;;  %v1410_v33 = vrot.slane %v13227_v23, %v1409_v26 }
  0x99   : > { %1787 = vperm.xlu1 %12454, %v596_v18   ;;  %1777 = vperm.xlu0 %12453, %v13208_v22   ;;  %18100 = vst [vmem:[#allocation9_spill] sm:$0xff] %v13222_v21  ;;  %v1457_v32 = vrot.slane %v13236_v27, %v13222_v21 }
  0x9a   : > { %1318 = vmatpush1.bf16.msra.mxu0 %v10924_v28  ;;  %1361 = vmatpush1.bf16.msra.mxu1 %v10926_v29  ;;  %v13241_v28 = vld [vmem:[%s17904_s8 + $0x28] sm:$0xff]  ;;  %v1398_v29 = vrot.slane %v13227_v23, %v13222_v21 }
  0x9b   : > { %1319 = vmatprep.subr.bf16.mxu0 %v10933_v30  ;;  %1362 = vmatprep.subr.bf16.mxu1 %v10935_v31  ;;  %v1406_v30 = vrot.slane %v13227_v23, %v1405_v24  ;;  %v1402_v31 = vrot.slane %v13227_v23, %v1401_v25 }
  0x9d   : > { %1782 = vperm.xlu0 %12453, %v595_v20  }
  0x9e   : > { %1320 = vmatpush1.bf16.msra.mxu0 %v10932_v36  ;;  %1363 = vmatpush1.bf16.msra.mxu1 %v10934_v37  ;;  %v1465_v36 = vrot.slane %v13236_v27, %v1405_v24  ;;  %v1461_v37 = vrot.slane %v13236_v27, %v1401_v25 }
  0x9f   : > { %1321 = vmatprep.subr.bf16.mxu0 %v10941_v38  ;;  %1364 = vmatprep.subr.bf16.mxu1 %v10943_v39  ;;  %v13257_v38 = vld [vmem:[%s17904_s8 + $0x48] sm:$0xff] }
  0xa1   : > { %1802 = vperm.xlu0 %12453, %v13241_v28  }
  0xa2   : > { %1322 = vmatpush1.bf16.msra.mxu0 %v10940_v45  ;;  %1365 = vmatpush1.bf16.msra.mxu1 %v10942_v46 }
  0xa3   : > { %1323 = vmatprep.subr.bf16.mxu0 %v10949_v48  ;;  %1366 = vmatprep.subr.bf16.mxu1 %v10951_v49 }
  0xa5   : > { %1822 = vperm.xlu0 %12453, %v13257_v38  }
  0xa6   : > { %1324 = vmatpush1.bf16.msra.mxu0 %v10948_v54  ;;  %1367 = vmatpush1.bf16.msra.mxu1 %v10950_v55 }
  0xa7   : > { %1325 = vmatprep.subr.bf16.mxu0 %v10957_v56  ;;  %1368 = vmatprep.subr.bf16.mxu1 %v10959_v59 }
  0xa9   : > { %1842 = vperm.xlu0 %12453, %v13270_v58  }
  0xaa   : > { %1326 = vmatpush1.bf16.msra.mxu0 %v10956_v2  ;;  %1369 = vmatpush1.bf16.msra.mxu1 %v10958_v3 }
  0xab   : > { %1327 = vmatprep.subr.bf16.mxu0 %v10965_v4  ;;  %1370 = vmatprep.subr.bf16.mxu1 %v10967_v6 }
  0xad   : > { %12461 = vset.pattern.permute.xlu0 %v17924_v34 }
  0xae   : > { %1328 = vmatpush1.bf16.msra.mxu0 %v10964_v8  ;;  %1371 = vmatpush1.bf16.msra.mxu1 %v10966_v10 }
  0xaf   : > { %1329 = vmatprep.subr.bf16.mxu0 %v1213_v11  ;;  %1372 = vmatprep.subr.bf16.mxu1 %v1219_v13  ;;  %v600_v13 = vld [vmem:[%s17904_s8 + $0x30] sm:$0xff] }
  0xb0   : > { %1872 = vperm.xlu0 %12461, %v13208_v22  }
  0xb2   : > { %1330 = vmatpush1.bf16.msra.mxu0 %v1210_v14  ;;  %1373 = vmatpush1.bf16.msra.mxu1 %v1216_v43 }
  0xb5   : > { %1340 = vmatmul.mubr.bf16.vlgmr.msra.gmra.mrb[4].mxu0 %v13183_v47  ;;  %1383 = vmatmul.mubr.bf16.vlgmr.msra.gmra.mrb[4].mxu1 %v13183_v47  ;;  %v13216_v47 = vld [vmem:[%s17904_s8 + $0x18] sm:$0xff] }
  0xb6   : > { %12036 = vmatprep.mubr.bf16.mxu0 %v12608_v15  ;;  %1792 = vperm.xlu1 %12454, %v13216_v47  }
  0xb7   : > { %1884 = vperm.xlu0 %12461, %v13216_v47  }
  0xba   : > { %12455 = vset.pattern.permute.xlu1 %v17924_v34 }
  0xbb   : > { %1876 = vperm.xlu1 %12455, %v595_v20   ;;  %v601_v20 = vld [vmem:[%s17904_s8 + $0x38] sm:$0xff]  ;;  %1888 = vperm.xlu0 %12461, %v598_v1  }
  0xbf   : > { %1880 = vperm.xlu1 %12455, %v596_v18   ;;  %1900 = vperm.xlu0 %12461, %v601_v20  }
  0xc3   : > { %12456 = vset.pattern.permute.xlu1 %v17922_v19 }
  0xc4   : > { %1797 = vperm.xlu1 %12456, %v598_v1   ;;  %v1417_v1 = vsub.s32 5, %v13200_v17 }
  0xc8   : > { %1807 = vperm.xlu1 %12456, %v600_v13  }
  0xcc   : > { %1812 = vperm.xlu1 %12456, %v601_v20  }
  0xd0   : > { %12457 = vset.pattern.permute.xlu1 %v17924_v34 }
  0xd1   : > { %1892 = vperm.xlu1 %12457, %v13241_v28  }
  0xd5   : > { %1896 = vperm.xlu1 %12457, %v600_v13  }
  0xd9   : > { %12458 = vset.pattern.permute.xlu1 %v17922_v19 }
 0x158   : > { %v1255_v35 = vpop.f32.mrb[0].mxu0  ;;  %v1298_v40 = vpop.f32.mrb[0].mxu1 }
 0x159   : > { %v1435_v39 = vmul.f32 %v1398_v29, %v1255_v35  ;;  %v1257_v41 = vpop.f32.mrb[1].mxu0  ;;  %v1437_v44 = vmul.f32 %v1406_v30, %v1298_v40  ;;  %v1300_v46 = vpop.f32.mrb[1].mxu1 }
 0x15a   : > { %v1436_v45 = vmul.f32 %v1402_v31, %v1257_v41  ;;  %v1259_v48 = vpop.f32.mrb[2].mxu0  ;;  %v1438_v50 = vmul.f32 %v1410_v33, %v1300_v46  ;;  %v1302_v52 = vpop.f32.mrb[2].mxu1 }
 0x15b   : > { %v13260_v49 = vadd.f32 %v1457_v32, %v1435_v39  ;;  %v1443_v51 = vmul.f32 %v1398_v29, %v1259_v48  ;;  %v1261_v53 = vpop.f32.mrb[3].mxu0  ;;  %v13263_v54 = vadd.f32 %v1465_v36, %v1437_v44  ;;  %v1445_v56 = vmul.f32 %v1406_v30, %v1302_v52  ;;  %v1304_v57 = vpop.f32.mrb[3].mxu1  ;;  %v602_v48 = vld [vmem:[%s17904_s8 + $0x40] sm:$0xff] }
 0x15c   : > { %v13265_v55 = vadd.f32 %v1461_v37, %v1436_v45  ;;  %v13273_v60 = vadd.f32 %v1469_v42, %v1438_v50  ;;  %v1444_v62 = vmul.f32 %v1402_v31, %v1261_v53  ;;  %v1446_v10 = vmul.f32 %v1410_v33, %v1304_v57  ;;  %1904 = vperm.xlu0 %12461, %v602_v48  }
 0x15d   : > { %v1526_v59 = vmin.f32 %v13260_v49, 0.0  ;;  %v13275_v61 = vadd.f32 %v1457_v32, %v1443_v51  ;;  %v1528_v63 = vmin.f32 %v13263_v54, 0.0  ;;  %v1504_v7 = vadd.f32 %v1465_v36, %v1445_v56  ;;  %1817 = vperm.xlu1 %12458, %v602_v48  }
 0x15e   : > { %v1527_v0 = vmin.f32 %v13265_v55, 0.0  ;;  %v1529_v3 = vmin.f32 %v13273_v60, 0.0  ;;  %v1503_v9 = vadd.f32 %v1461_v37, %v1444_v62  ;;  %v1505_v43 = vadd.f32 %v1469_v42, %v1446_v10  ;;  %v13328_v62 = vld [vmem:[%s17904_s8 + $0x78] sm:$0xff] }
 0x15f   : > { %v1542_v2 = vmul.f32 1.442695, %v1526_v59  ;;  %v1546_v4 = vmul.f32 1.442695, %v1528_v63  ;;  %v1534_v6 = vmin.f32 %v13275_v61, 0.0  ;;  %v1536_v12 = vmin.f32 %v1504_v7, 0.0 }
 0x160   : > { %v1544_v5 = vmul.f32 1.442695, %v1527_v0  ;;  %v1548_v8 = vmul.f32 1.442695, %v1529_v3  ;;  %v1535_v14 = vmin.f32 %v1503_v9, 0.0  ;;  %v1537_v18 = vmin.f32 %v1505_v43, 0.0 }
 0x161   : > { %12632 = vpow2.f32 %v1542_v2  ;;  %v1558_v11 = vmul.f32 1.442695, %v1534_v6  ;;  %v1562_v15 = vmul.f32 1.442695, %v1536_v12  ;;  %vm1510_vm3 = vcmp.gt.f32.partialorder %v13260_v49, 0.0  ;;  %v604_v59 = vld [vmem:[%s17904_s8 + $0x50] sm:$0xff] }
 0x162   : > { %12634 = vpow2.f32 %v1546_v4  ;;  %v1560_v16 = vmul.f32 1.442695, %v1535_v14  ;;  %v1564_v24 = vmul.f32 1.442695, %v1537_v18  ;;  %vm1512_vm4 = vcmp.gt.f32.partialorder %v13263_v54, 0.0  ;;  %1827 = vperm.xlu1 %12458, %v604_v59  }
 0x163   : > { %12636 = vpow2.f32 %v1544_v5  ;;  %vm1511_vm5 = vcmp.gt.f32.partialorder %v13265_v55, 0.0  ;;  %vm1518_vm6 = vcmp.gt.f32.partialorder %v13275_v61, 0.0  ;;  %vm1520_vm7 = vcmp.gt.f32.partialorder %v1504_v7, 0.0 }
 0x164   : > { %12638 = vpow2.f32 %v1548_v8  ;;  %vm1519_vm8 = vcmp.gt.f32.partialorder %v1503_v9, 0.0  ;;  %vm1513_vm9 = vcmp.gt.f32.partialorder %v13273_v60, 0.0  ;;  %vm1521_vm10 = vcmp.gt.f32.partialorder %v1505_v43, 0.0 }
 0x165   : > { %12640 = vpow2.f32 %v1558_v11  ;;  %v1413_v63 = vsub.s32 4, %v13200_v17  ;;  %v1421_v0 = vsub.s32 6, %v13200_v17  ;;  %v1425_v2 = vsub.s32 7, %v13200_v17 }
 0x166   : > { %12642 = vpow2.f32 %v1562_v15  ;;  %v1418_v5 = vrot.slane %v13227_v23, %v1417_v1  ;;  %v1477_v10 = vrot.slane %v13236_v27, %v1417_v1 }
 0x167   : > { %12644 = vpow2.f32 %v1560_v16  ;;  %v1414_v3 = vrot.slane %v13227_v23, %v1413_v63  ;;  %v1422_v4 = vrot.slane %v13227_v23, %v1421_v0  ;;  %v1473_v6 = vrot.slane %v13236_v27, %v1413_v63 }
 0x168   : > { %12646 = vpow2.f32 %v1564_v24 }
 0x16b   : > { %v12633_v25 = vpop.eup %12632 }
 0x16c   : > { %v12635_v26 = vpop.eup %12634  ;;  %v10981_v30 = vadd.f32 -1.0, %v12633_v25 }
 0x16d   : > { %v12637_v29 = vpop.eup %12636  ;;  %v10983_v32 = vadd.f32 -1.0, %v12635_v26 }
 0x16e   : > { %v12639_v22 = vpop.eup %12638  ;;  %v10982_v35 = vadd.f32 -1.0, %v12637_v29  ;;  %v1590_v39 = vsel %vm1510_vm3, %v13260_v49, %v10981_v30 }
 0x16f   : > { %v12641_v31 = vpop.eup %12640  ;;  %v10984_v41 = vadd.f32 -1.0, %v12639_v22  ;;  %v1592_v45 = vsel %vm1512_vm4, %v13263_v54, %v10983_v32  ;;  %v605_v54 = vld [vmem:[%s17904_s8 + $0x58] sm:$0xff] }
 0x170   : > { %v12643_v33 = vpop.eup %12642  ;;  %v10989_v47 = vadd.f32 -1.0, %v12641_v31  ;;  %v1591_v50 = vsel %vm1511_vm5, %v13265_v55, %v10982_v35  ;;  %1916 = vperm.xlu0 %12461, %v605_v54   ;;  %1832 = vperm.xlu1 %12458, %v605_v54   ;;  %v608_v35 = vld [vmem:[%s17904_s8 + $0x70] sm:$0xff] }
 0x171   : > { %v12645_v36 = vpop.eup %12644  ;;  %v10991_v37 = vadd.f32 -1.0, %v12643_v33  ;;  %v1593_v56 = vsel %vm1513_vm9, %v13273_v60, %v10984_v41  ;;  %v12616_v60 = vld [vmem:[%s18102_s4] sm:$0xff]  }
 0x172   : > { %v1598_v28 = vsel %vm1518_vm6, %v13275_v61, %v10989_v47  ;;  %v10990_v40 = vadd.f32 -1.0, %v12645_v36  ;;  %v12647_v42 = vpop.eup %12646  ;;  %v606_v61 = vld [vmem:[%s17904_s8 + $0x60] sm:$0xff]  ;;  %12052 = vmatprep.subr.bf16.mxu1 %v12616_v60 }
 0x173   : > { %v1606_v44 = vpack.c.bf16 %v1598_v28, %v1590_v39  ;;  %v1600_v46 = vsel %vm1520_vm7, %v1504_v7, %v10991_v37  ;;  %v10992_v52 = vadd.f32 -1.0, %v12647_v42  ;;  %12053 = vmatpush3.bf16.msra.mxu1 %v12616_v60  ;;  %v1426_v7 = vrot.slane %v13227_v23, %v1425_v2 }
 0x174   : > { %v1599_v49 = vsel %vm1519_vm8, %v1503_v9, %v10990_v40  ;;  %v1608_v51 = vpack.c.bf16 %v1600_v46, %v1592_v45  ;;  %1920 = vperm.xlu0 %12461, %v606_v61   ;;  %12459 = vset.pattern.permute.xlu1 %v17924_v34  ;;  %v1481_v9 = vrot.slane %v13236_v27, %v1421_v0 }
 0x175   : > { %12020 = vmatprep.subr.bf16.mxu0 %v1606_v44  ;;  %v1607_v53 = vpack.c.bf16 %v1599_v49, %v1591_v50  ;;  %v1601_v57 = vsel %vm1521_vm10, %v1505_v43, %v10992_v52  ;;  %1908 = vperm.xlu1 %12459, %v13257_v38   ;;  %v1485_v38 = vrot.slane %v13236_v27, %v1425_v2 }
 0x176   : > { %12021 = vmatpush3.bf16.msra.mxu0 %v1606_v44  ;;  %v1609_v55 = vpack.c.bf16 %v1601_v57, %v1593_v56 }
 0x177   : > { %12022 = vmatprep.subr.bf16.mxu0 %v1607_v53 }
 0x178   : > { %1932 = vperm.xlu0 %12461, %v13328_v62  }
 0x179   : > { %1912 = vperm.xlu1 %12459, %v604_v59  }
 0x17a   : > { %12023 = vmatpush3.bf16.msra.mxu0 %v1607_v53 }
 0x17b   : > { %12024 = vmatprep.subr.bf16.mxu0 %v1608_v51 }
 0x17d   : > { %12460 = vset.pattern.permute.xlu1 %v17922_v19 }
 0x17e   : > { %12025 = vmatpush3.bf16.msra.mxu0 %v1608_v51  ;;  %1837 = vperm.xlu1 %12460, %v606_v61  }
 0x17f   : > { %12026 = vmatprep.subr.bf16.mxu0 %v1609_v55 }
 0x182   : > { %12027 = vmatpush3.bf16.msra.mxu0 %v1609_v55  ;;  %1847 = vperm.xlu1 %12460, %v608_v35  }
 0x186   : > { %1852 = vperm.xlu1 %12460, %v13328_v62  }
 0x188   : > { %v1341_v8 = vpop.f32.mrb[4].mxu0  ;;  %v1384_v11 = vpop.f32.mrb[4].mxu1 }
 0x189   : > { %v1439_v17 = vmul.f32 %v1414_v3, %v1341_v8  ;;  %v1343_v12 = vpop.f32.mrb[5].mxu0  ;;  %v1441_v13 = vmul.f32 %v1422_v4, %v1384_v11  ;;  %v1386_v43 = vpop.f32.mrb[5].mxu1 }
 0x18a   : > { %v1440_v14 = vmul.f32 %v1418_v5, %v1343_v12  ;;  %v1345_v15 = vpop.f32.mrb[6].mxu0  ;;  %v1442_v18 = vmul.f32 %v1426_v7, %v1386_v43  ;;  %v1388_v23 = vpop.f32.mrb[6].mxu1  ;;  %12462 = vset.pattern.permute.xlu1 %v17924_v34 }
 0x18b   : > { %v13345_v16 = vadd.f32 %v1473_v6, %v1439_v17  ;;  %v1447_v20 = vmul.f32 %v1414_v3, %v1345_v15  ;;  %v1347_v24 = vpop.f32.mrb[7].mxu0  ;;  %v13347_v25 = vadd.f32 %v1481_v9, %v1441_v13  ;;  %v1449_v29 = vmul.f32 %v1422_v4, %v1388_v23  ;;  %v1390_v22 = vpop.f32.mrb[7].mxu1  ;;  %1924 = vperm.xlu1 %12462, %v13270_v58   ;;  %v12612_v23 = vld [vmem:[%s18099_s3 + $0x20] sm:$0xff]  }
 0x18c   : > { %v13349_v26 = vadd.f32 %v1477_v10, %v1440_v14  ;;  %v13353_v30 = vadd.f32 %v1485_v38, %v1442_v18  ;;  %v1448_v32 = vmul.f32 %v1418_v5, %v1347_v24  ;;  %v1450_v45 = vmul.f32 %v1426_v7, %v1390_v22  ;;  %v12610_v18 = vld [vmem:[%s18099_s3 + $0x10] sm:$0xff]   ;;  %v12613_v24 = vld [vmem:[%s18099_s3 + $0x28] sm:$0xff]  }
 0x18d   : > { %v1530_v27 = vmin.f32 %v13345_v16, 0.0  ;;  %v1506_v31 = vadd.f32 %v1473_v6, %v1447_v20  ;;  %v1532_v33 = vmin.f32 %v13347_v25, 0.0  ;;  %v1508_v41 = vadd.f32 %v1481_v9, %v1449_v29  ;;  %v12611_v20 = vld [vmem:[%s18099_s3 + $0x18] sm:$0xff]   ;;  %v12617_v29 = vld [vmem:[%s18102_s4 + $0x8] sm:$0xff]   ;;  %v12618_v22 = vld [vmem:[%s18102_s4 + $0x10] sm:$0xff]  }
 0x18e   : > { %v1531_v47 = vmin.f32 %v13349_v26, 0.0  ;;  %v1533_v37 = vmin.f32 %v13353_v30, 0.0  ;;  %v1507_v44 = vadd.f32 %v1477_v10, %v1448_v32  ;;  %v1509_v49 = vadd.f32 %v1485_v38, %v1450_v45  ;;  %12054 = vmatprep.subr.bf16.mxu1 %v12617_v29  ;;  %v12622_v32 = vld [vmem:[%s18102_s4 + $0x30] sm:$0xff]  }
 0x18f   : > { %v1550_v36 = vmul.f32 1.442695, %v1530_v27  ;;  %v1554_v39 = vmul.f32 1.442695, %v1532_v33  ;;  %v1538_v40 = vmin.f32 %v1506_v31, 0.0  ;;  %v1540_v48 = vmin.f32 %v1508_v41, 0.0  ;;  %1928 = vperm.xlu1 %12462, %v608_v35   ;;  %12055 = vmatpush3.bf16.msra.mxu1 %v12617_v29 }
 0x190   : > { %v1552_v28 = vmul.f32 1.442695, %v1531_v47  ;;  %v1556_v42 = vmul.f32 1.442695, %v1533_v37  ;;  %v1539_v50 = vmin.f32 %v1507_v44, 0.0  ;;  %v1541_v53 = vmin.f32 %v1509_v49, 0.0  ;;  %12056 = vmatprep.subr.bf16.mxu1 %v12618_v22  ;;  %v1788_v47 = vpop.permute.xlu1 %1787 }
 0x191   : > { %12648 = vpow2.f32 %v1550_v36  ;;  %v1566_v46 = vmul.f32 1.442695, %v1538_v40  ;;  %v1570_v51 = vmul.f32 1.442695, %v1540_v48  ;;  %vm1514_vm11 = vcmp.gt.f32.partialorder %v13345_v16, 0.0  ;;  %v12619_v27 = vld [vmem:[%s18102_s4 + $0x18] sm:$0xff]  }
 0x192   : > { %12650 = vpow2.f32 %v1554_v39  ;;  %v1568_v52 = vmul.f32 1.442695, %v1539_v50  ;;  %v1572_v54 = vmul.f32 1.442695, %v1541_v53  ;;  %vm1516_vm12 = vcmp.gt.f32.partialorder %v13347_v25, 0.0  ;;  %v12623_v33 = vld [vmem:[%s18102_s4 + $0x38] sm:$0xff]  }
 0x193   : > { %12652 = vpow2.f32 %v1552_v28  ;;  %vm1515_vm13 = vcmp.gt.f32.partialorder %v13349_v26, 0.0  ;;  %vm1522_vm14 = vcmp.gt.f32.partialorder %v1506_v31, 0.0  ;;  %vm1524_vm15 = vcmp.gt.f32.partialorder %v1508_v41, 0.0  ;;  %12057 = vmatpush3.bf16.msra.mxu1 %v12618_v22 }
 0x194   : > { %12654 = vpow2.f32 %v1556_v42  ;;  %vm1523_vm0 = vcmp.gt.f32.partialorder %v1507_v44, 0.0  ;;  %vm1517_vm1 = vcmp.gt.f32.partialorder %v13353_v30, 0.0  ;;  %vm1525_vm2 = vcmp.gt.f32.partialorder %v1509_v49, 0.0  ;;  %12058 = vmatprep.subr.bf16.mxu1 %v12619_v27  ;;  %v1793_v35 = vpop.permute.xlu1 %1792 }
 0x195   : > { %12656 = vpow2.f32 %v1566_v46 }
 0x196   : > { %12658 = vpow2.f32 %v1570_v51 }
 0x197   : > { %12660 = vpow2.f32 %v1568_v52  ;;  %12059 = vmatpush3.bf16.msra.mxu1 %v12619_v27 }
 0x198   : > { %12662 = vpow2.f32 %v1572_v54  ;;  %v1877_v36 = vpop.permute.xlu1 %1876 }
 0x19b   : > { %v12649_v56 = vpop.eup %12648 }
 0x19c   : > { %v12651_v57 = vpop.eup %12650  ;;  %v10985_v61 = vadd.f32 -1.0, %v12649_v56  ;;  %v1881_v37 = vpop.permute.xlu1 %1880 }
 0x19d   : > { %v12653_v55 = vpop.eup %12652  ;;  %v10987_v63 = vadd.f32 -1.0, %v12651_v57 }
 0x19e   : > { %v12655_v59 = vpop.eup %12654  ;;  %v10986_v1 = vadd.f32 -1.0, %v12653_v55  ;;  %v1594_v3 = vsel %vm1514_vm11, %v13345_v16, %v10985_v61  ;;  %v12609_v16 = vld [vmem:[%s18099_s3 + $0x8] sm:$0xff]  }
 0x19f   : > { %v12657_v60 = vpop.eup %12656  ;;  %v10988_v6 = vadd.f32 -1.0, %v12655_v59  ;;  %v1596_v9 = vsel %vm1516_vm12, %v13347_v25, %v10987_v63  ;;  %v12614_v25 = vld [vmem:[%s18099_s3 + $0x30] sm:$0xff]  }
 0x1a0   : > { %v12659_v0 = vpop.eup %12658  ;;  %v10993_v62 = vadd.f32 -1.0, %v12657_v60  ;;  %v1595_v17 = vsel %vm1515_vm13, %v13349_v26, %v10986_v1  ;;  %v12615_v26 = vld [vmem:[%s18099_s3 + $0x38] sm:$0xff]   ;;  %v1798_v39 = vpop.permute.xlu1 %1797 }
 0x1a1   : > { %v12661_v2 = vpop.eup %12660  ;;  %v10995_v58 = vadd.f32 -1.0, %v12659_v0  ;;  %v1597_v14 = vsel %vm1517_vm1, %v13353_v30, %v10988_v6  ;;  %v12620_v30 = vld [vmem:[%s18102_s4 + $0x20] sm:$0xff]  }
 0x1a2   : > { %v1602_v4 = vsel %vm1522_vm14, %v1506_v31, %v10993_v62  ;;  %v10994_v5 = vadd.f32 -1.0, %v12661_v2  ;;  %v12663_v7 = vpop.eup %12662  ;;  %12060 = vmatprep.subr.bf16.mxu1 %v12620_v30  ;;  %v12621_v31 = vld [vmem:[%s18102_s4 + $0x28] sm:$0xff]  }
 0x1a3   : > { %v1610_v8 = vpack.c.bf16 %v1602_v4, %v1594_v3  ;;  %v1604_v10 = vsel %vm1524_vm15, %v1508_v41, %v10995_v58  ;;  %v10996_v38 = vadd.f32 -1.0, %v12663_v7  ;;  %12061 = vmatpush3.bf16.msra.mxu1 %v12620_v30  ;;  %v1778_v41 = vpop.permute.xlu0 %1777 }
 0x1a4   : > { %v1603_v11 = vsel %vm1523_vm0, %v1507_v44, %v10994_v5  ;;  %v1612_v12 = vpack.c.bf16 %v1604_v10, %v1596_v9  ;;  %12062 = vmatprep.subr.bf16.mxu1 %v12621_v31  ;;  %v1808_v28 = vpop.permute.xlu1 %1807 }
 0x1a5   : > { %12028 = vmatprep.subr.bf16.mxu0 %v1610_v8  ;;  %v1611_v13 = vpack.c.bf16 %v1603_v11, %v1595_v17  ;;  %v1605_v43 = vsel %vm1525_vm2, %v1509_v49, %v10996_v38 }
 0x1a6   : > { %12029 = vmatpush3.bf16.msra.mxu0 %v1610_v8  ;;  %v1613_v15 = vpack.c.bf16 %v1605_v43, %v1597_v14 }
 0x1a7   : > { %12030 = vmatprep.subr.bf16.mxu0 %v1611_v13  ;;  %12063 = vmatpush3.bf16.msra.mxu1 %v12621_v31  ;;  %v1783_v44 = vpop.permute.xlu0 %1782 }
 0x1a8   : > { %12064 = vmatprep.subr.bf16.mxu1 %v12622_v32  ;;  %v1813_v40 = vpop.permute.xlu1 %1812 }
 0x1aa   : > { %12031 = vmatpush3.bf16.msra.mxu0 %v1611_v13 }
 0x1ab   : > { %12032 = vmatprep.subr.bf16.mxu0 %v1612_v12  ;;  %12065 = vmatpush3.bf16.msra.mxu1 %v12622_v32  ;;  %v1803_v46 = vpop.permute.xlu0 %1802 }
 0x1ac   : > { %12066 = vmatprep.subr.bf16.mxu1 %v12623_v33  ;;  %v1893_v42 = vpop.permute.xlu1 %1892 }
 0x1ae   : > { %12033 = vmatpush3.bf16.msra.mxu0 %v1612_v12 }
 0x1af   : > { %12034 = vmatprep.subr.bf16.mxu0 %v1613_v15  ;;  %12067 = vmatpush3.bf16.msra.mxu1 %v12623_v33  ;;  %v13416_v50 = vpop.permute.xlu0 %1822 }
 0x1b0   : > { %v1897_v45 = vpop.permute.xlu1 %1896 }
 0x1b2   : > { %12035 = vmatpush3.bf16.msra.mxu0 %v1613_v15 }
 0x1b3   : > { %v13418_v51 = vpop.permute.xlu0 %1842 }
 0x1b5   : > { %12037 = vmatmul.mubr.bf16.vlgmr.msra.gmra.mrb[8].mxu0 %v12609_v16 }
 0x1b6   : > { %12040 = vmatprep.mubr.bf16.mxu0 %v12610_v18 }
 0x1b7   : > { %v1873_v53 = vpop.permute.xlu0 %1872 }
 0x1bb   : > { %v1885_v56 = vpop.permute.xlu0 %1884 }
 0x1bd   : > { %12041 = vmatmul.mubr.bf16.gmra.mrb[12].mxu0 %v12611_v20 }
 0x1be   : > { %12044 = vmatprep.mubr.bf16.mxu0 %v12612_v23 }
 0x1bf   : > { %v1889_v55 = vpop.permute.xlu0 %1888 }
 0x1c3   : > { %v1901_v3 = vpop.permute.xlu0 %1900 }
 0x1c5   : > { %12045 = vmatmul.mubr.bf16.gmra.mrb[16].mxu0 %v12613_v24 }
 0x1c6   : > { %12048 = vmatprep.mubr.bf16.mxu0 %v12614_v25 }
 0x1cd   : > { %12049 = vmatmul.mubr.bf16.gmra.mrb[20].mxu0 %v12615_v26 }
 0x1db   : > { %v1905_v16 = vpop.permute.xlu0 %1904 }
 0x1dc   : > { %v13414_v48 = vpop.permute.xlu1 %1817 }
 0x1e1   : > { %v1828_v49 = vpop.permute.xlu1 %1827 }
 0x1ef   : > { %v13420_v52 = vpop.permute.xlu1 %1832 }
 0x1f4   : > { %v13422_v54 = vpop.permute.xlu1 %1908 }
 0x1f8   : > { %v1913_v57 = vpop.permute.xlu1 %1912 }
 0x1fd   : > { %v13424_v63 = vpop.permute.xlu1 %1837 }
 0x201   : > { %v13437_v11 = vpop.permute.xlu1 %1847 }
 0x205   : > { %v1853_v31 = vpop.permute.xlu1 %1852 }
 0x288   : > { %v12038_v59 = vpop.f32.mrb[8].mxu0 }
 0x289   : > { %v1857_v61 = vmul.f32 %v12038_v59, %v1788_v47  ;;  %v1712_v60 = vpop.f32.mrb[9].mxu0 }
 0x28a   : > { %v1855_v0 = vmul.f32 %v1778_v41, %v1712_v60  ;;  %v12039_v62 = vpop.f32.mrb[10].mxu0 }
 0x28b   : > { %v13426_v1 = vadd.f32 %v1881_v37, %v1857_v61  ;;  %v1858_v2 = vmul.f32 %v12039_v62, %v1793_v35  ;;  %v1715_v58 = vpop.f32.mrb[11].mxu0  ;;  %v13456_v61 = vpop.permute.xlu1 %1924 }
 0x28c   : > { %v13428_v4 = vadd.f32 %v1873_v53, %v1855_v0  ;;  %v1856_v5 = vmul.f32 %v1783_v44, %v1715_v58 }
 0x28d   : > { %v1969_v6 = vmin.f32 %v13426_v1, 0.0  ;;  %v13431_v7 = vadd.f32 %v1885_v56, %v1858_v2  ;;  %vm1953_vm3 = vcmp.gt.f32.partialorder %v13426_v1, 0.0 }
 0x28e   : > { %v1967_v8 = vmin.f32 %v13428_v4, 0.0  ;;  %v13434_v9 = vadd.f32 %v1877_v36, %v1856_v5  ;;  %v1917_v36 = vpop.permute.xlu0 %1916  ;;  %vm1951_vm4 = vcmp.gt.f32.partialorder %v13428_v4, 0.0 }
 0x28f   : > { %v1987_v10 = vmul.f32 1.442695, %v1969_v6  ;;  %v1970_v17 = vmin.f32 %v13431_v7, 0.0  ;;  %vm1954_vm5 = vcmp.gt.f32.partialorder %v13431_v7, 0.0 }
 0x290   : > { %v1983_v12 = vmul.f32 1.442695, %v1967_v8  ;;  %v1968_v38 = vmin.f32 %v13434_v9, 0.0  ;;  %v12042_v13 = vpop.f32.mrb[12].mxu0  ;;  %vm1952_vm6 = vcmp.gt.f32.partialorder %v13434_v9, 0.0 }
 0x291   : > { %12664 = vpow2.f32 %v1987_v10  ;;  %v1989_v14 = vmul.f32 1.442695, %v1970_v17  ;;  %v1861_v43 = vmul.f32 %v12042_v13, %v1808_v28  ;;  %v1728_v15 = vpop.f32.mrb[13].mxu0 }
 0x292   : > { %12666 = vpow2.f32 %v1983_v12  ;;  %v1985_v18 = vmul.f32 1.442695, %v1968_v38  ;;  %v1859_v20 = vmul.f32 %v1798_v39, %v1728_v15  ;;  %v12043_v23 = vpop.f32.mrb[14].mxu0 }
 0x293   : > { %12668 = vpow2.f32 %v1989_v14  ;;  %v13440_v24 = vadd.f32 %v1897_v45, %v1861_v43  ;;  %v1862_v25 = vmul.f32 %v12043_v23, %v1813_v40  ;;  %v1731_v26 = vpop.f32.mrb[15].mxu0 }
 0x294   : > { %12670 = vpow2.f32 %v1985_v18  ;;  %v13442_v29 = vadd.f32 %v1889_v55, %v1859_v20  ;;  %v1860_v22 = vmul.f32 %v1803_v46, %v1731_v26  ;;  %v1929_v18 = vpop.permute.xlu1 %1928 }
 0x295   : > { %v1973_v27 = vmin.f32 %v13440_v24, 0.0  ;;  %v13445_v30 = vadd.f32 %v1901_v3, %v1862_v25  ;;  %vm1957_vm7 = vcmp.gt.f32.partialorder %v13440_v24, 0.0 }
 0x296   : > { %v1971_v32 = vmin.f32 %v13442_v29, 0.0  ;;  %v13448_v33 = vadd.f32 %v1893_v42, %v1860_v22  ;;  %vm1955_vm8 = vcmp.gt.f32.partialorder %v13442_v29, 0.0 }
 0x297   : > { %v1995_v47 = vmul.f32 1.442695, %v1973_v27  ;;  %v1974_v35 = vmin.f32 %v13445_v30, 0.0  ;;  %vm1958_vm9 = vcmp.gt.f32.partialorder %v13445_v30, 0.0 }
 0x298   : > { %v1991_v37 = vmul.f32 1.442695, %v1971_v32  ;;  %v1972_v39 = vmin.f32 %v13448_v33, 0.0  ;;  %v12046_v28 = vpop.f32.mrb[16].mxu0  ;;  %vm1956_vm10 = vcmp.gt.f32.partialorder %v13448_v33, 0.0 }
 0x299   : > { %12672 = vpow2.f32 %v1995_v47  ;;  %v1997_v40 = vmul.f32 1.442695, %v1974_v35  ;;  %v1865_v41 = vmul.f32 %v12046_v28, %v1828_v49  ;;  %v1744_v44 = vpop.f32.mrb[17].mxu0 }
 0x29a   : > { %12674 = vpow2.f32 %v1991_v37  ;;  %v1993_v45 = vmul.f32 1.442695, %v1972_v39  ;;  %v1863_v46 = vmul.f32 %v13414_v48, %v1744_v44  ;;  %v12047_v53 = vpop.f32.mrb[18].mxu0 }
 0x29b   : > { %v12665_v56 = vpop.eup %12664  ;;  %12676 = vpow2.f32 %v1997_v40  ;;  %v13453_v42 = vadd.f32 %v1913_v57, %v1865_v41  ;;  %v1866_v55 = vmul.f32 %v12047_v53, %v13420_v52  ;;  %v1747_v59 = vpop.f32.mrb[19].mxu0 }
 0x29c   : > { %v12667_v60 = vpop.eup %12666  ;;  %v11007_v0 = vadd.f32 -1.0, %v12665_v56  ;;  %12678 = vpow2.f32 %v1993_v45  ;;  %v13458_v62 = vadd.f32 %v1905_v16, %v1863_v46  ;;  %v1864_v49 = vmul.f32 %v13416_v50, %v1747_v59  ;;  %v1921_v52 = vpop.permute.xlu0 %1920 }
 0x29d   : > { %v12669_v2 = vpop.eup %12668  ;;  %v1977_v48 = vmin.f32 %v13453_v42, 0.0  ;;  %v13463_v58 = vadd.f32 %v1917_v36, %v1866_v55  ;;  %v11005_v57 = vadd.f32 -1.0, %v12667_v60  ;;  %vm1961_vm11 = vcmp.gt.f32.partialorder %v13453_v42, 0.0 }
 0x29e   : > { %v12671_v3 = vpop.eup %12670  ;;  %v11008_v5 = vadd.f32 -1.0, %v12669_v2  ;;  %v1975_v6 = vmin.f32 %v13458_v62, 0.0  ;;  %v13471_v10 = vadd.f32 %v13422_v54, %v1864_v49  ;;  %v2033_v17 = vsel %vm1953_vm3, %v13426_v1, %v11007_v0 }
 0x29f   : > { %v2003_v50 = vmul.f32 1.442695, %v1977_v48  ;;  %v1978_v8 = vmin.f32 %v13463_v58, 0.0  ;;  %v11006_v14 = vadd.f32 -1.0, %v12671_v3  ;;  %v2031_v20 = vsel %vm1951_vm4, %v13428_v4, %v11005_v57 }
 0x2a0   : > { %v2034_v12 = vsel %vm1954_vm5, %v13431_v7, %v11008_v5  ;;  %v1999_v38 = vmul.f32 1.442695, %v1975_v6  ;;  %v12050_v13 = vpop.f32.mrb[20].mxu0  ;;  %v1976_v15 = vmin.f32 %v13471_v10, 0.0  ;;  %v1933_v35 = vpop.permute.xlu0 %1932  ;;  %vm1962_vm12 = vcmp.gt.f32.partialorder %v13463_v58, 0.0 }
 0x2a1   : > { %12680 = vpow2.f32 %v2003_v50  ;;  %v2005_v43 = vmul.f32 1.442695, %v1978_v8  ;;  %v1760_v16 = vpop.f32.mrb[21].mxu0  ;;  %v1869_v54 = vmul.f32 %v12050_v13, %v13437_v11  ;;  %v2032_v7 = vsel %vm1952_vm6, %v13434_v9, %v11006_v14 }
 0x2a2   : > { %12682 = vpow2.f32 %v1999_v38  ;;  %v1867_v1 = vmul.f32 %v13424_v63, %v1760_v16  ;;  %v12051_v23 = vpop.f32.mrb[22].mxu0  ;;  %v2001_v26 = vmul.f32 1.442695, %v1976_v15  ;;  %v2047_v32 = vpack.c.bf16 %v2032_v7, %v2031_v20 }
 0x2a3   : > { %v12673_v25 = vpop.eup %12672  ;;  %12684 = vpow2.f32 %v2005_v43  ;;  %v1870_v22 = vmul.f32 %v12051_v23, %v1853_v31  ;;  %v1763_v27 = vpop.f32.mrb[23].mxu0  ;;  %v13486_v4 = vadd.f32 %v1929_v18, %v1869_v54  ;;  %v2048_v63 = vpack.c.bf16 %v2034_v12, %v2033_v17 }
 0x2a4   : > { %v12675_v47 = vpop.eup %12674  ;;  %v13484_v36 = vadd.f32 %v1921_v52, %v1867_v1  ;;  %v1868_v11 = vmul.f32 %v13418_v51, %v1763_v27  ;;  %12686 = vpow2.f32 %v2001_v26  ;;  %12068 = vmatprep.mubr.bf16.mxu1 %v2047_v32  ;;  %v11011_v41 = vadd.f32 -1.0, %v12673_v25 }
 0x2a5   : > { %v12677_v37 = vpop.eup %12676  ;;  %v13490_v9 = vadd.f32 %v1933_v35, %v1870_v22  ;;  %v11009_v39 = vadd.f32 -1.0, %v12675_v47  ;;  %v1981_v40 = vmin.f32 %v13486_v4, 0.0  ;;  %12069 = vmatmul.mubr.bf16.vlgmr.msra.gmra.mrb[8].mxu1 %v2048_v63  ;;  %vm1959_vm13 = vcmp.gt.f32.partialorder %v13458_v62, 0.0 }
 0x2a6   : > { %v12679_v31 = vpop.eup %12678  ;;  %v1979_v28 = vmin.f32 %v13484_v36, 0.0  ;;  %v1948_v44 = vadd.f32 %v13456_v61, %v1868_v11  ;;  %v11012_v56 = vadd.f32 -1.0, %v12677_v37  ;;  %v2037_v2 = vsel %vm1957_vm7, %v13440_v24, %v11011_v41 }
 0x2a7   : > { %v1982_v51 = vmin.f32 %v13490_v9, 0.0  ;;  %v11010_v45 = vadd.f32 -1.0, %v12679_v31  ;;  %v2011_v53 = vmul.f32 1.442695, %v1981_v40  ;;  %v2035_v60 = vsel %vm1955_vm8, %v13442_v29, %v11009_v39 }
 0x2a8   : > { %v2007_v46 = vmul.f32 1.442695, %v1979_v28  ;;  %v1980_v59 = vmin.f32 %v1948_v44, 0.0  ;;  %v2038_v61 = vsel %vm1958_vm9, %v13445_v30, %v11012_v56  ;;  %vm1960_vm14 = vcmp.gt.f32.partialorder %v13471_v10, 0.0 }
 0x2a9   : > { %v2013_v55 = vmul.f32 1.442695, %v1982_v51  ;;  %v2036_v0 = vsel %vm1956_vm10, %v13448_v33, %v11010_v45  ;;  %v2050_v3 = vpack.c.bf16 %v2038_v61, %v2037_v2  ;;  %vm1966_vm15 = vcmp.gt.f32.partialorder %v13490_v9, 0.0  ;;  %v13581_v2 = vld [vmem:[#allocation4 + $0x48] sm:$0xff] }
 0x2aa   : > { %12688 = vpow2.f32 %v2007_v46  ;;  %v2049_v49 = vpack.c.bf16 %v2036_v0, %v2035_v60  ;;  %v2009_v57 = vmul.f32 1.442695, %v1980_v59  ;;  %vm1965_vm0 = vcmp.gt.f32.partialorder %v13486_v4, 0.0  ;;  %v13569_v59 = vld [vmem:[#allocation4 + $0x40] sm:$0xff] }
 0x2ab   : > { %v12681_v48 = vpop.eup %12680  ;;  %12690 = vpow2.f32 %v2013_v55  ;;  %vm1963_vm1 = vcmp.gt.f32.partialorder %v13484_v36, 0.0  ;;  %vm1964_vm2 = vcmp.gt.f32.partialorder %v1948_v44, 0.0  ;;  %v13567_v55 = vld [vmem:[#allocation4] sm:$0xff] }
 0x2ac   : > { %v12683_v52 = vpop.eup %12682  ;;  %12692 = vpow2.f32 %v2011_v53  ;;  %12072 = vmatprep.mubr.bf16.mxu1 %v2049_v49  ;;  %v11015_v5 = vadd.f32 -1.0, %v12681_v48  ;;  %v11029_v60 = vcombine.low %v13567_v55, %v13569_v59  ;;  %v11030_v0 = vcombine.high %v13567_v55, %v13569_v59  ;;  %v13579_v49 = vld [vmem:[#allocation4 + $0x8] sm:$0xff]  ;;  %v2648_v55 = vld [vmem:[#allocation4 + $0x1c0] sm:$0xff] }
 0x2ad   : > { %v12685_v6 = vpop.eup %12684  ;;  %12694 = vpow2.f32 %v2009_v57  ;;  %12073 = vmatmul.mubr.bf16.gmra.mrb[12].mxu1 %v2050_v3  ;;  %v11013_v29 = vadd.f32 -1.0, %v12683_v52  ;;  %v11031_v61 = vcombine.low %v13579_v49, %v13581_v2  ;;  %v11032_v48 = vcombine.high %v13579_v49, %v13581_v2  ;;  %v2641_v2 = vld [vmem:[#allocation4 + $0x188] sm:$0xff] }
 0x2ae   : > { %v11016_v33 = vadd.f32 -1.0, %v12685_v6  ;;  %v12687_v50 = vpop.eup %12686  ;;  %v2041_v30 = vsel %vm1961_vm11, %v13453_v42, %v11015_v5  ;;  %3392 = vmatprep.mubr.bf16.mxu0 %v11030_v0 }
 0x2af   : > { %v11014_v24 = vadd.f32 -1.0, %v12687_v50  ;;  %v2039_v12 = vsel %vm1959_vm13, %v13458_v62, %v11013_v29 }
 0x2b0   : > { %v2042_v8 = vsel %vm1962_vm12, %v13463_v58, %v11016_v33 }
 0x2b1   : > { %v2052_v17 = vpack.c.bf16 %v2042_v8, %v2041_v30  ;;  %v2040_v38 = vsel %vm1960_vm14, %v13471_v10, %v11014_v24 }
 0x2b2   : > { %v2051_v13 = vpack.c.bf16 %v2040_v38, %v2039_v12 }
 0x2b4   : > { %v12689_v14 = vpop.eup %12688  ;;  %12076 = vmatprep.mubr.bf16.mxu1 %v2051_v13 }
 0x2b5   : > { %v12691_v43 = vpop.eup %12690  ;;  %12077 = vmatmul.mubr.bf16.gmra.mrb[16].mxu1 %v2052_v17  ;;  %v11017_v16 = vadd.f32 -1.0, %v12689_v14 }
 0x2b6   : > { %v12693_v15 = vpop.eup %12692  ;;  %v11020_v18 = vadd.f32 -1.0, %v12691_v43 }
 0x2b7   : > { %v12695_v42 = vpop.eup %12694  ;;  %v11019_v58 = vadd.f32 -1.0, %v12693_v15  ;;  %v2043_v10 = vsel %vm1963_vm1, %v13484_v36, %v11017_v16 }
 0x2b8   : > { %v11018_v20 = vadd.f32 -1.0, %v12695_v42  ;;  %v2046_v54 = vsel %vm1966_vm15, %v13490_v9, %v11020_v18 }
 0x2b9   : > { %v2045_v62 = vsel %vm1965_vm0, %v13486_v4, %v11019_v58 }
 0x2ba   : > { %v2044_v1 = vsel %vm1964_vm2, %v1948_v44, %v11018_v20  ;;  %v2054_v23 = vpack.c.bf16 %v2046_v54, %v2045_v62  ;;  %v2608_v20 = vld [vmem:[#allocation4 + $0x80] sm:$0xff] }
 0x2bb   : > { %v2053_v7 = vpack.c.bf16 %v2044_v1, %v2043_v10  ;;  %v2616_v54 = vld [vmem:[#allocation4 + $0xc0] sm:$0xff] }
 0x2bc   : > { %v11046_v62 = vcombine.high %v2608_v20, %v2616_v54 }
 0x2bd   : > { %12080 = vmatprep.mubr.bf16.mxu1 %v2053_v7  ;;  %v2617_v7 = vld [vmem:[#allocation4 + $0xc8] sm:$0xff] }
 0x2be   : > { %12081 = vmatmul.mubr.bf16.gmra.mrb[20].mxu1 %v2054_v23  ;;  %v2609_v23 = vld [vmem:[#allocation4 + $0x88] sm:$0xff] }
 0x2bf   : > { %3489 = vmatprep.mubr.bf16.mxu1 %v11032_v48 }
 0x378   : > { %v12070_v25 = vpop.f32.mrb[8].mxu1 }
 0x379   : > { %v2153_v26 = vpop.f32.mrb[9].mxu1 }
 0x37a   : > { %v12071_v22 = vpop.f32.mrb[10].mxu1 }
 0x37b   : > { %v13519_v27 = vpack.c.bf16 %v12071_v22, %v12070_v25  ;;  %v2156_v32 = vpop.f32.mrb[11].mxu1  ;;  %v11048_v25 = vcombine.high %v2609_v23, %v2617_v7 }
 0x37c   : > { %v13521_v47 = vpack.c.bf16 %v2156_v32, %v2153_v26  ;;  %v2624_v32 = vld [vmem:[#allocation4 + $0x100] sm:$0xff] }
 0x37d   : > { %2282 = vrot.lane.b32.xlu1 %v13519_v27, %s12937_s30  ;;  %2234 = vrot.lane.b32.xlu0 %v13519_v27, %s12938_s28 }
 0x380   : > { %v12074_v35 = vpop.f32.mrb[12].mxu1 }
 0x381   : > { %2258 = vrot.lane.b32.xlu0 %v13519_v27, %s12939_s0  ;;  %2232 = vrot.lane.b32.xlu1 %v13521_v47, %s12938_s28  ;;  %v2169_v36 = vpop.f32.mrb[13].mxu1 }
 0x382   : > { %v12075_v4 = vpop.f32.mrb[14].mxu1 }
 0x383   : > { %v13531_v11 = vpack.c.bf16 %v12075_v4, %v12074_v35  ;;  %v2172_v63 = vpop.f32.mrb[15].mxu1  ;;  %v2632_v35 = vld [vmem:[#allocation4 + $0x140] sm:$0xff] }
 0x384   : > { %v13533_v37 = vpack.c.bf16 %v2172_v63, %v2169_v36  ;;  %v11045_v36 = vcombine.low %v2608_v20, %v2616_v54  ;;  %v11062_v4 = vcombine.high %v2624_v32, %v2632_v35  ;;  %v11061_v59 = vcombine.low %v2624_v32, %v2632_v35  ;;  %v2697_v32 = vld [vmem:[#allocation4 + $0x348] sm:$0xff] }
 0x385   : > { %2280 = vrot.lane.b32.xlu0 %v13521_v47, %s12937_s30  ;;  %2256 = vrot.lane.b32.xlu1 %v13521_v47, %s12939_s0 }
 0x388   : > { %v12078_v9 = vpop.f32.mrb[16].mxu1 }
 0x389   : > { %2286 = vrot.lane.b32.xlu1 %v13531_v11, %s12937_s30  ;;  %2238 = vrot.lane.b32.xlu0 %v13531_v11, %s12938_s28  ;;  %v2185_v39 = vpop.f32.mrb[17].mxu1 }
 0x38a   : > { %v12079_v31 = vpop.f32.mrb[18].mxu1 }
 0x38b   : > { %v13543_v28 = vpack.c.bf16 %v12079_v31, %v12078_v9  ;;  %v2188_v40 = vpop.f32.mrb[19].mxu1  ;;  %v2633_v31 = vld [vmem:[#allocation4 + $0x148] sm:$0xff] }
 0x38c   : > { %v13545_v41 = vpack.c.bf16 %v2188_v40, %v2185_v39  ;;  %v2625_v39 = vld [vmem:[#allocation4 + $0x108] sm:$0xff]  ;;  %v11047_v40 = vcombine.low %v2609_v23, %v2617_v7 }
 0x38d   : > { %2262 = vrot.lane.b32.xlu0 %v13531_v11, %s12939_s0  ;;  %2236 = vrot.lane.b32.xlu1 %v13533_v37, %s12938_s28  ;;  %v11063_v48 = vcombine.low %v2625_v39, %v2633_v31 }
 0x391   : > { %v12082_v51 = vpop.f32.mrb[20].mxu1  ;;  %2284 = vrot.lane.b32.xlu0 %v13533_v37, %s12937_s30  ;;  %2260 = vrot.lane.b32.xlu1 %v13533_v37, %s12939_s0 }
 0x392   : > { %v2201_v44 = vpop.f32.mrb[21].mxu1 }
 0x393   : > { %v12083_v45 = vpop.f32.mrb[22].mxu1 }
 0x394   : > { %v13555_v46 = vpack.c.bf16 %v12083_v45, %v12082_v51  ;;  %v2204_v53 = vpop.f32.mrb[23].mxu1  ;;  %v11064_v51 = vcombine.high %v2625_v39, %v2633_v31 }
 0x395   : > { %v13557_v56 = vpack.c.bf16 %v2204_v53, %v2201_v44  ;;  %2290 = vrot.lane.b32.xlu1 %v13543_v28, %s12937_s30  ;;  %2242 = vrot.lane.b32.xlu0 %v13543_v28, %s12938_s28  ;;  %v2640_v53 = vld [vmem:[#allocation4 + $0x180] sm:$0xff] }
 0x399   : > { %2288 = vrot.lane.b32.xlu0 %v13545_v41, %s12937_s30  ;;  %2240 = vrot.lane.b32.xlu1 %v13545_v41, %s12938_s28 }
 0x39d   : > { %2266 = vrot.lane.b32.xlu0 %v13543_v28, %s12939_s0  ;;  %2264 = vrot.lane.b32.xlu1 %v13545_v41, %s12939_s0 }
 0x3a1   : > { %2292 = vrot.lane.b32.xlu0 %v13557_v56, %s12937_s30  ;;  %2244 = vrot.lane.b32.xlu1 %v13557_v56, %s12938_s28 }
 0x3a5   : > { %2246 = vrot.lane.b32.xlu0 %v13555_v46, %s12938_s28  ;;  %2268 = vrot.lane.b32.xlu1 %v13557_v56, %s12939_s0  ;;  %s18068_s28 = smov 12  }
 0x3a9   : > { %2270 = vrot.lane.b32.xlu0 %v13555_v46, %s12939_s0  ;;  %2294 = vrot.lane.b32.xlu1 %v13555_v46, %s12937_s30  ;;  %s18070_s30 = smov 8   ;;  %s18066_s0 = smov 16  }
 0x3ad   : > { %2304 = vrot.lane.b32.xlu0 %v13521_v47, %s12940_s19  ;;  %2328 = vrot.lane.b32.xlu1 %v13521_v47, %s12941_s20 }
 0x3b1   : > { %2352 = vrot.lane.b32.xlu0 %v13521_v47, %s12942_s21  ;;  %2376 = vrot.lane.b32.xlu1 %v13521_v47, %s12943_s22 }
 0x3b5   : > { %2306 = vrot.lane.b32.xlu0 %v13519_v27, %s12940_s19  ;;  %2330 = vrot.lane.b32.xlu1 %v13519_v27, %s12941_s20 }
 0x3b9   : > { %2354 = vrot.lane.b32.xlu0 %v13519_v27, %s12942_s21  ;;  %2378 = vrot.lane.b32.xlu1 %v13519_v27, %s12943_s22 }
 0x3bd   : > { %2308 = vrot.lane.b32.xlu0 %v13533_v37, %s12940_s19  ;;  %2332 = vrot.lane.b32.xlu1 %v13533_v37, %s12941_s20 }
 0x3c1   : > { %2356 = vrot.lane.b32.xlu0 %v13533_v37, %s12942_s21  ;;  %2380 = vrot.lane.b32.xlu1 %v13533_v37, %s12943_s22 }
 0x3c5   : > { %2310 = vrot.lane.b32.xlu0 %v13531_v11, %s12940_s19  ;;  %2334 = vrot.lane.b32.xlu1 %v13531_v11, %s12941_s20 }
 0x3c9   : > { %2358 = vrot.lane.b32.xlu0 %v13531_v11, %s12942_s21  ;;  %2382 = vrot.lane.b32.xlu1 %v13531_v11, %s12943_s22 }
 0x3cd   : > { %2312 = vrot.lane.b32.xlu0 %v13545_v41, %s12940_s19  ;;  %2336 = vrot.lane.b32.xlu1 %v13545_v41, %s12941_s20 }
 0x3d1   : > { %2360 = vrot.lane.b32.xlu0 %v13545_v41, %s12942_s21  ;;  %2384 = vrot.lane.b32.xlu1 %v13545_v41, %s12943_s22 }
 0x3d5   : > { %2314 = vrot.lane.b32.xlu0 %v13543_v28, %s12940_s19  ;;  %2338 = vrot.lane.b32.xlu1 %v13543_v28, %s12941_s20 }
 0x3d9   : > { %2362 = vrot.lane.b32.xlu0 %v13543_v28, %s12942_s21  ;;  %2386 = vrot.lane.b32.xlu1 %v13543_v28, %s12943_s22 }
 0x3dd   : > { %2318 = vrot.lane.b32.xlu0 %v13555_v46, %s12940_s19  ;;  %2342 = vrot.lane.b32.xlu1 %v13555_v46, %s12941_s20 }
 0x3e1   : > { %2316 = vrot.lane.b32.xlu0 %v13557_v56, %s12940_s19  ;;  %2340 = vrot.lane.b32.xlu1 %v13557_v56, %s12941_s20  ;;  %s18064_s19 = smov 20   ;;  %s18062_s20 = smov 24  }
 0x3e5   : > { %2364 = vrot.lane.b32.xlu0 %v13557_v56, %s12942_s21  ;;  %2388 = vrot.lane.b32.xlu1 %v13557_v56, %s12943_s22 }
 0x3e9   : > { %2366 = vrot.lane.b32.xlu0 %v13555_v46, %s12942_s21  ;;  %2390 = vrot.lane.b32.xlu1 %v13555_v46, %s12943_s22  ;;  %s18060_s21 = smov 28   ;;  %s18058_s22 = smov 32  }
 0x3ed   : > { %2400 = vrot.lane.b32.xlu0 %v13521_v47, %s12944_s23  ;;  %2424 = vrot.lane.b32.xlu1 %v13521_v47, %s12945_s25 }
 0x3ef   : > { %v2283_v57 = vpop.permute.xlu1 %2282  ;;  %v2235_v3 = vpop.permute.xlu0 %2234 }
 0x3f1   : > { %2448 = vrot.lane.b32.xlu0 %v13521_v47, %s12946_s29  ;;  %2472 = vrot.lane.b32.xlu1 %v13521_v47, %s12947_s26 }
 0x3f3   : > { %v2233_v52 = vpop.permute.xlu1 %2232  ;;  %v2259_v5 = vpop.permute.xlu0 %2258 }
 0x3f4   : > { %11410 = vmatprep.subr.bf16.mxu0 %v2233_v52 }
 0x3f5   : > { %11411 = vmatpush3.bf16.msra.mxu0 %v13521_v47  ;;  %2402 = vrot.lane.b32.xlu0 %v13519_v27, %s12944_s23 }
 0x3f6   : > { %2426 = vrot.lane.b32.xlu1 %v13519_v27, %s12945_s25  ;;  %11412 = vmatprep.subr.bf16.mxu0 %v2235_v3 }
 0x3f7   : > { %v2257_v6 = vpop.permute.xlu1 %2256  ;;  %v2281_v29 = vpop.permute.xlu0 %2280 }
 0x3f8   : > { %11474 = vmatprep.subr.bf16.mxu1 %v2281_v29  ;;  %v11077_v29 = vcombine.low %v2640_v53, %v2648_v55 }
 0x3f9   : > { %2450 = vrot.lane.b32.xlu0 %v13519_v27, %s12946_s29  ;;  %11413 = vmatpush3.bf16.msra.mxu0 %v13519_v27 }
 0x3fa   : > { %2474 = vrot.lane.b32.xlu1 %v13519_v27, %s12947_s26  ;;  %11475 = vmatpush3.bf16.msra.mxu1 %v2257_v6  ;;  %v2664_v6 = vld [vmem:[#allocation4 + $0x240] sm:$0xff] }
 0x3fb   : > { %11476 = vmatprep.subr.bf16.mxu1 %v2283_v57  ;;  %v2287_v33 = vpop.permute.xlu1 %2286  ;;  %v2239_v50 = vpop.permute.xlu0 %2238 }
 0x3fd   : > { %2404 = vrot.lane.b32.xlu0 %v13533_v37, %s12944_s23 }
 0x3fe   : > { %2428 = vrot.lane.b32.xlu1 %v13533_v37, %s12945_s25  ;;  %11477 = vmatpush3.bf16.msra.mxu1 %v2259_v5  ;;  %v2656_v5 = vld [vmem:[#allocation4 + $0x200] sm:$0xff] }
 0x3ff   : > { %v2237_v24 = vpop.permute.xlu1 %2236  ;;  %v2263_v30 = vpop.permute.xlu0 %2262 }
 0x400   : > { %11414 = vmatprep.subr.bf16.mxu0 %v2237_v24 }
 0x401   : > { %2452 = vrot.lane.b32.xlu0 %v13533_v37, %s12946_s29  ;;  %11415 = vmatpush3.bf16.msra.mxu0 %v13533_v37 }
 0x402   : > { %2476 = vrot.lane.b32.xlu1 %v13533_v37, %s12947_s26  ;;  %11416 = vmatprep.subr.bf16.mxu0 %v2239_v50 }
 0x403   : > { %v2261_v8 = vpop.permute.xlu1 %2260  ;;  %v2285_v17 = vpop.permute.xlu0 %2284 }
 0x404   : > { %11478 = vmatprep.subr.bf16.mxu1 %v2285_v17 }
 0x405   : > { %2406 = vrot.lane.b32.xlu0 %v13531_v11, %s12944_s23  ;;  %11417 = vmatpush3.bf16.msra.mxu0 %v13531_v11 }
 0x406   : > { %2430 = vrot.lane.b32.xlu1 %v13531_v11, %s12945_s25  ;;  %11479 = vmatpush3.bf16.msra.mxu1 %v2261_v8  ;;  %v2665_v8 = vld [vmem:[#allocation4 + $0x248] sm:$0xff] }
 0x407   : > { %11480 = vmatprep.subr.bf16.mxu1 %v2287_v33  ;;  %v2291_v12 = vpop.permute.xlu1 %2290  ;;  %v2243_v38 = vpop.permute.xlu0 %2242  ;;  %v11094_v33 = vcombine.high %v2656_v5, %v2664_v6 }
 0x409   : > { %2454 = vrot.lane.b32.xlu0 %v13531_v11, %s12946_s29 }
 0x40a   : > { %2478 = vrot.lane.b32.xlu1 %v13531_v11, %s12947_s26  ;;  %11481 = vmatpush3.bf16.msra.mxu1 %v2263_v30  ;;  %v2657_v30 = vld [vmem:[#allocation4 + $0x208] sm:$0xff] }
 0x40b   : > { %v2241_v13 = vpop.permute.xlu1 %2240  ;;  %v2289_v14 = vpop.permute.xlu0 %2288  ;;  %v11095_v20 = vcombine.low %v2657_v30, %v2665_v8 }
 0x40c   : > { %11418 = vmatprep.subr.bf16.mxu0 %v2241_v13  ;;  %11482 = vmatprep.subr.bf16.mxu1 %v2289_v14  ;;  %v2672_v13 = vld [vmem:[#allocation4 + $0x280] sm:$0xff] }
 0x40d   : > { %2408 = vrot.lane.b32.xlu0 %v13545_v41, %s12944_s23  ;;  %11419 = vmatpush3.bf16.msra.mxu0 %v13545_v41  ;;  %v2680_v14 = vld [vmem:[#allocation4 + $0x2c0] sm:$0xff] }
 0x40e   : > { %2432 = vrot.lane.b32.xlu1 %v13545_v41, %s12945_s25  ;;  %11420 = vmatprep.subr.bf16.mxu0 %v2243_v38  ;;  %v11109_v23 = vcombine.low %v2672_v13, %v2680_v14 }
 0x40f   : > { %v2265_v43 = vpop.permute.xlu1 %2264  ;;  %v2267_v15 = vpop.permute.xlu0 %2266 }
 0x410   : > { %11483 = vmatpush3.bf16.msra.mxu1 %v2265_v43  ;;  %v11093_v43 = vcombine.low %v2656_v5, %v2664_v6  ;;  %v2610_v5 = vld [vmem:[#allocation4 + $0x90] sm:$0xff] }
 0x411   : > { %2456 = vrot.lane.b32.xlu0 %v13545_v41, %s12946_s29  ;;  %11421 = vmatpush3.bf16.msra.mxu0 %v13543_v28  ;;  %v2618_v6 = vld [vmem:[#allocation4 + $0xd0] sm:$0xff] }
 0x412   : > { %2480 = vrot.lane.b32.xlu1 %v13545_v41, %s12947_s26  ;;  %11484 = vmatprep.subr.bf16.mxu1 %v2291_v12  ;;  %v11096_v12 = vcombine.high %v2657_v30, %v2665_v8 }
 0x413   : > { %v2245_v16 = vpop.permute.xlu1 %2244  ;;  %v2293_v18 = vpop.permute.xlu0 %2292 }
 0x414   : > { %11422 = vmatprep.subr.bf16.mxu0 %v2245_v16  ;;  %11485 = vmatpush3.bf16.msra.mxu1 %v2267_v15  ;;  %v11110_v15 = vcombine.high %v2672_v13, %v2680_v14  ;;  %v2626_v14 = vld [vmem:[#allocation4 + $0x110] sm:$0xff] }
 0x415   : > { %2410 = vrot.lane.b32.xlu0 %v13543_v28, %s12944_s23  ;;  %11423 = vmatpush3.bf16.msra.mxu0 %v13557_v56 }
 0x416   : > { %2434 = vrot.lane.b32.xlu1 %v13543_v28, %s12945_s25  ;;  %11486 = vmatprep.subr.bf16.mxu1 %v2293_v18 }
 0x417   : > { %v2269_v42 = vpop.permute.xlu1 %2268  ;;  %v2247_v58 = vpop.permute.xlu0 %2246 }
 0x418   : > { %11424 = vmatprep.subr.bf16.mxu0 %v2247_v58  ;;  %11487 = vmatpush3.bf16.msra.mxu1 %v2269_v42  ;;  %v2673_v42 = vld [vmem:[#allocation4 + $0x288] sm:$0xff] }
 0x419   : > { %2458 = vrot.lane.b32.xlu0 %v13543_v28, %s12946_s29  ;;  %11425 = vmatpush3.bf16.msra.mxu0 %v13555_v46  ;;  %v2681_v58 = vld [vmem:[#allocation4 + $0x2c8] sm:$0xff] }
 0x41a   : > { %2482 = vrot.lane.b32.xlu1 %v13543_v28, %s12947_s26  ;;  %v11112_v54 = vcombine.high %v2673_v42, %v2681_v58  ;;  %v11111_v35 = vcombine.low %v2673_v42, %v2681_v58  ;;  %v2627_v58 = vld [vmem:[#allocation4 + $0x118] sm:$0xff] }
 0x41b   : > { %v2295_v10 = vpop.permute.xlu1 %2294  ;;  %v2271_v1 = vpop.permute.xlu0 %2270 }
 0x41c   : > { %3393 = vmatmul.mubr.bf16.vlgmr.msra.gmra.mrb[24].mxu0 %v11029_v60  ;;  %11488 = vmatprep.subr.bf16.mxu1 %v2295_v10  ;;  %v11078_v60 = vcombine.high %v2640_v53, %v2648_v55  ;;  %v2688_v10 = vld [vmem:[#allocation4 + $0x300] sm:$0xff] }
 0x41d   : > { %2414 = vrot.lane.b32.xlu0 %v13555_v46, %s12944_s23  ;;  %11489 = vmatpush3.bf16.msra.mxu1 %v2271_v1  ;;  %v2696_v1 = vld [vmem:[#allocation4 + $0x340] sm:$0xff] }
 0x41e   : > { %2438 = vrot.lane.b32.xlu1 %v13555_v46, %s12945_s25  ;;  %3400 = vmatprep.mubr.bf16.mxu0 %v11046_v62  ;;  %v11126_v7 = vcombine.high %v2688_v10, %v2696_v1  ;;  %v11125_v39 = vcombine.low %v2688_v10, %v2696_v1 }
 0x41f   : > { %v2329_v26 = vpop.permute.xlu1 %2328  ;;  %v2305_v22 = vpop.permute.xlu0 %2304 }
 0x420   : > { %3490 = vmatmul.mubr.bf16.vlgmr.msra.gmra.mrb[24].mxu1 %v11031_v61  ;;  %11538 = vmatprep.subr.bf16.mxu0 %v2329_v26  ;;  %v2649_v61 = vld [vmem:[#allocation4 + $0x1c8] sm:$0xff] }
 0x421   : > { %2412 = vrot.lane.b32.xlu0 %v13557_v56, %s12944_s23  ;;  %11539 = vmatpush3.bf16.msra.mxu0 %v2305_v22  ;;  %v11080_v57 = vcombine.high %v2641_v2, %v2649_v61  ;;  %v11079_v17 = vcombine.low %v2641_v2, %v2649_v61  ;;  %v2689_v22 = vld [vmem:[#allocation4 + $0x308] sm:$0xff]  ;;  %s18056_s23 = smov 36  }
 0x422   : > { %2436 = vrot.lane.b32.xlu1 %v13557_v56, %s12945_s25  ;;  %3497 = vmatprep.mubr.bf16.mxu1 %v11048_v25  ;;  %v11127_v53 = vcombine.low %v2689_v22, %v2697_v32  ;;  %s18054_s25 = smov 40  }
 0x423   : > { %v2377_v63 = vpop.permute.xlu1 %2376  ;;  %v2353_v9 = vpop.permute.xlu0 %2352 }
 0x424   : > { %3401 = vmatmul.mubr.bf16.gmra.mrb[28].mxu0 %v11045_v36  ;;  %11602 = vmatprep.subr.bf16.mxu1 %v2377_v63  ;;  %v11128_v36 = vcombine.high %v2689_v22, %v2697_v32  ;;  %v2704_v63 = vld [vmem:[#allocation4 + $0x380] sm:$0xff]  ;;  %v2651_v22 = vld [vmem:[#allocation4 + $0x1d8] sm:$0xff] }
 0x425   : > { %2460 = vrot.lane.b32.xlu0 %v13557_v56, %s12946_s29  ;;  %11603 = vmatpush3.bf16.msra.mxu1 %v2353_v9  ;;  %v2712_v9 = vld [vmem:[#allocation4 + $0x3c0] sm:$0xff] }
 0x426   : > { %2484 = vrot.lane.b32.xlu1 %v13557_v56, %s12947_s26  ;;  %3408 = vmatprep.mubr.bf16.mxu0 %v11062_v4  ;;  %v11142_v31 = vcombine.high %v2704_v63, %v2712_v9 }
 0x427   : > { %v2331_v44 = vpop.permute.xlu1 %2330  ;;  %v2307_v45 = vpop.permute.xlu0 %2306 }
 0x428   : > { %3498 = vmatmul.mubr.bf16.gmra.mrb[28].mxu1 %v11047_v40  ;;  %11540 = vmatprep.subr.bf16.mxu0 %v2331_v44  ;;  %v2705_v40 = vld [vmem:[#allocation4 + $0x388] sm:$0xff] }
 0x429   : > { %2462 = vrot.lane.b32.xlu0 %v13555_v46, %s12946_s29  ;;  %11541 = vmatpush3.bf16.msra.mxu0 %v2307_v45  ;;  %s18052_s29 = smov 44  }
 0x42a   : > { %2486 = vrot.lane.b32.xlu1 %v13555_v46, %s12947_s26  ;;  %3505 = vmatprep.mubr.bf16.mxu1 %v11064_v51  ;;  %v2713_v51 = vld [vmem:[#allocation4 + $0x3c8] sm:$0xff]  ;;  %s18050_s26 = smov 48  }
 0x42b   : > { %v2379_v0 = vpop.permute.xlu1 %2378  ;;  %v2355_v49 = vpop.permute.xlu0 %2354  ;;  %v11144_v55 = vcombine.high %v2705_v40, %v2713_v51 }
 0x42c   : > { %3409 = vmatmul.mubr.bf16.gmra.mrb[32].mxu0 %v11061_v59  ;;  %11604 = vmatprep.subr.bf16.mxu1 %v2379_v0  ;;  %v2594_v0 = vld [vmem:[#allocation4 + $0x10] sm:$0xff] }
 0x42d   : > { %2496 = vrot.lane.b32.xlu0 %v13521_v47, %s12948_s15  ;;  %11605 = vmatpush3.bf16.msra.mxu1 %v2355_v49  ;;  %v2602_v49 = vld [vmem:[#allocation4 + $0x50] sm:$0xff] }
 0x42e   : > { %2520 = vrot.lane.b32.xlu1 %v13521_v47, %s12949_s17  ;;  %3416 = vmatprep.mubr.bf16.mxu0 %v11078_v60  ;;  %v11141_v60 = vcombine.low %v2704_v63, %v2712_v9 }
 0x42f   : > { %v2333_v3 = vpop.permute.xlu1 %2332  ;;  %v2309_v52 = vpop.permute.xlu0 %2308 }
 0x430   : > { %3506 = vmatmul.mubr.bf16.gmra.mrb[32].mxu1 %v11063_v48  ;;  %11542 = vmatprep.subr.bf16.mxu0 %v2333_v3  ;;  %v11034_v48 = vcombine.high %v2594_v0, %v2602_v49  ;;  %v2595_v3 = vld [vmem:[#allocation4 + $0x18] sm:$0xff] }
 0x431   : > { %2544 = vrot.lane.b32.xlu0 %v13521_v47, %s12950_s24  ;;  %11543 = vmatpush3.bf16.msra.mxu0 %v2309_v52  ;;  %v2603_v52 = vld [vmem:[#allocation4 + $0x58] sm:$0xff] }
 0x432   : > { %2568 = vrot.lane.b32.xlu1 %v13521_v47, %s12951_s18  ;;  %3513 = vmatprep.mubr.bf16.mxu1 %v11080_v57  ;;  %v11143_v57 = vcombine.low %v2705_v40, %v2713_v51  ;;  %v2659_v40 = vld [vmem:[#allocation4 + $0x218] sm:$0xff] }
 0x433   : > { %v2381_v50 = vpop.permute.xlu1 %2380  ;;  %v2357_v24 = vpop.permute.xlu0 %2356  ;;  %v2667_v51 = vld [vmem:[#allocation4 + $0x258] sm:$0xff] }
 0x434   : > { %3417 = vmatmul.mubr.bf16.gmra.mrb[36].mxu0 %v11077_v29  ;;  %11606 = vmatprep.subr.bf16.mxu1 %v2381_v50  ;;  %v11033_v50 = vcombine.low %v2594_v0, %v2602_v49 }
 0x435   : > { %2498 = vrot.lane.b32.xlu0 %v13519_v27, %s12948_s15  ;;  %11607 = vmatpush3.bf16.msra.mxu1 %v2357_v24  ;;  %v11050_v24 = vcombine.high %v2610_v5, %v2618_v6 }
 0x436   : > { %2522 = vrot.lane.b32.xlu1 %v13519_v27, %s12949_s17  ;;  %3424 = vmatprep.mubr.bf16.mxu0 %v11094_v33  ;;  %v11036_v33 = vcombine.high %v2595_v3, %v2603_v52 }
 0x437   : > { %v2335_v38 = vpop.permute.xlu1 %2334  ;;  %v2311_v47 = vpop.permute.xlu0 %2310 }
 0x438   : > { %3514 = vmatmul.mubr.bf16.gmra.mrb[36].mxu1 %v11079_v17  ;;  %11544 = vmatprep.subr.bf16.mxu0 %v2335_v38  ;;  %v2611_v17 = vld [vmem:[#allocation4 + $0x98] sm:$0xff]  ;;  %v11035_v38 = vcombine.low %v2595_v3, %v2603_v52  ;;  %v11099_v3 = vcombine.low %v2659_v40, %v2667_v51 }
 0x439   : > { %2546 = vrot.lane.b32.xlu0 %v13519_v27, %s12950_s24  ;;  %11545 = vmatpush3.bf16.msra.mxu0 %v2311_v47 }
 0x43a   : > { %2570 = vrot.lane.b32.xlu1 %v13519_v27, %s12951_s18  ;;  %3521 = vmatprep.mubr.bf16.mxu1 %v11096_v12  ;;  %v2619_v12 = vld [vmem:[#allocation4 + $0xd8] sm:$0xff] }
 0x43b   : > { %v2383_v16 = vpop.permute.xlu1 %2382  ;;  %v2359_v18 = vpop.permute.xlu0 %2358 }
 0x43c   : > { %3425 = vmatmul.mubr.bf16.gmra.mrb[40].mxu0 %v11093_v43  ;;  %11608 = vmatprep.subr.bf16.mxu1 %v2383_v16  ;;  %v2634_v43 = vld [vmem:[#allocation4 + $0x150] sm:$0xff] }
 0x43d   : > { %2500 = vrot.lane.b32.xlu0 %v13533_v37, %s12948_s15  ;;  %11609 = vmatpush3.bf16.msra.mxu1 %v2359_v18  ;;  %v11066_v16 = vcombine.high %v2626_v14, %v2634_v43 }
 0x43e   : > { %2524 = vrot.lane.b32.xlu1 %v13533_v37, %s12949_s17  ;;  %3432 = vmatprep.mubr.bf16.mxu0 %v11110_v15  ;;  %v11049_v15 = vcombine.low %v2610_v5, %v2618_v6  ;;  %v2690_v5 = vld [vmem:[#allocation4 + $0x310] sm:$0xff] }
 0x43f   : > { %v2337_v62 = vpop.permute.xlu1 %2336  ;;  %v2313_v27 = vpop.permute.xlu0 %2312  ;;  %v2698_v6 = vld [vmem:[#allocation4 + $0x350] sm:$0xff] }
 0x440   : > { %3522 = vmatmul.mubr.bf16.gmra.mrb[40].mxu1 %v11095_v20  ;;  %11546 = vmatprep.subr.bf16.mxu0 %v2337_v62  ;;  %v2635_v20 = vld [vmem:[#allocation4 + $0x158] sm:$0xff]  ;;  %v2642_v62 = vld [vmem:[#allocation4 + $0x190] sm:$0xff] }
 0x441   : > { %2548 = vrot.lane.b32.xlu0 %v13533_v37, %s12950_s24  ;;  %11547 = vmatpush3.bf16.msra.mxu0 %v2313_v27  ;;  %v2650_v27 = vld [vmem:[#allocation4 + $0x1d0] sm:$0xff]  ;;  %v11068_v1 = vcombine.high %v2627_v58, %v2635_v20 }
 0x442   : > { %2572 = vrot.lane.b32.xlu1 %v13533_v37, %s12951_s18  ;;  %3529 = vmatprep.mubr.bf16.mxu1 %v11112_v54  ;;  %v11051_v54 = vcombine.low %v2611_v17, %v2619_v12 }
 0x443   : > { %v2385_v25 = vpop.permute.xlu1 %2384  ;;  %v2361_v26 = vpop.permute.xlu0 %2360 }
 0x444   : > { %3433 = vmatmul.mubr.bf16.gmra.mrb[44].mxu0 %v11109_v23  ;;  %11610 = vmatprep.subr.bf16.mxu1 %v2385_v25  ;;  %v11082_v25 = vcombine.high %v2642_v62, %v2650_v27 }
 0x445   : > { %2502 = vrot.lane.b32.xlu0 %v13531_v11, %s12948_s15  ;;  %11611 = vmatpush3.bf16.msra.mxu1 %v2361_v26 }
 0x446   : > { %2526 = vrot.lane.b32.xlu1 %v13531_v11, %s12949_s17  ;;  %3440 = vmatprep.mubr.bf16.mxu0 %v11126_v7  ;;  %v11065_v7 = vcombine.low %v2626_v14, %v2634_v43  ;;  %v11129_v43 = vcombine.low %v2690_v5, %v2698_v6 }
 0x447   : > { %v2339_v4 = vpop.permute.xlu1 %2338  ;;  %v2315_v37 = vpop.permute.xlu0 %2314 }
 0x448   : > { %3530 = vmatmul.mubr.bf16.gmra.mrb[44].mxu1 %v11111_v35  ;;  %11548 = vmatprep.subr.bf16.mxu0 %v2339_v4  ;;  %v11067_v35 = vcombine.low %v2627_v58, %v2635_v20  ;;  %v2658_v4 = vld [vmem:[#allocation4 + $0x210] sm:$0xff] }
 0x449   : > { %2550 = vrot.lane.b32.xlu0 %v13531_v11, %s12950_s24  ;;  %11549 = vmatpush3.bf16.msra.mxu0 %v2315_v37  ;;  %v2666_v37 = vld [vmem:[#allocation4 + $0x250] sm:$0xff] }
 0x44a   : > { %2574 = vrot.lane.b32.xlu1 %v13531_v11, %s12951_s18  ;;  %3537 = vmatprep.mubr.bf16.mxu1 %v11128_v36  ;;  %v11097_v0 = vcombine.low %v2658_v4, %v2666_v37 }
 0x44b   : > { %v2387_v44 = vpop.permute.xlu1 %2386  ;;  %v2363_v45 = vpop.permute.xlu0 %2362 }
 0x44c   : > { %3441 = vmatmul.mubr.bf16.gmra.mrb[48].mxu0 %v11125_v39  ;;  %11612 = vmatprep.subr.bf16.mxu1 %v2387_v44  ;;  %v11081_v39 = vcombine.low %v2642_v62, %v2650_v27  ;;  %v2596_v62 = vld [vmem:[#allocation4 + $0x20] sm:$0xff] }
 0x44d   : > { %2504 = vrot.lane.b32.xlu0 %v13545_v41, %s12948_s15  ;;  %11613 = vmatpush3.bf16.msra.mxu1 %v2363_v45  ;;  %v2604_v27 = vld [vmem:[#allocation4 + $0x60] sm:$0xff] }
 0x44e   : > { %2528 = vrot.lane.b32.xlu1 %v13545_v41, %s12949_s17  ;;  %3448 = vmatprep.mubr.bf16.mxu0 %v11142_v31 }
 0x44f   : > { %v2343_v59 = vpop.permute.xlu1 %2342  ;;  %v2319_v11 = vpop.permute.xlu0 %2318 }
 0x450   : > { %3538 = vmatmul.mubr.bf16.gmra.mrb[48].mxu1 %v11127_v53  ;;  %v11100_v53 = vcombine.high %v2659_v40, %v2667_v51  ;;  %v2613_v51 = vld [vmem:[#allocation4 + $0xa8] sm:$0xff] }
 0x451   : > { %2552 = vrot.lane.b32.xlu0 %v13545_v41, %s12950_s24  ;;  %3545 = vmatprep.mubr.bf16.mxu1 %v11144_v55  ;;  %v2674_v55 = vld [vmem:[#allocation4 + $0x290] sm:$0xff] }
 0x452   : > { %2576 = vrot.lane.b32.xlu1 %v13545_v41, %s12951_s18 }
 0x453   : > { %v2341_v2 = vpop.permute.xlu1 %2340  ;;  %v2317_v61 = vpop.permute.xlu0 %2316 }
 0x454   : > { %3449 = vmatmul.mubr.bf16.gmra.mrb[52].mxu0 %v11141_v60  ;;  %11550 = vmatprep.subr.bf16.mxu0 %v2341_v2 }
 0x455   : > { %2506 = vrot.lane.b32.xlu0 %v13543_v28, %s12948_s15  ;;  %11551 = vmatpush3.bf16.msra.mxu0 %v2317_v61  ;;  %v2675_v61 = vld [vmem:[#allocation4 + $0x298] sm:$0xff] }
 0x456   : > { %2530 = vrot.lane.b32.xlu1 %v13543_v28, %s12949_s17  ;;  %11552 = vmatprep.subr.bf16.mxu0 %v2343_v59  ;;  %v2682_v59 = vld [vmem:[#allocation4 + $0x2d0] sm:$0xff] }
 0x457   : > { %v2389_v29 = vpop.permute.xlu1 %2388  ;;  %v2365_v41 = vpop.permute.xlu0 %2364  ;;  %3586 = vmatprep.mubr.bf16.mxu0 %v11034_v48  ;;  %v11114_v49 = vcombine.high %v2674_v55, %v2682_v59  ;;  %v2683_v48 = vld [vmem:[#allocation4 + $0x2d8] sm:$0xff] }
 0x458   : > { %3546 = vmatmul.mubr.bf16.gmra.mrb[52].mxu1 %v11143_v57  ;;  %11614 = vmatprep.subr.bf16.mxu1 %v2389_v29  ;;  %v11116_v52 = vcombine.high %v2675_v61, %v2683_v48 }
 0x459   : > { %2554 = vrot.lane.b32.xlu0 %v13543_v28, %s12950_s24  ;;  %11553 = vmatpush3.bf16.msra.mxu0 %v2319_v11 }
 0x45a   : > { %2578 = vrot.lane.b32.xlu1 %v13543_v28, %s12951_s18  ;;  %11615 = vmatpush3.bf16.msra.mxu1 %v2365_v41  ;;  %v11052_v28 = vcombine.high %v2611_v17, %v2619_v12  ;;  %v11115_v12 = vcombine.low %v2675_v61, %v2683_v48 }
 0x45b   : > { %v2391_v30 = vpop.permute.xlu1 %2390  ;;  %v2367_v8 = vpop.permute.xlu0 %2366  ;;  %3683 = vmatprep.mubr.bf16.mxu1 %v11036_v33  ;;  %v11113_v33 = vcombine.low %v2674_v55, %v2682_v59  ;;  %v12825_v55 = vld [vmem:[%s17904_s8] sm:$0xff] }
 0x45c   : > { %3587 = vmatmul.mubr.bf16.vlgmr.msra.gmra.mrb[56].mxu0 %v11033_v50  ;;  %11616 = vmatprep.subr.bf16.mxu1 %v2391_v30  ;;  %v11130_v50 = vcombine.high %v2690_v5, %v2698_v6  ;;  %v2691_v30 = vld [vmem:[#allocation4 + $0x318] sm:$0xff]  ;;  %v2637_v5 = vld [vmem:[#allocation4 + $0x168] sm:$0xff]  ;;  %v13807_v6 = vld [vmem:[%s17904_s8 + $0x50] sm:$0xff] }
 0x45d   : > { %2510 = vrot.lane.b32.xlu0 %v13555_v46, %s12948_s15  ;;  %3594 = vmatprep.mubr.bf16.mxu0 %v11050_v24 }
 0x45e   : > { %2534 = vrot.lane.b32.xlu1 %v13555_v46, %s12949_s17  ;;  %11617 = vmatpush3.bf16.msra.mxu1 %v2367_v8  ;;  %v2699_v8 = vld [vmem:[#allocation4 + $0x358] sm:$0xff] }
 0x45f   : > { %v2425_v47 = vpop.permute.xlu1 %2424  ;;  %v2401_v13 = vpop.permute.xlu0 %2400  ;;  %v11131_v20 = vcombine.low %v2691_v30, %v2699_v8 }
 0x460   : > { %11666 = vmatprep.subr.bf16.mxu0 %v2425_v47  ;;  %v2706_v47 = vld [vmem:[#allocation4 + $0x390] sm:$0xff] }
 0x461   : > { %3684 = vmatmul.mubr.bf16.vlgmr.msra.gmra.mrb[56].mxu1 %v11035_v38  ;;  %2508 = vrot.lane.b32.xlu0 %v13557_v56, %s12948_s15  ;;  %v11132_v38 = vcombine.high %v2691_v30, %v2699_v8  ;;  %v2652_v30 = vld [vmem:[#allocation4 + $0x1e0] sm:$0xff]  ;;  %v12828_v8 = vld [vmem:[%s17904_s8 + $0x8] sm:$0xff]  ;;  %s18079_s15 = smov 52  }
 0x462   : > { %2532 = vrot.lane.b32.xlu1 %v13557_v56, %s12949_s17  ;;  %11667 = vmatpush3.bf16.msra.mxu0 %v2401_v13  ;;  %v2714_v13 = vld [vmem:[#allocation4 + $0x3d0] sm:$0xff]  ;;  %s18076_s17 = smov 56  }
 0x463   : > { %v2473_v18 = vpop.permute.xlu1 %2472  ;;  %v2449_v42 = vpop.permute.xlu0 %2448  ;;  %3691 = vmatprep.mubr.bf16.mxu1 %v11052_v28 }
 0x464   : > { %3595 = vmatmul.mubr.bf16.gmra.mrb[60].mxu0 %v11049_v15  ;;  %11730 = vmatprep.subr.bf16.mxu1 %v2473_v18  ;;  %v11146_v15 = vcombine.high %v2706_v47, %v2714_v13  ;;  %v2707_v18 = vld [vmem:[#allocation4 + $0x398] sm:$0xff] }
 0x465   : > { %2556 = vrot.lane.b32.xlu0 %v13557_v56, %s12950_s24  ;;  %11731 = vmatpush3.bf16.msra.mxu1 %v2449_v42  ;;  %v2715_v42 = vld [vmem:[#allocation4 + $0x3d8] sm:$0xff] }
 0x466   : > { %2580 = vrot.lane.b32.xlu1 %v13557_v56, %s12951_s18  ;;  %3602 = vmatprep.mubr.bf16.mxu0 %v11066_v16  ;;  %v2643_v56 = vld [vmem:[#allocation4 + $0x198] sm:$0xff] }
 0x467   : > { %v2403_v10 = vpop.permute.xlu0 %2402  ;;  %v11084_v36 = vcombine.high %v2643_v56, %v2651_v22  ;;  %v11083_v45 = vcombine.low %v2643_v56, %v2651_v22  ;;  %v2597_v56 = vld [vmem:[#allocation4 + $0x28] sm:$0xff] }
 0x468   : > { %v2427_v23 = vpop.permute.xlu1 %2426  ;;  %v2605_v22 = vld [vmem:[#allocation4 + $0x68] sm:$0xff] }
 0x469   : > { %3692 = vmatmul.mubr.bf16.gmra.mrb[60].mxu1 %v11051_v54  ;;  %11668 = vmatprep.subr.bf16.mxu0 %v2427_v23  ;;  %v11148_v54 = vcombine.high %v2707_v18, %v2715_v42  ;;  %v11145_v23 = vcombine.low %v2706_v47, %v2714_v13  ;;  %v11039_v59 = vcombine.low %v2597_v56, %v2605_v22  ;;  %v2645_v13 = vld [vmem:[#allocation4 + $0x1a8] sm:$0xff] }
 0x46a   : > { %2582 = vrot.lane.b32.xlu1 %v13555_v46, %s12951_s18  ;;  %2558 = vrot.lane.b32.xlu0 %v13555_v46, %s12950_s24  ;;  %v11098_v46 = vcombine.high %v2658_v4, %v2666_v37  ;;  %v2612_v4 = vld [vmem:[#allocation4 + $0xa0] sm:$0xff]  ;;  %s18072_s18 = smov 4   ;;  %s18074_s24 = smov 60  }
 0x46b   : > { %11669 = vmatpush3.bf16.msra.mxu0 %v2403_v10  ;;  %v2451_v26 = vpop.permute.xlu0 %2450  ;;  %3699 = vmatprep.mubr.bf16.mxu1 %v11068_v1  ;;  %v2620_v37 = vld [vmem:[#allocation4 + $0xe0] sm:$0xff] }
 0x46c   : > { %v2475_v32 = vpop.permute.xlu1 %2474  ;;  %3603 = vmatmul.mubr.bf16.gmra.mrb[64].mxu0 %v11065_v7  ;;  %v11038_v7 = vcombine.high %v2596_v62, %v2604_v27  ;;  %v11053_v48 = vcombine.low %v2612_v4, %v2620_v37 }
 0x46d   : > { %11732 = vmatprep.subr.bf16.mxu1 %v2475_v32  ;;  %3610 = vmatprep.mubr.bf16.mxu0 %v11082_v25  ;;  %v11147_v32 = vcombine.low %v2707_v18, %v2715_v42  ;;  %v2660_v42 = vld [vmem:[#allocation4 + $0x220] sm:$0xff] }
 0x46e   : > { %11733 = vmatpush3.bf16.msra.mxu1 %v2451_v26 }
 0x46f   : > { %v2405_v63 = vpop.permute.xlu0 %2404 }
 0x470   : > { %v2429_v9 = vpop.permute.xlu1 %2428 }
 0x471   : > { %3700 = vmatmul.mubr.bf16.gmra.mrb[64].mxu1 %v11067_v35  ;;  %11670 = vmatprep.subr.bf16.mxu0 %v2429_v9  ;;  %v17918_v9 = vmov 3  }
 0x472   : > { %11671 = vmatpush3.bf16.msra.mxu0 %v2405_v63  ;;  %3707 = vmatprep.mubr.bf16.mxu1 %v11084_v36  ;;  %v11040_v36 = vcombine.high %v2597_v56, %v2605_v22  ;;  %v2676_v22 = vld [vmem:[#allocation4 + $0x2a0] sm:$0xff] }
 0x473   : > { %v2453_v31 = vpop.permute.xlu0 %2452  ;;  %12466 = vset.pattern.permute.xlu0 %v17918_v9 }
 0x474   : > { %v2477_v44 = vpop.permute.xlu1 %2476  ;;  %3611 = vmatmul.mubr.bf16.gmra.mrb[68].mxu0 %v11081_v39  ;;  %v17920_v39 = vmov 2  }
 0x475   : > { %11734 = vmatprep.subr.bf16.mxu1 %v2477_v44  ;;  %3618 = vmatprep.mubr.bf16.mxu0 %v11098_v46  ;;  %v11037_v46 = vcombine.low %v2596_v62, %v2604_v27  ;;  %v2621_v44 = vld [vmem:[#allocation4 + $0xe8] sm:$0xff] }
 0x476   : > { %11735 = vmatpush3.bf16.msra.mxu1 %v2453_v31  ;;  %12463 = vset.pattern.permute.xlu1 %v17920_v39  ;;  %v11054_v31 = vcombine.high %v2612_v4, %v2620_v37  ;;  %v13833_v4 = vld [vmem:[%s17904_s8 + $0x48] sm:$0xff] }
 0x477   : > { %v2407_v11 = vpop.permute.xlu0 %2406  ;;  %4137 = vperm.xlu1 %12463, %v12825_v55  }
 0x478   : > { %v2431_v60 = vpop.permute.xlu1 %2430 }
 0x479   : > { %3708 = vmatmul.mubr.bf16.gmra.mrb[68].mxu1 %v11083_v45  ;;  %11672 = vmatprep.subr.bf16.mxu0 %v2431_v60  ;;  %v12824_v45 = vld [vmem:[%s17904_s8 + $0x10] sm:$0xff] }
 0x47a   : > { %11673 = vmatpush3.bf16.msra.mxu0 %v2407_v11  ;;  %3715 = vmatprep.mubr.bf16.mxu1 %v11100_v53  ;;  %v11056_v11 = vcombine.high %v2613_v51, %v2621_v44 }
 0x47b   : > { %v2455_v2 = vpop.permute.xlu0 %2454  ;;  %4225 = vperm.xlu0 %12466, %v12824_v45   ;;  %12464 = vset.pattern.permute.xlu1 %v17918_v9 }
 0x47c   : > { %v2479_v57 = vpop.permute.xlu1 %2478  ;;  %3619 = vmatmul.mubr.bf16.gmra.mrb[72].mxu0 %v11097_v0  ;;  %v2628_v0 = vld [vmem:[#allocation4 + $0x120] sm:$0xff]  ;;  %4217 = vperm.xlu1 %12464, %v12825_v55  }
 0x47d   : > { %11736 = vmatprep.subr.bf16.mxu1 %v2479_v57  ;;  %3626 = vmatprep.mubr.bf16.mxu0 %v11114_v49  ;;  %v2636_v49 = vld [vmem:[#allocation4 + $0x160] sm:$0xff] }
 0x47e   : > { %11737 = vmatpush3.bf16.msra.mxu1 %v2455_v2  ;;  %v13800_v2 = vld [vmem:[%s17904_s8 + $0x30] sm:$0xff]  ;;  %v11070_v57 = vcombine.high %v2628_v0, %v2636_v49  ;;  %v2692_v55 = vld [vmem:[#allocation4 + $0x320] sm:$0xff] }
 0x47f   : > { %v2409_v29 = vpop.permute.xlu0 %2408  ;;  %4241 = vperm.xlu0 %12466, %v13800_v2  }
 0x480   : > { %v2433_v41 = vpop.permute.xlu1 %2432  ;;  %4221 = vperm.xlu1 %12464, %v12828_v8  }
 0x481   : > { %3716 = vmatmul.mubr.bf16.gmra.mrb[72].mxu1 %v11099_v3  ;;  %11674 = vmatprep.subr.bf16.mxu0 %v2433_v41  ;;  %v11055_v41 = vcombine.low %v2613_v51, %v2621_v44 }
 0x482   : > { %11675 = vmatpush3.bf16.msra.mxu0 %v2409_v29  ;;  %3723 = vmatprep.mubr.bf16.mxu1 %v11116_v52  ;;  %v2629_v52 = vld [vmem:[#allocation4 + $0x128] sm:$0xff] }
 0x483   : > { %v2457_v24 = vpop.permute.xlu0 %2456  ;;  %4257 = vperm.xlu0 %12466, %v13807_v6  }
 0x484   : > { %v2481_v17 = vpop.permute.xlu1 %2480  ;;  %3627 = vmatmul.mubr.bf16.gmra.mrb[76].mxu0 %v11113_v33  ;;  %v11072_v33 = vcombine.high %v2629_v52, %v2637_v5  ;;  %12465 = vset.pattern.permute.xlu1 %v17920_v39 }
 0x485   : > { %11738 = vmatprep.subr.bf16.mxu1 %v2481_v17  ;;  %3634 = vmatprep.mubr.bf16.mxu0 %v11130_v50 }
 0x486   : > { %11739 = vmatpush3.bf16.msra.mxu1 %v2457_v24  ;;  %v2644_v24 = vld [vmem:[#allocation4 + $0x1a0] sm:$0xff] }
 0x487   : > { %v2411_v28 = vpop.permute.xlu0 %2410  ;;  %12475 = vset.pattern.permute.xlu0 %v17920_v39  ;;  %v11085_v62 = vcombine.low %v2644_v24, %v2652_v30 }
 0x488   : > { %v2435_v14 = vpop.permute.xlu1 %2434  ;;  %4141 = vperm.xlu0 %12475, %v12828_v8  }
 0x489   : > { %3724 = vmatmul.mubr.bf16.gmra.mrb[76].mxu1 %v11115_v12  ;;  %11676 = vmatprep.subr.bf16.mxu0 %v2435_v14  ;;  %v11069_v12 = vcombine.low %v2628_v0, %v2636_v49 }
 0x48a   : > { %11677 = vmatpush3.bf16.msra.mxu0 %v2411_v28  ;;  %3731 = vmatprep.mubr.bf16.mxu1 %v11132_v38  ;;  %v11086_v38 = vcombine.high %v2644_v24, %v2652_v30  ;;  %v2653_v28 = vld [vmem:[#allocation4 + $0x1e8] sm:$0xff] }
 0x48b   : > { %v2459_v16 = vpop.permute.xlu0 %2458 }
 0x48c   : > { %v2483_v58 = vpop.permute.xlu1 %2482  ;;  %3635 = vmatmul.mubr.bf16.gmra.mrb[80].mxu0 %v11129_v43  ;;  %4145 = vperm.xlu0 %12475, %v12824_v45   ;;  %v12829_v43 = vld [vmem:[%s17904_s8 + $0x18] sm:$0xff] }
 0x48d   : > { %11740 = vmatprep.subr.bf16.mxu1 %v2483_v58  ;;  %3642 = vmatprep.mubr.bf16.mxu0 %v11146_v15  ;;  %v11071_v15 = vcombine.low %v2629_v52, %v2637_v5  ;;  %v2668_v58 = vld [vmem:[#allocation4 + $0x260] sm:$0xff] }
 0x48e   : > { %11741 = vmatpush3.bf16.msra.mxu1 %v2459_v16  ;;  %4149 = vperm.xlu1 %12465, %v12829_v43   ;;  %v11088_v16 = vcombine.high %v2645_v13, %v2653_v28  ;;  %v11102_v27 = vcombine.high %v2660_v42, %v2668_v58  ;;  %v11101_v37 = vcombine.low %v2660_v42, %v2668_v58 }
 0x48f   : > { %v2415_v10 = vpop.permute.xlu0 %2414 }
 0x490   : > { %v2439_v1 = vpop.permute.xlu1 %2438 }
 0x491   : > { %3732 = vmatmul.mubr.bf16.gmra.mrb[80].mxu1 %v11131_v20 }
 0x492   : > { %3739 = vmatprep.mubr.bf16.mxu1 %v11148_v54  ;;  %v13821_v54 = vld [vmem:[%s17904_s8 + $0x28] sm:$0xff]  ;;  %12467 = vset.pattern.permute.xlu1 %v17918_v9 }
 0x493   : > { %v2413_v25 = vpop.permute.xlu0 %2412  ;;  %4157 = vperm.xlu0 %12475, %v13821_v54   ;;  %4229 = vperm.xlu1 %12467, %v12829_v43   ;;  %v2606_v43 = vld [vmem:[#allocation4 + $0x70] sm:$0xff] }
 0x494   : > { %v2437_v26 = vpop.permute.xlu1 %2436  ;;  %3643 = vmatmul.mubr.bf16.gmra.mrb[84].mxu0 %v11145_v23  ;;  %v2669_v23 = vld [vmem:[#allocation4 + $0x268] sm:$0xff] }
 0x495   : > { %11678 = vmatprep.subr.bf16.mxu0 %v2437_v26  ;;  %3780 = vmatprep.mubr.bf16.mxu0 %v11038_v7 }
 0x496   : > { %11679 = vmatpush3.bf16.msra.mxu0 %v2413_v25  ;;  %v11087_v25 = vcombine.low %v2645_v13, %v2653_v28 }
 0x497   : > { %11680 = vmatprep.subr.bf16.mxu0 %v2439_v1  ;;  %v2461_v35 = vpop.permute.xlu0 %2460  ;;  %v2661_v1 = vld [vmem:[#allocation4 + $0x228] sm:$0xff]  ;;  %4161 = vperm.xlu0 %12475, %v13800_v2  }
 0x498   : > { %v2485_v63 = vpop.permute.xlu1 %2484  ;;  %v11104_v26 = vcombine.high %v2661_v1, %v2669_v23  ;;  %12468 = vset.pattern.permute.xlu1 %v17920_v39  ;;  %v11103_v44 = vcombine.low %v2661_v1, %v2669_v23  ;;  %v2614_v23 = vld [vmem:[#allocation4 + $0xb0] sm:$0xff] }
 0x499   : > { %3740 = vmatmul.mubr.bf16.gmra.mrb[84].mxu1 %v11147_v32  ;;  %11742 = vmatprep.subr.bf16.mxu1 %v2485_v63  ;;  %v2684_v32 = vld [vmem:[#allocation4 + $0x2e0] sm:$0xff] }
 0x49a   : > { %11681 = vmatpush3.bf16.msra.mxu0 %v2415_v10  ;;  %11743 = vmatpush3.bf16.msra.mxu1 %v2461_v35  ;;  %v11118_v63 = vcombine.high %v2676_v22, %v2684_v32  ;;  %v11117_v0 = vcombine.low %v2676_v22, %v2684_v32  ;;  %v2615_v22 = vld [vmem:[#allocation4 + $0xb8] sm:$0xff] }
 0x49b   : > { %v2463_v40 = vpop.permute.xlu0 %2462  ;;  %3877 = vmatprep.mubr.bf16.mxu1 %v11040_v36  ;;  %v12831_v36 = vld [vmem:[%s17904_s8 + $0x20] sm:$0xff]  ;;  %4173 = vperm.xlu0 %12475, %v13833_v4   ;;  %v2623_v32 = vld [vmem:[#allocation4 + $0xf8] sm:$0xff] }
 0x49c   : > { %v2487_v53 = vpop.permute.xlu1 %2486  ;;  %4153 = vperm.xlu1 %12468, %v12831_v36  }
 0x49d   : > { %3781 = vmatmul.mubr.bf16.vlgmr.msra.gmra.mrb[88].mxu0 %v11037_v46  ;;  %11744 = vmatprep.subr.bf16.mxu1 %v2487_v53 }
 0x49e   : > { %11745 = vmatpush3.bf16.msra.mxu1 %v2463_v40  ;;  %3788 = vmatprep.mubr.bf16.mxu0 %v11054_v31  ;;  %v2677_v31 = vld [vmem:[#allocation4 + $0x2a8] sm:$0xff] }
 0x49f   : > { %v2497_v60 = vpop.permute.xlu0 %2496  ;;  %v2685_v40 = vld [vmem:[#allocation4 + $0x2e8] sm:$0xff]  ;;  %4177 = vperm.xlu0 %12475, %v13807_v6  }
 0x4a0   : > { %v2521_v61 = vpop.permute.xlu1 %2520  ;;  %12469 = vset.pattern.permute.xlu1 %v17918_v9  ;;  %v11120_v45 = vcombine.high %v2677_v31, %v2685_v40  ;;  %v11119_v52 = vcombine.low %v2677_v31, %v2685_v40  ;;  %v2638_v31 = vld [vmem:[#allocation4 + $0x170] sm:$0xff] }
 0x4a1   : > { %3878 = vmatmul.mubr.bf16.vlgmr.msra.gmra.mrb[88].mxu1 %v11039_v59  ;;  %11794 = vmatprep.subr.bf16.mxu0 %v2521_v61  ;;  %v2700_v59 = vld [vmem:[#allocation4 + $0x360] sm:$0xff]  ;;  %v2693_v61 = vld [vmem:[#allocation4 + $0x328] sm:$0xff] }
 0x4a2   : > { %11795 = vmatpush3.bf16.msra.mxu0 %v2497_v60  ;;  %3885 = vmatprep.mubr.bf16.mxu1 %v11056_v11  ;;  %v13841_v60 = vld [vmem:[%s17904_s8 + $0x68] sm:$0xff]  ;;  %v11134_v49 = vcombine.high %v2692_v55, %v2700_v59  ;;  %v11133_v24 = vcombine.low %v2692_v55, %v2700_v59  ;;  %v11059_v55 = vcombine.low %v2615_v22, %v2623_v32 }
 0x4a3   : > { %v2545_v3 = vpop.permute.xlu0 %2544  ;;  %4233 = vperm.xlu1 %12469, %v12831_v36   ;;  %4189 = vperm.xlu0 %12475, %v13841_v60  }
 0x4a4   : > { %v2569_v29 = vpop.permute.xlu1 %2568 }
 0x4a5   : > { %3789 = vmatmul.mubr.bf16.gmra.mrb[92].mxu0 %v11053_v48  ;;  %11858 = vmatprep.subr.bf16.mxu1 %v2569_v29  ;;  %v2701_v48 = vld [vmem:[#allocation4 + $0x368] sm:$0xff]  ;;  %v2708_v29 = vld [vmem:[#allocation4 + $0x3a0] sm:$0xff] }
 0x4a6   : > { %11859 = vmatpush3.bf16.msra.mxu1 %v2545_v3  ;;  %3796 = vmatprep.mubr.bf16.mxu0 %v11070_v57  ;;  %v12834_v3 = vld [vmem:[%s17904_s8 + $0x70] sm:$0xff]  ;;  %v11136_v5 = vcombine.high %v2693_v61, %v2701_v48 }
 0x4a7   : > { %v2499_v50 = vpop.permute.xlu0 %2498  ;;  %4237 = vperm.xlu1 %12469, %v13821_v54   ;;  %4193 = vperm.xlu0 %12475, %v12834_v3   ;;  %v2607_v54 = vld [vmem:[#allocation4 + $0x78] sm:$0xff] }
 0x4a8   : > { %v2523_v17 = vpop.permute.xlu1 %2522 }
 0x4a9   : > { %3886 = vmatmul.mubr.bf16.gmra.mrb[92].mxu1 %v11055_v41  ;;  %11796 = vmatprep.subr.bf16.mxu0 %v2523_v17  ;;  %v2716_v41 = vld [vmem:[#allocation4 + $0x3e0] sm:$0xff]  ;;  %v2709_v17 = vld [vmem:[#allocation4 + $0x3a8] sm:$0xff] }
 0x4aa   : > { %11797 = vmatpush3.bf16.msra.mxu0 %v2499_v50  ;;  %3893 = vmatprep.mubr.bf16.mxu1 %v11072_v33  ;;  %v12835_v50 = vld [vmem:[%s17904_s8 + $0x38] sm:$0xff]  ;;  %v11150_v30 = vcombine.high %v2708_v29, %v2716_v41 }
 0x4ab   : > { %v2547_v47 = vpop.permute.xlu0 %2546  ;;  %12470 = vset.pattern.permute.xlu1 %v17920_v39  ;;  %12480 = vset.pattern.permute.xlu0 %v17918_v9 }
 0x4ac   : > { %v2571_v14 = vpop.permute.xlu1 %2570  ;;  %4165 = vperm.xlu1 %12470, %v12835_v50   ;;  %4273 = vperm.xlu0 %12480, %v12834_v3   ;;  %v12838_v3 = vld [vmem:[%s17904_s8 + $0x60] sm:$0xff] }
 0x4ad   : > { %3797 = vmatmul.mubr.bf16.gmra.mrb[96].mxu0 %v11069_v12  ;;  %11860 = vmatprep.subr.bf16.mxu1 %v2571_v14  ;;  %v2717_v12 = vld [vmem:[#allocation4 + $0x3e8] sm:$0xff]  ;;  %v2598_v14 = vld [vmem:[#allocation4 + $0x30] sm:$0xff] }
 0x4ae   : > { %11861 = vmatpush3.bf16.msra.mxu1 %v2547_v47  ;;  %3804 = vmatprep.mubr.bf16.mxu0 %v11086_v38  ;;  %v11135_v47 = vcombine.low %v2693_v61, %v2701_v48  ;;  %v11152_v13 = vcombine.high %v2709_v17, %v2717_v12  ;;  %v2655_v61 = vld [vmem:[#allocation4 + $0x1f8] sm:$0xff] }
 0x4af   : > { %v2501_v18 = vpop.permute.xlu0 %2500 }
 0x4b0   : > { %v2525_v20 = vpop.permute.xlu1 %2524  ;;  %12471 = vset.pattern.permute.xlu1 %v17918_v9 }
 0x4b1   : > { %3894 = vmatmul.mubr.bf16.gmra.mrb[96].mxu1 %v11071_v15  ;;  %11798 = vmatprep.subr.bf16.mxu0 %v2525_v20  ;;  %v2599_v20 = vld [vmem:[#allocation4 + $0x38] sm:$0xff] }
 0x4b2   : > { %11799 = vmatpush3.bf16.msra.mxu0 %v2501_v18  ;;  %3901 = vmatprep.mubr.bf16.mxu1 %v11088_v16  ;;  %v11149_v16 = vcombine.low %v2708_v29, %v2716_v41  ;;  %v11042_v18 = vcombine.high %v2598_v14, %v2606_v43  ;;  %v11044_v1 = vcombine.high %v2599_v20, %v2607_v54 }
 0x4b3   : > { %v2549_v10 = vpop.permute.xlu0 %2548  ;;  %4245 = vperm.xlu1 %12471, %v12835_v50  }
 0x4b4   : > { %v2573_v7 = vpop.permute.xlu1 %2572 }
 0x4b5   : > { %3805 = vmatmul.mubr.bf16.gmra.mrb[100].mxu0 %v11085_v62  ;;  %11862 = vmatprep.subr.bf16.mxu1 %v2573_v7  ;;  %v12836_v62 = vld [vmem:[%s17904_s8 + $0x40] sm:$0xff]  ;;  %v2622_v7 = vld [vmem:[#allocation4 + $0xf0] sm:$0xff] }
 0x4b6   : > { %11863 = vmatpush3.bf16.msra.mxu1 %v2549_v10  ;;  %3812 = vmatprep.mubr.bf16.mxu0 %v11102_v27  ;;  %v11151_v27 = vcombine.low %v2709_v17, %v2717_v12  ;;  %v11057_v40 = vcombine.low %v2614_v23, %v2622_v7  ;;  %v2663_v12 = vld [vmem:[#allocation4 + $0x238] sm:$0xff] }
 0x4b7   : > { %v2503_v56 = vpop.permute.xlu0 %2502  ;;  %12472 = vset.pattern.permute.xlu1 %v17920_v39 }
 0x4b8   : > { %v2527_v35 = vpop.permute.xlu1 %2526  ;;  %4169 = vperm.xlu1 %12472, %v12836_v62  }
 0x4b9   : > { %3902 = vmatmul.mubr.bf16.gmra.mrb[100].mxu1 %v11087_v25  ;;  %11800 = vmatprep.subr.bf16.mxu0 %v2527_v35 }
 0x4ba   : > { %11801 = vmatpush3.bf16.msra.mxu0 %v2503_v56  ;;  %3909 = vmatprep.mubr.bf16.mxu1 %v11104_v26  ;;  %v11041_v26 = vcombine.low %v2598_v14, %v2606_v43  ;;  %v11058_v56 = vcombine.high %v2614_v23, %v2622_v7 }
 0x4bb   : > { %v2551_v46 = vpop.permute.xlu0 %2550 }
 0x4bc   : > { %v2575_v51 = vpop.permute.xlu1 %2574  ;;  %12473 = vset.pattern.permute.xlu1 %v17918_v9 }
 0x4bd   : > { %3813 = vmatmul.mubr.bf16.gmra.mrb[104].mxu0 %v11101_v37  ;;  %11864 = vmatprep.subr.bf16.mxu1 %v2575_v51  ;;  %v11043_v37 = vcombine.low %v2599_v20, %v2607_v54  ;;  %v2686_v20 = vld [vmem:[#allocation4 + $0x2f0] sm:$0xff] }
 0x4be   : > { %11865 = vmatpush3.bf16.msra.mxu1 %v2551_v46  ;;  %3820 = vmatprep.mubr.bf16.mxu0 %v11118_v63  ;;  %v11060_v63 = vcombine.high %v2615_v22, %v2623_v32  ;;  %v2630_v46 = vld [vmem:[#allocation4 + $0x130] sm:$0xff]  ;;  %v2687_v22 = vld [vmem:[#allocation4 + $0x2f8] sm:$0xff] }
 0x4bf   : > { %v2505_v53 = vpop.permute.xlu0 %2504  ;;  %4249 = vperm.xlu1 %12473, %v12836_v62   ;;  %v11074_v51 = vcombine.high %v2630_v46, %v2638_v31 }
 0x4c0   : > { %v2529_v11 = vpop.permute.xlu1 %2528 }
 0x4c1   : > { %3910 = vmatmul.mubr.bf16.gmra.mrb[104].mxu1 %v11103_v44  ;;  %11802 = vmatprep.subr.bf16.mxu0 %v2529_v11  ;;  %v2631_v44 = vld [vmem:[#allocation4 + $0x138] sm:$0xff]  ;;  %v2646_v11 = vld [vmem:[#allocation4 + $0x1b0] sm:$0xff] }
 0x4c2   : > { %11803 = vmatpush3.bf16.msra.mxu0 %v2505_v53  ;;  %3917 = vmatprep.mubr.bf16.mxu1 %v11120_v45  ;;  %v2639_v45 = vld [vmem:[#allocation4 + $0x178] sm:$0xff] }
 0x4c3   : > { %v2553_v2 = vpop.permute.xlu0 %2552  ;;  %4253 = vperm.xlu1 %12473, %v13833_v4   ;;  %v12837_v53 = vld [vmem:[%s17904_s8 + $0x58] sm:$0xff]  ;;  %v11076_v59 = vcombine.high %v2631_v44, %v2639_v45  ;;  %v11073_v4 = vcombine.low %v2630_v46, %v2638_v31  ;;  %v11075_v48 = vcombine.low %v2631_v44, %v2639_v45  ;;  %v2694_v44 = vld [vmem:[#allocation4 + $0x330] sm:$0xff] }
 0x4c4   : > { %v2577_v57 = vpop.permute.xlu1 %2576  ;;  %v2702_v45 = vld [vmem:[#allocation4 + $0x370] sm:$0xff] }
 0x4c5   : > { %3821 = vmatmul.mubr.bf16.gmra.mrb[108].mxu0 %v11117_v0  ;;  %11866 = vmatprep.subr.bf16.mxu1 %v2577_v57  ;;  %v2654_v0 = vld [vmem:[#allocation4 + $0x1f0] sm:$0xff] }
 0x4c6   : > { %11867 = vmatpush3.bf16.msra.mxu1 %v2553_v2  ;;  %3828 = vmatprep.mubr.bf16.mxu0 %v11134_v49  ;;  %v11090_v49 = vcombine.high %v2646_v11, %v2654_v0  ;;  %v2647_v2 = vld [vmem:[#allocation4 + $0x1b8] sm:$0xff]  ;;  %v11089_v50 = vcombine.low %v2646_v11, %v2654_v0 }
 0x4c7   : > { %v2507_v6 = vpop.permute.xlu0 %2506  ;;  %12474 = vset.pattern.permute.xlu1 %v17920_v39  ;;  %v11092_v57 = vcombine.high %v2647_v2, %v2655_v61  ;;  %v11091_v14 = vcombine.low %v2647_v2, %v2655_v61 }
 0x4c8   : > { %v2531_v33 = vpop.permute.xlu1 %2530  ;;  %4181 = vperm.xlu1 %12474, %v12837_v53  }
 0x4c9   : > { %3918 = vmatmul.mubr.bf16.gmra.mrb[108].mxu1 %v11119_v52  ;;  %11804 = vmatprep.subr.bf16.mxu0 %v2531_v33 }
 0x4ca   : > { %11805 = vmatpush3.bf16.msra.mxu0 %v2507_v6  ;;  %3925 = vmatprep.mubr.bf16.mxu1 %v11136_v5  ;;  %v2662_v5 = vld [vmem:[#allocation4 + $0x230] sm:$0xff] }
 0x4cb   : > { %v2555_v8 = vpop.permute.xlu0 %2554  ;;  %v2670_v6 = vld [vmem:[#allocation4 + $0x270] sm:$0xff] }
 0x4cc   : > { %v2579_v38 = vpop.permute.xlu1 %2578  ;;  %12476 = vset.pattern.permute.xlu1 %v17918_v9 }
 0x4cd   : > { %3829 = vmatmul.mubr.bf16.gmra.mrb[112].mxu0 %v11133_v24  ;;  %11868 = vmatprep.subr.bf16.mxu1 %v2579_v38  ;;  %v2671_v38 = vld [vmem:[#allocation4 + $0x278] sm:$0xff] }
 0x4ce   : > { %11869 = vmatpush3.bf16.msra.mxu1 %v2555_v8  ;;  %3836 = vmatprep.mubr.bf16.mxu0 %v11150_v30  ;;  %v11106_v30 = vcombine.high %v2662_v5, %v2670_v6 }
 0x4cf   : > { %v2511_v28 = vpop.permute.xlu0 %2510  ;;  %4261 = vperm.xlu1 %12476, %v12837_v53  }
 0x4d0   : > { %v2535_v15 = vpop.permute.xlu1 %2534 }
 0x4d1   : > { %3926 = vmatmul.mubr.bf16.gmra.mrb[112].mxu1 %v11135_v47 }
 0x4d2   : > { %3933 = vmatprep.mubr.bf16.mxu1 %v11152_v13 }
 0x4d3   : > { %v2509_v42 = vpop.permute.xlu0 %2508  ;;  %12477 = vset.pattern.permute.xlu1 %v17920_v39 }
 0x4d4   : > { %v2533_v58 = vpop.permute.xlu1 %2532  ;;  %4185 = vperm.xlu1 %12477, %v12838_v3  }
 0x4d5   : > { %3837 = vmatmul.mubr.bf16.gmra.mrb[116].mxu0 %v11149_v16  ;;  %11806 = vmatprep.subr.bf16.mxu0 %v2533_v58  ;;  %v2678_v58 = vld [vmem:[#allocation4 + $0x2b0] sm:$0xff] }
 0x4d6   : > { %11807 = vmatpush3.bf16.msra.mxu0 %v2509_v42  ;;  %3974 = vmatprep.mubr.bf16.mxu0 %v11042_v18  ;;  %v11122_v7 = vcombine.high %v2678_v58, %v2686_v20  ;;  %v11121_v0 = vcombine.low %v2678_v58, %v2686_v20 }
 0x4d7   : > { %11808 = vmatprep.subr.bf16.mxu0 %v2535_v15  ;;  %v2557_v10 = vpop.permute.xlu0 %2556  ;;  %v11108_v15 = vcombine.high %v2663_v12, %v2671_v38 }
 0x4d8   : > { %v2581_v25 = vpop.permute.xlu1 %2580  ;;  %12478 = vset.pattern.permute.xlu1 %v17918_v9 }
 0x4d9   : > { %3934 = vmatmul.mubr.bf16.gmra.mrb[116].mxu1 %v11151_v27  ;;  %11870 = vmatprep.subr.bf16.mxu1 %v2581_v25 }
 0x4da   : > { %11809 = vmatpush3.bf16.msra.mxu0 %v2511_v28  ;;  %11871 = vmatpush3.bf16.msra.mxu1 %v2557_v10 }
 0x4db   : > { %4071 = vmatprep.mubr.bf16.mxu1 %v11044_v1  ;;  %4265 = vperm.xlu1 %12478, %v12838_v3   ;;  %v11105_v1 = vcombine.low %v2662_v5, %v2670_v6 }
 0x4dc   : > { %v2583_v35 = vpop.permute.xlu1 %2582  ;;  %v2559_v36 = vpop.permute.xlu0 %2558 }
 0x4dd   : > { %3975 = vmatmul.mubr.bf16.vlgmr.msra.gmra.mrb[120].mxu0 %v11041_v26  ;;  %11872 = vmatprep.subr.bf16.mxu1 %v2583_v35 }
 0x4de   : > { %11873 = vmatpush3.bf16.msra.mxu1 %v2559_v36  ;;  %3982 = vmatprep.mubr.bf16.mxu0 %v11058_v56  ;;  %v2679_v56 = vld [vmem:[#allocation4 + $0x2b8] sm:$0xff] }
 0x4df   : > { %4269 = vperm.xlu1 %12478, %v13841_v60   ;;  %v12839_v60 = vld [vmem:[%s17904_s8 + $0x78] sm:$0xff]  ;;  %v11124_v46 = vcombine.high %v2679_v56, %v2687_v22  ;;  %v11123_v6 = vcombine.low %v2679_v56, %v2687_v22 }
 0x4e1   : > { %4072 = vmatmul.mubr.bf16.vlgmr.msra.gmra.mrb[120].mxu1 %v11043_v37  ;;  %v11107_v37 = vcombine.low %v2663_v12, %v2671_v38 }
 0x4e2   : > { %4079 = vmatprep.mubr.bf16.mxu1 %v11060_v63 }
 0x4e3   : > { %12479 = vset.pattern.permute.xlu1 %v17920_v39 }
 0x4e4   : > { %4197 = vperm.xlu1 %12479, %v12839_v60  }
 0x4e5   : > { %3983 = vmatmul.mubr.bf16.gmra.mrb[124].mxu0 %v11057_v40 }
 0x4e6   : > { %3990 = vmatprep.mubr.bf16.mxu0 %v11074_v51 }
 0x4e8   : > { %12481 = vset.pattern.permute.xlu1 %v17918_v9 }
 0x4e9   : > { %4080 = vmatmul.mubr.bf16.gmra.mrb[124].mxu1 %v11059_v55  ;;  %4277 = vperm.xlu1 %12481, %v12839_v60  }
 0x4ea   : > { %4087 = vmatprep.mubr.bf16.mxu1 %v11076_v59 }
 0x4ed   : > { %3991 = vmatmul.mubr.bf16.gmra.mrb[128].mxu0 %v11073_v4 }
 0x4ee   : > { %3998 = vmatprep.mubr.bf16.mxu0 %v11090_v49  ;;  %v11138_v49 = vcombine.high %v2694_v44, %v2702_v45 }
 0x4ef   : > { %v11426_v52 = vpop.f32.mrb[24].mxu0 }
 0x4f0   : > { %v11427_v29 = vpop.f32.mrb[25].mxu0 }
 0x4f1   : > { %4088 = vmatmul.mubr.bf16.gmra.mrb[128].mxu1 %v11075_v48  ;;  %v11428_v41 = vadd.f32 %v11427_v29, %v11426_v52  ;;  %v11429_v33 = vpop.f32.mrb[26].mxu0  ;;  %v2695_v48 = vld [vmem:[#allocation4 + $0x338] sm:$0xff] }
 0x4f2   : > { %v11430_v24 = vpop.f32.mrb[27].mxu0  ;;  %4095 = vmatprep.mubr.bf16.mxu1 %v11092_v57  ;;  %v2703_v57 = vld [vmem:[#allocation4 + $0x378] sm:$0xff] }
 0x4f3   : > { %v11490_v8 = vpop.f32.mrb[24].mxu1  ;;  %v11431_v17 = vadd.f32 %v11430_v24, %v11429_v33 }
 0x4f4   : > { %v11491_v47 = vpop.f32.mrb[25].mxu1 }
 0x4f5   : > { %v11492_v13 = vadd.f32 %v11491_v47, %v11490_v8  ;;  %3999 = vmatmul.mubr.bf16.gmra.mrb[132].mxu0 %v11089_v50  ;;  %v11493_v28 = vpop.f32.mrb[26].mxu1  ;;  %v2718_v8 = vld [vmem:[#allocation4 + $0x3f0] sm:$0xff] }
 0x4f6   : > { %v11494_v43 = vpop.f32.mrb[27].mxu1  ;;  %4006 = vmatprep.mubr.bf16.mxu0 %v11106_v30  ;;  %v2710_v30 = vld [vmem:[#allocation4 + $0x3b0] sm:$0xff] }
 0x4f7   : > { %v13870_v16 = vadd.f32 %v11492_v13, %v11428_v41  ;;  %v11495_v18 = vadd.f32 %v11494_v43, %v11493_v28  ;;  %v11432_v42 = vpop.f32.mrb[28].mxu0  ;;  %v11140_v41 = vcombine.high %v2695_v48, %v2703_v57  ;;  %v11137_v13 = vcombine.low %v2694_v44, %v2702_v45 }
 0x4f8   : > { %v11433_v54 = vpop.f32.mrb[29].mxu0  ;;  %v11153_v60 = vcombine.low %v2710_v30, %v2718_v8 }
 0x4f9   : > { %v13873_v62 = vadd.f32 %v11495_v18, %v11431_v17  ;;  %4096 = vmatmul.mubr.bf16.gmra.mrb[132].mxu1 %v11091_v14  ;;  %v11434_v27 = vadd.f32 %v11433_v54, %v11432_v42  ;;  %v11435_v10 = vpop.f32.mrb[30].mxu0  ;;  %v11154_v14 = vcombine.high %v2710_v30, %v2718_v8  ;;  %v2711_v18 = vld [vmem:[#allocation4 + $0x3b8] sm:$0xff] }
 0x4fa   : > { %v11436_v23 = vpop.f32.mrb[31].mxu0  ;;  %4103 = vmatprep.mubr.bf16.mxu1 %v11108_v15  ;;  %v2719_v42 = vld [vmem:[#allocation4 + $0x3f8] sm:$0xff] }
 0x4fb   : > { %v11496_v25 = vpop.f32.mrb[28].mxu1  ;;  %v11437_v26 = vadd.f32 %v11436_v23, %v11435_v10 }
 0x4fc   : > { %v11497_v32 = vpop.f32.mrb[29].mxu1 }
 0x4fd   : > { %v11498_v35 = vadd.f32 %v11497_v32, %v11496_v25  ;;  %4007 = vmatmul.mubr.bf16.gmra.mrb[136].mxu0 %v11105_v1  ;;  %v11499_v36 = vpop.f32.mrb[30].mxu1  ;;  %v11156_v1 = vcombine.high %v2711_v18, %v2719_v42 }
 0x4fe   : > { %v11500_v63 = vpop.f32.mrb[31].mxu1  ;;  %4014 = vmatprep.mubr.bf16.mxu0 %v11122_v7 }
 0x4ff   : > { %v13879_v31 = vadd.f32 %v11498_v35, %v11434_v27  ;;  %v11501_v40 = vadd.f32 %v11500_v63, %v11499_v36  ;;  %v11438_v51 = vpop.f32.mrb[32].mxu0  ;;  %v11139_v27 = vcombine.low %v2695_v48, %v2703_v57 }
 0x500   : > { %v11439_v53 = vpop.f32.mrb[33].mxu0 }
 0x501   : > { %v13882_v55 = vadd.f32 %v11501_v40, %v11437_v26  ;;  %4104 = vmatmul.mubr.bf16.gmra.mrb[136].mxu1 %v11107_v37  ;;  %v11440_v59 = vadd.f32 %v11439_v53, %v11438_v51  ;;  %v11441_v11 = vpop.f32.mrb[34].mxu0  ;;  %v11155_v51 = vcombine.low %v2711_v18, %v2719_v42 }
 0x502   : > { %v11442_v4 = vpop.f32.mrb[35].mxu0  ;;  %4111 = vmatprep.mubr.bf16.mxu1 %v11124_v46 }
 0x503   : > { %v11502_v2 = vpop.f32.mrb[32].mxu1  ;;  %v11443_v61 = vadd.f32 %v11442_v4, %v11441_v11 }
 0x504   : > { %v11503_v3 = vpop.f32.mrb[33].mxu1 }
 0x505   : > { %v11504_v52 = vadd.f32 %v11503_v3, %v11502_v2  ;;  %4015 = vmatmul.mubr.bf16.gmra.mrb[140].mxu0 %v11121_v0  ;;  %v11505_v5 = vpop.f32.mrb[34].mxu1 }
 0x506   : > { %v11506_v29 = vpop.f32.mrb[35].mxu1  ;;  %4022 = vmatprep.mubr.bf16.mxu0 %v11138_v49 }
 0x507   : > { %v13884_v33 = vadd.f32 %v11504_v52, %v11440_v59  ;;  %v11507_v50 = vadd.f32 %v11506_v29, %v11505_v5  ;;  %v11444_v24 = vpop.f32.mrb[36].mxu0 }
 0x508   : > { %v11445_v17 = vpop.f32.mrb[37].mxu0 }
 0x509   : > { %v13886_v12 = vadd.f32 %v11507_v50, %v11443_v61  ;;  %4112 = vmatmul.mubr.bf16.gmra.mrb[140].mxu1 %v11123_v6  ;;  %v11446_v38 = vadd.f32 %v11445_v17, %v11444_v24  ;;  %v11447_v47 = vpop.f32.mrb[38].mxu0 }
 0x50a   : > { %v11448_v28 = vpop.f32.mrb[39].mxu0  ;;  %4119 = vmatprep.mubr.bf16.mxu1 %v11140_v41 }
 0x50b   : > { %v11508_v43 = vpop.f32.mrb[36].mxu1  ;;  %v11449_v15 = vadd.f32 %v11448_v28, %v11447_v47 }
 0x50c   : > { %v11509_v58 = vpop.f32.mrb[37].mxu1 }
 0x50d   : > { %v11510_v20 = vadd.f32 %v11509_v58, %v11508_v43  ;;  %4023 = vmatmul.mubr.bf16.gmra.mrb[144].mxu0 %v11137_v13  ;;  %v11511_v54 = vpop.f32.mrb[38].mxu1 }
 0x50e   : > { %v11512_v10 = vpop.f32.mrb[39].mxu1  ;;  %4030 = vmatprep.mubr.bf16.mxu0 %v11154_v14 }
 0x50f   : > { %v13888_v23 = vadd.f32 %v11510_v20, %v11446_v38  ;;  %v11513_v7 = vadd.f32 %v11512_v10, %v11511_v54  ;;  %v11450_v25 = vpop.f32.mrb[40].mxu0 }
 0x510   : > { %v11451_v26 = vpop.f32.mrb[41].mxu0 }
 0x511   : > { %v13890_v56 = vadd.f32 %v11513_v7, %v11449_v15  ;;  %4120 = vmatmul.mubr.bf16.gmra.mrb[144].mxu1 %v11139_v27  ;;  %v11452_v22 = vadd.f32 %v11451_v26, %v11450_v25  ;;  %v11453_v32 = vpop.f32.mrb[42].mxu0 }
 0x512   : > { %v11454_v35 = vpop.f32.mrb[43].mxu0  ;;  %4127 = vmatprep.mubr.bf16.mxu1 %v11156_v1 }
 0x513   : > { %v11514_v36 = vpop.f32.mrb[40].mxu1  ;;  %v11455_v37 = vadd.f32 %v11454_v35, %v11453_v32 }
 0x514   : > { %v11515_v63 = vpop.f32.mrb[41].mxu1 }
 0x515   : > { %v11516_v46 = vadd.f32 %v11515_v63, %v11514_v36  ;;  %4031 = vmatmul.mubr.bf16.gmra.mrb[148].mxu0 %v11153_v60  ;;  %v11517_v40 = vpop.f32.mrb[42].mxu1 }
 0x516   : > { %v11518_v44 = vpop.f32.mrb[43].mxu1 }
 0x517   : > { %v13892_v45 = vadd.f32 %v11516_v46, %v11452_v22  ;;  %v11519_v53 = vadd.f32 %v11518_v44, %v11517_v40  ;;  %v11456_v59 = vpop.f32.mrb[44].mxu0 }
 0x518   : > { %v11457_v11 = vpop.f32.mrb[45].mxu0 }
 0x519   : > { %v13894_v0 = vadd.f32 %v11519_v53, %v11455_v37  ;;  %4128 = vmatmul.mubr.bf16.gmra.mrb[148].mxu1 %v11155_v51  ;;  %v11458_v4 = vadd.f32 %v11457_v11, %v11456_v59  ;;  %v11459_v49 = vpop.f32.mrb[46].mxu0 }
 0x51a   : > { %v11460_v2 = vpop.f32.mrb[47].mxu0 }
 0x51b   : > { %v11520_v61 = vpop.f32.mrb[44].mxu1  ;;  %v11461_v48 = vadd.f32 %v11460_v2, %v11459_v49 }
 0x51c   : > { %v11521_v57 = vpop.f32.mrb[45].mxu1 }
 0x51d   : > { %v11522_v3 = vadd.f32 %v11521_v57, %v11520_v61  ;;  %v11523_v52 = vpop.f32.mrb[46].mxu1 }
 0x51e   : > { %v11524_v5 = vpop.f32.mrb[47].mxu1 }
 0x51f   : > { %v13896_v6 = vadd.f32 %v11522_v3, %v11458_v4  ;;  %v11525_v29 = vadd.f32 %v11524_v5, %v11523_v52  ;;  %v11462_v41 = vpop.f32.mrb[48].mxu0 }
 0x520   : > { %v11463_v50 = vpop.f32.mrb[49].mxu0 }
 0x521   : > { %v13898_v24 = vadd.f32 %v11525_v29, %v11461_v48  ;;  %v11464_v30 = vadd.f32 %v11463_v50, %v11462_v41  ;;  %v11465_v8 = vpop.f32.mrb[50].mxu0 }
 0x522   : > { %v11466_v17 = vpop.f32.mrb[51].mxu0 }
 0x523   : > { %v11526_v38 = vpop.f32.mrb[48].mxu1  ;;  %v11467_v47 = vadd.f32 %v11466_v17, %v11465_v8 }
 0x524   : > { %v11527_v13 = vpop.f32.mrb[49].mxu1 }
 0x525   : > { %v11528_v28 = vadd.f32 %v11527_v13, %v11526_v38  ;;  %v11529_v14 = vpop.f32.mrb[50].mxu1 }
 0x526   : > { %v11530_v43 = vpop.f32.mrb[51].mxu1 }
 0x527   : > { %v13900_v15 = vadd.f32 %v11528_v28, %v11464_v30  ;;  %v11531_v18 = vadd.f32 %v11530_v43, %v11529_v14  ;;  %v11468_v42 = vpop.f32.mrb[52].mxu0 }
 0x528   : > { %v11469_v58 = vpop.f32.mrb[53].mxu0 }
 0x529   : > { %v13902_v20 = vadd.f32 %v11531_v18, %v11467_v47  ;;  %v11470_v54 = vadd.f32 %v11469_v58, %v11468_v42  ;;  %v11471_v27 = vpop.f32.mrb[54].mxu0 }
 0x52a   : > { %v11472_v10 = vpop.f32.mrb[55].mxu0 }
 0x52b   : > { %v11532_v1 = vpop.f32.mrb[52].mxu1  ;;  %v11473_v7 = vadd.f32 %v11472_v10, %v11471_v27 }
 0x52c   : > { %v11533_v25 = vpop.f32.mrb[53].mxu1 }
 0x52d   : > { %v11534_v26 = vadd.f32 %v11533_v25, %v11532_v1  ;;  %v11535_v22 = vpop.f32.mrb[54].mxu1 }
 0x52e   : > { %v11536_v32 = vpop.f32.mrb[55].mxu1 }
 0x52f   : > { %v13904_v60 = vadd.f32 %v11534_v26, %v11470_v54  ;;  %v11537_v35 = vadd.f32 %v11536_v32, %v11535_v22  ;;  %v11554_v36 = vpop.f32.mrb[56].mxu0 }
 0x530   : > { %v11555_v37 = vpop.f32.mrb[57].mxu0 }
 0x531   : > { %v13906_v63 = vadd.f32 %v11537_v35, %v11473_v7  ;;  %v11556_v46 = vadd.f32 %v11555_v37, %v11554_v36  ;;  %v11557_v40 = vpop.f32.mrb[58].mxu0 }
 0x532   : > { %v11558_v51 = vpop.f32.mrb[59].mxu0 }
 0x533   : > { %v3589_v44 = vadd.f32 %v11556_v46, %v13870_v16  ;;  %v11559_v53 = vadd.f32 %v11558_v51, %v11557_v40 }
 0x534   : > { %v11618_v59 = vpop.f32.mrb[56].mxu1 }
 0x535   : > { %v3592_v11 = vadd.f32 %v11559_v53, %v13873_v62  ;;  %v11619_v4 = vpop.f32.mrb[57].mxu1 }
 0x536   : > { %v11620_v49 = vadd.f32 %v11619_v4, %v11618_v59  ;;  %v11621_v2 = vpop.f32.mrb[58].mxu1 }
 0x537   : > { %v11622_v61 = vpop.f32.mrb[59].mxu1  ;;  %v11560_v48 = vpop.f32.mrb[60].mxu0 }
 0x538   : > { %v13910_v57 = vadd.f32 %v11620_v49, %v3589_v44  ;;  %v11623_v3 = vadd.f32 %v11622_v61, %v11621_v2  ;;  %v11561_v52 = vpop.f32.mrb[61].mxu0 }
 0x539   : > { %v11562_v5 = vadd.f32 %v11561_v52, %v11560_v48  ;;  %v11563_v29 = vpop.f32.mrb[62].mxu0 }
 0x53a   : > { %v13912_v41 = vadd.f32 %v11623_v3, %v3592_v11  ;;  %v11564_v50 = vpop.f32.mrb[63].mxu0 }
 0x53b   : > { %v3597_v16 = vadd.f32 %v11562_v5, %v13879_v31  ;;  %v11565_v30 = vadd.f32 %v11564_v50, %v11563_v29 }
 0x53c   : > { %v11624_v8 = vpop.f32.mrb[60].mxu1 }
 0x53d   : > { %v3600_v62 = vadd.f32 %v11565_v30, %v13882_v55  ;;  %v11625_v17 = vpop.f32.mrb[61].mxu1 }
 0x53e   : > { %v11626_v38 = vadd.f32 %v11625_v17, %v11624_v8  ;;  %v11627_v47 = vpop.f32.mrb[62].mxu1 }
 0x53f   : > { %v11628_v13 = vpop.f32.mrb[63].mxu1  ;;  %v11566_v28 = vpop.f32.mrb[64].mxu0 }
 0x540   : > { %v13916_v14 = vadd.f32 %v11626_v38, %v3597_v16  ;;  %v11629_v43 = vadd.f32 %v11628_v13, %v11627_v47  ;;  %v11567_v18 = vpop.f32.mrb[65].mxu0 }
 0x541   : > { %v11568_v42 = vadd.f32 %v11567_v18, %v11566_v28  ;;  %v11569_v58 = vpop.f32.mrb[66].mxu0 }
 0x542   : > { %v13918_v54 = vadd.f32 %v11629_v43, %v3600_v62  ;;  %v11570_v27 = vpop.f32.mrb[67].mxu0 }
 0x543   : > { %v3605_v31 = vadd.f32 %v11568_v42, %v13884_v33  ;;  %v11571_v10 = vadd.f32 %v11570_v27, %v11569_v58 }
 0x544   : > { %v11630_v1 = vpop.f32.mrb[64].mxu1 }
 0x545   : > { %v3608_v55 = vadd.f32 %v11571_v10, %v13886_v12  ;;  %v11631_v7 = vpop.f32.mrb[65].mxu1 }
 0x546   : > { %v11632_v25 = vadd.f32 %v11631_v7, %v11630_v1  ;;  %v11633_v26 = vpop.f32.mrb[66].mxu1 }
 0x547   : > { %v11634_v22 = vpop.f32.mrb[67].mxu1  ;;  %v11572_v32 = vpop.f32.mrb[68].mxu0 }
 0x548   : > { %v13922_v35 = vadd.f32 %v11632_v25, %v3605_v31  ;;  %v11635_v36 = vadd.f32 %v11634_v22, %v11633_v26  ;;  %v11573_v37 = vpop.f32.mrb[69].mxu0 }
 0x549   : > { %v11574_v46 = vadd.f32 %v11573_v37, %v11572_v32  ;;  %v11575_v40 = vpop.f32.mrb[70].mxu0 }
 0x54a   : > { %v13924_v51 = vadd.f32 %v11635_v36, %v3608_v55  ;;  %v11576_v44 = vpop.f32.mrb[71].mxu0 }
 0x54b   : > { %v3613_v33 = vadd.f32 %v11574_v46, %v13888_v23  ;;  %v11577_v53 = vadd.f32 %v11576_v44, %v11575_v40 }
 0x54c   : > { %v11636_v59 = vpop.f32.mrb[68].mxu1 }
 0x54d   : > { %v3616_v12 = vadd.f32 %v11577_v53, %v13890_v56  ;;  %v11637_v11 = vpop.f32.mrb[69].mxu1 }
 0x54e   : > { %v11638_v4 = vadd.f32 %v11637_v11, %v11636_v59  ;;  %v11639_v49 = vpop.f32.mrb[70].mxu1 }
 0x54f   : > { %v11640_v2 = vpop.f32.mrb[71].mxu1  ;;  %v11578_v61 = vpop.f32.mrb[72].mxu0 }
 0x550   : > { %v13928_v48 = vadd.f32 %v11638_v4, %v3613_v33  ;;  %v11641_v3 = vadd.f32 %v11640_v2, %v11639_v49  ;;  %v11579_v52 = vpop.f32.mrb[73].mxu0 }
 0x551   : > { %v11580_v5 = vadd.f32 %v11579_v52, %v11578_v61  ;;  %v11581_v29 = vpop.f32.mrb[74].mxu0 }
 0x552   : > { %v13930_v50 = vadd.f32 %v11641_v3, %v3616_v12  ;;  %v11582_v16 = vpop.f32.mrb[75].mxu0 }
 0x553   : > { %v3621_v23 = vadd.f32 %v11580_v5, %v13892_v45  ;;  %v11583_v30 = vadd.f32 %v11582_v16, %v11581_v29 }
 0x554   : > { %v11642_v8 = vpop.f32.mrb[72].mxu1 }
 0x555   : > { %v3624_v56 = vadd.f32 %v11583_v30, %v13894_v0  ;;  %v11643_v62 = vpop.f32.mrb[73].mxu1 }
 0x556   : > { %v11644_v17 = vadd.f32 %v11643_v62, %v11642_v8  ;;  %v11645_v38 = vpop.f32.mrb[74].mxu1 }
 0x557   : > { %v11646_v47 = vpop.f32.mrb[75].mxu1  ;;  %v11584_v13 = vpop.f32.mrb[76].mxu0 }
 0x558   : > { %v13934_v28 = vadd.f32 %v11644_v17, %v3621_v23  ;;  %v11647_v43 = vadd.f32 %v11646_v47, %v11645_v38  ;;  %v11585_v18 = vpop.f32.mrb[77].mxu0 }
 0x559   : > { %v11586_v42 = vadd.f32 %v11585_v18, %v11584_v13  ;;  %v11587_v58 = vpop.f32.mrb[78].mxu0 }
 0x55a   : > { %v13936_v27 = vadd.f32 %v11647_v43, %v3624_v56  ;;  %v11588_v31 = vpop.f32.mrb[79].mxu0 }
 0x55b   : > { %v3629_v45 = vadd.f32 %v11586_v42, %v13896_v6  ;;  %v11589_v10 = vadd.f32 %v11588_v31, %v11587_v58 }
 0x55c   : > { %v11648_v1 = vpop.f32.mrb[76].mxu1 }
 0x55d   : > { %v3632_v0 = vadd.f32 %v11589_v10, %v13898_v24  ;;  %v11649_v55 = vpop.f32.mrb[77].mxu1 }
 0x55e   : > { %v11650_v7 = vadd.f32 %v11649_v55, %v11648_v1  ;;  %v11651_v25 = vpop.f32.mrb[78].mxu1 }
 0x55f   : > { %v11652_v26 = vpop.f32.mrb[79].mxu1  ;;  %v11590_v22 = vpop.f32.mrb[80].mxu0 }
 0x560   : > { %v13940_v32 = vadd.f32 %v11650_v7, %v3629_v45  ;;  %v11653_v36 = vadd.f32 %v11652_v26, %v11651_v25  ;;  %v11591_v37 = vpop.f32.mrb[81].mxu0 }
 0x561   : > { %v11592_v46 = vadd.f32 %v11591_v37, %v11590_v22  ;;  %v11593_v40 = vpop.f32.mrb[82].mxu0 }
 0x562   : > { %v13942_v44 = vadd.f32 %v11653_v36, %v3632_v0  ;;  %v11594_v33 = vpop.f32.mrb[83].mxu0 }
 0x563   : > { %v3637_v6 = vadd.f32 %v11592_v46, %v13900_v15  ;;  %v11595_v53 = vadd.f32 %v11594_v33, %v11593_v40 }
 0x564   : > { %v11654_v59 = vpop.f32.mrb[80].mxu1 }
 0x565   : > { %v3640_v24 = vadd.f32 %v11595_v53, %v13902_v20  ;;  %v11655_v12 = vpop.f32.mrb[81].mxu1 }
 0x566   : > { %v11656_v11 = vadd.f32 %v11655_v12, %v11654_v59  ;;  %v11657_v4 = vpop.f32.mrb[82].mxu1 }
 0x567   : > { %v11658_v49 = vpop.f32.mrb[83].mxu1  ;;  %v11596_v2 = vpop.f32.mrb[84].mxu0 }
 0x568   : > { %v13946_v61 = vadd.f32 %v11656_v11, %v3637_v6  ;;  %v11659_v3 = vadd.f32 %v11658_v49, %v11657_v4  ;;  %v11597_v52 = vpop.f32.mrb[85].mxu0 }
 0x569   : > { %v11598_v5 = vadd.f32 %v11597_v52, %v11596_v2  ;;  %v11599_v29 = vpop.f32.mrb[86].mxu0 }
 0x56a   : > { %v13948_v16 = vadd.f32 %v11659_v3, %v3640_v24  ;;  %v11600_v23 = vpop.f32.mrb[87].mxu0 }
 0x56b   : > { %v3645_v15 = vadd.f32 %v11598_v5, %v13904_v60  ;;  %v11601_v30 = vadd.f32 %v11600_v23, %v11599_v29 }
 0x56c   : > { %v11660_v8 = vpop.f32.mrb[84].mxu1 }
 0x56d   : > { %v3648_v20 = vadd.f32 %v11601_v30, %v13906_v63  ;;  %v11661_v56 = vpop.f32.mrb[85].mxu1 }
 0x56e   : > { %v11662_v62 = vadd.f32 %v11661_v56, %v11660_v8  ;;  %v11663_v17 = vpop.f32.mrb[86].mxu1 }
 0x56f   : > { %v11664_v38 = vpop.f32.mrb[87].mxu1 }
 0x570   : > { %v13952_v47 = vadd.f32 %v11662_v62, %v3645_v15  ;;  %v11665_v13 = vadd.f32 %v11664_v38, %v11663_v17  ;;  %v11682_v43 = vpop.f32.mrb[88].mxu0 }
 0x571   : > { %v11683_v18 = vpop.f32.mrb[89].mxu0 }
 0x572   : > { %v13954_v42 = vadd.f32 %v11665_v13, %v3648_v20  ;;  %v11684_v58 = vadd.f32 %v11683_v18, %v11682_v43  ;;  %v11685_v31 = vpop.f32.mrb[90].mxu0 }
 0x573   : > { %v11686_v45 = vpop.f32.mrb[91].mxu0 }
 0x574   : > { %v3783_v60 = vadd.f32 %v11684_v58, %v13910_v57  ;;  %v11687_v10 = vadd.f32 %v11686_v45, %v11685_v31  ;;  %v11746_v1 = vpop.f32.mrb[88].mxu1  ;;  %v13972_v58 = vpop.permute.xlu1 %4137 }
 0x575   : > { %v11747_v0 = vpop.f32.mrb[89].mxu1 }
 0x576   : > { %v3786_v63 = vadd.f32 %v11687_v10, %v13912_v41  ;;  %v11748_v55 = vadd.f32 %v11747_v0, %v11746_v1  ;;  %v11749_v7 = vpop.f32.mrb[90].mxu1 }
 0x577   : > { %v11750_v25 = vpop.f32.mrb[91].mxu1 }
 0x578   : > { %v13958_v26 = vadd.f32 %v11748_v55, %v3783_v60  ;;  %v11751_v22 = vadd.f32 %v11750_v25, %v11749_v7  ;;  %v11688_v36 = vpop.f32.mrb[92].mxu0 }
 0x579   : > { %v11689_v37 = vpop.f32.mrb[93].mxu0 }
 0x57a   : > { %v13960_v46 = vadd.f32 %v11751_v22, %v3786_v63  ;;  %v11690_v40 = vadd.f32 %v11689_v37, %v11688_v36  ;;  %v11691_v33 = vpop.f32.mrb[94].mxu0  ;;  %v12624_v63 = vld [vmem:[%s17902_s6] sm:$0xff]   ;;  %v13981_v36 = vpop.permute.xlu1 %4217 }
 0x57b   : > { %v11692_v6 = vpop.f32.mrb[95].mxu0  ;;  %12100 = vmatprep.mubr.bf16.mxu0 %v12624_v63 }
 0x57c   : > { %v3791_v57 = vadd.f32 %v11690_v40, %v13916_v14  ;;  %v11693_v53 = vadd.f32 %v11692_v6, %v11691_v33  ;;  %v11752_v59 = vpop.f32.mrb[92].mxu1 }
 0x57d   : > { %v11753_v24 = vpop.f32.mrb[93].mxu1 }
 0x57e   : > { %v3794_v41 = vadd.f32 %v11693_v53, %v13918_v54  ;;  %v11754_v12 = vadd.f32 %v11753_v24, %v11752_v59  ;;  %v11755_v11 = vpop.f32.mrb[94].mxu1 }
 0x57f   : > { %v11756_v4 = vpop.f32.mrb[95].mxu1 }
 0x580   : > { %v13964_v49 = vadd.f32 %v11754_v12, %v3791_v57  ;;  %v11757_v2 = vadd.f32 %v11756_v4, %v11755_v11  ;;  %v11694_v3 = vpop.f32.mrb[96].mxu0  ;;  %v13988_v11 = vpop.permute.xlu1 %4221 }
 0x581   : > { %v11695_v52 = vpop.f32.mrb[97].mxu0 }
 0x582   : > { %v13966_v5 = vadd.f32 %v11757_v2, %v3794_v41  ;;  %v11696_v29 = vadd.f32 %v11695_v52, %v11694_v3  ;;  %v11697_v23 = vpop.f32.mrb[98].mxu0 }
 0x583   : > { %v11698_v15 = vpop.f32.mrb[99].mxu0 }
 0x584   : > { %v3799_v14 = vadd.f32 %v11696_v29, %v13922_v35  ;;  %v11699_v30 = vadd.f32 %v11698_v15, %v11697_v23  ;;  %v11758_v8 = vpop.f32.mrb[96].mxu1 }
 0x585   : > { %v11759_v20 = vpop.f32.mrb[97].mxu1 }
 0x586   : > { %v3802_v54 = vadd.f32 %v11699_v30, %v13924_v51  ;;  %v11760_v56 = vadd.f32 %v11759_v20, %v11758_v8  ;;  %v11761_v62 = vpop.f32.mrb[98].mxu1  ;;  %v13993_v30 = vpop.permute.xlu1 %4149 }
 0x587   : > { %v11762_v17 = vpop.f32.mrb[99].mxu1 }
 0x588   : > { %v13970_v38 = vadd.f32 %v11760_v56, %v3799_v14  ;;  %v11763_v13 = vadd.f32 %v11762_v17, %v11761_v62  ;;  %v11700_v43 = vpop.f32.mrb[100].mxu0 }
 0x589   : > { %v11701_v18 = vpop.f32.mrb[101].mxu0 }
 0x58a   : > { %v13974_v31 = vadd.f32 %v11763_v13, %v3802_v54  ;;  %v11702_v45 = vadd.f32 %v11701_v18, %v11700_v43  ;;  %v11703_v60 = vpop.f32.mrb[102].mxu0 }
 0x58b   : > { %v11704_v35 = vpop.f32.mrb[103].mxu0 }
 0x58c   : > { %v3807_v10 = vadd.f32 %v11702_v45, %v13928_v48  ;;  %v11705_v1 = vadd.f32 %v11704_v35, %v11703_v60  ;;  %v11764_v0 = vpop.f32.mrb[100].mxu1  ;;  %v13999_v60 = vpop.permute.xlu1 %4229 }
 0x58d   : > { %v11765_v51 = vpop.f32.mrb[101].mxu1 }
 0x58e   : > { %v3810_v55 = vadd.f32 %v11705_v1, %v13930_v50  ;;  %v11766_v7 = vadd.f32 %v11765_v51, %v11764_v0  ;;  %v11767_v25 = vpop.f32.mrb[102].mxu1 }
 0x58f   : > { %v11768_v22 = vpop.f32.mrb[103].mxu1 }
 0x590   : > { %v13983_v37 = vadd.f32 %v11766_v7, %v3807_v10  ;;  %v11769_v40 = vadd.f32 %v11768_v22, %v11767_v25  ;;  %v11706_v33 = vpop.f32.mrb[104].mxu0 }
 0x591   : > { %v11707_v48 = vpop.f32.mrb[105].mxu0 }
 0x592   : > { %v13985_v6 = vadd.f32 %v11769_v40, %v3810_v55  ;;  %v11708_v57 = vadd.f32 %v11707_v48, %v11706_v33  ;;  %v11709_v53 = vpop.f32.mrb[106].mxu0  ;;  %v14006_v40 = vpop.permute.xlu1 %4153 }
 0x593   : > { %v11710_v59 = vpop.f32.mrb[107].mxu0 }
 0x594   : > { %v3815_v24 = vadd.f32 %v11708_v57, %v13934_v28  ;;  %v11711_v41 = vadd.f32 %v11710_v59, %v11709_v53  ;;  %v11770_v50 = vpop.f32.mrb[104].mxu1  ;;  %v14009_v59 = vpop.permute.xlu0 %4225 }
 0x595   : > { %v11771_v12 = vpop.f32.mrb[105].mxu1 }
 0x596   : > { %v3818_v4 = vadd.f32 %v11711_v41, %v13936_v27  ;;  %v11772_v2 = vadd.f32 %v11771_v12, %v11770_v50  ;;  %v11773_v3 = vpop.f32.mrb[106].mxu1 }
 0x597   : > { %v11774_v52 = vpop.f32.mrb[107].mxu1 }
 0x598   : > { %v13991_v29 = vadd.f32 %v11772_v2, %v3815_v24  ;;  %v11775_v23 = vadd.f32 %v11774_v52, %v11773_v3  ;;  %v11712_v15 = vpop.f32.mrb[108].mxu0  ;;  %v12840_v52 = vld [vmem:[%s17904_s8] sm:$0xff] }
 0x599   : > { %v11713_v14 = vpop.f32.mrb[109].mxu0 }
 0x59a   : > { %v13995_v8 = vadd.f32 %v11775_v23, %v3818_v4  ;;  %v11714_v28 = vadd.f32 %v11713_v14, %v11712_v15  ;;  %v11715_v20 = vpop.f32.mrb[110].mxu0  ;;  %v12954_v4 = vmov 4   ;;  %v12841_v23 = vld [vmem:[%s17904_s8 + $0x10] sm:$0xff]  ;;  %v14023_v14 = vpop.permute.xlu1 %4233 }
 0x59b   : > { %v11716_v54 = vpop.f32.mrb[111].mxu0  ;;  %12482 = vset.pattern.permute.xlu1 %v12954_v4 }
 0x59c   : > { %v3823_v56 = vadd.f32 %v11714_v28, %v13940_v32  ;;  %v11717_v62 = vadd.f32 %v11716_v54, %v11715_v20  ;;  %v11776_v17 = vpop.f32.mrb[108].mxu1  ;;  %4562 = vperm.xlu1 %12482, %v12840_v52  }
 0x59d   : > { %v11777_v27 = vpop.f32.mrb[109].mxu1 }
 0x59e   : > { %v3826_v13 = vadd.f32 %v11717_v62, %v13942_v44  ;;  %v11778_v43 = vadd.f32 %v11777_v27, %v11776_v17  ;;  %v11779_v18 = vpop.f32.mrb[110].mxu1  ;;  %v14026_v62 = vpop.permute.xlu0 %4241 }
 0x59f   : > { %v11780_v45 = vpop.f32.mrb[111].mxu1 }
 0x5a0   : > { %v14001_v35 = vadd.f32 %v11778_v43, %v3823_v56  ;;  %v11781_v10 = vadd.f32 %v11780_v45, %v11779_v18  ;;  %v11718_v1 = vpop.f32.mrb[112].mxu0  ;;  %v14033_v43 = vld [vmem:[%s17904_s8 + $0x30] sm:$0xff] }
 0x5a1   : > { %v11719_v0 = vpop.f32.mrb[113].mxu0 }
 0x5a2   : > { %v14003_v51 = vadd.f32 %v11781_v10, %v3826_v13  ;;  %v11720_v63 = vadd.f32 %v11719_v0, %v11718_v1  ;;  %v11721_v55 = vpop.f32.mrb[114].mxu0  ;;  %v14038_v0 = vpop.permute.xlu1 %4237 }
 0x5a3   : > { %v11722_v32 = vpop.f32.mrb[115].mxu0 }
 0x5a4   : > { %v3831_v7 = vadd.f32 %v11720_v63, %v13946_v61  ;;  %v11723_v25 = vadd.f32 %v11722_v32, %v11721_v55  ;;  %v11782_v22 = vpop.f32.mrb[112].mxu1  ;;  %v12955_v61 = vmov 5   ;;  %v14045_v32 = vld [vmem:[%s17904_s8 + $0x50] sm:$0xff] }
 0x5a5   : > { %v11783_v44 = vpop.f32.mrb[113].mxu1  ;;  %12485 = vset.pattern.permute.xlu0 %v12955_v61  ;;  %12483 = vset.pattern.permute.xlu1 %v12955_v61 }
 0x5a6   : > { %v3834_v33 = vadd.f32 %v11723_v25, %v13948_v16  ;;  %v11784_v48 = vadd.f32 %v11783_v44, %v11782_v22  ;;  %v11785_v57 = vpop.f32.mrb[114].mxu1  ;;  %4650 = vperm.xlu0 %12485, %v12841_v23   ;;  %4642 = vperm.xlu1 %12483, %v12840_v52   ;;  %v4818_v25 = vld [vmem:[%s17903_s7 + $0x8] sm:$0xff] }
 0x5a7   : > { %v11786_v53 = vpop.f32.mrb[115].mxu1  ;;  %v12844_v44 = vld [vmem:[%s17904_s8 + $0x8] sm:$0xff] }
 0x5a8   : > { %v14011_v24 = vadd.f32 %v11784_v48, %v3831_v7  ;;  %v11787_v41 = vadd.f32 %v11786_v53, %v11785_v57  ;;  %v11724_v50 = vpop.f32.mrb[116].mxu0  ;;  %v4817_v7 = vld [vmem:[%s17903_s7] sm:$0xff]  ;;  %v14057_v48 = vpop.permute.xlu0 %4257 }
 0x5a9   : > { %v11725_v12 = vpop.f32.mrb[117].mxu0 }
 0x5aa   : > { %v14015_v2 = vadd.f32 %v11787_v41, %v3834_v33  ;;  %v11726_v3 = vadd.f32 %v11725_v12, %v11724_v50  ;;  %v11727_v16 = vpop.f32.mrb[118].mxu0  ;;  %4666 = vperm.xlu0 %12485, %v14033_v43   ;;  %4646 = vperm.xlu1 %12483, %v12844_v44   ;;  %v12258_v33 = vpack.c.bf16 %v4818_v25, %v4817_v7  ;;  %v14060_v12 = vpop.permute.xlu1 %4165 }
 0x5ab   : > { %v11728_v15 = vpop.f32.mrb[119].mxu0 }
 0x5ac   : > { %v3839_v28 = vadd.f32 %v11726_v3, %v13952_v47  ;;  %v11729_v20 = vadd.f32 %v11728_v15, %v11727_v16  ;;  %v11788_v54 = vpop.f32.mrb[116].mxu1  ;;  %12259 = vmatprep.subr.bf16.mxu1 %v12258_v33 }
 0x5ad   : > { %v11789_v56 = vpop.f32.mrb[117].mxu1  ;;  %12261 = vmatpush3.bf16.msra.mxu1 %v12258_v33 }
 0x5ae   : > { %v3842_v17 = vadd.f32 %v11729_v20, %v13954_v42  ;;  %v11790_v27 = vadd.f32 %v11789_v56, %v11788_v54  ;;  %v11791_v13 = vpop.f32.mrb[118].mxu1  ;;  %4682 = vperm.xlu0 %12485, %v14045_v32   ;;  %12484 = vset.pattern.permute.xlu1 %v12954_v4  ;;  %v12845_v54 = vld [vmem:[%s17904_s8 + $0x18] sm:$0xff] }
 0x5af   : > { %v11792_v18 = vpop.f32.mrb[119].mxu1  ;;  %4574 = vperm.xlu1 %12484, %v12845_v54  }
 0x5b0   : > { %v14036_v47 = vadd.f32 %v11790_v27, %v3839_v28  ;;  %v11793_v45 = vadd.f32 %v11792_v18, %v11791_v13  ;;  %v11810_v10 = vpop.f32.mrb[120].mxu0 }
 0x5b1   : > { %v11811_v1 = vpop.f32.mrb[121].mxu0 }
 0x5b2   : > { %v14040_v42 = vadd.f32 %v11793_v45, %v3842_v17  ;;  %v11812_v63 = vadd.f32 %v11811_v1, %v11810_v10  ;;  %v11813_v55 = vpop.f32.mrb[122].mxu0  ;;  %12494 = vset.pattern.permute.xlu0 %v12954_v4  ;;  %v4142_v17 = vpop.permute.xlu0 %4141 }
 0x5b3   : > { %v11814_v22 = vpop.f32.mrb[123].mxu0  ;;  %4566 = vperm.xlu0 %12494, %v12844_v44   ;;  %v14069_v10 = vpop.permute.xlu1 %4245  ;;  %12486 = vset.pattern.permute.xlu1 %v12955_v61 }
 0x5b4   : > { %v3977_v57 = vadd.f32 %v11812_v63, %v13958_v26  ;;  %v11815_v53 = vadd.f32 %v11814_v22, %v11813_v55  ;;  %v11874_v41 = vpop.f32.mrb[120].mxu1  ;;  %4654 = vperm.xlu1 %12486, %v12845_v54   ;;  %v12847_v54 = vld [vmem:[%s17904_s8 + $0x20] sm:$0xff] }
 0x5b5   : > { %v11875_v50 = vpop.f32.mrb[121].mxu1 }
 0x5b6   : > { %v3980_v3 = vadd.f32 %v11815_v53, %v13960_v46  ;;  %v11876_v16 = vadd.f32 %v11875_v50, %v11874_v41  ;;  %v11877_v52 = vpop.f32.mrb[122].mxu1  ;;  %v4146_v53 = vpop.permute.xlu0 %4145 }
 0x5b7   : > { %v11878_v15 = vpop.f32.mrb[123].mxu1  ;;  %4570 = vperm.xlu0 %12494, %v12841_v23  }
 0x5b8   : > { %v4074_v28 = vadd.f32 %v11876_v16, %v3977_v57  ;;  %v11879_v20 = vadd.f32 %v11878_v15, %v11877_v52  ;;  %v11816_v26 = vpop.f32.mrb[124].mxu0  ;;  %12487 = vset.pattern.permute.xlu1 %v12954_v4 }
 0x5b9   : > { %v11817_v56 = vpop.f32.mrb[125].mxu0  ;;  %4578 = vperm.xlu1 %12487, %v12847_v54  }
 0x5ba   : > { %v4200_v46 = vmul.f32 %v13972_v58, %v4074_v28  ;;  %v4077_v27 = vadd.f32 %v11879_v20, %v3980_v3  ;;  %v11818_v13 = vadd.f32 %v11817_v56, %v11816_v26  ;;  %v11819_v18 = vpop.f32.mrb[126].mxu0 }
 0x5bb   : > { %v11820_v45 = vpop.f32.mrb[127].mxu0 }
 0x5bc   : > { %v14072_v1 = vadd.f32 %v13981_v36, %v4200_v46  ;;  %v4201_v63 = vmul.f32 %v4142_v17, %v4077_v27  ;;  %v3985_v55 = vadd.f32 %v11818_v13, %v13964_v49  ;;  %v11821_v7 = vadd.f32 %v11820_v45, %v11819_v18  ;;  %v11880_v25 = vpop.f32.mrb[124].mxu1  ;;  %v12846_v49 = vld [vmem:[%s17904_s8 + $0x28] sm:$0xff] }
 0x5bd   : > { %v11881_v22 = vpop.f32.mrb[125].mxu1  ;;  %4582 = vperm.xlu0 %12494, %v12846_v49   ;;  %12488 = vset.pattern.permute.xlu1 %v12955_v61 }
 0x5be   : > { %v4312_v58 = vmin.f32 %v14072_v1, 0.0  ;;  %v14078_v44 = vadd.f32 %v13988_v11, %v4201_v63  ;;  %v3988_v33 = vadd.f32 %v11821_v7, %v13966_v5  ;;  %v11882_v23 = vadd.f32 %v11881_v22, %v11880_v25  ;;  %v11883_v57 = vpop.f32.mrb[126].mxu1  ;;  %v14085_v11 = vpop.permute.xlu1 %4169  ;;  %4658 = vperm.xlu1 %12488, %v12847_v54  }
 0x5bf   : > { %v11884_v36 = vpop.f32.mrb[127].mxu1  ;;  %vm4296_vm3 = vcmp.gt.f32.partialorder %v14072_v1, 0.0 }
 0x5c0   : > { %v4328_v41 = vmul.f32 1.442695, %v4312_v58  ;;  %v4313_v50 = vmin.f32 %v14078_v44, 0.0  ;;  %v4082_v3 = vadd.f32 %v11882_v23, %v3985_v55  ;;  %v11885_v16 = vadd.f32 %v11884_v36, %v11883_v57  ;;  %v11822_v52 = vpop.f32.mrb[128].mxu0  ;;  %v4158_v36 = vpop.permute.xlu0 %4157 }
 0x5c1   : > { %v11823_v15 = vpop.f32.mrb[129].mxu0  ;;  %4586 = vperm.xlu0 %12494, %v14033_v43   ;;  %vm4297_vm4 = vcmp.gt.f32.partialorder %v14078_v44, 0.0 }
 0x5c2   : > { %12696 = vpow2.f32 %v4328_v41  ;;  %v4330_v5 = vmul.f32 1.442695, %v4313_v50  ;;  %v4202_v28 = vmul.f32 %v4146_v53, %v4082_v3  ;;  %v4085_v20 = vadd.f32 %v11885_v16, %v3988_v33  ;;  %v11825_v26 = vpop.f32.mrb[130].mxu0  ;;  %v14103_v58 = vpop.permute.xlu1 %4249  ;;  %4662 = vperm.xlu1 %12488, %v12846_v49  }
 0x5c3   : > { %v11824_v56 = vadd.f32 %v11823_v15, %v11822_v52  ;;  %v11826_v17 = vpop.f32.mrb[131].mxu0 }
 0x5c4   : > { %12698 = vpow2.f32 %v4330_v5  ;;  %v14093_v46 = vadd.f32 %v14009_v59, %v4202_v28  ;;  %v4203_v27 = vmul.f32 %v13993_v30, %v4085_v20  ;;  %v11827_v13 = vadd.f32 %v11826_v17, %v11825_v26  ;;  %v11886_v18 = vpop.f32.mrb[128].mxu1 }
 0x5c5   : > { %v3993_v45 = vadd.f32 %v11824_v56, %v13970_v38  ;;  %v11887_v63 = vpop.f32.mrb[129].mxu1  ;;  %v14108_v38 = vld [vmem:[%s17904_s8 + $0x48] sm:$0xff] }
 0x5c6   : > { %v4314_v55 = vmin.f32 %v14093_v46, 0.0  ;;  %v14099_v7 = vadd.f32 %v13999_v60, %v4203_v27  ;;  %v3996_v25 = vadd.f32 %v11827_v13, %v13974_v31  ;;  %v11888_v22 = vadd.f32 %v11887_v63, %v11886_v18  ;;  %v11889_v43 = vpop.f32.mrb[130].mxu1  ;;  %4598 = vperm.xlu0 %12494, %v14108_v38   ;;  %v14118_v17 = vpop.permute.xlu1 %4253  ;;  %12489 = vset.pattern.permute.xlu1 %v12954_v4  ;;  %v14131_v63 = vld [vmem:[%s17904_s8 + $0x68] sm:$0xff] }
 0x5c7   : > { %v11890_v59 = vpop.f32.mrb[131].mxu1  ;;  %vm4298_vm5 = vcmp.gt.f32.partialorder %v14093_v46, 0.0 }
 0x5c8   : > { %v4332_v30 = vmul.f32 1.442695, %v4314_v55  ;;  %v4315_v60 = vmin.f32 %v14099_v7, 0.0  ;;  %v4090_v33 = vadd.f32 %v11888_v22, %v3993_v45  ;;  %v11891_v31 = vadd.f32 %v11890_v59, %v11889_v43  ;;  %v11828_v23 = vpop.f32.mrb[132].mxu0  ;;  %v12850_v59 = vld [vmem:[%s17904_s8 + $0x38] sm:$0xff] }
 0x5c9   : > { %v11829_v57 = vpop.f32.mrb[133].mxu0  ;;  %4590 = vperm.xlu1 %12489, %v12850_v59   ;;  %vm4299_vm6 = vcmp.gt.f32.partialorder %v14099_v7, 0.0 }
 0x5ca   : > { %12700 = vpow2.f32 %v4332_v30  ;;  %v4334_v53 = vmul.f32 1.442695, %v4315_v60  ;;  %v4204_v41 = vmul.f32 %v14006_v40, %v4090_v33  ;;  %v4093_v50 = vadd.f32 %v11891_v31, %v3996_v25  ;;  %v11831_v3 = vpop.f32.mrb[134].mxu0  ;;  %4602 = vperm.xlu0 %12494, %v14045_v32   ;;  %v14140_v31 = vpop.permute.xlu1 %4181 }
 0x5cb   : > { %v11830_v16 = vadd.f32 %v11829_v57, %v11828_v23  ;;  %v11832_v52 = vpop.f32.mrb[135].mxu0 }
 0x5cc   : > { %v12697_v15 = vpop.eup %12696  ;;  %12702 = vpow2.f32 %v4334_v53  ;;  %v14115_v5 = vadd.f32 %v14023_v14, %v4204_v41  ;;  %v4205_v28 = vmul.f32 %v4158_v36, %v4093_v50  ;;  %v11833_v20 = vadd.f32 %v11832_v52, %v11831_v3  ;;  %v11892_v26 = vpop.f32.mrb[132].mxu1 }
 0x5cd   : > { %v4001_v54 = vadd.f32 %v11830_v16, %v13983_v37  ;;  %v11893_v56 = vpop.f32.mrb[133].mxu1  ;;  %v11157_v40 = vadd.f32 -1.0, %v12697_v15  ;;  %v12851_v16 = vld [vmem:[%s17904_s8 + $0x70] sm:$0xff]  ;;  %12490 = vset.pattern.permute.xlu1 %v12955_v61 }
 0x5ce   : > { %v12699_v27 = vpop.eup %12698  ;;  %v4316_v13 = vmin.f32 %v14115_v5, 0.0  ;;  %v14122_v49 = vadd.f32 %v14038_v0, %v4205_v28  ;;  %v4004_v32 = vadd.f32 %v11833_v20, %v13985_v6  ;;  %v11894_v18 = vadd.f32 %v11893_v56, %v11892_v26  ;;  %v11895_v14 = vpop.f32.mrb[134].mxu1  ;;  %4614 = vperm.xlu0 %12494, %v14131_v63   ;;  %4670 = vperm.xlu1 %12490, %v12850_v59  }
 0x5cf   : > { %v11896_v45 = vpop.f32.mrb[135].mxu1  ;;  %v11158_v37 = vadd.f32 -1.0, %v12699_v27  ;;  %v4162_v0 = vpop.permute.xlu0 %4161  ;;  %v4376_v60 = vsel %vm4296_vm3, %v14072_v1, %v11157_v40  ;;  %vm4300_vm7 = vcmp.gt.f32.partialorder %v14115_v5, 0.0  ;;  %vm18024_vm3 = vcmask 261120  }
 0x5d0   : > { %v4336_v55 = vmul.f32 1.442695, %v4316_v13  ;;  %v4317_v6 = vmin.f32 %v14122_v49, 0.0  ;;  %v4098_v25 = vadd.f32 %v11894_v18, %v4001_v54  ;;  %v11897_v22 = vadd.f32 %v11896_v45, %v11895_v14  ;;  %v11834_v43 = vpop.f32.mrb[136].mxu0  ;;  %v14158_v18 = vpop.permute.xlu1 %4261 }
 0x5d1   : > { %v11835_v30 = vpop.f32.mrb[137].mxu0  ;;  %v4377_v33 = vsel %vm4297_vm4, %v14078_v44, %v11158_v37  ;;  %vm4301_vm8 = vcmp.gt.f32.partialorder %v14122_v49, 0.0 }
 0x5d2   : > { %12704 = vpow2.f32 %v4336_v55  ;;  %v4338_v23 = vmul.f32 1.442695, %v4317_v6  ;;  %v4206_v57 = vmul.f32 %v4162_v0, %v4098_v25  ;;  %v4101_v36 = vadd.f32 %v11897_v22, %v4004_v32  ;;  %v11837_v53 = vpop.f32.mrb[138].mxu0  ;;  %4618 = vperm.xlu0 %12494, %v12851_v16   ;;  %12491 = vset.pattern.permute.xlu1 %v12954_v4 }
 0x5d3   : > { %v11836_v41 = vadd.f32 %v11835_v30, %v11834_v43  ;;  %v11838_v50 = vpop.f32.mrb[139].mxu0  ;;  %v4392_v3 = vpack.c.bf16 %v4377_v33, %v4376_v60  ;;  %v12852_v30 = vld [vmem:[%s17904_s8 + $0x40] sm:$0xff]  ;;  %v4174_v60 = vpop.permute.xlu0 %4173 }
 0x5d4   : > { %v12701_v52 = vpop.eup %12700  ;;  %12706 = vpow2.f32 %v4338_v23  ;;  %v14146_v1 = vadd.f32 %v14026_v62, %v4206_v57  ;;  %v4207_v44 = vmul.f32 %v14060_v12, %v4101_v36  ;;  %v11839_v15 = vadd.f32 %v11838_v50, %v11837_v53  ;;  %v11898_v28 = vpop.f32.mrb[136].mxu1  ;;  %4594 = vperm.xlu1 %12491, %v12852_v30  }
 0x5d5   : > { %v4009_v20 = vadd.f32 %v11836_v41, %v13991_v29  ;;  %12084 = vmatprep.subr.bf16.mxu0 %v4392_v3  ;;  %v11899_v26 = vpop.f32.mrb[137].mxu1  ;;  %v11159_v54 = vadd.f32 -1.0, %v12701_v52 }
 0x5d6   : > { %v12703_v56 = vpop.eup %12702  ;;  %v4318_v40 = vmin.f32 %v14146_v1, 0.0  ;;  %v14153_v27 = vadd.f32 %v14069_v10, %v4207_v44  ;;  %v4012_v62 = vadd.f32 %v11839_v15, %v13995_v8  ;;  %v11900_v13 = vadd.f32 %v11899_v26, %v11898_v28  ;;  %12085 = vmatpush3.bf16.msra.mxu0 %v4392_v3  ;;  %v11901_v12 = vpop.f32.mrb[138].mxu1  ;;  %12499 = vset.pattern.permute.xlu0 %v12955_v61 }
 0x5d7   : > { %v11902_v32 = vpop.f32.mrb[139].mxu1  ;;  %v11160_v29 = vadd.f32 -1.0, %v12703_v56  ;;  %4698 = vperm.xlu0 %12499, %v12851_v16   ;;  %v4378_v55 = vsel %vm4298_vm5, %v14093_v46, %v11159_v54  ;;  %v14174_v3 = vpop.permute.xlu1 %4185  ;;  %vm4302_vm9 = vcmp.gt.f32.partialorder %v14146_v1, 0.0 }
 0x5d8   : > { %v4340_v14 = vmul.f32 1.442695, %v4318_v40  ;;  %v4319_v45 = vmin.f32 %v14153_v27, 0.0  ;;  %v4106_v10 = vadd.f32 %v11900_v13, %v4009_v20  ;;  %v11903_v37 = vadd.f32 %v11902_v32, %v11901_v12  ;;  %v11840_v0 = vpop.f32.mrb[140].mxu0  ;;  %12492 = vset.pattern.permute.xlu1 %v12955_v61  ;;  %v4178_v13 = vpop.permute.xlu0 %4177 }
 0x5d9   : > { %v11841_v8 = vpop.f32.mrb[141].mxu0  ;;  %v4379_v6 = vsel %vm4299_vm6, %v14099_v7, %v11160_v29  ;;  %4674 = vperm.xlu1 %12492, %v12852_v30   ;;  %vm4303_vm10 = vcmp.gt.f32.partialorder %v14153_v27, 0.0 }
 0x5da   : > { %12708 = vpow2.f32 %v4340_v14  ;;  %v4342_v25 = vmul.f32 1.442695, %v4319_v45  ;;  %v4208_v22 = vmul.f32 %v14085_v11, %v4106_v10  ;;  %v4109_v43 = vadd.f32 %v11903_v37, %v4012_v62  ;;  %v11843_v59 = vpop.f32.mrb[142].mxu0 }
 0x5db   : > { %v11842_v33 = vadd.f32 %v11841_v8, %v11840_v0  ;;  %v11844_v23 = vpop.f32.mrb[143].mxu0  ;;  %v4393_v57 = vpack.c.bf16 %v4379_v6, %v4378_v55  ;;  %12501 = vset.pattern.permute.xlu0 %v17922_v19  ;;  %v4266_v55 = vpop.permute.xlu1 %4265 }
 0x5dc   : > { %v12705_v46 = vpop.eup %12704  ;;  %12710 = vpow2.f32 %v4342_v25  ;;  %v14170_v7 = vadd.f32 %v14103_v58, %v4208_v22  ;;  %v4209_v36 = vmul.f32 %v4174_v60, %v4109_v43  ;;  %v11845_v53 = vadd.f32 %v11844_v23, %v11843_v59  ;;  %v11904_v41 = vpop.f32.mrb[140].mxu1 }
 0x5dd   : > { %v4017_v11 = vadd.f32 %v11842_v33, %v14001_v35  ;;  %12086 = vmatprep.subr.bf16.mxu0 %v4393_v57  ;;  %v11905_v50 = vpop.f32.mrb[141].mxu1  ;;  %v11161_v16 = vadd.f32 -1.0, %v12705_v46  ;;  %4678 = vperm.xlu1 %12492, %v14108_v38  }
 0x5de   : > { %v12707_v52 = vpop.eup %12706  ;;  %v4320_v44 = vmin.f32 %v14170_v7, 0.0  ;;  %v14178_v15 = vadd.f32 %v14118_v17, %v4209_v36  ;;  %v4020_v58 = vadd.f32 %v11845_v53, %v14003_v51  ;;  %v11906_v28 = vadd.f32 %v11905_v50, %v11904_v41  ;;  %12087 = vmatpush3.bf16.msra.mxu0 %v4393_v57  ;;  %v11907_v20 = vpop.f32.mrb[142].mxu1 }
 0x5df   : > { %v11908_v26 = vpop.f32.mrb[143].mxu1  ;;  %v11162_v35 = vadd.f32 -1.0, %v12707_v52  ;;  %v4380_v12 = vsel %vm4300_vm7, %v14115_v5, %v11161_v16  ;;  %v4270_v16 = vpop.permute.xlu1 %4269  ;;  %vm4304_vm11 = vcmp.gt.f32.partialorder %v14170_v7, 0.0 }
 0x5e0   : > { %v4344_v54 = vmul.f32 1.442695, %v4320_v44  ;;  %v4321_v56 = vmin.f32 %v14178_v15, 0.0  ;;  %v4114_v40 = vadd.f32 %v11906_v28, %v4017_v11  ;;  %v11909_v17 = vadd.f32 %v11908_v26, %v11907_v20  ;;  %v11846_v62 = vpop.f32.mrb[144].mxu0 }
 0x5e1   : > { %v11847_v51 = vpop.f32.mrb[145].mxu0  ;;  %v4381_v32 = vsel %vm4301_vm8, %v14122_v49, %v11162_v35  ;;  %12493 = vset.pattern.permute.xlu1 %v12954_v4  ;;  %vm4305_vm12 = vcmp.gt.f32.partialorder %v14178_v15, 0.0 }
 0x5e2   : > { %12712 = vpow2.f32 %v4344_v54  ;;  %v4346_v29 = vmul.f32 1.442695, %v4321_v56  ;;  %v4210_v14 = vmul.f32 %v4178_v13, %v4114_v40  ;;  %v4117_v45 = vadd.f32 %v11909_v17, %v4020_v58  ;;  %v11849_v10 = vpop.f32.mrb[146].mxu0 }
 0x5e3   : > { %v11848_v37 = vadd.f32 %v11847_v51, %v11846_v62  ;;  %v11850_v0 = vpop.f32.mrb[147].mxu0  ;;  %v4394_v8 = vpack.c.bf16 %v4381_v32, %v4380_v12  ;;  %v4198_v12 = vpop.permute.xlu1 %4197 }
 0x5e4   : > { %v12709_v6 = vpop.eup %12708  ;;  %12714 = vpow2.f32 %v4346_v29  ;;  %v14189_v25 = vadd.f32 %v14057_v48, %v4210_v14  ;;  %v4211_v5 = vmul.f32 %v14140_v31, %v4117_v45  ;;  %v11851_v22 = vadd.f32 %v11850_v0, %v11849_v10  ;;  %v11910_v49 = vpop.f32.mrb[144].mxu1 }
 0x5e5   : > { %v4025_v43 = vadd.f32 %v11848_v37, %v14011_v24  ;;  %12088 = vmatprep.subr.bf16.mxu0 %v4394_v8  ;;  %v11911_v59 = vpop.f32.mrb[145].mxu1  ;;  %v11163_v30 = vadd.f32 -1.0, %v12709_v6  ;;  %v4190_v31 = vpop.permute.xlu0 %4189 }
 0x5e6   : > { %v12711_v60 = vpop.eup %12710  ;;  %v4322_v33 = vmin.f32 %v14189_v25, 0.0  ;;  %v14195_v23 = vadd.f32 %v14158_v18, %v4211_v5  ;;  %v4028_v38 = vadd.f32 %v11851_v22, %v14015_v2  ;;  %v11912_v57 = vadd.f32 %v11911_v59, %v11910_v49  ;;  %12089 = vmatpush3.bf16.msra.mxu0 %v4394_v8  ;;  %v11913_v48 = vpop.f32.mrb[146].mxu1  ;;  %v12853_v2 = vld [vmem:[%s17904_s8 + $0x58] sm:$0xff] }
 0x5e7   : > { %v11914_v46 = vpop.f32.mrb[147].mxu1  ;;  %v11164_v24 = vadd.f32 -1.0, %v12711_v60  ;;  %4606 = vperm.xlu1 %12493, %v12853_v2   ;;  %v4382_v52 = vsel %vm4302_vm9, %v14146_v1, %v11163_v30  ;;  %vm4306_vm13 = vcmp.gt.f32.partialorder %v14189_v25, 0.0 }
 0x5e8   : > { %v4348_v36 = vmul.f32 1.442695, %v4322_v33  ;;  %v4323_v53 = vmin.f32 %v14195_v23, 0.0  ;;  %v4122_v41 = vadd.f32 %v11912_v57, %v4025_v43  ;;  %v11915_v18 = vadd.f32 %v11914_v46, %v11913_v48  ;;  %v11852_v11 = vpop.f32.mrb[148].mxu0  ;;  %v12854_v33 = vld [vmem:[%s17904_s8 + $0x60] sm:$0xff]  ;;  %v4278_v57 = vpop.permute.xlu1 %4277 }
 0x5e9   : > { %v11853_v50 = vpop.f32.mrb[149].mxu0  ;;  %v4383_v44 = vsel %vm4303_vm10, %v14153_v27, %v11164_v24  ;;  %v4194_v29 = vpop.permute.xlu0 %4193  ;;  %vm4307_vm14 = vcmp.gt.f32.partialorder %v14195_v23, 0.0 }
 0x5ea   : > { %12716 = vpow2.f32 %v4348_v36  ;;  %v4350_v58 = vmul.f32 1.442695, %v4323_v53  ;;  %v4212_v28 = vmul.f32 %v14174_v3, %v4122_v41  ;;  %v4125_v20 = vadd.f32 %v11915_v18, %v4028_v38  ;;  %v11855_v26 = vpop.f32.mrb[150].mxu0 }
 0x5eb   : > { %v11854_v35 = vadd.f32 %v11853_v50, %v11852_v11  ;;  %v11856_v54 = vpop.f32.mrb[151].mxu0  ;;  %v4395_v56 = vpack.c.bf16 %v4383_v44, %v4382_v52  ;;  %12495 = vset.pattern.permute.xlu1 %v12955_v61 }
 0x5ec   : > { %v12713_v40 = vpop.eup %12712  ;;  %12718 = vpow2.f32 %v4350_v58  ;;  %v14208_v17 = vadd.f32 %v4266_v55, %v4212_v28  ;;  %v4213_v62 = vmul.f32 %v4190_v31, %v4125_v20  ;;  %v11857_v13 = vadd.f32 %v11856_v54, %v11855_v26  ;;  %v11916_v51 = vpop.f32.mrb[148].mxu1  ;;  %4686 = vperm.xlu1 %12495, %v12853_v2  }
 0x5ed   : > { %v4033_v1 = vadd.f32 %v11854_v35, %v14036_v47  ;;  %12090 = vmatprep.subr.bf16.mxu0 %v4395_v56  ;;  %v11917_v27 = vpop.f32.mrb[149].mxu1  ;;  %v11165_v3 = vadd.f32 -1.0, %v12713_v40  ;;  %v4274_v30 = vpop.permute.xlu0 %4273 }
 0x5ee   : > { %v12715_v32 = vpop.eup %12714  ;;  %v4324_v14 = vmin.f32 %v14208_v17, 0.0  ;;  %v4293_v45 = vadd.f32 %v4270_v16, %v4213_v62  ;;  %v4036_v10 = vadd.f32 %v11857_v13, %v14040_v42  ;;  %12091 = vmatpush3.bf16.msra.mxu0 %v4395_v56  ;;  %v11919_v37 = vpop.f32.mrb[150].mxu1  ;;  %v11918_v0 = vadd.f32 %v11917_v27, %v11916_v51  ;;  %v12627_v13 = vld [vmem:[%s17902_s6 + $0x18] sm:$0xff]   ;;  %v12628_v51 = vld [vmem:[%s17902_s6 + $0x20] sm:$0xff]   ;;  %v12630_v27 = vld [vmem:[%s17902_s6 + $0x30] sm:$0xff]  }
 0x5ef   : > { %v11920_v8 = vpop.f32.mrb[151].mxu1  ;;  %v11166_v55 = vadd.f32 -1.0, %v12715_v32  ;;  %v4384_v49 = vsel %vm4304_vm11, %v14170_v7, %v11165_v3  ;;  %vm4308_vm15 = vcmp.gt.f32.partialorder %v14208_v17, 0.0  ;;  %v4819_v3 = vld [vmem:[%s17903_s7 + $0x10] sm:$0xff]  ;;  %v4820_v32 = vld [vmem:[%s17903_s7 + $0x18] sm:$0xff] }
 0x5f0   : > { %v4352_v47 = vmul.f32 1.442695, %v4324_v14  ;;  %v4325_v6 = vmin.f32 %v4293_v45, 0.0  ;;  %v11921_v5 = vadd.f32 %v11920_v8, %v11919_v37  ;;  %v4130_v22 = vadd.f32 %v11918_v0, %v4033_v1  ;;  %12496 = vset.pattern.permute.xlu1 %v12954_v4  ;;  %v12629_v1 = vld [vmem:[%s17902_s6 + $0x28] sm:$0xff]  }
 0x5f1   : > { %v4385_v43 = vsel %vm4305_vm12, %v14178_v15, %v11166_v55  ;;  %4610 = vperm.xlu1 %12496, %v12854_v33   ;;  %vm4309_vm0 = vcmp.gt.f32.partialorder %v4293_v45, 0.0 }
 0x5f2   : > { %12720 = vpow2.f32 %v4352_v47  ;;  %v4354_v42 = vmul.f32 1.442695, %v4325_v6  ;;  %v4133_v59 = vadd.f32 %v11921_v5, %v4036_v10  ;;  %v4396_v60 = vpack.c.bf16 %v4385_v43, %v4384_v49 }
 0x5f3   : > { %v4214_v38 = vmul.f32 %v4194_v29, %v4130_v22  ;;  %v12262_v29 = vpack.c.bf16 %v4820_v32, %v4819_v3 }
 0x5f4   : > { %v12717_v48 = vpop.eup %12716  ;;  %12722 = vpow2.f32 %v4354_v42  ;;  %v4215_v46 = vmul.f32 %v4198_v12, %v4133_v59  ;;  %12092 = vmatprep.subr.bf16.mxu0 %v4396_v60  ;;  %v12631_v12 = vld [vmem:[%s17902_s6 + $0x38] sm:$0xff]  }
 0x5f5   : > { %v4294_v7 = vadd.f32 %v4274_v30, %v4214_v38  ;;  %12093 = vmatpush3.bf16.msra.mxu0 %v4396_v60  ;;  %v11167_v15 = vadd.f32 -1.0, %v12717_v48  ;;  %12497 = vset.pattern.permute.xlu1 %v12955_v61 }
 0x5f6   : > { %v12719_v24 = vpop.eup %12718  ;;  %v4295_v31 = vadd.f32 %v4278_v57, %v4215_v46  ;;  %4690 = vperm.xlu1 %12497, %v12854_v33   ;;  %12263 = vmatprep.subr.bf16.mxu1 %v12262_v29 }
 0x5f7   : > { %v4326_v36 = vmin.f32 %v4294_v7, 0.0  ;;  %v11168_v53 = vadd.f32 -1.0, %v12719_v24  ;;  %v4386_v11 = vsel %vm4306_vm13, %v14189_v25, %v11167_v15  ;;  %v12855_v25 = vld [vmem:[%s17904_s8 + $0x78] sm:$0xff]  ;;  %vm4310_vm1 = vcmp.gt.f32.partialorder %v4294_v7, 0.0  ;;  %12265 = vmatpush3.bf16.msra.mxu1 %v12262_v29 }
 0x5f8   : > { %v4327_v41 = vmin.f32 %v4295_v31, 0.0  ;;  %vm4311_vm2 = vcmp.gt.f32.partialorder %v4295_v31, 0.0 }
 0x5f9   : > { %v4356_v18 = vmul.f32 1.442695, %v4326_v36  ;;  %v4387_v2 = vsel %vm4307_vm14, %v14195_v23, %v11168_v53 }
 0x5fa   : > { %v4358_v50 = vmul.f32 1.442695, %v4327_v41  ;;  %v4397_v16 = vpack.c.bf16 %v4387_v2, %v4386_v11  ;;  %4694 = vperm.xlu1 %12497, %v14131_v63  }
 0x5fb   : > { %12724 = vpow2.f32 %v4356_v18 }
 0x5fc   : > { %v12721_v52 = vpop.eup %12720  ;;  %12726 = vpow2.f32 %v4358_v50  ;;  %12094 = vmatprep.subr.bf16.mxu0 %v4397_v16 }
 0x5fd   : > { %12095 = vmatpush3.bf16.msra.mxu0 %v4397_v16  ;;  %v11169_v44 = vadd.f32 -1.0, %v12721_v52 }
 0x5fe   : > { %v12723_v58 = vpop.eup %12722  ;;  %12498 = vset.pattern.permute.xlu1 %v12954_v4 }
 0x5ff   : > { %v11170_v28 = vadd.f32 -1.0, %v12723_v58  ;;  %4622 = vperm.xlu1 %12498, %v12855_v25   ;;  %v4388_v23 = vsel %vm4308_vm15, %v14208_v17, %v11169_v44  ;;  %v12625_v17 = vld [vmem:[%s17902_s6 + $0x8] sm:$0xff]  }
 0x601   : > { %v4389_v63 = vsel %vm4309_vm0, %v4293_v45, %v11170_v28 }
 0x602   : > { %v4398_v20 = vpack.c.bf16 %v4389_v63, %v4388_v23 }
 0x603   : > { %12500 = vset.pattern.permute.xlu1 %v12955_v61  ;;  %v12626_v61 = vld [vmem:[%s17902_s6 + $0x10] sm:$0xff]  }
 0x604   : > { %12096 = vmatprep.subr.bf16.mxu0 %v4398_v20  ;;  %4702 = vperm.xlu1 %12500, %v12855_v25  }
 0x605   : > { %v12725_v26 = vpop.eup %12724  ;;  %12097 = vmatpush3.bf16.msra.mxu0 %v4398_v20 }
 0x606   : > { %v12727_v35 = vpop.eup %12726  ;;  %v11171_v4 = vadd.f32 -1.0, %v12725_v26 }
 0x607   : > { %v11172_v54 = vadd.f32 -1.0, %v12727_v35 }
 0x608   : > { %v4390_v56 = vsel %vm4310_vm1, %v4294_v7, %v11171_v4  ;;  %12502 = vset.pattern.permute.xlu1 %v17922_v19 }
 0x609   : > { %v4391_v40 = vsel %vm4311_vm2, %v4295_v31, %v11172_v54 }
 0x60a   : > { %v4399_v62 = vpack.c.bf16 %v4391_v40, %v4390_v56 }
 0x60c   : > { %12098 = vmatprep.subr.bf16.mxu0 %v4399_v62 }
 0x60d   : > { %12099 = vmatpush3.bf16.msra.mxu0 %v4399_v62 }
 0x610   : > { %12101 = vmatmul.mubr.bf16.vlgmr.msra.gmra.mrb[152].mxu0 %v12625_v17 }
 0x611   : > { %12104 = vmatprep.mubr.bf16.mxu0 %v12626_v61 }
 0x618   : > { %12105 = vmatmul.mubr.bf16.gmra.mrb[156].mxu0 %v12627_v13 }
 0x619   : > { %12108 = vmatprep.mubr.bf16.mxu0 %v12628_v51 }
 0x61b   : > { %v4563_v14 = vpop.permute.xlu1 %4562 }
 0x620   : > { %12109 = vmatmul.mubr.bf16.gmra.mrb[160].mxu0 %v12629_v1 }
 0x621   : > { %12112 = vmatprep.mubr.bf16.mxu0 %v12630_v27 }
 0x625   : > { %v4643_v45 = vpop.permute.xlu1 %4642  ;;  %v4651_v55 = vpop.permute.xlu0 %4650 }
 0x628   : > { %12113 = vmatmul.mubr.bf16.gmra.mrb[164].mxu0 %v12631_v12 }
 0x629   : > { %v4647_v10 = vpop.permute.xlu1 %4646  ;;  %v4667_v6 = vpop.permute.xlu0 %4666 }
 0x62d   : > { %v14263_v22 = vpop.permute.xlu0 %4682 }
 0x62e   : > { %v4575_v37 = vpop.permute.xlu1 %4574 }
 0x632   : > { %v4567_v43 = vpop.permute.xlu0 %4566 }
 0x633   : > { %v4655_v0 = vpop.permute.xlu1 %4654 }
 0x636   : > { %v4571_v59 = vpop.permute.xlu0 %4570 }
 0x638   : > { %v4579_v8 = vpop.permute.xlu1 %4578 }
 0x63c   : > { %v4583_v60 = vpop.permute.xlu0 %4582 }
 0x63d   : > { %v4659_v47 = vpop.permute.xlu1 %4658 }
 0x640   : > { %v4587_v38 = vpop.permute.xlu0 %4586 }
 0x641   : > { %v4663_v5 = vpop.permute.xlu1 %4662 }
 0x645   : > { %v14269_v15 = vpop.permute.xlu0 %4598 }
 0x648   : > { %v4591_v49 = vpop.permute.xlu1 %4590 }
 0x649   : > { %v4603_v63 = vpop.permute.xlu0 %4602 }
 0x64d   : > { %v4671_v42 = vpop.permute.xlu1 %4670  ;;  %v14290_v3 = vpop.permute.xlu0 %4614 }
 0x653   : > { %v4595_v30 = vpop.permute.xlu1 %4594 }
 0x658   : > { %v14265_v33 = vpop.permute.xlu1 %4674 }
 0x65c   : > { %v14267_v57 = vpop.permute.xlu1 %4678 }
 0x666   : > { %v4607_v18 = vpop.permute.xlu1 %4606 }
 0x66b   : > { %v4687_v54 = vpop.permute.xlu1 %4686 }
 0x6e3   : > { %v12102_v48 = vpop.f32.mrb[152].mxu0 }
 0x6e4   : > { %v4627_v46 = vmul.f32 %v12102_v48, %v4571_v59  ;;  %v4498_v7 = vpop.f32.mrb[153].mxu0 }
 0x6e5   : > { %v4625_v24 = vmul.f32 %v4563_v14, %v4498_v7  ;;  %v12103_v31 = vpop.f32.mrb[154].mxu0 }
 0x6e6   : > { %v14271_v36 = vadd.f32 %v4651_v55, %v4627_v46  ;;  %v4628_v53 = vmul.f32 %v12103_v31, %v4575_v37  ;;  %v4501_v41 = vpop.f32.mrb[155].mxu0  ;;  %v4619_v46 = vpop.permute.xlu0 %4618 }
 0x6e7   : > { %v14273_v11 = vadd.f32 %v4643_v45, %v4625_v24  ;;  %v4626_v2 = vmul.f32 %v4567_v43, %v4501_v41 }
 0x6e8   : > { %v4739_v50 = vmin.f32 %v14271_v36, 0.0  ;;  %v14276_v16 = vadd.f32 %v4655_v0, %v4628_v53  ;;  %vm4723_vm4 = vcmp.gt.f32.partialorder %v14271_v36, 0.0 }
 0x6e9   : > { %v4737_v52 = vmin.f32 %v14273_v11, 0.0  ;;  %v14279_v44 = vadd.f32 %v4647_v10, %v4626_v2  ;;  %v4611_v10 = vpop.permute.xlu1 %4610  ;;  %vm4721_vm5 = vcmp.gt.f32.partialorder %v14273_v11, 0.0 }
 0x6ea   : > { %v4757_v58 = vmul.f32 1.442695, %v4739_v50  ;;  %v4740_v28 = vmin.f32 %v14276_v16, 0.0  ;;  %vm4724_vm7 = vcmp.gt.f32.partialorder %v14276_v16, 0.0 }
 0x6eb   : > { %v4753_v25 = vmul.f32 1.442695, %v4737_v52  ;;  %v4738_v23 = vmin.f32 %v14279_v44, 0.0  ;;  %v12106_v20 = vpop.f32.mrb[156].mxu0  ;;  %vm4722_vm6 = vcmp.gt.f32.partialorder %v14279_v44, 0.0 }
 0x6ec   : > { %12728 = vpow2.f32 %v4757_v58  ;;  %v4759_v26 = vmul.f32 1.442695, %v4740_v28  ;;  %v4631_v35 = vmul.f32 %v12106_v20, %v4587_v38  ;;  %v4514_v4 = vpop.f32.mrb[157].mxu0  ;;  %v4699_v20 = vpop.permute.xlu0 %4698 }
 0x6ed   : > { %12730 = vpow2.f32 %v4753_v25  ;;  %v4755_v56 = vmul.f32 1.442695, %v4738_v23  ;;  %v4629_v40 = vmul.f32 %v4579_v8, %v4514_v4  ;;  %v12107_v62 = vpop.f32.mrb[158].mxu0  ;;  %v4691_v2 = vpop.permute.xlu1 %4690 }
 0x6ee   : > { %12732 = vpow2.f32 %v4759_v26  ;;  %v14283_v17 = vadd.f32 %v4667_v6, %v4631_v35  ;;  %v4632_v61 = vmul.f32 %v12107_v62, %v4591_v49  ;;  %v4517_v13 = vpop.f32.mrb[159].mxu0 }
 0x6ef   : > { %12734 = vpow2.f32 %v4755_v56  ;;  %v14285_v51 = vadd.f32 %v4659_v47, %v4629_v40  ;;  %v4630_v1 = vmul.f32 %v4583_v60, %v4517_v13 }
 0x6f0   : > { %v4743_v27 = vmin.f32 %v14283_v17, 0.0  ;;  %v14288_v12 = vadd.f32 %v4671_v42, %v4632_v61  ;;  %vm4727_vm11 = vcmp.gt.f32.partialorder %v14283_v17, 0.0 }
 0x6f1   : > { %v4741_v32 = vmin.f32 %v14285_v51, 0.0  ;;  %v14293_v29 = vadd.f32 %v4663_v5, %v4630_v1  ;;  %v4695_v1 = vpop.permute.xlu1 %4694  ;;  %vm4725_vm8 = vcmp.gt.f32.partialorder %v14285_v51, 0.0 }
 0x6f2   : > { %v4765_v14 = vmul.f32 1.442695, %v4743_v27  ;;  %v4744_v45 = vmin.f32 %v14288_v12, 0.0  ;;  %vm4728_vm10 = vcmp.gt.f32.partialorder %v14288_v12, 0.0 }
 0x6f3   : > { %v4761_v37 = vmul.f32 1.442695, %v4741_v32  ;;  %v4742_v0 = vmin.f32 %v14293_v29, 0.0  ;;  %v12110_v8 = vpop.f32.mrb[160].mxu0  ;;  %vm4726_vm9 = vcmp.gt.f32.partialorder %v14293_v29, 0.0 }
 0x6f4   : > { %12736 = vpow2.f32 %v4765_v14  ;;  %v4767_v55 = vmul.f32 1.442695, %v4744_v45  ;;  %v4635_v47 = vmul.f32 %v12110_v8, %v4603_v63  ;;  %v4530_v6 = vpop.f32.mrb[161].mxu0 }
 0x6f5   : > { %12738 = vpow2.f32 %v4761_v37  ;;  %v4763_v49 = vmul.f32 1.442695, %v4742_v0  ;;  %v4633_v43 = vmul.f32 %v4595_v30, %v4530_v6  ;;  %v12111_v42 = vpop.f32.mrb[162].mxu0  ;;  %v4623_v34 = vpop.permute.xlu1 %4622 }
 0x6f6   : > { %v12729_v59 = vpop.eup %12728  ;;  %12740 = vpow2.f32 %v4767_v55  ;;  %v14298_v5 = vadd.f32 %v14263_v22, %v4635_v47  ;;  %v4636_v60 = vmul.f32 %v12111_v42, %v4607_v18  ;;  %v4533_v38 = vpop.f32.mrb[163].mxu0 }
 0x6f7   : > { %v12731_v48 = vpop.eup %12730  ;;  %12742 = vpow2.f32 %v4763_v49  ;;  %v14301_v7 = vadd.f32 %v14265_v33, %v4633_v43  ;;  %v4634_v24 = vmul.f32 %v14269_v15, %v4533_v38  ;;  %v11183_v33 = vadd.f32 -1.0, %v12729_v59 }
 0x6f8   : > { %v12733_v31 = vpop.eup %12732  ;;  %v4747_v30 = vmin.f32 %v14298_v5, 0.0  ;;  %v14305_v53 = vadd.f32 %v4687_v54, %v4636_v60  ;;  %v11181_v41 = vadd.f32 -1.0, %v12731_v48  ;;  %vm4731_vm15 = vcmp.gt.f32.partialorder %v14298_v5, 0.0 }
 0x6f9   : > { %v12735_v22 = vpop.eup %12734  ;;  %v4745_v18 = vmin.f32 %v14301_v7, 0.0  ;;  %v14310_v50 = vadd.f32 %v14267_v57, %v4634_v24  ;;  %v11184_v57 = vadd.f32 -1.0, %v12733_v31  ;;  %v4803_v62 = vsel %vm4723_vm4, %v14271_v36, %v11183_v33 }
 0x6fa   : > { %v11182_v15 = vadd.f32 -1.0, %v12735_v22  ;;  %v4773_v52 = vmul.f32 1.442695, %v4747_v30  ;;  %v4748_v58 = vmin.f32 %v14305_v53, 0.0  ;;  %v4801_v28 = vsel %vm4721_vm5, %v14273_v11, %v11181_v41 }
 0x6fb   : > { %v4769_v25 = vmul.f32 1.442695, %v4745_v18  ;;  %v4746_v23 = vmin.f32 %v14310_v50, 0.0  ;;  %v12114_v63 = vpop.f32.mrb[164].mxu0  ;;  %12124 = vmatprep.mubr.msk.f32.mxu1 %vm18024_vm3, %v4801_v28  ;;  %vm4729_vm12 = vcmp.gt.f32.partialorder %v14301_v7, 0.0  ;;  %vm4730_vm13 = vcmp.gt.f32.partialorder %v14310_v50, 0.0 }
 0x6fc   : > { %v4802_v26 = vsel %vm4722_vm6, %v14279_v44, %v11182_v15  ;;  %12744 = vpow2.f32 %v4773_v52  ;;  %v4775_v35 = vmul.f32 1.442695, %v4748_v58  ;;  %v4639_v4 = vmul.f32 %v12114_v63, %v4619_v46  ;;  %v4546_v54 = vpop.f32.mrb[165].mxu0 }
 0x6fd   : > { %12746 = vpow2.f32 %v4769_v25  ;;  %v4771_v56 = vmul.f32 1.442695, %v4746_v23  ;;  %v4637_v40 = vmul.f32 %v4611_v10, %v4546_v54  ;;  %v14319_v11 = vpop.f32.mrb[166].mxu0  ;;  %12125 = vmatmul.mubr.msk.f32.vlgmr.msra.gmra.mrb[152].mxu1 %vm18024_vm3, %v4802_v26  ;;  %v4804_v10 = vsel %vm4724_vm7, %v14276_v16, %v11184_v57 }
 0x6fe   : > { %v12737_v61 = vpop.eup %12736  ;;  %12748 = vpow2.f32 %v4775_v35  ;;  %v14325_v13 = vadd.f32 %v4699_v20, %v4639_v4  ;;  %v4549_v44 = vpop.f32.mrb[167].mxu0  ;;  %12127 = vmatprep.mubr.msk.f32.mxu1 %vm18024_vm3, %v4803_v62  ;;  %vm4732_vm14 = vcmp.gt.f32.partialorder %v14305_v53, 0.0 }
 0x6ff   : > { %v12739_v27 = vpop.eup %12738  ;;  %12750 = vpow2.f32 %v4771_v56  ;;  %v4717_v32 = vadd.f32 %v4691_v2, %v4637_v40  ;;  %v4638_v14 = vmul.f32 %v14290_v3, %v4549_v44  ;;  %v11187_v47 = vadd.f32 -1.0, %v12737_v61 }
 0x700   : > { %v12741_v45 = vpop.eup %12740  ;;  %v4751_v36 = vmin.f32 %v14325_v13, 0.0  ;;  %v11185_v37 = vadd.f32 -1.0, %v12739_v27  ;;  %vm4735_vm2 = vcmp.gt.f32.partialorder %v14325_v13, 0.0 }
 0x701   : > { %v12743_v0 = vpop.eup %12742  ;;  %v4749_v8 = vmin.f32 %v4717_v32, 0.0  ;;  %v4718_v55 = vadd.f32 %v4695_v1, %v4638_v14  ;;  %12128 = vmatmul.mubr.msk.f32.gmra.mrb[154].mxu1 %vm18024_vm3, %v4804_v10  ;;  %v11188_v42 = vadd.f32 -1.0, %v12741_v45  ;;  %vm4733_vm0 = vcmp.gt.f32.partialorder %v4717_v32, 0.0 }
 0x702   : > { %v4781_v6 = vmul.f32 1.442695, %v4751_v36  ;;  %v4805_v49 = vsel %vm4725_vm8, %v14285_v51, %v11185_v37  ;;  %v11186_v43 = vadd.f32 -1.0, %v12743_v0  ;;  %v4807_v51 = vsel %vm4727_vm11, %v14283_v17, %v11187_v47 }
 0x703   : > { %v4777_v3 = vmul.f32 1.442695, %v4749_v8  ;;  %v4750_v59 = vmin.f32 %v4718_v55, 0.0  ;;  %12130 = vmatprep.mubr.msk.f32.mxu1 %vm18024_vm3, %v4805_v49  ;;  %v4808_v48 = vsel %vm4728_vm10, %v14288_v12, %v11188_v42  ;;  %vm4734_vm1 = vcmp.gt.f32.partialorder %v4718_v55, 0.0 }
 0x704   : > { %12752 = vpow2.f32 %v4781_v6  ;;  %v4806_v16 = vsel %vm4726_vm9, %v14293_v29, %v11186_v43  ;;  %v17935_v37 = vmov 920167782   ;;  %v17932_v49 = vmov 2102212464  }
 0x705   : > { %12754 = vpow2.f32 %v4777_v3  ;;  %v4779_v60 = vmul.f32 1.442695, %v4750_v59  ;;  %12131 = vmatmul.mubr.msk.f32.gmra.mrb[156].mxu1 %vm18024_vm3, %v4806_v16  ;;  %v17949_v3 = vmov 2475754826   ;;  %v17947_v16 = vmov 2131351028  }
 0x706   : > { %v12745_v38 = vpop.eup %12744  ;;  %12133 = vmatprep.mubr.msk.f32.mxu1 %vm18024_vm3, %v4807_v51 }
 0x707   : > { %v12747_v46 = vpop.eup %12746  ;;  %12756 = vpow2.f32 %v4779_v60  ;;  %v11191_v30 = vadd.f32 -1.0, %v12745_v38 }
 0x708   : > { %v12749_v24 = vpop.eup %12748  ;;  %v11189_v31 = vadd.f32 -1.0, %v12747_v46  ;;  %v17951_v46 = vmov 683565275  }
 0x709   : > { %v12751_v29 = vpop.eup %12750  ;;  %12134 = vmatmul.mubr.msk.f32.gmra.mrb[158].mxu1 %vm18024_vm3, %v4808_v48  ;;  %v11192_v22 = vadd.f32 -1.0, %v12749_v24  ;;  %v4811_v12 = vsel %vm4731_vm15, %v14298_v5, %v11191_v30 }
 0x70a   : > { %v4809_v41 = vsel %vm4729_vm12, %v14301_v7, %v11189_v31  ;;  %v11190_v2 = vadd.f32 -1.0, %v12751_v29 }
 0x70b   : > { %12136 = vmatprep.mubr.msk.f32.mxu1 %vm18024_vm3, %v4809_v41  ;;  %v4812_v7 = vsel %vm4732_vm14, %v14305_v53, %v11192_v22 }
 0x70c   : > { %v4810_v17 = vsel %vm4730_vm13, %v14310_v50, %v11190_v2 }
 0x70d   : > { %12137 = vmatmul.mubr.msk.f32.gmra.mrb[160].mxu1 %vm18024_vm3, %v4810_v17 }
 0x70e   : > { %v12753_v18 = vpop.eup %12752  ;;  %12139 = vmatprep.mubr.msk.f32.mxu1 %vm18024_vm3, %v4811_v12 }
 0x70f   : > { %v12755_v33 = vpop.eup %12754  ;;  %v11195_v58 = vadd.f32 -1.0, %v12753_v18 }
 0x710   : > { %v11193_v15 = vadd.f32 -1.0, %v12755_v33 }
 0x711   : > { %v12757_v52 = vpop.eup %12756  ;;  %12140 = vmatmul.mubr.msk.f32.gmra.mrb[162].mxu1 %vm18024_vm3, %v4812_v7  ;;  %v4815_v5 = vsel %vm4735_vm2, %v14325_v13, %v11195_v58 }
 0x712   : > { %v4813_v28 = vsel %vm4733_vm0, %v4717_v32, %v11193_v15  ;;  %v11194_v50 = vadd.f32 -1.0, %v12757_v52 }
 0x713   : > { %12142 = vmatprep.mubr.msk.f32.mxu1 %vm18024_vm3, %v4813_v28 }
 0x714   : > { %v4814_v25 = vsel %vm4734_vm1, %v4718_v55, %v11194_v50  ;;  %v17930_v55 = vmov 1326507024  }
 0x715   : > { %12143 = vmatmul.mubr.msk.f32.gmra.mrb[164].mxu1 %vm18024_vm3, %v4814_v25 }
 0x716   : > { %12145 = vmatprep.mubr.msk.f32.mxu1 %vm18024_vm3, %v4815_v5 }
 0x7d0   : > { %v12126_v53 = vpop.f32.mrb[152].mxu1 }
 0x7d1   : > { %v14362_v23 = vmul.f32 0.5, %v12126_v53  ;;  %v4936_v63 = vpop.f32.mrb[153].mxu1 }
 0x7d2   : > { %v14365_v35 = vmul.f32 0.5, %v4936_v63 }
 0x7d3   : > { %v5137_v20 = vand.u32 2139095040, %v14362_v23  ;;  %v17929_v8 = vand.u32 2147483647, %v14362_v23 }
 0x7d4   : > { %v12129_v57 = vpop.f32.mrb[154].mxu1  ;;  %v5034_v62 = vand.u32 2139095040, %v14365_v35 }
 0x7d5   : > { %v5138_v26 = vshrl.u32 %v5137_v20, 23  ;;  %v14367_v4 = vpop.f32.mrb[155].mxu1  ;;  %v14386_v42 = vmul.f32 0.5, %v12129_v57  ;;  %v5141_v41 = vand.u32 8388607, %v17929_v8 }
 0x7d6   : > { %v5035_v27 = vshrl.u32 %v5034_v62, 23 }
 0x7d7   : > { %v11217_v54 = vadd.s32 4294967169, %v5138_v26  ;;  %18103 = vst [vmem:[#allocation10_spill] sm:$0xff] %v14386_v42  ;;  %v5343_v22 = vand.u32 2139095040, %v14386_v42  ;;  %v5142_v28 = vor.u32 8388608, %v5141_v41 }
 0x7d8   : > { %v14369_v56 = vpop.f32.mrb[156].mxu1  ;;  %v11213_v45 = vadd.s32 4294967169, %v5035_v27 }
 0x7d9   : > { %v5144_v40 = vadd.s32 1, %v11217_v54  ;;  %v14372_v61 = vpop.f32.mrb[157].mxu1  ;;  %v5344_v58 = vshrl.u32 %v5343_v22, 23  ;;  %v5182_v54 = vshll.u32 %v5142_v28, 8 }
 0x7da   : > { %v5041_v10 = vadd.s32 1, %v11213_v45 }
 0x7db   : > { %vm5145_vm4 = vcmp.gt.s32.totalorder %v5144_v40, 0  ;;  %v11225_v57 = vadd.s32 4294967169, %v5344_v58 }
 0x7dc   : > { %v14374_v13 = vpop.f32.mrb[158].mxu1  ;;  %v5146_v44 = vsel %vm5145_vm4, %v5144_v40, 0  ;;  %vm5042_vm5 = vcmp.gt.s32.totalorder %v5041_v10, 0 }
 0x7dd   : > { %v14376_v1 = vpop.f32.mrb[159].mxu1  ;;  %v5148_v32 = vand.u32 31, %v5146_v44  ;;  %v14383_v6 = vshrl.u32 %v5146_v44, 5  ;;  %v5043_v2 = vsel %vm5042_vm5, %v5041_v10, 0  ;;  %v5350_v45 = vadd.s32 1, %v11225_v57 }
 0x7de   : > { %v5045_v52 = vand.u32 31, %v5043_v2  ;;  %v17928_v10 = vand.u32 2147483647, %v14365_v35 }
 0x7df   : > { %v5149_v36 = vsub.s32 32, %v5148_v32  ;;  %v5160_v43 = vshll.u32 %v17932_v49, %v5148_v32  ;;  %v5163_v38 = vshll.u32 %v17935_v37, %v5148_v32  ;;  %v5151_v24 = vshll.u32 %v17951_v46, %v5148_v32 }
 0x7e0   : > { %v14378_v14 = vpop.f32.mrb[160].mxu1  ;;  %v5154_v31 = vshll.u32 %v17949_v3, %v5148_v32  ;;  %v5157_v29 = vshll.u32 %v17947_v16, %v5148_v32  ;;  %vm5169_vm6 = vcmp.lt.s32.totalorder %v14383_v6, 4  ;;  %vm5166_vm7 = vcmp.lt.s32.totalorder %v14383_v6, 1 }
 0x7e1   : > { %v5161_v0 = vshrl.u32 %v17935_v37, %v5149_v36  ;;  %v5164_v47 = vshrl.u32 %v17930_v55, %v5149_v36  ;;  %v5152_v59 = vshrl.u32 %v17949_v3, %v5149_v36  ;;  %v5155_v60 = vshrl.u32 %v17947_v16, %v5149_v36  ;;  %v14399_v7 = vpop.f32.mrb[161].mxu1 }
 0x7e2   : > { %v5158_v51 = vshrl.u32 %v17932_v49, %v5149_v36  ;;  %vm5168_vm8 = vcmp.lt.s32.totalorder %v14383_v6, 3  ;;  %vm5167_vm9 = vcmp.lt.s32.totalorder %v14383_v6, 2  ;;  %v5046_v63 = vsub.s32 32, %v5045_v52 }
 0x7e3   : > { %v5162_v48 = vor.u32 %v5161_v0, %v5160_v43  ;;  %v5165_v30 = vor.u32 %v5164_v47, %v5163_v38  ;;  %v5153_v17 = vor.u32 %v5152_v59, %v5151_v24  ;;  %v5156_v12 = vor.u32 %v5155_v60, %v5154_v31 }
 0x7e4   : > { %v5159_v18 = vor.u32 %v5158_v51, %v5157_v29  ;;  %v5058_v44 = vshrl.u32 %v17935_v37, %v5046_v63  ;;  %v14429_v0 = vshrl.u32 %v5043_v2, 5  ;;  %v5057_v47 = vshll.u32 %v17932_v49, %v5045_v52 }
 0x7e5   : > { %v5175_v33 = vsel %vm5169_vm6, %v5162_v48, 920167782  ;;  %v5179_v15 = vsel %vm5169_vm6, %v5165_v30, 1326507024  ;;  %v5174_v50 = vsel %vm5166_vm7, %v5153_v17, %v5156_v12  ;;  %v5061_v43 = vshrl.u32 %v17930_v55, %v5046_v63 }
 0x7e6   : > { %v5176_v25 = vsel %vm5168_vm8, %v5159_v18, %v5175_v33  ;;  %v5178_v5 = vsel %vm5166_vm7, %v5156_v12, %v5159_v18  ;;  %v5180_v53 = vsel %vm5168_vm8, %v5162_v48, %v5179_v15  ;;  %v5171_v59 = vsel %vm5169_vm6, %v5159_v18, 2102212464 }
 0x7e7   : > { %v5177_v20 = vsel %vm5167_vm9, %v5174_v50, %v5176_v25  ;;  %v5181_v26 = vsel %vm5167_vm9, %v5178_v5, %v5180_v53  ;;  %v5049_v60 = vshrl.u32 %v17949_v3, %v5046_v63  ;;  %v5052_v51 = vshrl.u32 %v17947_v16, %v5046_v63 }
 0x7e8   : > { %v14420_v40 = vmul.u32.u64.low %v5182_v54, %v5177_v20  ;;  %v14421_v62 = vmul.u32.u64.high %v5182_v54, %v5177_v20, %v14420_v40  ;;  %v14425_v27 = vmul.u32.u64.low %v5182_v54, %v5181_v26  ;;  %v14426_v32 = vmul.u32.u64.high %v5182_v54, %v5181_v26, %v14425_v27 }
 0x7e9   : > { %v5055_v38 = vshrl.u32 %v17932_v49, %v5046_v63  ;;  %v5150_v48 = vshrl.u32 %v17951_v46, %v5149_v36  ;;  %v5059_v24 = vor.u32 %v5058_v44, %v5057_v47  ;;  %v5060_v31 = vshll.u32 %v17935_v37, %v5045_v52 }
 0x7ea   : > { %v14441_v29 = vmul.f32 0.5, %v14367_v4  ;;  %v5048_v30 = vshll.u32 %v17951_v46, %v5045_v52  ;;  %v5051_v41 = vshll.u32 %v17949_v3, %v5045_v52  ;;  %v5054_v2 = vshll.u32 %v17947_v16, %v5045_v52 }
 0x7eb   : > { %vm5351_vm10 = vcmp.gt.s32.totalorder %v5350_v45, 0  ;;  %v5170_v22 = vsel %vm5166_vm7, %v5150_v48, %v5153_v17  ;;  %v5172_v18 = vsel %vm5168_vm8, %v5156_v12, %v5171_v59  ;;  %v5038_v36 = vand.u32 8388607, %v17928_v10 }
 0x7ec   : > { %18104 = vst [vmem:[#allocation11_spill] sm:$0xff] %v14441_v29  ;;  %v5062_v33 = vor.u32 %v5061_v43, %v5060_v31  ;;  %v5050_v15 = vor.u32 %v5049_v60, %v5048_v30  ;;  %v5053_v4 = vor.u32 %v5052_v51, %v5051_v41  ;;  %v5056_v58 = vor.u32 %v5055_v38, %v5054_v2 }
 0x7ed   : > { %vm5066_vm11 = vcmp.lt.s32.totalorder %v14429_v0, 4  ;;  %v5192_v28 = vadd.s32 1, %v14421_v62  ;;  %v5352_v50 = vsel %vm5351_vm10, %v5350_v45, 0  ;;  %v5240_v17 = vand.u32 2139095040, %v14441_v29 }
 0x7ee   : > { %v5072_v52 = vsel %vm5066_vm11, %v5059_v24, 920167782  ;;  %vm5191_vm12 = vc.u32 %v14426_v32, %v14420_v40  ;;  %v5173_v12 = vsel %vm5167_vm9, %v5170_v22, %v5172_v18  ;;  %vm5063_vm13 = vcmp.lt.s32.totalorder %v14429_v0, 1  ;;  %v14494_v18 = vpop.f32.mrb[162].mxu1 }
 0x7ef   : > { %vm5065_vm14 = vcmp.lt.s32.totalorder %v14429_v0, 3  ;;  %v5076_v25 = vsel %vm5066_vm11, %v5062_v33, 1326507024  ;;  %v5039_v5 = vor.u32 8388608, %v5038_v36  ;;  %v5071_v53 = vsel %vm5063_vm13, %v5050_v15, %v5053_v4  ;;  %v14500_v33 = vpop.f32.mrb[163].mxu1 }
 0x7f0   : > { %v5073_v20 = vsel %vm5065_vm14, %v5056_v58, %v5072_v52  ;;  %v5354_v57 = vand.u32 31, %v5352_v50  ;;  %v5193_v26 = vsel %vm5191_vm12, %v5192_v28, %v14421_v62  ;;  %v5241_v44 = vshrl.u32 %v5240_v17, 23  ;;  %18105 = vst [vmem:[#allocation12_spill] sm:$0xff] %v14500_v33 }
 0x7f1   : > { %v5189_v6 = vmul.u32 %v5182_v54, %v5173_v12  ;;  %vm5064_vm15 = vcmp.lt.s32.totalorder %v14429_v0, 2  ;;  %v5075_v27 = vsel %vm5063_vm13, %v5053_v4, %v5056_v58  ;;  %v5077_v45 = vsel %vm5065_vm14, %v5059_v24, %v5076_v25  ;;  %v14507_v12 = vpop.f32.mrb[164].mxu1 }
 0x7f2   : > { %v5074_v47 = vsel %vm5064_vm15, %v5071_v53, %v5073_v20  ;;  %v5079_v59 = vshll.u32 %v5039_v5, 8  ;;  %v14477_v60 = vsub.s32 32, %v5354_v57  ;;  %v5078_v62 = vsel %vm5064_vm15, %v5075_v27, %v5077_v45  ;;  %18106 = vst [vmem:[#allocation13_spill] sm:$0xff] %v14507_v12 }
 0x7f3   : > { %v5194_v43 = vadd.s32 %v5193_v26, %v5189_v6  ;;  %v11221_v38 = vadd.s32 4294967169, %v5241_v44  ;;  %v5047_v48 = vshrl.u32 %v17951_v46, %v5046_v63  ;;  %v5068_v24 = vsel %vm5066_vm11, %v5056_v58, 2102212464 }
 0x7f4   : > { %v14481_v51 = vmul.u32.u64.low %v5079_v59, %v5074_v47  ;;  %v14482_v54 = vmul.u32.u64.high %v5079_v59, %v5074_v47, %v14481_v51  ;;  %v17927_v31 = vand.u32 2147483647, %v14386_v42  ;;  %v5367_v22 = vshrl.u32 %v17935_v37, %v14477_v60 }
 0x7f5   : > { %v5195_v30 = vadd.s32 536870912, %v5194_v43  ;;  %v14489_v41 = vmul.u32.u64.low %v5079_v59, %v5078_v62  ;;  %v14490_v2 = vmul.u32.u64.high %v5079_v59, %v5078_v62, %v14489_v41  ;;  %v5067_v36 = vsel %vm5063_vm13, %v5047_v48, %v5050_v15 }
 0x7f6   : > { %v5370_v63 = vshrl.u32 %v17930_v55, %v14477_v60  ;;  %v5069_v58 = vsel %vm5065_vm14, %v5053_v4, %v5068_v24  ;;  %v14504_v28 = vshrl.u32 %v5352_v50, 5  ;;  %v5366_v52 = vshll.u32 %v17932_v49, %v5354_v57 }
 0x7f7   : > { %v5247_v17 = vadd.s32 1, %v11221_v38  ;;  %v5358_v25 = vshrl.u32 %v17949_v3, %v14477_v60  ;;  %v5361_v15 = vshrl.u32 %v17947_v16, %v14477_v60  ;;  %v5364_v5 = vshrl.u32 %v17932_v49, %v14477_v60 }
 0x7f8   : > { %v5369_v53 = vshll.u32 %v17935_v37, %v5354_v57  ;;  %v14516_v20 = vshrl.u32 %v5195_v30, 30  ;;  %v5347_v4 = vand.u32 8388607, %v17927_v31  ;;  %v5368_v50 = vor.u32 %v5367_v22, %v5366_v52 }
 0x7f9   : > { %v5357_v26 = vshll.u32 %v17951_v46, %v5354_v57  ;;  %v5360_v44 = vshll.u32 %v17949_v3, %v5354_v57  ;;  %v5363_v6 = vshll.u32 %v17947_v16, %v5354_v57  ;;  %v5070_v45 = vsel %vm5064_vm15, %v5067_v36, %v5069_v58 }
 0x7fa   : > { %18107 = vst [vmem:[#allocation14_spill] sm:$0xff] %v14516_v20  ;;  %v5371_v27 = vor.u32 %v5370_v63, %v5369_v53  ;;  %v5089_v47 = vadd.s32 1, %v14482_v54  ;;  %vm5248_vm0 = vcmp.gt.s32.totalorder %v5247_v17, 0  ;;  %v14527_v62 = vmul.f32 0.5, %v14369_v56 }
 0x7fb   : > { %v5359_v38 = vor.u32 %v5358_v25, %v5357_v26  ;;  %v5362_v48 = vor.u32 %v5361_v15, %v5360_v44  ;;  %v5365_v24 = vor.u32 %v5364_v5, %v5363_v6  ;;  %vm5375_vm1 = vcmp.lt.s32.totalorder %v14504_v28, 4 }
 0x7fc   : > { %18108 = vst [vmem:[#allocation15_spill] sm:$0xff] %v14527_v62  ;;  %v5197_v30 = vshll.u32 %v14516_v20, 30  ;;  %vm5088_vm2 = vc.u32 %v14490_v2, %v14481_v51  ;;  %v5381_v0 = vsel %vm5375_vm1, %v5368_v50, 920167782  ;;  %v5385_v57 = vsel %vm5375_vm1, %v5371_v27, 1326507024 }
 0x7fd   : > { %v5249_v41 = vsel %vm5248_vm0, %v5247_v17, 0  ;;  %v5086_v22 = vmul.u32 %v5079_v59, %v5070_v45  ;;  %v5348_v56 = vor.u32 8388608, %v5347_v4  ;;  %vm5372_vm4 = vcmp.lt.s32.totalorder %v14504_v28, 1 }
 0x7fe   : > { %vm5374_vm5 = vcmp.lt.s32.totalorder %v14504_v28, 3  ;;  %v5090_v36 = vsel %vm5088_vm2, %v5089_v47, %v14482_v54  ;;  %v5380_v63 = vsel %vm5372_vm4, %v5359_v38, %v5362_v48  ;;  %v5549_v52 = vand.u32 2139095040, %v14527_v62 }
 0x7ff   : > { %v5382_v58 = vsel %vm5374_vm5, %v5365_v24, %v5381_v0  ;;  %v14545_v25 = vsub.s32 %v5194_v43, %v5197_v30  ;;  %v5384_v59 = vsel %vm5372_vm4, %v5362_v48, %v5365_v24  ;;  %v5386_v17 = vsel %vm5374_vm5, %v5368_v50, %v5385_v57 }
 0x800   : > { %v5251_v15 = vand.u32 31, %v5249_v41  ;;  %vm5373_vm6 = vcmp.lt.s32.totalorder %v14504_v28, 2  ;;  %v5091_v54 = vadd.s32 %v5090_v36, %v5086_v22  ;;  %v14556_v4 = vshll.u32 %v5348_v56, 8 }
 0x801   : > { %v5383_v5 = vsel %vm5373_vm6, %v5380_v63, %v5382_v58  ;;  %v5387_v53 = vsel %vm5373_vm6, %v5384_v59, %v5386_v17  ;;  %v5550_v43 = vshrl.u32 %v5549_v52, 23  ;;  %v5200_v26 = vsub.s32 0, %v14545_v25 }
 0x802   : > { %v14559_v44 = vsub.s32 32, %v5251_v15  ;;  %v14562_v6 = vmul.u32.u64.low %v14556_v4, %v5383_v5  ;;  %v14563_v50 = vmul.u32.u64.high %v14556_v4, %v5383_v5, %v14562_v6  ;;  %v17926_v27 = vand.u32 2147483647, %v14441_v29 }
 0x803   : > { %v5092_v45 = vadd.s32 536870912, %v5091_v54  ;;  %v14568_v47 = vmul.u32.u64.low %v14556_v4, %v5387_v53  ;;  %v14569_v30 = vmul.u32.u64.high %v14556_v4, %v5387_v53, %v14568_v47  ;;  %v11233_v0 = vadd.s32 4294967169, %v5550_v43 }
 0x804   : > { %v11218_v57 = vmin.u32 %v5200_v26, %v14545_v25  ;;  %v5264_v22 = vshrl.u32 %v17935_v37, %v14559_v44  ;;  %v5356_v36 = vshrl.u32 %v17951_v46, %v14477_v60  ;;  %v5377_v63 = vsel %vm5375_vm1, %v5365_v24, 2102212464 }
 0x805   : > { %v5556_v56 = vadd.s32 1, %v11233_v0  ;;  %v5244_v58 = vand.u32 8388607, %v17926_v27  ;;  %v5267_v52 = vshrl.u32 %v17930_v55, %v14559_v44  ;;  %v14582_v59 = vshrl.u32 %v5092_v45, 30 }
 0x806   : > { %v14584_v17 = vshrl.u32 %v5249_v41, 5  ;;  %v5255_v5 = vshrl.u32 %v17949_v3, %v14559_v44  ;;  %v5263_v53 = vshll.u32 %v17932_v49, %v5251_v15  ;;  %v5258_v60 = vshrl.u32 %v17947_v16, %v14559_v44 }
 0x807   : > { %18109 = vst [vmem:[#allocation16_spill] sm:$0xff] %v14582_v59  ;;  %v5261_v24 = vshrl.u32 %v17932_v49, %v14559_v44  ;;  %v5266_v43 = vshll.u32 %v17935_v37, %v5251_v15  ;;  %vm5557_vm7 = vcmp.gt.s32.totalorder %v5556_v56, 0  ;;  %v5202_v26 = vclz %v11218_v57 }
 0x808   : > { %v5376_v45 = vsel %vm5372_vm4, %v5356_v36, %v5359_v38  ;;  %v5378_v41 = vsel %vm5374_vm5, %v5362_v48, %v5377_v63  ;;  %v5265_v47 = vor.u32 %v5264_v22, %v5263_v53  ;;  %v5254_v0 = vshll.u32 %v17951_v46, %v5251_v15 }
 0x809   : > { %v5257_v9 = vshll.u32 %v17949_v3, %v5251_v15  ;;  %v5260_v39 = vshll.u32 %v17947_v16, %v5251_v15  ;;  %v5268_v19 = vor.u32 %v5267_v52, %v5266_v43  ;;  %vm5397_vm8 = vc.u32 %v14569_v30, %v14562_v6 }
 0x80a   : > { %v5398_v57 = vadd.s32 1, %v14563_v50  ;;  %v5558_v27 = vsel %vm5557_vm7, %v5556_v56, 0  ;;  %v14605_v38 = vmul.f32 0.5, %v14372_v61  ;;  %v5256_v36 = vor.u32 %v5255_v5, %v5254_v0 }
 0x80b   : > { %v5259_v48 = vor.u32 %v5258_v60, %v5257_v9  ;;  %v5262_v22 = vor.u32 %v5261_v24, %v5260_v39  ;;  %vm5272_vm9 = vcmp.lt.s32.totalorder %v14584_v17, 4  ;;  %v5094_v63 = vshll.u32 %v14582_v59, 30 }
 0x80c   : > { %18110 = vst [vmem:[#allocation17_spill] sm:$0xff] %v14605_v38  ;;  %v5379_v15 = vsel %vm5373_vm6, %v5376_v45, %v5378_v41  ;;  %v5278_v52 = vsel %vm5272_vm9, %v5265_v47, 920167782  ;;  %v4640_v53 = vmul.f32 %v14319_v11, %v4623_v34  ;;  %v11219_v43 = vadd.s32 4294967294, %v5202_v26 }
 0x80d   : > { %v5282_v61 = vsel %vm5272_vm9, %v5268_v19, 1326507024  ;;  %v5560_v56 = vand.u32 31, %v5558_v27  ;;  %v5399_v9 = vsel %vm5397_vm8, %v5398_v57, %v14563_v50  ;;  %vm5269_vm10 = vcmp.lt.s32.totalorder %v14584_v17, 1  ;;  %v4703_v19 = vpop.permute.xlu1 %4702 }
 0x80e   : > { %vm5271_vm11 = vcmp.lt.s32.totalorder %v14584_v17, 3  ;;  %v5446_v39 = vand.u32 2139095040, %v14605_v38  ;;  %v5395_v28 = vmul.u32 %v14556_v4, %v5379_v15  ;;  %v5245_v5 = vor.u32 8388608, %v5244_v58 }
 0x80f   : > { %v5277_v60 = vsel %vm5269_vm10, %v5256_v36, %v5259_v48  ;;  %v5279_v34 = vsel %vm5271_vm11, %v5262_v22, %v5278_v52  ;;  %v14625_v11 = vsub.s32 %v5091_v54, %v5094_v63  ;;  %v5281_v50 = vsel %vm5269_vm10, %v5259_v48, %v5262_v22 }
 0x810   : > { %v5283_v24 = vsel %vm5271_vm11, %v5265_v47, %v5282_v61  ;;  %vm11220_vm12 = vcmp.lt.s32.totalorder %v11219_v43, 0  ;;  %v14631_v26 = vadd.s32 %v5399_v9, %v5395_v28  ;;  %vm5270_vm13 = vcmp.lt.s32.totalorder %v14584_v17, 2 }
 0x811   : > { %v14634_v4 = vsub.s32 32, %v5560_v56  ;;  %v5280_v58 = vsel %vm5270_vm13, %v5277_v60, %v5279_v34  ;;  %v5447_v45 = vshrl.u32 %v5446_v39, 23  ;;  %v5190_v54 = vadd.s32 %v14420_v40, %v14426_v32 }
 0x812   : > { %v14640_v41 = vadd.f32 %v4703_v19, %v4640_v53  ;;  %v5284_v0 = vsel %vm5270_vm13, %v5281_v50, %v5283_v24  ;;  %v14644_v47 = vshll.u32 %v5245_v5, 8  ;;  %v14646_v57 = vsel %vm11220_vm12, 0, %v11219_v43 }
 0x813   : > { %v5097_v63 = vsub.s32 0, %v14625_v11  ;;  %v17934_v15 = vand.u32 2147483647, %v14527_v62  ;;  %v14651_v52 = vmul.f32 0.5, %v14374_v13  ;;  %v5401_v61 = vadd.s32 536870912, %v14631_v26 }
 0x814   : > { %18111 = vst [vmem:[#allocation18_spill] sm:$0xff] %v14640_v41  ;;  %v14655_v40 = vmul.u32.u64.low %v14644_v47, %v5280_v58  ;;  %v14656_v32 = vmul.u32.u64.high %v14644_v47, %v5280_v58, %v14655_v40  ;;  %v5573_v53 = vshrl.u32 %v17935_v37, %v14634_v4  ;;  %v5274_v43 = vsel %vm5272_vm9, %v5262_v22, 2102212464 }
 0x815   : > { %18112 = vst [vmem:[#allocation19_spill] sm:$0xff] %v14651_v52  ;;  %v14664_v9 = vmul.u32.u64.low %v14644_v47, %v5284_v0  ;;  %v14665_v39 = vmul.u32.u64.high %v14644_v47, %v5284_v0, %v14664_v9  ;;  %v11229_v28 = vadd.s32 4294967169, %v5447_v45  ;;  %v5564_v13 = vshrl.u32 %v17949_v3, %v14634_v4 }
 0x816   : > { %v5567_v5 = vshrl.u32 %v17947_v16, %v14634_v4  ;;  %v5572_v60 = vshll.u32 %v17932_v49, %v5560_v56  ;;  %v5576_v34 = vshrl.u32 %v17930_v55, %v14634_v4  ;;  %v5253_v19 = vshrl.u32 %v17951_v46, %v14559_v44 }
 0x817   : > { %v14676_v22 = vshrl.u32 %v5558_v27, 5  ;;  %v5570_v50 = vshrl.u32 %v17932_v49, %v14634_v4  ;;  %v5453_v24 = vadd.s32 1, %v11229_v28  ;;  %v5563_v58 = vshll.u32 %v17951_v46, %v5560_v56 }
 0x818   : > { %v5566_v45 = vshll.u32 %v17949_v3, %v5560_v56  ;;  %v5574_v0 = vor.u32 %v5573_v53, %v5572_v60  ;;  %v5575_v9 = vshll.u32 %v17935_v37, %v5560_v56  ;;  %v5273_v31 = vsel %vm5269_vm10, %v5253_v19, %v5256_v36 }
 0x819   : > { %v5275_v10 = vsel %vm5271_vm11, %v5259_v48, %v5274_v43  ;;  %v5553_v44 = vand.u32 8388607, %v17934_v15  ;;  %v5569_v27 = vshll.u32 %v17947_v16, %v5560_v56  ;;  %v5565_v8 = vor.u32 %v5564_v13, %v5563_v58 }
 0x81a   : > { %v5568_v28 = vor.u32 %v5567_v5, %v5566_v45  ;;  %v5577_v55 = vor.u32 %v5576_v34, %v5575_v9  ;;  %vm5454_vm14 = vcmp.gt.s32.totalorder %v5453_v24, 0  ;;  %vm5581_vm15 = vcmp.lt.s32.totalorder %v14676_v22, 4 }
 0x81b   : > { %v5571_v49 = vor.u32 %v5570_v50, %v5569_v27  ;;  %v5455_v53 = vsel %vm5454_vm14, %v5453_v24, 0  ;;  %v5755_v60 = vand.u32 2139095040, %v14651_v52  ;;  %v5206_v36 = vsub.s32 32, %v14646_v57 }
 0x81c   : > { %v14694_v19 = vmin.u32 %v5097_v63, %v14625_v11  ;;  %v5587_v48 = vsel %vm5581_vm15, %v5574_v0, 920167782  ;;  %v5457_v43 = vand.u32 31, %v5455_v53  ;;  %v14698_v56 = vshrl.u32 %v5401_v61, 30 }
 0x81d   : > { %v5276_v13 = vsel %vm5270_vm13, %v5273_v31, %v5275_v10  ;;  %vm5294_vm0 = vc.u32 %v14665_v39, %v14655_v40  ;;  %v5295_v5 = vadd.s32 1, %v14656_v32  ;;  %v5554_v34 = vor.u32 8388608, %v5553_v44 }
 0x81e   : > { %18113 = vst [vmem:[#allocation20_spill] sm:$0xff] %v14698_v56  ;;  %vm5578_vm1 = vcmp.lt.s32.totalorder %v14676_v22, 1  ;;  %vm5580_vm2 = vcmp.lt.s32.totalorder %v14676_v22, 3  ;;  %v5591_v63 = vsel %vm5581_vm15, %v5577_v55, 1326507024  ;;  %v14713_v10 = vsub.s32 32, %v5457_v43 }
 0x81f   : > { %v5586_v61 = vsel %vm5578_vm1, %v5565_v8, %v5568_v28  ;;  %v5588_v17 = vsel %vm5580_vm2, %v5571_v49, %v5587_v48  ;;  %v5756_v31 = vshrl.u32 %v5755_v60, 23  ;;  %v14717_v24 = vshrl.u32 %v5190_v54, %v5206_v36 }
 0x820   : > { %v5210_v58 = vsub.s32 4294967266, %v14646_v57  ;;  %v5296_v55 = vsel %vm5294_vm0, %v5295_v5, %v14656_v32  ;;  %vm5579_vm4 = vcmp.lt.s32.totalorder %v14676_v22, 2  ;;  %v5590_v9 = vsel %vm5578_vm1, %v5568_v28, %v5571_v49 }
 0x821   : > { %v5592_v44 = vsel %vm5580_vm2, %v5574_v0, %v5591_v63  ;;  %v5099_v27 = vclz %v14694_v19  ;;  %v5403_v60 = vshll.u32 %v14698_v56, 30  ;;  %v5292_v54 = vmul.u32 %v14644_v47, %v5276_v13 }
 0x822   : > { %v5589_v36 = vsel %vm5579_vm4, %v5586_v61, %v5588_v17  ;;  %v14732_v48 = vshll.u32 %v5554_v34, 8  ;;  %v17945_v32 = vand.u32 2147483647, %v14605_v38  ;;  %v5470_v5 = vshrl.u32 %v17935_v37, %v14713_v10 }
 0x823   : > { %v11241_v15 = vadd.s32 4294967169, %v5756_v31  ;;  %v14737_v45 = vadd.s32 %v5296_v55, %v5292_v54  ;;  %v5562_v0 = vshrl.u32 %v17951_v46, %v14634_v4  ;;  %v5583_v19 = vsel %vm5581_vm15, %v5571_v49, 2102212464  ;;  %v14753_v31 = vpop.f32.mrb[165].mxu1 }
 0x824   : > { %v5593_v47 = vsel %vm5579_vm4, %v5590_v9, %v5592_v44  ;;  %v14746_v13 = vmul.u32.u64.low %v14732_v48, %v5589_v36  ;;  %v14747_v34 = vmul.u32.u64.high %v14732_v48, %v5589_v36, %v14746_v13  ;;  %v5461_v63 = vshrl.u32 %v17949_v3, %v14713_v10  ;;  %18115 = vst [vmem:[#allocation21_spill] sm:$0xff] %v14753_v31 }
 0x825   : > { %v18114_v61 = vmov 2102212464   ;;  %v14755_v55 = vshrl.u32 %v5455_v53, 5  ;;  %v5464_v49 = vshrl.u32 %v17947_v16, %v14713_v10  ;;  %v18116_v9 = vmov 1326507024  }
 0x826   : > { %v5469_v17 = vshll.u32 %v18114_v61, %v5457_v43  ;;  %v5467_v4 = vshrl.u32 %v18114_v61, %v14713_v10  ;;  %v5473_v44 = vshrl.u32 %v18116_v9, %v14713_v10  ;;  %v5450_v54 = vand.u32 8388607, %v17945_v32 }
 0x827   : > { %v5460_v36 = vshll.u32 %v17951_v46, %v5457_v43  ;;  %v5762_v37 = vadd.s32 1, %v11241_v15  ;;  %v5582_v53 = vsel %vm5578_vm1, %v5562_v0, %v5565_v8  ;;  %v5463_v21 = vshll.u32 %v17949_v3, %v5457_v43 }
 0x828   : > { %v5471_v50 = vor.u32 %v5470_v5, %v5469_v17  ;;  %v5466_v56 = vshll.u32 %v17947_v16, %v5457_v43  ;;  %v18117_v59 = vmov 920167782   ;;  %v5584_v31 = vsel %vm5580_vm2, %v5568_v28, %v5583_v19 }
 0x829   : > { %v5472_v20 = vshll.u32 %v18117_v59, %v5457_v43  ;;  %v14774_v33 = vmul.u32.u64.low %v14732_v48, %v5593_v47  ;;  %v14775_v12 = vmul.u32.u64.high %v14732_v48, %v5593_v47, %v14774_v33  ;;  %v14777_v32 = vor.u32 %v5461_v63, %v5460_v36 }
 0x82a   : > { %v14779_v5 = vor.u32 %v5464_v49, %v5463_v21  ;;  %v14781_v15 = vor.u32 %v5467_v4, %v5466_v56  ;;  %vm5478_vm5 = vcmp.lt.s32.totalorder %v14755_v55, 4  ;;  %v5298_v0 = vadd.s32 536870912, %v14737_v45 }
 0x82b   : > { %v5474_v8 = vor.u32 %v5473_v44, %v5472_v20  ;;  %v5484_v43 = vsel %vm5478_vm5, %v5471_v50, 920167782  ;;  %v17946_v28 = vand.u32 2147483647, %v14651_v52  ;;  %vm5763_vm6 = vcmp.gt.s32.totalorder %v5762_v37, 0 }
 0x82c   : > { %v14788_v19 = vadd.s32 127, %v5210_v58  ;;  %v5585_v33 = vsel %vm5579_vm4, %v5582_v53, %v5584_v31  ;;  %v5451_v21 = vor.u32 8388608, %v5450_v54  ;;  %v5764_v47 = vsel %vm5763_vm6, %v5762_v37, 0 }
 0x82d   : > { %v14792_v56 = vadd.s32 4294967294, %v5099_v27  ;;  %vm5475_vm7 = vcmp.lt.s32.totalorder %v14755_v55, 1  ;;  %vm5477_vm8 = vcmp.lt.s32.totalorder %v14755_v55, 3  ;;  %v5766_v20 = vand.u32 31, %v5764_v47 }
 0x82e   : > { %v14797_v63 = vsub.s32 %v14631_v26, %v5403_v60  ;;  %v5483_v58 = vsel %vm5475_vm7, %v14777_v32, %v14779_v5  ;;  %v5485_v22 = vsel %vm5477_vm8, %v14781_v15, %v5484_v43  ;;  %v5488_v37 = vsel %vm5478_vm5, %v5474_v8, 1326507024 }
 0x82f   : > { %v14808_v27 = vshrl.u32 %v5298_v0, 30  ;;  %v5601_v17 = vmul.u32 %v14732_v48, %v5585_v33  ;;  %v5759_v26 = vand.u32 8388607, %v17946_v28  ;;  %v14813_v60 = vsub.s32 32, %v5766_v20 }
 0x830   : > { %v5604_v31 = vadd.s32 1, %v14747_v34  ;;  %vm5476_vm9 = vcmp.lt.s32.totalorder %v14755_v55, 2  ;;  %v14817_v49 = vshll.u32 %v5451_v21, 8  ;;  %v14820_v4 = vmul.f32 0.5, %v14376_v1 }
 0x831   : > { %18118 = vst [vmem:[#allocation22_spill] sm:$0xff] %v14808_v27  ;;  %vm5603_vm10 = vc.u32 %v14775_v12, %v14746_v13  ;;  %v5486_v48 = vsel %vm5476_vm9, %v5483_v58, %v5485_v22  ;;  %v5487_v44 = vsel %vm5475_vm7, %v14779_v5, %v14781_v15  ;;  %v5489_v54 = vsel %vm5477_vm8, %v5471_v50, %v5488_v37 }
 0x832   : > { %18119 = vst [vmem:[#allocation23_spill] sm:$0xff] %v14820_v4  ;;  %v5769_v36 = vshll.u32 %v17951_v46, %v5766_v20  ;;  %v5770_v1 = vshrl.u32 %v17949_v3, %v14813_v60  ;;  %v5772_v53 = vshll.u32 %v17949_v3, %v5766_v20  ;;  %v5773_v8 = vshrl.u32 %v17947_v16, %v14813_v60 }
 0x833   : > { %v5760_v0 = vor.u32 8388608, %v5759_v26  ;;  %v14838_v43 = vshrl.u32 %v5764_v47, 5  ;;  %v5775_v33 = vshll.u32 %v17947_v16, %v5766_v20  ;;  %v5776_v21 = vshrl.u32 %v18114_v61, %v14813_v60 }
 0x834   : > { %v5605_v50 = vsel %vm5603_vm10, %v5604_v31, %v14747_v34  ;;  %v14845_v58 = vmul.u32.u64.low %v14817_v49, %v5486_v48  ;;  %v14846_v22 = vmul.u32.u64.high %v14817_v49, %v5486_v48, %v14845_v58  ;;  %v5778_v37 = vshll.u32 %v18114_v61, %v5766_v20 }
 0x835   : > { %v5490_v28 = vsel %vm5476_vm9, %v5487_v44, %v5489_v54  ;;  %v5779_v47 = vshrl.u32 %v18117_v59, %v14813_v60  ;;  %v5781_v26 = vshll.u32 %v18117_v59, %v5766_v20  ;;  %v5652_v16 = vand.u32 2139095040, %v14820_v4 }
 0x836   : > { %v5771_v3 = vor.u32 %v5770_v1, %v5769_v36  ;;  %v5774_v46 = vor.u32 %v5773_v8, %v5772_v53  ;;  %v5777_v34 = vor.u32 %v5776_v21, %v5775_v33  ;;  %v5782_v31 = vshrl.u32 %v18116_v9, %v14813_v60 }
 0x837   : > { %v14858_v48 = vadd.s32 %v5605_v50, %v5601_v17  ;;  %v5780_v52 = vor.u32 %v5779_v47, %v5778_v37  ;;  %vm5784_vm11 = vcmp.lt.s32.totalorder %v14838_v43, 1  ;;  %vm5786_vm12 = vcmp.lt.s32.totalorder %v14838_v43, 3 }
 0x838   : > { %v14863_v44 = vmul.u32.u64.low %v14817_v49, %v5490_v28  ;;  %v14864_v54 = vmul.u32.u64.high %v14817_v49, %v5490_v28, %v14863_v44  ;;  %v5783_v20 = vor.u32 %v5782_v31, %v5781_v26  ;;  %vm5787_vm13 = vcmp.lt.s32.totalorder %v14838_v43, 4 }
 0x839   : > { %v5212_v36 = vshll.u32 %v14788_v19, 23  ;;  %v5406_v1 = vsub.s32 0, %v14797_v63  ;;  %v5793_v17 = vsel %vm5787_vm13, %v5780_v52, 920167782  ;;  %v5653_v53 = vshrl.u32 %v5652_v16, 23 }
 0x83a   : > { %v5300_v8 = vshll.u32 %v14808_v27, 30  ;;  %vm5785_vm14 = vcmp.lt.s32.totalorder %v14838_v43, 2  ;;  %v5792_v33 = vsel %vm5784_vm11, %v5771_v3, %v5774_v46  ;;  %v5794_v28 = vsel %vm5786_vm12, %v5777_v34, %v5793_v17 }
 0x83b   : > { %vm11216_vm15 = vcmp.lt.s32.totalorder %v14792_v56, 0  ;;  %v5607_v19 = vadd.s32 536870912, %v14858_v48  ;;  %v5796_v21 = vsel %vm5784_vm11, %v5774_v46, %v5777_v34  ;;  %v5797_v16 = vsel %vm5787_vm13, %v5783_v20, 1326507024 }
 0x83c   : > { %v18120_v50 = vshll.u32 %v14545_v25, %v14646_v57  ;;  %v5480_v47 = vsel %vm5478_vm5, %v14781_v15, 2102212464  ;;  %v5798_v26 = vsel %vm5786_vm12, %v5780_v52, %v5797_v16  ;;  %v14892_v31 = vshll.u32 %v5760_v0, 8 }
 0x83d   : > { %v5213_v44 = vor.u32 4788187, %v5212_v36  ;;  %v18121_v17 = vmov 683565275   ;;  %v5795_v20 = vsel %vm5785_vm14, %v5792_v33, %v5794_v28  ;;  %v11237_v38 = vadd.s32 4294967169, %v5653_v53 }
 0x83e   : > { %v5209_v37 = vor.u32 %v14717_v24, %v18120_v50  ;;  %v5459_v27 = vshrl.u32 %v18121_v17, %v14713_v10  ;;  %v14899_v25 = vsel %vm11216_vm15, 0, %v14792_v56  ;;  %v11226_v57 = vmin.u32 %v5406_v1, %v14797_v63 }
 0x83f   : > { %v14903_v24 = vsub.s32 %v14737_v45, %v5300_v8  ;;  %v5799_v52 = vsel %vm5785_vm14, %v5796_v21, %v5798_v26  ;;  %v14907_v15 = vshrl.u32 %v5607_v19, 30  ;;  %v5481_v0 = vsel %vm5477_vm8, %v14779_v5, %v5480_v47 }
 0x840   : > { %v5479_v10 = vsel %vm5475_vm7, %v5459_v27, %v14777_v32  ;;  %v5659_v56 = vadd.s32 1, %v11237_v38  ;;  %vm5500_vm0 = vc.u32 %v14864_v54, %v14845_v58  ;;  %v5501_v45 = vadd.s32 1, %v14846_v22 }
 0x841   : > { %18122 = vst [vmem:[#allocation24_spill] sm:$0xff] %v14907_v15  ;;  %v14919_v36 = vmul.u32.u64.low %v14892_v31, %v5795_v20  ;;  %v14920_v1 = vmul.u32.u64.high %v14892_v31, %v5795_v20, %v14919_v36  ;;  %v5768_v53 = vshrl.u32 %v18121_v17, %v14813_v60  ;;  %v5482_v38 = vsel %vm5476_vm9, %v5479_v10, %v5481_v0 }
 0x842   : > { %v14926_v32 = vmul.u32.u64.low %v14892_v31, %v5799_v52  ;;  %v14927_v27 = vmul.u32.u64.high %v14892_v31, %v5799_v52, %v14926_v32  ;;  %vm5660_vm1 = vcmp.gt.s32.totalorder %v5659_v56, 0  ;;  %v5789_v5 = vsel %vm5787_vm13, %v5777_v34, 2102212464 }
 0x843   : > { %v5661_v8 = vsel %vm5660_vm1, %v5659_v56, 0  ;;  %v14934_v33 = vmul.f32 0.5, %v14378_v14  ;;  %v5214_v28 = vand.u32 2147483647, %v5213_v44  ;;  %v5216_v19 = vcvt.s32.f32 %v5209_v37 }
 0x844   : > { %v5107_v21 = vsub.s32 4294967266, %v14899_v25  ;;  %v5408_v60 = vclz %v11226_v57  ;;  %v5303_v16 = vsub.s32 0, %v14903_v24  ;;  %v5609_v50 = vshll.u32 %v14907_v15, 30 }
 0x845   : > { %18123 = vst [vmem:[#allocation25_spill] sm:$0xff] %v14934_v33  ;;  %v5502_v55 = vsel %vm5500_vm0, %v5501_v45, %v14846_v22  ;;  %v5498_v34 = vmul.u32 %v14817_v49, %v5482_v38  ;;  %v5788_v14 = vsel %vm5784_vm11, %v5768_v53, %v5771_v3  ;;  %v5790_v37 = vsel %vm5786_vm12, %v5774_v46, %v5789_v5 }
 0x846   : > { %v5663_v47 = vand.u32 31, %v5661_v8  ;;  %v18124_v26 = vmin.f32 %v14640_v41, 0.0  ;;  %v5961_v20 = vand.u32 2139095040, %v14934_v33  ;;  %v14951_v57 = vmul.f32 %v5216_v19, %v5214_v28 }
 0x847   : > { %v5103_v52 = vsub.s32 32, %v14899_v25  ;;  %v5108_v10 = vadd.s32 127, %v5107_v21  ;;  %v14954_v22 = vadd.s32 %v5502_v55, %v5498_v34  ;;  %v11227_v49 = vadd.s32 4294967294, %v5408_v60 }
 0x848   : > { %v4783_v44 = vmul.f32 1.442695, %v18124_v26  ;;  %v11222_v0 = vmin.u32 %v5303_v16, %v14903_v24  ;;  %v5791_v3 = vsel %vm5785_vm14, %v5788_v14, %v5790_v37  ;;  %v5810_v46 = vadd.s32 1, %v14920_v1 }
 0x849   : > { %v5087_v56 = vadd.s32 %v14481_v51, %v14490_v2  ;;  %v14963_v45 = vsub.s32 %v14858_v48, %v5609_v50  ;;  %vm5809_vm2 = vc.u32 %v14927_v27, %v14919_v36  ;;  %v14967_v53 = vsub.s32 32, %v5663_v47 }
 0x84a   : > { %v5104_v32 = vshll.u32 %v14625_v11, %v14899_v25  ;;  %12758 = vpow2.f32 %v4783_v44  ;;  %v5962_v38 = vshrl.u32 %v5961_v20, 23  ;;  %v5504_v28 = vadd.s32 536870912, %v14954_v22 }
 0x84b   : > { %v5105_v5 = vshrl.u32 %v5087_v56, %v5103_v52  ;;  %v5807_v51 = vmul.u32 %v14892_v31, %v5791_v3  ;;  %v5109_v2 = vshll.u32 %v5108_v10, 23  ;;  %vm11228_vm4 = vcmp.lt.s32.totalorder %v11227_v49, 0 }
 0x84c   : > { %v5305_v48 = vclz %v11222_v0  ;;  %v5811_v19 = vsel %vm5809_vm2, %v5810_v46, %v14920_v1  ;;  %v5612_v21 = vsub.s32 0, %v14963_v45  ;;  %v17959_v60 = vand.u32 2147483647, %v14820_v4 }
 0x84d   : > { %v5675_v11 = vshll.u32 %v18114_v61, %v5663_v47  ;;  %v5676_v25 = vshrl.u32 %v18117_v59, %v14967_v53  ;;  %v14980_v16 = vshrl.u32 %v5661_v8, 5  ;;  %v5678_v50 = vshll.u32 %v18117_v59, %v5663_v47 }
 0x84e   : > { %v5679_v31 = vshrl.u32 %v18116_v9, %v14967_v53  ;;  %v11249_v55 = vadd.s32 4294967169, %v5962_v38  ;;  %v14985_v34 = vshrl.u32 %v5504_v28, 30  ;;  %v14987_v1 = vadd.s32 %v5811_v19, %v5807_v51 }
 0x84f   : > { %v5666_v14 = vshll.u32 %v18121_v17, %v5663_v47  ;;  %v18126_v37 = vmov 2475754826   ;;  %v18127_v8 = vmov 2131351028   ;;  %v5673_v10 = vshrl.u32 %v18114_v61, %v14967_v53 }
 0x850   : > { %18125 = vst [vmem:[#allocation26_spill] sm:$0xff] %v14985_v34  ;;  %v5669_v26 = vshll.u32 %v18126_v37, %v5663_v47  ;;  %v5667_v44 = vshrl.u32 %v18126_v37, %v14967_v53  ;;  %v5670_v20 = vshrl.u32 %v18127_v8, %v14967_v53  ;;  %v5672_v52 = vshll.u32 %v18127_v8, %v5663_v47 }
 0x851   : > { %v5106_v0 = vor.u32 %v5105_v5, %v5104_v32  ;;  %v5110_v3 = vor.u32 4788187, %v5109_v2  ;;  %v14999_v46 = vsel %vm11228_vm4, 0, %v11227_v49  ;;  %v5677_v56 = vor.u32 %v5676_v25, %v5675_v11 }
 0x852   : > { %vm5136_vm5 = vcmp.lt.s32.totalorder %v14362_v23, 0  ;;  %v5656_v38 = vand.u32 8388607, %v17959_v60  ;;  %v5680_v28 = vor.u32 %v5679_v31, %v5678_v50  ;;  %vm5684_vm6 = vcmp.lt.s32.totalorder %v14980_v16, 4 }
 0x853   : > { %v5968_v51 = vadd.s32 1, %v11249_v55  ;;  %v11223_v19 = vadd.s32 4294967294, %v5305_v48  ;;  %v11234_v47 = vmin.u32 %v5612_v21, %v14963_v45  ;;  %v5506_v43 = vshll.u32 %v14985_v34, 30 }
 0x854   : > { %v5813_v32 = vadd.s32 536870912, %v14987_v1  ;;  %v15008_v5 = vpop.eup %12758  ;;  %v5668_v49 = vor.u32 %v5667_v44, %v5666_v14  ;;  %v5671_v2 = vor.u32 %v5670_v20, %v5669_v26  ;;  %v5674_v11 = vor.u32 %v5673_v10, %v5672_v52 }
 0x855   : > { %18128 = vst [vmem:[#allocation27_spill] sm:$0xff] %v15008_v5  ;;  %vm5969_vm7 = vcmp.gt.s32.totalorder %v5968_v51, 0  ;;  %vm5681_vm8 = vcmp.lt.s32.totalorder %v14980_v16, 1  ;;  %vm5683_vm9 = vcmp.lt.s32.totalorder %v14980_v16, 3  ;;  %v5690_v25 = vsel %vm5684_vm6, %v5677_v56, 920167782 }
 0x856   : > { %v5970_v48 = vsel %vm5969_vm7, %v5968_v51, 0  ;;  %v5113_v50 = vcvt.s32.f32 %v5106_v0  ;;  %v5657_v21 = vor.u32 8388608, %v5656_v38  ;;  %v5694_v31 = vsel %vm5684_vm6, %v5680_v28, 1326507024 }
 0x857   : > { %v5972_v55 = vand.u32 31, %v5970_v48  ;;  %v5111_v60 = vand.u32 2147483647, %v5110_v3  ;;  %v5412_v14 = vsub.s32 32, %v14999_v46  ;;  %vm11224_vm10 = vcmp.lt.s32.totalorder %v11223_v19, 0 }
 0x858   : > { %v15018_v26 = vsub.s32 %v14954_v22, %v5506_v43  ;;  %v15020_v44 = vshrl.u32 %v5813_v32, 30  ;;  %vm5682_vm11 = vcmp.lt.s32.totalorder %v14980_v16, 2  ;;  %v5689_v20 = vsel %vm5681_vm8, %v5668_v49, %v5671_v2 }
 0x859   : > { %v5691_v52 = vsel %vm5683_vm9, %v5674_v11, %v5690_v25  ;;  %v5416_v10 = vsub.s32 4294967266, %v14999_v46  ;;  %v5614_v0 = vclz %v11234_v47  ;;  %v5693_v3 = vsel %vm5681_vm8, %v5671_v2, %v5674_v11 }
 0x85a   : > { %18129 = vst [vmem:[#allocation28_spill] sm:$0xff] %v15020_v44  ;;  %v5695_v22 = vsel %vm5683_vm9, %v5677_v56, %v5694_v31  ;;  %v5396_v43 = vadd.s32 %v14562_v6, %v14569_v30  ;;  %v15034_v38 = vsel %vm11224_vm10, 0, %v11223_v19  ;;  %v15036_v28 = vshll.u32 %v5657_v21, 8 }
 0x85b   : > { %v15038_v51 = vsub.s32 32, %v5972_v55  ;;  %v18130_v32 = vxor.u32 2147483648, %v14951_v57  ;;  %v15047_v25 = vmul.f32 %v5113_v50, %v5111_v60  ;;  %v5692_v6 = vsel %vm5682_vm11, %v5689_v20, %v5691_v52 }
 0x85c   : > { %v15053_v30 = vshrl.u32 %v5396_v43, %v5412_v14  ;;  %v5509_v19 = vsub.s32 0, %v15018_v26  ;;  %v5815_v21 = vshll.u32 %v15020_v44, 30  ;;  %v5696_v31 = vsel %vm5682_vm11, %v5693_v3, %v5695_v22 }
 0x85d   : > { %v15045_v47 = vsel %vm5136_vm5, %v18130_v32, %v14951_v57  ;;  %v5417_v34 = vadd.s32 127, %v5416_v10  ;;  %v5313_v57 = vsub.s32 4294967266, %v15034_v38  ;;  %v11235_v60 = vadd.s32 4294967294, %v5614_v0 }
 0x85e   : > { %v5665_v32 = vshrl.u32 %v18121_v17, %v14967_v53  ;;  %v15064_v20 = vmul.u32.u64.low %v15036_v28, %v5692_v6  ;;  %v15065_v14 = vmul.u32.u64.high %v15036_v28, %v5692_v6, %v15064_v20  ;;  %v5985_v52 = vshrl.u32 %v18117_v59, %v15038_v51 }
 0x85f   : > { %v5686_v3 = vsel %vm5684_vm6, %v5674_v11, 2102212464  ;;  %v15073_v10 = vmul.u32.u64.low %v15036_v28, %v5696_v31  ;;  %v15074_v22 = vmul.u32.u64.high %v15036_v28, %v5696_v31, %v15073_v10  ;;  %v5988_v0 = vshrl.u32 %v18116_v9, %v15038_v51 }
 0x860   : > { %v11230_v53 = vmin.u32 %v5509_v19, %v15018_v26  ;;  %v15080_v43 = vsub.s32 %v14987_v1, %v5815_v21  ;;  %v15082_v6 = vshrl.u32 %v5970_v48, 5  ;;  %v5984_v56 = vshll.u32 %v18114_v61, %v5972_v55 }
 0x861   : > { %v5976_v50 = vshrl.u32 %v18126_v37, %v15038_v51  ;;  %v5979_v11 = vshrl.u32 %v18127_v8, %v15038_v51  ;;  %v5982_v31 = vshrl.u32 %v18114_v61, %v15038_v51  ;;  %v5987_v10 = vshll.u32 %v18117_v59, %v5972_v55 }
 0x862   : > { %v5685_v19 = vsel %vm5681_vm8, %v5665_v32, %v5668_v49  ;;  %v5687_v1 = vsel %vm5683_vm9, %v5671_v2, %v5686_v3  ;;  %v5986_v48 = vor.u32 %v5985_v52, %v5984_v56  ;;  %v15097_v21 = vmul.f32 0.5, %v14399_v7 }
 0x863   : > { %v5975_v44 = vshll.u32 %v18121_v17, %v5972_v55  ;;  %v5978_v15 = vshll.u32 %v18126_v37, %v5972_v55  ;;  %v5981_v4 = vshll.u32 %v18127_v8, %v5972_v55  ;;  %v5989_v41 = vor.u32 %v5988_v0, %v5987_v10 }
 0x864   : > { %18131 = vst [vmem:[#allocation29_spill] sm:$0xff] %v15097_v21  ;;  %v5418_v5 = vshll.u32 %v5417_v34, 23  ;;  %v5314_v62 = vadd.s32 127, %v5313_v57  ;;  %v5818_v29 = vsub.s32 0, %v15080_v43  ;;  %v18132_v49 = vand.u32 2147483647, %v14934_v33 }
 0x865   : > { %v15105_v42 = vor.u32 %v5976_v50, %v5975_v44  ;;  %v15107_v2 = vor.u32 %v5979_v11, %v5978_v15  ;;  %v5983_v7 = vor.u32 %v5982_v31, %v5981_v4  ;;  %vm5993_vm12 = vcmp.lt.s32.totalorder %v15082_v6, 4 }
 0x866   : > { %v5965_v32 = vand.u32 8388607, %v18132_v49  ;;  %v5688_v56 = vsel %vm5682_vm11, %v5685_v19, %v5687_v1  ;;  %v5707_v55 = vadd.s32 1, %v15065_v14  ;;  %v5999_v34 = vsel %vm5993_vm12, %v5986_v48, 920167782 }
 0x867   : > { %v5858_v57 = vand.u32 2139095040, %v15097_v21  ;;  %vm11236_vm13 = vcmp.lt.s32.totalorder %v11235_v60, 0  ;;  %v5511_v52 = vclz %v11230_v53  ;;  %vm5706_vm14 = vc.u32 %v15074_v22, %v15064_v20 }
 0x868   : > { %v6003_v4 = vsel %vm5993_vm12, %v5989_v41, 1326507024  ;;  %v5966_v15 = vor.u32 8388608, %v5965_v32  ;;  %vm5990_vm15 = vcmp.lt.s32.totalorder %v15082_v6, 1  ;;  %vm5992_vm0 = vcmp.lt.s32.totalorder %v15082_v6, 3 }
 0x869   : > { %v5859_v16 = vshrl.u32 %v5858_v57, 23  ;;  %v11242_v44 = vmin.u32 %v5818_v29, %v15080_v43  ;;  %v5704_v50 = vmul.u32 %v15036_v28, %v5688_v56  ;;  %v5998_v3 = vsel %vm5990_vm15, %v15105_v42, %v15107_v2 }
 0x86a   : > { %v6000_v0 = vsel %vm5992_vm0, %v5983_v7, %v5999_v34  ;;  %v5708_v41 = vsel %vm5706_vm14, %v5707_v55, %v15065_v14  ;;  %v6002_v53 = vsel %vm5990_vm15, %v15107_v2, %v5983_v7  ;;  %v6004_v11 = vsel %vm5992_vm0, %v5986_v48, %v6003_v4 }
 0x86b   : > { %v11245_v29 = vadd.s32 4294967169, %v5859_v16  ;;  %v18133_v28 = vand.u32 2147483647, %v14362_v23  ;;  %v5419_v10 = vor.u32 4788187, %v5418_v5  ;;  %v5293_v19 = vadd.s32 %v14655_v40, %v14665_v39 }
 0x86c   : > { %v5617_v14 = vsel %vm11236_vm13, 0, %v11235_v60  ;;  %vm5991_vm2 = vcmp.lt.s32.totalorder %v15082_v6, 2  ;;  %v18136_v1 = vshll.u32 %v14797_v63, %v14999_v46  ;;  %v5309_v49 = vsub.s32 32, %v15034_v38 }
 0x86d   : > { %vm15138_vm1 = vcmp.le.f32.partialorder %v18133_v28, 0.7853982  ;;  %v6001_v32 = vsel %vm5991_vm2, %v5998_v3, %v6000_v0  ;;  %v5865_v56 = vadd.s32 1, %v11245_v29  ;;  %v5315_v55 = vshll.u32 %v5314_v62, 23 }
 0x86e   : > { %v5415_v48 = vor.u32 %v15053_v30, %v18136_v1  ;;  %v15153_v5 = vadd.s32 %v5708_v41, %v5704_v50  ;;  %v6005_v40 = vsel %vm5991_vm2, %v6002_v53, %v6004_v11  ;;  %v15157_v39 = vshll.u32 %v5966_v15, 8 }
 0x86f   : > { %vm18016_vm4 = vcmp.lt.s32.totalorder %v14365_v35, 0  ;;  %v5622_v60 = vsub.s32 4294967266, %v5617_v14  ;;  %v11231_v63 = vadd.s32 4294967294, %v5511_v52  ;;  %v5820_v46 = vclz %v11242_v44 }
 0x870   : > { %vm5866_vm6 = vcmp.gt.s32.totalorder %v5865_v56, 0  ;;  %v5420_v30 = vand.u32 2147483647, %v5419_v10  ;;  %v5618_v34 = vsub.s32 32, %v5617_v14  ;;  %v5422_v62 = vcvt.s32.f32 %v5415_v48 }
 0x871   : > { %v15161_v57 = vmul.u32.u64.low %v15157_v39, %v6001_v32  ;;  %v15162_v4 = vmul.u32.u64.high %v15157_v39, %v6001_v32, %v15161_v57  ;;  %v5311_v16 = vshrl.u32 %v5293_v19, %v5309_v49  ;;  %v5316_v15 = vor.u32 4788187, %v5315_v55 }
 0x872   : > { %v15166_v50 = vmul.u32.u64.low %v15157_v39, %v6005_v40  ;;  %v15167_v3 = vmul.u32.u64.high %v15157_v39, %v6005_v40, %v15166_v50  ;;  %v5602_v0 = vadd.s32 %v14746_v13, %v14775_v12  ;;  %v5710_v52 = vadd.s32 536870912, %v15153_v5 }
 0x873   : > { %v5867_v44 = vsel %vm5866_vm6, %v5865_v56, 0  ;;  %v5310_v41 = vshll.u32 %v14903_v24, %v15034_v38  ;;  %v5623_v53 = vadd.s32 127, %v5622_v60  ;;  %vm11232_vm7 = vcmp.lt.s32.totalorder %v11231_v63, 0 }
 0x874   : > { %v11243_v11 = vadd.s32 4294967294, %v5820_v46  ;;  %v5115_v29 = vxor.u32 2147483648, %v15047_v25  ;;  %v15175_v28 = vmul.f32 %v5422_v62, %v5420_v30  ;;  %v5620_v10 = vshrl.u32 %v5602_v0, %v5618_v34 }
 0x875   : > { %v5995_v19 = vsel %vm5993_vm12, %v5983_v7, 2102212464  ;;  %v15183_v12 = vsel %vm15138_vm1, %v14362_v23, %v15045_v47  ;;  %v5312_v13 = vor.u32 %v5311_v16, %v5310_v41  ;;  %v5974_v24 = vshrl.u32 %v18121_v17, %v15038_v51 }
 0x876   : > { %v5869_v38 = vand.u32 31, %v5867_v44  ;;  %v5317_v1 = vand.u32 2147483647, %v5316_v15  ;;  %v5619_v48 = vshll.u32 %v14963_v45, %v5617_v14  ;;  %v5514_v49 = vsel %vm11232_vm7, 0, %v11231_v63 }
 0x877   : > { %v15188_v32 = vshrl.u32 %v5710_v52, 30  ;;  %v5624_v56 = vshll.u32 %v5623_v53, 23  ;;  %vm11244_vm8 = vcmp.lt.s32.totalorder %v11243_v11, 0  ;;  %v5994_v7 = vsel %vm5990_vm15, %v5974_v24, %v15105_v42 }
 0x878   : > { %v5996_v47 = vsel %vm5992_vm0, %v15107_v2, %v5995_v19  ;;  %v15199_v51 = vsel %vm18016_vm4, %v5115_v29, %v15047_v25  ;;  %v5424_v45 = vxor.u32 2147483648, %v15175_v28  ;;  %v15202_v14 = vor.u32 %v5620_v10, %v5619_v48 }
 0x879   : > { %18137 = vst [vmem:[#allocation30_spill] sm:$0xff] %v15188_v32  ;;  %v6016_v55 = vadd.s32 1, %v15162_v4  ;;  %v5319_v40 = vcvt.s32.f32 %v5312_v13  ;;  %v5519_v60 = vsub.s32 4294967266, %v5514_v49  ;;  %vm6015_vm9 = vc.u32 %v15167_v3, %v15161_v57 }
 0x87a   : > { %v15207_v42 = vsub.s32 32, %v5869_v38  ;;  %v5515_v63 = vsub.s32 32, %v5514_v49  ;;  %v15209_v2 = vsel %vm11244_vm8, 0, %v11243_v11  ;;  %v5712_v46 = vshll.u32 %v15188_v32, 30 }
 0x87b   : > { %v5997_v25 = vsel %vm5991_vm2, %v5994_v7, %v5996_v47  ;;  %v15214_v30 = vmul.f32 %v5319_v40, %v5317_v1  ;;  %v5625_v34 = vor.u32 4788187, %v5624_v56  ;;  %v5499_v62 = vadd.s32 %v14845_v58, %v14864_v54 }
 0x87c   : > { %v15219_v16 = vmul.f32 0.5, %v14494_v18  ;;  %v5628_v50 = vcvt.s32.f32 %v15202_v14  ;;  %v5516_v15 = vshll.u32 %v15018_v26, %v5514_v49  ;;  %v5808_v0 = vadd.s32 %v14919_v36, %v14927_v27 }
 0x87d   : > { %v6017_v52 = vsel %vm6015_vm9, %v6016_v55, %v15162_v4  ;;  %v5520_v6 = vadd.s32 127, %v5519_v60  ;;  %v5828_v41 = vsub.s32 4294967266, %v15209_v2  ;;  %v6013_v53 = vmul.u32 %v15157_v39, %v5997_v25 }
 0x87e   : > { %18138 = vst [vmem:[#allocation31_spill] sm:$0xff] %v15219_v16  ;;  %v5882_v58 = vshrl.u32 %v18117_v59, %v15207_v42  ;;  %v5517_v54 = vshrl.u32 %v5499_v62, %v5515_v63  ;;  %v15231_v18 = vsub.s32 %v15153_v5, %v5712_v46  ;;  %v17979_v11 = vand.u32 2147483647, %v15097_v21  ;;  %v18142_v46 = vld [vmem:[#allocation10_spill] sm:$0xff] }
 0x87f   : > { %v5885_v26 = vshrl.u32 %v18116_v9, %v15207_v42  ;;  %v15236_v36 = vadd.s32 %v6017_v52, %v6013_v53  ;;  %v15238_v27 = vshrl.u32 %v5867_v44, 5  ;;  %v5881_v4 = vshll.u32 %v18114_v61, %v5869_v38 }
 0x880   : > { %v6167_v39 = vand.u32 2139095040, %v15219_v16  ;;  %v5873_v29 = vshrl.u32 %v18126_v37, %v15207_v42  ;;  %v5876_v5 = vshrl.u32 %v18127_v8, %v15207_v42  ;;  %v5879_v10 = vshrl.u32 %v18114_v61, %v15207_v42 }
 0x881   : > { %v5884_v19 = vshll.u32 %v18117_v59, %v5869_v38  ;;  %v5521_v13 = vshll.u32 %v5520_v6, 23  ;;  %v5824_v24 = vsub.s32 32, %v15209_v2  ;;  %v5829_v44 = vadd.s32 127, %v5828_v41 }
 0x882   : > { %v5883_v1 = vor.u32 %v5882_v58, %v5881_v4  ;;  %v18139_v48 = vand.u32 2147483647, %v14365_v35  ;;  %v5872_v56 = vshll.u32 %v18121_v17, %v5869_v38  ;;  %v5875_v7 = vshll.u32 %v18126_v37, %v5869_v38 }
 0x883   : > { %v5878_v47 = vshll.u32 %v18127_v8, %v5869_v38  ;;  %v5886_v14 = vor.u32 %v5885_v26, %v5884_v19  ;;  %v5715_v55 = vsub.s32 0, %v15231_v18  ;;  %v6019_v40 = vadd.s32 536870912, %v15236_v36 }
 0x884   : > { %vm15252_vm10 = vcmp.le.f32.partialorder %v18139_v48, 0.7853982  ;;  %v5862_v60 = vand.u32 8388607, %v17979_v11  ;;  %v6168_v63 = vshrl.u32 %v6167_v39, 23  ;;  %vm17976_vm11 = vcmp.lt.s32.totalorder %v18142_v46, 0 }
 0x885   : > { %v15264_v25 = vor.u32 %v5873_v29, %v5872_v56  ;;  %v15266_v62 = vor.u32 %v5876_v5, %v5875_v7  ;;  %v5880_v52 = vor.u32 %v5879_v10, %v5878_v47  ;;  %vm5890_vm12 = vcmp.lt.s32.totalorder %v15238_v27, 4 }
 0x886   : > { %v5626_v6 = vand.u32 2147483647, %v5625_v34  ;;  %v5518_v38 = vor.u32 %v5517_v54, %v5516_v15  ;;  %v5522_v41 = vor.u32 4788187, %v5521_v13  ;;  %v5896_v53 = vsel %vm5890_vm12, %v5883_v1, 920167782 }
 0x887   : > { %v5825_v58 = vshll.u32 %v15080_v43, %v15209_v2  ;;  %v5826_v26 = vshrl.u32 %v5808_v0, %v5824_v24  ;;  %v5830_v4 = vshll.u32 %v5829_v44, 23  ;;  %v5900_v39 = vsel %vm5890_vm12, %v5886_v14, 1326507024  ;;  %v18147_v43 = vld [vmem:[#allocation11_spill] sm:$0xff] }
 0x888   : > { %v11238_v29 = vmin.u32 %v5715_v55, %v15231_v18  ;;  %v15276_v5 = vshrl.u32 %v6019_v40, 30  ;;  %vm5887_vm13 = vcmp.lt.s32.totalorder %v15238_v27, 1  ;;  %vm5889_vm14 = vcmp.lt.s32.totalorder %v15238_v27, 3 }
 0x889   : > { %v18144_v34 = vand.u32 2147483647, %v18142_v46  ;;  %vm17978_vm0 = vcmp.lt.s32.totalorder %v18147_v43, 0  ;;  %v5863_v2 = vor.u32 8388608, %v5862_v60  ;;  %v5895_v0 = vsel %vm5887_vm13, %v15264_v25, %v15266_v62 }
 0x88a   : > { %18143 = vst [vmem:[#allocation10_spill] sm:$0xff] %v15276_v5  ;;  %v5897_v54 = vsel %vm5889_vm14, %v5880_v52, %v5896_v53  ;;  %v11257_v10 = vadd.s32 4294967169, %v6168_v63  ;;  %v5629_v19 = vmul.f32 %v5628_v50, %v5626_v6  ;;  %v5523_v13 = vand.u32 2147483647, %v5522_v41 }
 0x88b   : > { %vm15282_vm15 = vcmp.le.f32.partialorder %v18144_v34, 0.7853982  ;;  %v5899_v24 = vsel %vm5887_vm13, %v15266_v62, %v5880_v52  ;;  %v5901_v44 = vsel %vm5889_vm14, %v5883_v1, %v5900_v39  ;;  %12760 = vcosq.f32 %v15183_v12 }
 0x88c   : > { %v5827_v48 = vor.u32 %v5826_v26, %v5825_v58  ;;  %v5831_v56 = vor.u32 4788187, %v5830_v4  ;;  %vm5888_vm2 = vcmp.lt.s32.totalorder %v15238_v27, 2  ;;  %v5119_v7 = vsel %vm15252_vm10, %v14365_v35, %v15199_v51 }
 0x88d   : > { %v18148_v50 = vand.u32 2147483647, %v18147_v43  ;;  %v5525_v14 = vcvt.s32.f32 %v5518_v38  ;;  %v6021_v1 = vshll.u32 %v15276_v5, 30  ;;  %v5898_v55 = vsel %vm5888_vm2, %v5895_v0, %v5897_v54 }
 0x88e   : > { %v5717_v40 = vclz %v11238_v29  ;;  %v5902_v60 = vsel %vm5888_vm2, %v5899_v24, %v5901_v44  ;;  %v15315_v63 = vshll.u32 %v5863_v2, 8  ;;  %v6174_v6 = vadd.s32 1, %v11257_v10 }
 0x88f   : > { %vm15306_vm6 = vcmp.le.f32.partialorder %v18148_v50, 0.7853982  ;;  %v5425_v51 = vsel %vm17976_vm11, %v5424_v45, %v15175_v28  ;;  %v5321_v38 = vxor.u32 2147483648, %v15214_v30  ;;  %v5630_v41 = vxor.u32 2147483648, %v5629_v19  ;;  %v18151_v28 = vld [vmem:[#allocation15_spill] sm:$0xff] }
 0x890   : > { %v5526_v53 = vmul.f32 %v5525_v14, %v5523_v13  ;;  %v5832_v58 = vand.u32 2147483647, %v5831_v56  ;;  %v5834_v26 = vcvt.s32.f32 %v5827_v48  ;;  %12762 = vsinq.f32 %v15183_v12  ;;  %v18156_v48 = vld [vmem:[#allocation17_spill] sm:$0xff]  ;;  %v18157_v14 = vld [vmem:[#allocation19_spill] sm:$0xff] }
 0x891   : > { %v15324_v4 = vmul.u32.u64.low %v15315_v63, %v5898_v55  ;;  %v15325_v39 = vmul.u32.u64.high %v15315_v63, %v5898_v55, %v15324_v4  ;;  %v15330_v29 = vsub.s32 %v15236_v36, %v6021_v1  ;;  %12764 = vcosq.f32 %v5119_v7 }
 0x892   : > { %v15333_v34 = vmul.u32.u64.low %v15315_v63, %v5902_v60  ;;  %v15334_v2 = vmul.u32.u64.high %v15315_v63, %v5902_v60, %v15333_v34  ;;  %vm17977_vm7 = vcmp.lt.s32.totalorder %v18151_v28, 0  ;;  %v11239_v45 = vadd.s32 4294967294, %v5717_v40 }
 0x893   : > { %vm6175_vm8 = vcmp.gt.s32.totalorder %v6174_v6, 0  ;;  %12766 = vsinq.f32 %v5119_v7  ;;  %v5428_v0 = vsel %vm15282_vm15, %v18142_v46, %v5425_v51  ;;  %v5322_v12 = vsel %vm17978_vm0, %v5321_v38, %v15214_v30 }
 0x894   : > { %v18152_v36 = vand.u32 2147483647, %v18151_v28  ;;  %v18153_v54 = vmov 0  ;;  %v5631_v10 = vsel %vm17977_vm7, %v5630_v41, %v5629_v19  ;;  %v5527_v13 = vxor.u32 2147483648, %v5526_v53 }
 0x895   : > { %v5835_v24 = vmul.f32 %v5834_v26, %v5832_v58  ;;  %v5892_v44 = vsel %vm5890_vm12, %v5880_v52, 2102212464  ;;  %vm18015_vm11 = vcmp.lt.s32.totalorder %v18156_v48, 0  ;;  %v6024_v56 = vsub.s32 0, %v15330_v29  ;;  %v15357_v50 = vpop.eup %12760 }
 0x896   : > { %vm15345_vm9 = vcmp.le.f32.partialorder %v18152_v36, 0.7853982  ;;  %v5871_v30 = vshrl.u32 %v18121_v17, %v15207_v42  ;;  %v6176_v7 = vsel %vm6175_vm8, %v6174_v6, 0  ;;  %12768 = vcosq.f32 %v5428_v0 }
 0x897   : > { %v18154_v54 = vsel %vm15345_vm9, 4294967295, %v18153_v54  ;;  %v5325_v19 = vsel %vm15306_vm6, %v18147_v43, %v5322_v12  ;;  %vm17993_vm7 = vcmp.lt.s32.totalorder %v18157_v14, 0  ;;  %vm11240_vm0 = vcmp.lt.s32.totalorder %v11239_v45, 0 }
 0x898   : > { %18155 = vst [vmem:[#allocation11_spill] sm:$0xff] %v18154_v54  ;;  %12770 = vsinq.f32 %v5428_v0  ;;  %v5634_v52 = vsel %vm15345_vm9, %v18151_v28, %v5631_v10  ;;  %v5891_v42 = vsel %vm5887_vm13, %v5871_v30, %v15264_v25  ;;  %v5893_v1 = vsel %vm5889_vm14, %v15266_v62, %v5892_v44 }
 0x899   : > { %v5528_v55 = vsel %vm18015_vm11, %v5527_v13, %v5526_v53  ;;  %v5836_v40 = vxor.u32 2147483648, %v5835_v24  ;;  %v5913_v60 = vadd.s32 1, %v15325_v39  ;;  %v6178_v6 = vand.u32 31, %v6176_v7  ;;  %v18162_v53 = vld [vmem:[#allocation13_spill] sm:$0xff] }
 0x89a   : > { %12772 = vcosq.f32 %v5325_v19  ;;  %v15375_v51 = vsel %vm11240_vm0, 0, %v11239_v45  ;;  %v11250_v38 = vmin.u32 %v6024_v56, %v15330_v29  ;;  %vm5912_vm12 = vc.u32 %v15334_v2, %v15324_v4  ;;  %v15391_v26 = vpop.eup %12762 }
 0x89b   : > { %12774 = vsinq.f32 %v5325_v19  ;;  %v18158_v25 = vand.u32 2147483647, %v18156_v48  ;;  %v18159_v62 = vmov 0  ;;  %v5894_v41 = vsel %vm5888_vm2, %v5891_v42, %v5893_v1  ;;  %v15402_v12 = vpop.eup %12764 }
 0x89c   : > { %v15389_v58 = vmul.f32 0.5, %v18162_v53  ;;  %12776 = vcosq.f32 %v5634_v52  ;;  %v18164_v45 = vand.u32 2147483647, %v18157_v14  ;;  %v18165_v0 = vmov 0 }
 0x89d   : > { %vm15382_vm13 = vcmp.le.f32.partialorder %v18158_v25, 0.7853982  ;;  %v5837_v27 = vsel %vm17993_vm7, %v5836_v40, %v5835_v24  ;;  %v5725_v36 = vsub.s32 4294967266, %v15375_v51  ;;  %v5914_v10 = vsel %vm5912_vm12, %v5913_v60, %v15325_v39  ;;  %v15410_v44 = vpop.eup %12766 }
 0x89e   : > { %v18160_v62 = vsel %vm15382_vm13, 4294967295, %v18159_v62  ;;  %18163 = vst [vmem:[#allocation13_spill] sm:$0xff] %v15389_v58  ;;  %v5531_v34 = vsel %vm15382_vm13, %v18156_v48, %v5528_v55  ;;  %vm15398_vm14 = vcmp.le.f32.partialorder %v18164_v45, 0.7853982  ;;  %v15408_v13 = vsub.s32 32, %v6178_v6 }
 0x89f   : > { %18161 = vst [vmem:[#allocation32_spill] sm:$0xff] %v18160_v62  ;;  %v18166_v0 = vsel %vm15398_vm14, 4294967295, %v18165_v0  ;;  %12778 = vsinq.f32 %v5634_v52  ;;  %v6026_v56 = vclz %v11250_v38  ;;  %v5910_v30 = vmul.u32 %v15315_v63, %v5894_v41 }
 0x8a0   : > { %18167 = vst [vmem:[#allocation33_spill] sm:$0xff] %v18166_v0  ;;  %12780 = vcosq.f32 %v5531_v34  ;;  %v6373_v19 = vand.u32 2139095040, %v15389_v58  ;;  %v5840_v42 = vsel %vm15398_vm14, %v18157_v14, %v5837_v27  ;;  %v5705_v24 = vadd.s32 %v15064_v20, %v15074_v22  ;;  %v15422_v55 = vpop.eup %12768 }
 0x8a1   : > { %v15419_v1 = vadd.s32 %v5914_v10, %v5910_v30  ;;  %v5721_v52 = vsub.s32 32, %v15375_v51  ;;  %v5726_v40 = vadd.s32 127, %v5725_v36  ;;  %v6190_v63 = vshll.u32 %v18114_v61, %v6178_v6 }
 0x8a2   : > { %v6191_v60 = vshrl.u32 %v18117_v59, %v15408_v13  ;;  %v15428_v38 = vpop.eup %12770  ;;  %v11251_v25 = vadd.s32 4294967294, %v6026_v56  ;;  %v15430_v41 = vshrl.u32 %v6176_v7, 5  ;;  %v6181_v20 = vshll.u32 %v18121_v17, %v6178_v6 }
 0x8a3   : > { %v6184_v22 = vshll.u32 %v18126_v37, %v6178_v6  ;;  %v6187_v53 = vshll.u32 %v18127_v8, %v6178_v6  ;;  %v6193_v45 = vshll.u32 %v18117_v59, %v6178_v6  ;;  %v6194_v27 = vshrl.u32 %v18116_v9, %v15408_v13 }
 0x8a4   : > { %v6374_v36 = vshrl.u32 %v6373_v19, 23  ;;  %v15438_v10 = vpop.eup %12772  ;;  %v5916_v30 = vadd.s32 536870912, %v15419_v1  ;;  %v6182_v7 = vshrl.u32 %v18126_v37, %v15408_v13  ;;  %v6185_v56 = vshrl.u32 %v18127_v8, %v15408_v13 }
 0x8a5   : > { %18168 = vst [vmem:[#allocation34_spill] sm:$0xff] %v15438_v10  ;;  %v6188_v11 = vshrl.u32 %v18114_v61, %v15408_v13  ;;  %v15447_v39 = vpop.eup %12774  ;;  %12782 = vsinq.f32 %v5531_v34  ;;  %v18170_v6 = vand.u32 2147483647, %v15219_v16  ;;  %v6192_v19 = vor.u32 %v6191_v60, %v6190_v63 }
 0x8a6   : > { %18169 = vst [vmem:[#allocation35_spill] sm:$0xff] %v15447_v39  ;;  %v15451_v32 = vpop.eup %12776  ;;  %12784 = vcosq.f32 %v5840_v42  ;;  %v5722_v0 = vshll.u32 %v15231_v18, %v15375_v51  ;;  %v5723_v14 = vshrl.u32 %v5705_v24, %v5721_v52  ;;  %vm6199_vm0 = vcmp.lt.s32.totalorder %v15430_v41, 4  ;;  %v18175_v24 = vld [vmem:[#allocation12_spill] sm:$0xff] }
 0x8a7   : > { %v6171_v5 = vand.u32 8388607, %v18170_v6  ;;  %18171 = vst [vmem:[#allocation36_spill] sm:$0xff] %v15451_v32  ;;  %v5727_v62 = vshll.u32 %v5726_v40, 23  ;;  %vm11252_vm2 = vcmp.lt.s32.totalorder %v11251_v25, 0  ;;  %v6195_v48 = vor.u32 %v6194_v27, %v6193_v45 }
 0x8a8   : > { %v11265_v54 = vadd.s32 4294967169, %v6374_v36  ;;  %v15458_v34 = vshrl.u32 %v5916_v30, 30  ;;  %v15460_v16 = vor.u32 %v6182_v7, %v6181_v20  ;;  %v15462_v63 = vor.u32 %v6185_v56, %v6184_v22 }
 0x8a9   : > { %v15456_v28 = vpop.eup %12778  ;;  %v6189_v60 = vor.u32 %v6188_v11, %v6187_v53  ;;  %v6172_v32 = vor.u32 8388608, %v6171_v5  ;;  %vm6196_vm8 = vcmp.lt.s32.totalorder %v15430_v41, 1  ;;  %vm6198_vm12 = vcmp.lt.s32.totalorder %v15430_v41, 3 }
 0x8aa   : > { %18172 = vst [vmem:[#allocation37_spill] sm:$0xff] %v15456_v28  ;;  %18173 = vst [vmem:[#allocation38_spill] sm:$0xff] %v15458_v34  ;;  %v15464_v6 = vpop.eup %12780  ;;  %v6205_v18 = vsel %vm6199_vm0, %v6192_v19, 920167782  ;;  %12786 = vsinq.f32 %v5840_v42  ;;  %v15470_v51 = vsel %vm11252_vm2, 0, %v11251_v25  ;;  %v15473_v52 = vmul.f32 0.5, %v18175_v24 }
 0x8ab   : > { %18174 = vst [vmem:[#allocation39_spill] sm:$0xff] %v15464_v6  ;;  %v15475_v40 = vor.u32 %v5723_v14, %v5722_v0  ;;  %v15477_v20 = vor.u32 4788187, %v5727_v62  ;;  %v6209_v11 = vsel %vm6199_vm0, %v6195_v48, 1326507024  ;;  %v6380_v5 = vadd.s32 1, %v11265_v54 }
 0x8ac   : > { %18176 = vst [vmem:[#allocation12_spill] sm:$0xff] %v15473_v52  ;;  %v5918_v22 = vshll.u32 %v15458_v34, 30  ;;  %vm6197_vm7 = vcmp.lt.s32.totalorder %v15430_v41, 2  ;;  %v6204_v42 = vsel %vm6196_vm8, %v15460_v16, %v15462_v63  ;;  %v6206_v25 = vsel %vm6198_vm12, %v6189_v60, %v6205_v18 }
 0x8ad   : > { %18177 = vst [vmem:[#allocation40_spill] sm:$0xff] %v15475_v40  ;;  %18178 = vst [vmem:[#allocation41_spill] sm:$0xff] %v15477_v20  ;;  %v6034_v14 = vsub.s32 4294967266, %v15470_v51  ;;  %v15490_v62 = vshll.u32 %v6172_v32, 8  ;;  %v17994_v0 = vand.u32 2147483647, %v15473_v52  ;;  %v6208_v54 = vsel %vm6196_vm8, %v15462_v63, %v6189_v60 }
 0x8ae   : > { %vm6381_vm2 = vcmp.gt.s32.totalorder %v6380_v5, 0  ;;  %v6210_v48 = vsel %vm6198_vm12, %v6192_v19, %v6209_v11  ;;  %v6064_v53 = vand.u32 2139095040, %v15473_v52  ;;  %v15504_v32 = vadd.s32 %v15161_v57, %v15167_v3  ;;  %v18181_v11 = vld [vmem:[#allocation21_spill] sm:$0xff] }
 0x8af   : > { %v6382_v45 = vsel %vm6381_vm2, %v6380_v5, 0  ;;  %v15499_v27 = vpop.eup %12782  ;;  %v6207_v30 = vsel %vm6197_vm7, %v6204_v42, %v6206_v25  ;;  %v17999_v7 = vand.u32 2147483647, %v15389_v58  ;;  %v15514_v24 = vsub.s32 %v15419_v1, %v5918_v22 }
 0x8b0   : > { %18179 = vst [vmem:[#allocation42_spill] sm:$0xff] %v15499_v27  ;;  %v15509_v56 = vpop.eup %12784  ;;  %v15517_v5 = vmul.f32 0.5, %v18181_v11  ;;  %v15519_v36 = vadd.s32 127, %v6034_v14  ;;  %v6211_v57 = vsel %vm6197_vm7, %v6208_v54, %v6210_v48  ;;  %v15525_v3 = vand.u32 8388607, %v17994_v0 }
 0x8b1   : > { %18180 = vst [vmem:[#allocation43_spill] sm:$0xff] %v15509_v56  ;;  %v6384_v42 = vand.u32 31, %v6382_v45  ;;  %v6180_v25 = vshrl.u32 %v18121_v17, %v15408_v13  ;;  %v15530_v19 = vmul.u32.u64.low %v15490_v62, %v6207_v30  ;;  %v15531_v1 = vmul.u32.u64.high %v15490_v62, %v6207_v30, %v15530_v19 }
 0x8b2   : > { %v6065_v22 = vshrl.u32 %v6064_v53, 23  ;;  %v6201_v14 = vsel %vm6199_vm0, %v6189_v60, 2102212464  ;;  %v6377_v54 = vand.u32 8388607, %v17999_v7  ;;  %v15538_v48 = vshrl.u32 %v6382_v45, 5 }
 0x8b3   : > { %v6385_v11 = vsub.s32 32, %v6384_v42  ;;  %v5921_v18 = vsub.s32 0, %v15514_v24  ;;  %v15544_v13 = vmul.u32.u64.low %v15490_v62, %v6211_v57  ;;  %v15545_v52 = vmul.u32.u64.high %v15490_v62, %v6211_v57, %v15544_v13 }
 0x8b4   : > { %v15540_v0 = vpop.eup %12786  ;;  %v6270_v30 = vand.u32 2139095040, %v15517_v5  ;;  %v6387_v53 = vshll.u32 %v18121_v17, %v6384_v42  ;;  %v6390_v34 = vshll.u32 %v18126_v37, %v6384_v42  ;;  %v6393_v7 = vshll.u32 %v18127_v8, %v6384_v42 }
 0x8b5   : > { %18182 = vst [vmem:[#allocation21_spill] sm:$0xff] %v15540_v0  ;;  %v6388_v60 = vshrl.u32 %v18126_v37, %v6385_v11  ;;  %v6391_v45 = vshrl.u32 %v18127_v8, %v6385_v11  ;;  %v6394_v56 = vshrl.u32 %v18114_v61, %v6385_v11  ;;  %v6396_v0 = vshll.u32 %v18114_v61, %v6384_v42 }
 0x8b6   : > { %v6397_v6 = vshrl.u32 %v18117_v59, %v6385_v11  ;;  %v6378_v57 = vor.u32 8388608, %v6377_v54  ;;  %vm6402_vm0 = vcmp.lt.s32.totalorder %v15538_v48, 1  ;;  %v6399_v21 = vshll.u32 %v18117_v59, %v6384_v42 }
 0x8b7   : > { %v6389_v13 = vor.u32 %v6388_v60, %v6387_v53  ;;  %v6392_v27 = vor.u32 %v6391_v45, %v6390_v34  ;;  %v6395_v28 = vor.u32 %v6394_v56, %v6393_v7  ;;  %v6400_v10 = vshrl.u32 %v18116_v9, %v6385_v11 }
 0x8b8   : > { %v6398_v58 = vor.u32 %v6397_v6, %v6396_v0  ;;  %v11246_v39 = vmin.u32 %v5921_v18, %v15514_v24  ;;  %v11253_v33 = vadd.s32 4294967169, %v6065_v22  ;;  %vm6405_vm2 = vcmp.lt.s32.totalorder %v15538_v48, 4 }
 0x8b9   : > { %v6410_v40 = vsel %vm6402_vm0, %v6389_v13, %v6392_v27  ;;  %v6401_v20 = vor.u32 %v6400_v10, %v6399_v21  ;;  %vm6404_vm11 = vcmp.lt.s32.totalorder %v15538_v48, 3  ;;  %v6271_v7 = vshrl.u32 %v6270_v30, 23 }
 0x8ba   : > { %v6411_v34 = vsel %vm6405_vm2, %v6398_v58, 920167782  ;;  %vm6403_vm4 = vcmp.lt.s32.totalorder %v15538_v48, 2  ;;  %v6414_v0 = vsel %vm6402_vm0, %v6392_v27, %v6395_v28  ;;  %v6418_v56 = vshll.u32 %v6378_v57, 8 }
 0x8bb   : > { %v6412_v6 = vsel %vm6404_vm11, %v6395_v28, %v6411_v34  ;;  %v6200_v18 = vsel %vm6196_vm8, %v6180_v25, %v15460_v16  ;;  %v6202_v21 = vsel %vm6198_vm12, %v15462_v63, %v6201_v14  ;;  %v6415_v42 = vsel %vm6405_vm2, %v6401_v20, 1326507024 }
 0x8bc   : > { %v6413_v10 = vsel %vm6403_vm4, %v6410_v40, %v6412_v6  ;;  %v5923_v22 = vclz %v11246_v39  ;;  %v6416_v54 = vsel %vm6404_vm11, %v6398_v58, %v6415_v42  ;;  %v6031_v16 = vshll.u32 %v15330_v29, %v15470_v51 }
 0x8bd   : > { %v15583_v30 = vmul.u32.u64.low %v6418_v56, %v6413_v10  ;;  %v15584_v53 = vmul.u32.u64.high %v6418_v56, %v6413_v10, %v15583_v30  ;;  %v6407_v63 = vsel %vm6405_vm2, %v6395_v28, 2102212464  ;;  %v6417_v40 = vsel %vm6403_vm4, %v6414_v0, %v6416_v54 }
 0x8be   : > { %v11261_v25 = vadd.s32 4294967169, %v6271_v7  ;;  %v6071_v14 = vadd.s32 1, %v11253_v33  ;;  %v6386_v39 = vshrl.u32 %v18121_v17, %v6385_v11  ;;  %v18183_v58 = vsub.s32 32, %v15470_v51 }
 0x8bf   : > { %v15594_v20 = vmul.u32.u64.low %v6418_v56, %v6417_v40  ;;  %v15595_v60 = vmul.u32.u64.high %v6418_v56, %v6417_v40, %v15594_v20  ;;  %v6036_v57 = vshll.u32 %v15519_v36, 23  ;;  %v6203_v29 = vsel %vm6197_vm7, %v6200_v18, %v6202_v21 }
 0x8c0   : > { %v6032_v45 = vshrl.u32 %v15504_v32, %v18183_v58  ;;  %v6277_v28 = vadd.s32 1, %v11261_v25  ;;  %v11247_v34 = vadd.s32 4294967294, %v5923_v22  ;;  %v6069_v6 = vor.u32 8388608, %v15525_v3 }
 0x8c1   : > { %v6406_v33 = vsel %vm6402_vm0, %v6386_v39, %v6389_v13  ;;  %v6408_v11 = vsel %vm6404_vm11, %v6392_v27, %v6407_v63  ;;  %vm6221_vm8 = vc.u32 %v15545_v52, %v15530_v19  ;;  %v6222_v51 = vadd.s32 1, %v15531_v1 }
 0x8c2   : > { %v6428_v36 = vadd.s32 1, %v15584_v53  ;;  %vm6278_vm12 = vcmp.gt.s32.totalorder %v6277_v28, 0  ;;  %vm6072_vm2 = vcmp.gt.s32.totalorder %v6071_v14, 0  ;;  %vm6427_vm7 = vc.u32 %v15595_v60, %v15583_v30 }
 0x8c3   : > { %v18017_v41 = vand.u32 2147483647, %v15517_v5  ;;  %v6279_v32 = vsel %vm6278_vm12, %v6277_v28, 0  ;;  %v15615_v3 = vor.u32 %v6032_v45, %v6031_v16  ;;  %v15619_v27 = vadd.s32 %v15324_v4, %v15334_v2 }
 0x8c4   : > { %v6409_v13 = vsel %vm6403_vm4, %v6406_v33, %v6408_v11  ;;  %v6281_v7 = vand.u32 31, %v6279_v32  ;;  %v15623_v0 = vor.u32 4788187, %v6036_v57  ;;  %vm11248_vm11 = vcmp.lt.s32.totalorder %v11247_v34, 0 }
 0x8c5   : > { %v6219_v18 = vmul.u32 %v15490_v62, %v6203_v29  ;;  %v15626_v21 = vshll.u32 %v6069_v6, 8  ;;  %v6223_v10 = vsel %vm6221_vm8, %v6222_v51, %v15531_v1  ;;  %v6073_v42 = vsel %vm6072_vm2, %v6071_v14, 0 }
 0x8c6   : > { %v6429_v4 = vsel %vm6427_vm7, %v6428_v36, %v15584_v53  ;;  %v6282_v2 = vsub.s32 32, %v6281_v7  ;;  %v6425_v22 = vmul.u32 %v6418_v56, %v6409_v13  ;;  %v6274_v48 = vand.u32 8388607, %v18017_v41  ;;  %v18184_v36 = vld [vmem:[#allocation27_spill] sm:$0xff] }
 0x8c7   : > { %v6280_v54 = vshrl.u32 %v6279_v32, 5  ;;  %v6284_v16 = vshll.u32 %v18121_v17, %v6281_v7  ;;  %v6287_v63 = vshll.u32 %v18126_v37, %v6281_v7  ;;  %v6290_v53 = vshll.u32 %v18127_v8, %v6281_v7 }
 0x8c8   : > { %v6285_v62 = vshrl.u32 %v18126_v37, %v6282_v2  ;;  %v6288_v40 = vshrl.u32 %v18127_v8, %v6282_v2  ;;  %v6291_v25 = vshrl.u32 %v18114_v61, %v6282_v2  ;;  %v15640_v1 = vadd.s32 %v6429_v4, %v6425_v22 }
 0x8c9   : > { %v6293_v56 = vshll.u32 %v18114_v61, %v6281_v7  ;;  %v6294_v14 = vshrl.u32 %v18117_v59, %v6282_v2  ;;  %v15646_v39 = vsel %vm11248_vm11, 0, %v11247_v34  ;;  %v15648_v20 = vadd.s32 %v6223_v10, %v6219_v18  ;;  %v18185_v34 = vld [vmem:[#allocation14_spill] sm:$0xff] }
 0x8ca   : > { %v6286_v58 = vor.u32 %v6285_v62, %v6284_v16  ;;  %v6289_v45 = vor.u32 %v6288_v40, %v6287_v63  ;;  %v15650_v57 = vshrl.u32 %v6073_v42, 5  ;;  %v6075_v29 = vand.u32 31, %v6073_v42  ;;  %v18186_v16 = vld [vmem:[#allocation18_spill] sm:$0xff] }
 0x8cb   : > { %v6292_v28 = vor.u32 %v6291_v25, %v6290_v53  ;;  %v6295_v6 = vor.u32 %v6294_v14, %v6293_v56  ;;  %v6275_v33 = vor.u32 8388608, %v6274_v48  ;;  %v6296_v11 = vshll.u32 %v18117_v59, %v6281_v7 }
 0x8cc   : > { %v6297_v51 = vshrl.u32 %v18116_v9, %v6282_v2  ;;  %v11196_v32 = vadd.f32 -1.0, %v18184_v36  ;;  %v6431_v13 = vadd.s32 536870912, %v15640_v1  ;;  %vm6299_vm4 = vcmp.lt.s32.totalorder %v6280_v54, 1 }
 0x8cd   : > { %vm6302_vm0 = vcmp.lt.s32.totalorder %v6280_v54, 4  ;;  %v5220_v18 = vsub.s32 4, %v18185_v34  ;;  %vm6301_vm8 = vcmp.lt.s32.totalorder %v6280_v54, 3  ;;  %v6307_v4 = vsel %vm6299_vm4, %v6286_v58, %v6289_v45 }
 0x8ce   : > { %v6298_v10 = vor.u32 %v6297_v51, %v6296_v11  ;;  %v6308_v42 = vsel %vm6302_vm0, %v6295_v6, 920167782  ;;  %v6283_v48 = vshrl.u32 %v18121_v17, %v6282_v2  ;;  %vm4736_vm12 = vcmp.gt.f32.partialorder %v18186_v16, 0.0 }
 0x8cf   : > { %v6309_v7 = vsel %vm6301_vm8, %v6292_v28, %v6308_v42  ;;  %vm6300_vm2 = vcmp.lt.s32.totalorder %v6280_v54, 2  ;;  %v6304_v62 = vsel %vm6302_vm0, %v6292_v28, 2102212464  ;;  %v6311_v63 = vsel %vm6299_vm4, %v6289_v45, %v6292_v28 }
 0x8d0   : > { %v6312_v40 = vsel %vm6302_vm0, %v6298_v10, 1326507024  ;;  %v15663_v25 = vshrl.u32 %v6431_v13, 30  ;;  %v6310_v53 = vsel %vm6300_vm2, %v6307_v4, %v6309_v7  ;;  %v6315_v14 = vshll.u32 %v6275_v33, 8 }
 0x8d1   : > { %v6313_v56 = vsel %vm6301_vm8, %v6295_v6, %v6312_v40  ;;  %v15667_v11 = vsub.s32 32, %v6075_v29  ;;  %v4816_v51 = vsel %vm4736_vm12, %v18186_v16, %v11196_v32  ;;  %v5221_v36 = vsel %vm5136_vm5, %v5220_v18, %v18185_v34 }
 0x8d2   : > { %v6314_v2 = vsel %vm6300_vm2, %v6311_v63, %v6313_v56  ;;  %v6303_v28 = vsel %vm6299_vm4, %v6283_v48, %v6286_v58  ;;  %v6305_v13 = vsel %vm6301_vm8, %v6289_v45, %v6304_v62  ;;  %12146 = vmatmul.mubr.msk.f32.gmra.mrb[166].mxu1 %vm18024_vm3, %v4816_v51  ;;  %v15681_v6 = vadd.s32 536870912, %v15648_v20  ;;  %v18187_v51 = vld [vmem:[#allocation16_spill] sm:$0xff] }
 0x8d3   : > { %v15676_v10 = vmul.u32.u64.low %v6315_v14, %v6314_v2  ;;  %v15677_v42 = vmul.u32.u64.high %v6315_v14, %v6314_v2, %v15676_v10  ;;  %v6078_v33 = vshll.u32 %v18121_v17, %v6075_v29  ;;  %v6081_v34 = vshll.u32 %v18126_v37, %v6075_v29 }
 0x8d4   : > { %v15684_v4 = vmul.u32.u64.low %v6315_v14, %v6310_v53  ;;  %v15685_v32 = vmul.u32.u64.high %v6315_v14, %v6310_v53, %v15684_v4  ;;  %v15690_v58 = vshll.u32 %v18127_v8, %v6075_v29  ;;  %v6433_v45 = vshll.u32 %v15663_v25, 30 }
 0x8d5   : > { %v5223_v18 = vsel %vm15138_vm1, 0, %v5221_v36  ;;  %v6079_v48 = vshrl.u32 %v18126_v37, %v15667_v11  ;;  %v6087_v7 = vshll.u32 %v18114_v61, %v6075_v29  ;;  %v6306_v16 = vsel %vm6300_vm2, %v6303_v28, %v6305_v13 }
 0x8d6   : > { %v6876_v62 = vadd.s32 3, %v5223_v18  ;;  %v6082_v63 = vshrl.u32 %v18127_v8, %v15667_v11  ;;  %vm6324_vm5 = vc.u32 %v15677_v42, %v15684_v4  ;;  %v5230_v40 = vxor.u32 2147483648, %v15391_v26 }
 0x8d7   : > { %v5227_v53 = vand.u32 3, %v5223_v18  ;;  %v6325_v31 = vadd.s32 1, %v15685_v32  ;;  %v5233_v56 = vxor.u32 2147483648, %v15357_v50  ;;  %v5117_v36 = vsub.s32 4, %v18187_v51 }
 0x8d8   : > { %v6877_v2 = vand.u32 3, %v6876_v62  ;;  %v6085_v54 = vshrl.u32 %v18114_v61, %v15667_v11  ;;  %v6088_v28 = vshrl.u32 %v18117_v59, %v15667_v11  ;;  %v15712_v13 = vsub.s32 %v15640_v1, %v6433_v45 }
 0x8d9   : > { %v6322_v10 = vmul.u32 %v6315_v14, %v6306_v16  ;;  %v15715_v41 = vshll.u32 %v18117_v59, %v6075_v29  ;;  %v6326_v18 = vsel %vm6324_vm5, %v6325_v31, %v15685_v32  ;;  %vm5226_vm1 = vweird.f32 %v14362_v23 }
 0x8da   : > { %vm6879_vm7 = vcmp.eq.s32.totalorder %v6877_v2, 0  ;;  %vm6882_vm11 = vcmp.eq.s32.totalorder %v6877_v2, 2  ;;  %vm5229_vm4 = vcmp.eq.s32.totalorder %v5227_v53, 0  ;;  %vm6878_vm0 = vcmp.lt.s32.totalorder %v6877_v2, 2 }
 0x8db   : > { %v6327_v62 = vadd.s32 %v6326_v18, %v6322_v10  ;;  %v6881_v22 = vsel %vm6879_vm7, %v15357_v50, %v5230_v40  ;;  %v6884_v61 = vsel %vm6882_vm11, %v5233_v56, %v15391_v26  ;;  %v5231_v1 = vsel %vm5229_vm4, %v15357_v50, %v5230_v40 }
 0x8dc   : > { %vm18188_vm8 = vcmp.lt.s32.totalorder %v14365_v35, 0  ;;  %v6436_v14 = vsub.s32 0, %v15712_v13  ;;  %v6885_v45 = vsel %vm6878_vm0, %v6881_v22, %v6884_v61  ;;  %vm5232_vm12 = vcmp.eq.s32.totalorder %v5227_v53, 2 }
 0x8dd   : > { %v5118_v29 = vsel %vm18188_vm8, %v5117_v36, %v18187_v51  ;;  %v6328_v32 = vadd.s32 536870912, %v6327_v62  ;;  %v15728_v16 = vsel %vm5226_vm1, nan, %v6885_v45  ;;  %vm5228_vm2 = vcmp.lt.s32.totalorder %v5227_v53, 2  ;;  %v18189_v53 = vld [vmem:[#allocation20_spill] sm:$0xff] }
 0x8de   : > { %v5234_v31 = vsel %vm5232_vm12, %v5233_v56, %v15391_v26  ;;  %v15733_v2 = vsel %vm15252_vm10, 0, %v5118_v29  ;;  %v6091_v50 = vshrl.u32 %v18116_v9, %v15667_v11  ;;  %8355 = vperm.xlu0 %12501, %v15728_v16   ;;  %v18020_v22 = vxor.u32 2147483648, %v15410_v44 }
 0x8df   : > { %v15737_v40 = vshrl.u32 %v6328_v32, 30  ;;  %v5235_v61 = vsel %vm5228_vm2, %v5231_v1, %v5234_v31  ;;  %v5124_v26 = vand.u32 3, %v15733_v2  ;;  %v18019_v49 = vxor.u32 2147483648, %v15402_v12 }
 0x8e0   : > { %v15743_v51 = vsel %vm5226_vm1, nan, %v5235_v61  ;;  %v5426_v56 = vsub.s32 4, %v18189_v53  ;;  %v15748_v36 = vor.u32 %v6079_v48, %v6078_v33  ;;  %v15750_v10 = vor.u32 %v6082_v63, %v6081_v34 }
 0x8e1   : > { %v11266_v18 = vmin.u32 %v6436_v14, %v15712_v13  ;;  %v6330_v1 = vshll.u32 %v15737_v40, 30  ;;  %8456 = vperm.xlu1 %12502, %v15743_v51   ;;  %v6089_v29 = vor.u32 %v6088_v28, %v6087_v7  ;;  %vm5126_vm10 = vcmp.eq.s32.totalorder %v5124_v26, 0 }
 0x8e2   : > { %vm5129_vm5 = vcmp.eq.s32.totalorder %v5124_v26, 2  ;;  %vm18190_vm1 = vcmp.lt.s32.totalorder %v18142_v46, 0  ;;  %vm6096_vm7 = vcmp.lt.s32.totalorder %v15650_v57, 4  ;;  %v18191_v33 = vmov 1  }
 0x8e3   : > { %v5427_v23 = vsel %vm18190_vm1, %v5426_v56, %v18189_v53  ;;  %v15759_v32 = vsub.s32 %v6327_v62, %v6330_v1  ;;  %12503 = vset.pattern.permute.xlu0 %v18191_v33  ;;  %v5128_v34 = vsel %vm5126_vm10, %v15402_v12, %v18020_v22  ;;  %v5131_v48 = vsel %vm5129_vm5, %v18019_v49, %v15410_v44 }
 0x8e4   : > { %v15769_v7 = vor.u32 %v6085_v54, %v15690_v58  ;;  %v6092_v63 = vor.u32 %v6091_v50, %v15715_v41  ;;  %8571 = vperm.xlu0 %12503, %v15728_v16   ;;  %vm5125_vm11 = vcmp.lt.s32.totalorder %v5124_v26, 2  ;;  %v5429_v28 = vsel %vm15282_vm15, 0, %v5427_v23 }
 0x8e5   : > { %v6438_v62 = vclz %v11266_v18  ;;  %v6333_v14 = vsub.s32 0, %v15759_v32  ;;  %12504 = vset.pattern.permute.xlu1 %v18191_v33  ;;  %v5132_v45 = vsel %vm5125_vm11, %v5128_v34, %v5131_v48  ;;  %v7084_v31 = vadd.s32 3, %v5429_v28 }
 0x8e6   : > { %v15778_v61 = vshrl.u32 %v15681_v6, 30  ;;  %vm6093_vm4 = vcmp.lt.s32.totalorder %v15650_v57, 1  ;;  %vm6095_vm0 = vcmp.lt.s32.totalorder %v15650_v57, 3  ;;  %v6102_v41 = vsel %vm6096_vm7, %v6089_v29, 920167782  ;;  %8656 = vperm.xlu1 %12504, %v15743_v51  }
 0x8e7   : > { %v5927_v15 = vsub.s32 32, %v15646_v39  ;;  %v11262_v58 = vmin.u32 %v6333_v14, %v15759_v32  ;;  %vm5123_vm15 = vweird.f32 %v14365_v35  ;;  %v7085_v54 = vand.u32 3, %v7084_v31 }
 0x8e8   : > { %v6106_v6 = vsel %vm6096_vm7, %v6092_v63, 1326507024  ;;  %v18192_v50 = vmov 0   ;;  %v15793_v26 = vsel %vm5123_vm15, nan, %v5132_v45  ;;  %v5436_v53 = vxor.u32 2147483648, %v15428_v38 }
 0x8e9   : > { %12508 = vset.pattern.permute.xlu0 %v18192_v50  ;;  %v5439_v56 = vxor.u32 2147483648, %v15422_v55  ;;  %vm6094_vm8 = vcmp.lt.s32.totalorder %v15650_v57, 2  ;;  %v6101_v18 = vsel %vm6093_vm4, %v15748_v36, %v15750_v10  ;;  %v6103_v1 = vsel %vm6095_vm0, %v15769_v7, %v6102_v41  ;;  %v18206_v57 = vld [vmem:[#allocation34_spill] sm:$0xff] }
 0x8ea   : > { %v11267_v23 = vadd.s32 4294967294, %v6438_v62  ;;  %8451 = vperm.xlu0 %12508, %v15793_v26   ;;  %v5928_v34 = vshll.u32 %v15514_v24, %v15646_v39  ;;  %v18193_v48 = vsub.s32 4294967266, %v15646_v39  ;;  %v6227_v14 = vshll.u32 %v15778_v61, 30 }
 0x8eb   : > { %v6105_v45 = vsel %vm6093_vm4, %v15750_v10, %v15769_v7  ;;  %v18194_v31 = vmov 2   ;;  %v6107_v62 = vsel %vm6095_vm0, %v6089_v29, %v6106_v6  ;;  %v6335_v41 = vclz %v11262_v58  ;;  %v18195_v58 = vld [vmem:[#allocation22_spill] sm:$0xff] }
 0x8ec   : > { %v5932_v63 = vadd.s32 127, %v18193_v48  ;;  %12505 = vset.pattern.permute.xlu1 %v18194_v31  ;;  %vm7087_vm12 = vcmp.eq.s32.totalorder %v7085_v54, 0  ;;  %vm7090_vm2 = vcmp.eq.s32.totalorder %v7085_v54, 2  ;;  %v6104_v24 = vsel %vm6094_vm8, %v6101_v18, %v6103_v1 }
 0x8ed   : > { %8773 = vperm.xlu1 %12505, %v15728_v16   ;;  %v7089_v39 = vsel %vm7087_vm12, %v15422_v55, %v5436_v53  ;;  %v7092_v48 = vsel %vm7090_vm2, %v5439_v56, %v15428_v38  ;;  %v5433_v49 = vand.u32 3, %v5429_v28  ;;  %v5929_v22 = vshrl.u32 %v15619_v27, %v5927_v15 }
 0x8ee   : > { %vm11268_vm10 = vcmp.lt.s32.totalorder %v11267_v23, 0  ;;  %12511 = vset.pattern.permute.xlu0 %v18194_v31  ;;  %v6772_v29 = vadd.s32 3, %v15733_v2  ;;  %v5323_v6 = vsub.s32 4, %v18195_v58  ;;  %v5933_v9 = vshll.u32 %v5932_v63, 23 }
 0x8ef   : > { %v15828_v59 = vsub.s32 %v15648_v20, %v6227_v14  ;;  %v6108_v18 = vsel %vm6094_vm8, %v6105_v45, %v6107_v62  ;;  %8854 = vperm.xlu0 %12511, %v15793_v26   ;;  %vm7086_vm5 = vcmp.lt.s32.totalorder %v7085_v54, 2  ;;  %v11263_v15 = vadd.s32 4294967294, %v6335_v41 }
 0x8f0   : > { %v15834_v28 = vmul.u32.u64.low %v15626_v21, %v6104_v24  ;;  %v15835_v27 = vmul.u32.u64.high %v15626_v21, %v6104_v24, %v15834_v28  ;;  %v7093_v2 = vsel %vm7086_vm5, %v7089_v39, %v7092_v48  ;;  %v15839_v1 = vsel %vm11268_vm10, 0, %v11267_v23 }
 0x8f1   : > { %8858 = vperm.xlu1 %12505, %v15743_v51   ;;  %vm5432_vm1 = vweird.f32 %v18142_v46  ;;  %vm5435_vm11 = vcmp.eq.s32.totalorder %v5433_v49, 0  ;;  %vm5438_vm12 = vcmp.eq.s32.totalorder %v5433_v49, 2  ;;  %v6773_v54 = vand.u32 3, %v6772_v29 }
 0x8f2   : > { %v5437_v20 = vsel %vm5435_vm11, %v15422_v55, %v5436_v53  ;;  %v5440_v63 = vsel %vm5438_vm12, %v5439_v56, %v15428_v38  ;;  %vm18196_vm2 = vcmp.lt.s32.totalorder %v18147_v43, 0  ;;  %v6230_v45 = vsub.s32 0, %v15828_v59 }
 0x8f3   : > { %v5324_v14 = vsel %vm18196_vm2, %v5323_v6, %v18195_v58  ;;  %v15849_v62 = vmul.u32.u64.low %v15626_v21, %v6108_v18  ;;  %v15850_v41 = vmul.u32.u64.high %v15626_v21, %v6108_v18, %v15849_v62  ;;  %12513 = vset.pattern.permute.xlu0 %v18192_v50  ;;  %v15855_v23 = vsel %vm5432_vm1, nan, %v7093_v2  ;;  %v18200_v18 = vld [vmem:[#allocation41_spill] sm:$0xff]  ;;  %v18202_v2 = vld [vmem:[#allocation40_spill] sm:$0xff] }
 0x8f4   : > { %v6038_v55 = vand.u32 2147483647, %v15623_v0  ;;  %v6446_v38 = vsub.s32 4294967266, %v15839_v1  ;;  %vm11264_vm10 = vcmp.lt.s32.totalorder %v11263_v15, 0  ;;  %v18197_v53 = vmov 3   ;;  %8365 = vperm.xlu0 %12513, %v15855_v23  }
 0x8f5   : > { %12506 = vset.pattern.permute.xlu1 %v18197_v53  ;;  %vm5434_vm5 = vcmp.lt.s32.totalorder %v5433_v49, 2  ;;  %v5930_v56 = vor.u32 %v5929_v22, %v5928_v34  ;;  %v6077_v24 = vshrl.u32 %v18121_v17, %v15667_v11  ;;  %v5326_v48 = vsel %vm15306_vm6, 0, %v5324_v14  ;;  %v18204_v14 = vld [vmem:[#allocation25_spill] sm:$0xff] }
 0x8f6   : > { %8975 = vperm.xlu1 %12506, %v15728_v16   ;;  %v5441_v39 = vsel %vm5434_vm5, %v5437_v20, %v5440_v63  ;;  %v5934_v29 = vor.u32 4788187, %v5933_v9  ;;  %v6098_v0 = vsel %vm6096_vm7, %v15769_v7, 2102212464  ;;  %vm6775_vm11 = vcmp.eq.s32.totalorder %v6773_v54, 0 }
 0x8f7   : > { %vm6778_vm12 = vcmp.eq.s32.totalorder %v6773_v54, 2  ;;  %v11258_v58 = vmin.u32 %v6230_v45, %v15828_v59  ;;  %v15870_v49 = vsel %vm11264_vm10, 0, %v11263_v15  ;;  %v18198_v22 = vxor.u32 2147483648, %v15410_v44 }
 0x8f8   : > { %v18199_v16 = vxor.u32 2147483648, %v15402_v12  ;;  %v6040_v9 = vcvt.s32.f32 %v15615_v3  ;;  %v6447_v34 = vadd.s32 127, %v6446_v38  ;;  %12516 = vset.pattern.permute.xlu0 %v18191_v33  ;;  %v15882_v7 = vsel %vm5432_vm1, nan, %v5441_v39 }
 0x8f9   : > { %v6777_v11 = vsel %vm6775_vm11, %v15402_v12, %v18198_v22  ;;  %v6980_v6 = vadd.s32 3, %v5326_v48  ;;  %v18201_v15 = vand.u32 2147483647, %v18200_v18  ;;  %v18203_v20 = vcvt.s32.f32 %v18202_v2  ;;  %8664 = vperm.xlu0 %12516, %v15882_v7  }
 0x8fa   : > { %v6780_v47 = vsel %vm6778_vm12, %v18199_v16, %v15410_v44  ;;  %vm5960_vm6 = vcmp.lt.s32.totalorder %v18204_v14, 0  ;;  %v6097_v12 = vsel %vm6093_vm4, %v6077_v24, %v15748_v36  ;;  %v6099_v44 = vsel %vm6095_vm0, %v15750_v10, %v6098_v0  ;;  %9060 = vperm.xlu1 %12506, %v15743_v51  }
 0x8fb   : > { %v15888_v63 = vmul.f32 %v18203_v20, %v18201_v15  ;;  %vm6774_vm7 = vcmp.lt.s32.totalorder %v6773_v54, 2  ;;  %v6041_v46 = vmul.f32 %v6040_v9, %v6038_v55  ;;  %v5935_v3 = vand.u32 2147483647, %v5934_v29  ;;  %v18211_v9 = vld [vmem:[#allocation29_spill] sm:$0xff] }
 0x8fc   : > { %v6343_v45 = vsub.s32 4294967266, %v15870_v49  ;;  %v6781_v62 = vsel %vm6774_vm7, %v6777_v11, %v6780_v47  ;;  %v5937_v38 = vcvt.s32.f32 %v5930_v56  ;;  %v6232_v39 = vclz %v11258_v58  ;;  %v18205_v56 = vld [vmem:[#allocation35_spill] sm:$0xff] }
 0x8fd   : > { %v6119_v22 = vadd.s32 1, %v15835_v27  ;;  %v6442_v36 = vsub.s32 32, %v15839_v1  ;;  %v6100_v24 = vsel %vm6094_vm8, %v6097_v12, %v6099_v44  ;;  %vm6118_vm4 = vc.u32 %v15850_v41, %v15834_v28  ;;  %12518 = vset.pattern.permute.xlu0 %v18194_v31  ;;  %v18207_v58 = vld [vmem:[#allocation23_spill] sm:$0xff] }
 0x8fe   : > { %v6448_v51 = vshll.u32 %v6447_v34, 23  ;;  %v6981_v10 = vand.u32 3, %v6980_v6  ;;  %v6426_v54 = vadd.s32 %v15583_v30, %v15595_v60  ;;  %12507 = vset.pattern.permute.xlu1 %v18192_v50  ;;  %v15911_v55 = vsel %vm5123_vm15, nan, %v6781_v62  ;;  %8866 = vperm.xlu0 %12518, %v15882_v7  }
 0x8ff   : > { %v5333_v29 = vxor.u32 2147483648, %v18205_v56  ;;  %v5336_v0 = vxor.u32 2147483648, %v18206_v57  ;;  %vm5651_vm0 = vcmp.lt.s32.totalorder %v18207_v58, 0  ;;  %v5733_v11 = vxor.u32 2147483648, %v15888_v63  ;;  %8350 = vperm.xlu1 %12507, %v15911_v55  }
 0x900   : > { %v18208_v16 = vand.u32 2147483647, %v18204_v14  ;;  %v6042_v60 = vxor.u32 2147483648, %v6041_v46  ;;  %v5938_v35 = vmul.f32 %v5937_v38, %v5935_v3  ;;  %v6344_v47 = vadd.s32 127, %v6343_v45 }
 0x901   : > { %vm5857_vm15 = vcmp.lt.s32.totalorder %v18211_v9, 0  ;;  %v11259_v34 = vadd.s32 4294967294, %v6232_v39  ;;  %v6116_v6 = vmul.u32 %v15626_v21, %v6100_v24  ;;  %v6120_v18 = vsel %vm6118_vm4, %v6119_v22, %v15835_v27 }
 0x902   : > { %vm15920_vm8 = vcmp.le.f32.partialorder %v18208_v16, 0.7853982  ;;  %v6444_v15 = vshrl.u32 %v6426_v54, %v6442_v36  ;;  %v6449_v2 = vor.u32 4788187, %v6448_v51  ;;  %v6339_v20 = vsub.s32 32, %v15870_v49  ;;  %12519 = vset.pattern.permute.xlu0 %v18197_v53 }
 0x903   : > { %vm6983_vm1 = vcmp.eq.s32.totalorder %v6981_v10, 0  ;;  %vm6986_vm2 = vcmp.eq.s32.totalorder %v6981_v10, 2  ;;  %v6443_v12 = vshll.u32 %v15712_v13, %v15839_v1  ;;  %v5330_v45 = vand.u32 3, %v5326_v48  ;;  %12509 = vset.pattern.permute.xlu1 %v18191_v33  ;;  %8983 = vperm.xlu0 %12519, %v15855_v23   ;;  %v18215_v1 = vld [vmem:[#allocation24_spill] sm:$0xff] }
 0x904   : > { %v6985_v44 = vsel %vm6983_vm1, %v18206_v57, %v5333_v29  ;;  %v6988_v3 = vsel %vm6986_vm2, %v5336_v0, %v18205_v56  ;;  %v6043_v21 = vsel %vm5960_vm6, %v6042_v60, %v6041_v46  ;;  %v18212_v62 = vand.u32 2147483647, %v18211_v9  ;;  %8567 = vperm.xlu1 %12509, %v15911_v55  }
 0x905   : > { %v5939_v38 = vxor.u32 2147483648, %v5938_v35  ;;  %v6323_v39 = vadd.s32 %v15684_v4, %v15677_v42  ;;  %v6345_v22 = vshll.u32 %v6344_v47, 23  ;;  %vm11260_vm5 = vcmp.lt.s32.totalorder %v11259_v34, 0 }
 0x906   : > { %vm15941_vm10 = vcmp.le.f32.partialorder %v18212_v62, 0.7853982  ;;  %v6445_v13 = vor.u32 %v6444_v15, %v6443_v12  ;;  %vm6982_vm11 = vcmp.lt.s32.totalorder %v6981_v10, 2  ;;  %v5632_v48 = vsub.s32 4, %v18215_v1  ;;  %v18216_v10 = vld [vmem:[#allocation26_spill] sm:$0xff] }
 0x907   : > { %v15952_v46 = vadd.s32 %v6120_v18, %v6116_v6  ;;  %v6450_v36 = vand.u32 2147483647, %v6449_v2  ;;  %v6341_v24 = vshrl.u32 %v6323_v39, %v6339_v20  ;;  %v6989_v51 = vsel %vm6982_vm11, %v6985_v44, %v6988_v3  ;;  %12521 = vset.pattern.permute.xlu0 %v18192_v50  ;;  %v18220_v3 = vld [vmem:[#allocation17_spill] sm:$0xff]  ;;  %v18235_v44 = vld [vmem:[#allocation42_spill] sm:$0xff] }
 0x908   : > { %v6340_v42 = vshll.u32 %v15759_v32, %v15870_v49  ;;  %vm5329_vm12 = vweird.f32 %v18147_v43  ;;  %vm5332_vm7 = vcmp.eq.s32.totalorder %v5330_v45, 0  ;;  %vm5335_vm4 = vcmp.eq.s32.totalorder %v5330_v45, 2  ;;  %8652 = vperm.xlu1 %12509, %v15793_v26   ;;  %v18217_v49 = vld [vmem:[#allocation15_spill] sm:$0xff] }
 0x909   : > { %v6346_v4 = vor.u32 4788187, %v6345_v22  ;;  %v5334_v54 = vsel %vm5332_vm7, %v18206_v57, %v5333_v29  ;;  %v5337_v16 = vsel %vm5335_vm4, %v5336_v0, %v18205_v56  ;;  %v5529_v60 = vsub.s32 4, %v18216_v10 }
 0x90a   : > { %v6046_v47 = vsel %vm15920_vm8, %v18204_v14, %v6043_v21  ;;  %v6452_v6 = vcvt.s32.f32 %v6445_v13  ;;  %v15967_v32 = vsel %vm5329_vm12, nan, %v6989_v51  ;;  %vm18218_vm1 = vcmp.lt.s32.totalorder %v18217_v49, 0 }
 0x90b   : > { %v5633_v29 = vsel %vm18218_vm1, %v5632_v48, %v18215_v1  ;;  %v5940_v56 = vsel %vm5857_vm15, %v5939_v38, %v5938_v35  ;;  %v6122_v57 = vadd.s32 536870912, %v15952_v46  ;;  %v6342_v0 = vor.u32 %v6341_v24, %v6340_v42  ;;  %8360 = vperm.xlu0 %12521, %v15967_v32  }
 0x90c   : > { %vm5331_vm2 = vcmp.lt.s32.totalorder %v5330_v45, 2  ;;  %v15979_v18 = vsel %vm5651_vm0, %v5733_v11, %v15888_v63  ;;  %v15982_v15 = vsel %vm11260_vm5, 0, %v11259_v34  ;;  %v6453_v2 = vmul.f32 %v6452_v6, %v6450_v36  ;;  %v18222_v11 = vld [vmem:[#allocation13_spill] sm:$0xff]  ;;  %12510 = vset.pattern.permute.xlu1 %v18194_v31  ;;  %v18223_v34 = vld [vmem:[#allocation28_spill] sm:$0xff] }
 0x90d   : > { %v5338_v20 = vsel %vm5331_vm2, %v5334_v54, %v5337_v16  ;;  %12788 = vcosq.f32 %v6046_v47  ;;  %v6347_v12 = vand.u32 2147483647, %v6346_v4  ;;  %v15986_v35 = vsel %vm15345_vm9, 0, %v5633_v29  ;;  %8769 = vperm.xlu1 %12510, %v15911_v55   ;;  %v18228_v4 = vld [vmem:[#allocation37_spill] sm:$0xff]  ;;  %v18229_v16 = vld [vmem:[#allocation36_spill] sm:$0xff] }
 0x90e   : > { %vm18221_vm11 = vcmp.lt.s32.totalorder %v18220_v3, 0  ;;  %12790 = vsinq.f32 %v6046_v47  ;;  %v5943_v63 = vsel %vm15941_vm10, %v18211_v9, %v5940_v56  ;;  %vm18025_vm5 = vcmp.lt.s32.totalorder %v18222_v11, 0 }
 0x90f   : > { %v5530_v45 = vsel %vm18221_vm11, %v5529_v60, %v18216_v10  ;;  %v5838_v21 = vsub.s32 4, %v18223_v34  ;;  %v6240_v62 = vsub.s32 4294967266, %v15982_v15  ;;  %v15998_v38 = vshrl.u32 %v6122_v57, 30  ;;  %12524 = vset.pattern.permute.xlu0 %v18191_v33  ;;  %v18230_v60 = vld [vmem:[#allocation19_spill] sm:$0xff] }
 0x910   : > { %v6349_v39 = vcvt.s32.f32 %v6342_v0  ;;  %v16004_v22 = vsel %vm5329_vm12, nan, %v5338_v20  ;;  %v18224_v13 = vand.u32 2147483647, %v18222_v11  ;;  %v6454_v48 = vxor.u32 2147483648, %v6453_v2 }
 0x911   : > { %8660 = vperm.xlu0 %12524, %v16004_v22   ;;  %v5639_v36 = vand.u32 3, %v15986_v35  ;;  %v5532_v51 = vsel %vm15382_vm13, 0, %v5530_v45  ;;  %12792 = vcosq.f32 %v5943_v63  ;;  %v6220_v43 = vadd.s32 %v15530_v19, %v15545_v52  ;;  %12512 = vset.pattern.permute.xlu1 %v18197_v53 }
 0x912   : > { %vm16008_vm9 = vcmp.le.f32.partialorder %v18224_v13, 0.7853982  ;;  %vm6269_vm12 = vcmp.lt.s32.totalorder %v15517_v5, 0  ;;  %v6350_v42 = vmul.f32 %v6349_v39, %v6347_v12  ;;  %12794 = vsinq.f32 %v5943_v63  ;;  %8971 = vperm.xlu1 %12512, %v15911_v55   ;;  %v18237_v39 = vld [vmem:[#allocation39_spill] sm:$0xff] }
 0x913   : > { %v18026_v54 = vxor.u32 2147483648, %v18228_v4  ;;  %v18023_v10 = vxor.u32 2147483648, %v18229_v16  ;;  %vm18231_vm7 = vcmp.lt.s32.totalorder %v18230_v60, 0  ;;  %v6236_v6 = vsub.s32 32, %v15982_v15 }
 0x914   : > { %v5839_v47 = vsel %vm18231_vm7, %v5838_v21, %v18223_v34  ;;  %v16025_v29 = vadd.s32 127, %v6240_v62  ;;  %v6124_v56 = vshll.u32 %v15998_v38, 30  ;;  %v18232_v52 = vand.u32 2147483647, %v15517_v5 }
 0x915   : > { %v7188_v57 = vadd.s32 3, %v5532_v51  ;;  %v6455_v20 = vsel %vm18025_vm5, %v6454_v48, %v6453_v2  ;;  %12525 = vset.pattern.permute.xlu0 %v18194_v31  ;;  %vm5641_vm4 = vcmp.eq.s32.totalorder %v5639_v36, 0  ;;  %vm5644_vm1 = vcmp.eq.s32.totalorder %v5639_v36, 2 }
 0x916   : > { %vm16030_vm13 = vcmp.le.f32.partialorder %v18232_v52, 0.7853982  ;;  %v6351_v12 = vxor.u32 2147483648, %v6350_v42  ;;  %8777 = vperm.xlu0 %12525, %v15967_v32   ;;  %v5539_v45 = vxor.u32 2147483648, %v18235_v44  ;;  %v5841_v34 = vsel %vm15398_vm14, 0, %v5839_v47  ;;  %9056 = vperm.xlu1 %12512, %v15793_v26  }
 0x917   : > { %v7189_v21 = vand.u32 3, %v7188_v57  ;;  %v5643_v62 = vsel %vm5641_vm4, %v18229_v16, %v18026_v54  ;;  %v5646_v55 = vsel %vm5644_vm1, %v18023_v10, %v18228_v4  ;;  %v5536_v2 = vand.u32 3, %v5532_v51  ;;  %v16052_v48 = vpop.eup %12788 }
 0x918   : > { %v5542_v13 = vxor.u32 2147483648, %v18237_v39  ;;  %v18238_v24 = vand.u32 2147483647, %v18207_v58  ;;  %v16060_v47 = vshrl.u32 %v6220_v43, %v6236_v6  ;;  %v16064_v63 = vsub.s32 %v15952_v46, %v6124_v56  ;;  %v16069_v10 = vpop.eup %12790 }
 0x919   : > { %v6458_v51 = vsel %vm16008_vm9, %v18222_v11, %v6455_v20  ;;  %vm5640_vm14 = vcmp.lt.s32.totalorder %v5639_v36, 2  ;;  %vm5535_vm11 = vweird.f32 %v18220_v3  ;;  %vm7191_vm7 = vcmp.eq.s32.totalorder %v7189_v21, 0 }
 0x91a   : > { %vm16056_vm2 = vcmp.le.f32.partialorder %v18238_v24, 0.7853982  ;;  %v7500_v24 = vadd.s32 3, %v5841_v34  ;;  %v6352_v43 = vsel %vm6269_vm12, %v6351_v12, %v6350_v42  ;;  %12527 = vset.pattern.permute.xlu0 %v18197_v53  ;;  %v5647_v46 = vsel %vm5640_vm14, %v5643_v62, %v5646_v55  ;;  %12514 = vset.pattern.permute.xlu1 %v18192_v50 }
 0x91b   : > { %v7193_v6 = vsel %vm7191_vm7, %v18237_v39, %v5539_v45  ;;  %vm7194_vm4 = vcmp.eq.s32.totalorder %v7189_v21, 2  ;;  %8979 = vperm.xlu0 %12527, %v15967_v32   ;;  %vm5538_vm1 = vcmp.eq.s32.totalorder %v5536_v2, 0  ;;  %vm5541_vm3 = vcmp.eq.s32.totalorder %v5536_v2, 2  ;;  %v16079_v36 = vpop.eup %12792  ;;  %8466 = vperm.xlu1 %12514, %v15882_v7  }
 0x91c   : > { %vm7190_vm5 = vcmp.lt.s32.totalorder %v7189_v21, 2  ;;  %v7196_v26 = vsel %vm7194_vm4, %v5542_v13, %v18235_v44  ;;  %v5540_v56 = vsel %vm5538_vm1, %v18237_v39, %v5539_v45  ;;  %v5543_v20 = vsel %vm5541_vm3, %v5542_v13, %v18235_v44  ;;  %v16083_v54 = vpop.eup %12794  ;;  %v18241_v44 = vld [vmem:[#allocation30_spill] sm:$0xff]  ;;  %v18242_v13 = vld [vmem:[#allocation21_spill] sm:$0xff] }
 0x91d   : > { %v5845_v42 = vand.u32 3, %v5841_v34  ;;  %v7197_v12 = vsel %vm7190_vm5, %v7193_v6, %v7196_v26  ;;  %v6127_v62 = vsub.s32 0, %v16064_v63  ;;  %v6355_v55 = vsel %vm16030_vm13, %v15517_v5, %v6352_v43  ;;  %v18243_v43 = vld [vmem:[#allocation43_spill] sm:$0xff]  ;;  %v18245_v26 = vld [vmem:[#allocation38_spill] sm:$0xff] }
 0x91e   : > { %v7501_v21 = vand.u32 3, %v7500_v24  ;;  %v16092_v57 = vsel %vm5535_vm11, nan, %v7197_v12  ;;  %12796 = vcosq.f32 %v6458_v51  ;;  %vm18028_vm3 = vweird.f32 %v18217_v49 }
 0x91f   : > { %vm5537_vm5 = vcmp.lt.s32.totalorder %v5536_v2, 2  ;;  %v5735_v45 = vsub.s32 4, %v18241_v44  ;;  %12798 = vsinq.f32 %v6458_v51  ;;  %12530 = vset.pattern.permute.xlu0 %v18192_v50  ;;  %v16100_v34 = vsel %vm18028_vm3, nan, %v5647_v46  ;;  %v18244_v2 = vld [vmem:[#allocation10_spill] sm:$0xff]  ;;  %12515 = vset.pattern.permute.xlu1 %v18191_v33 }
 0x920   : > { %v5544_v39 = vsel %vm5537_vm5, %v5540_v56, %v5543_v20  ;;  %v5848_v24 = vxor.u32 2147483648, %v18242_v13  ;;  %12800 = vcosq.f32 %v6355_v55  ;;  %8476 = vperm.xlu0 %12530, %v16100_v34   ;;  %v5851_v6 = vxor.u32 2147483648, %v18243_v43  ;;  %8579 = vperm.xlu1 %12515, %v15855_v23  }
 0x921   : > { %vm5847_vm14 = vcmp.eq.s32.totalorder %v5845_v42, 0  ;;  %vm5850_vm7 = vcmp.eq.s32.totalorder %v5845_v42, 2  ;;  %vm7503_vm4 = vcmp.eq.s32.totalorder %v7501_v21, 0  ;;  %vm7506_vm1 = vcmp.eq.s32.totalorder %v7501_v21, 2 }
 0x922   : > { %v6044_v51 = vsub.s32 4, %v18244_v2  ;;  %v5941_v12 = vsub.s32 4, %v18245_v26  ;;  %v11254_v0 = vmin.u32 %v6127_v62, %v16064_v63  ;;  %12802 = vsinq.f32 %v6355_v55 }
 0x923   : > { %v5736_v46 = vsel %vm5651_vm0, %v5735_v45, %v18241_v44  ;;  %v6456_v56 = vsub.s32 4, %v15663_v25  ;;  %v5737_v20 = vsel %vm16056_vm2, %v18207_v58, %v15979_v18  ;;  %v16120_v8 = vsel %vm5535_vm11, nan, %v5544_v39 }
 0x924   : > { %vm5846_vm5 = vcmp.lt.s32.totalorder %v5845_v42, 2  ;;  %v5849_v62 = vsel %vm5847_vm14, %v18243_v43, %v5848_v24  ;;  %8471 = vperm.xlu0 %12530, %v16120_v8   ;;  %vm7502_vm3 = vcmp.lt.s32.totalorder %v7501_v21, 2  ;;  %v7505_v55 = vsel %vm7503_vm4, %v18243_v43, %v5848_v24  ;;  %12517 = vset.pattern.permute.xlu1 %v18194_v31 }
 0x925   : > { %v7508_v44 = vsel %vm7506_vm1, %v5851_v6, %v18242_v13  ;;  %v5852_v18 = vsel %vm5850_vm7, %v5851_v6, %v18242_v13  ;;  %v18246_v3 = vshll.u32 %v15828_v59, %v15982_v15  ;;  %v16138_v39 = vsel %vm16056_vm2, 0, %v5736_v46  ;;  %8781 = vperm.xlu1 %12517, %v15855_v23  }
 0x926   : > { %v6045_v24 = vsel %vm5960_vm6, %v6044_v51, %v18244_v2  ;;  %v5942_v21 = vsel %vm5857_vm15, %v5941_v12, %v18245_v26  ;;  %v18247_v13 = vshll.u32 %v16025_v29, 23  ;;  %v6129_v59 = vclz %v11254_v0 }
 0x927   : > { %v16134_v45 = vor.u32 %v16060_v47, %v18246_v3  ;;  %vm18248_vm0 = vcmp.lt.s32.totalorder %v18222_v11, 0  ;;  %12804 = vsinq.f32 %v5737_v20  ;;  %vm5844_vm2 = vweird.f32 %v18230_v60 }
 0x928   : > { %v16148_v43 = vor.u32 4788187, %v18247_v13  ;;  %v6457_v15 = vsel %vm18248_vm0, %v6456_v56, %v15663_v25  ;;  %v7509_v52 = vsel %vm7502_vm3, %v7505_v55, %v7508_v44  ;;  %v5853_v47 = vsel %vm5846_vm5, %v5849_v62, %v5852_v18  ;;  %v16156_v6 = vpop.eup %12796  ;;  %12537 = vset.pattern.permute.xlu0 %v18194_v31 }
 0x929   : > { %v7396_v29 = vadd.s32 3, %v16138_v39  ;;  %v16163_v0 = vsel %vm15920_vm8, 0, %v6045_v24  ;;  %v16167_v25 = vsel %vm15941_vm10, 0, %v5942_v21  ;;  %v6353_v2 = vsub.s32 4, %v15737_v40  ;;  %v16170_v42 = vpop.eup %12798  ;;  %8870 = vperm.xlu0 %12537, %v16120_v8   ;;  %12520 = vset.pattern.permute.xlu1 %v18197_v53 }
 0x92a   : > { %12806 = vcosq.f32 %v5737_v20  ;;  %v6246_v51 = vcvt.s32.f32 %v16134_v45  ;;  %v16176_v23 = vsel %vm16008_vm9, 0, %v6457_v15  ;;  %v16178_v30 = vpop.eup %12800  ;;  %v6244_v26 = vand.u32 2147483647, %v16148_v43  ;;  %9068 = vperm.xlu1 %12520, %v15882_v7  }
 0x92b   : > { %v16181_v27 = vadd.s32 4294967294, %v6129_v59  ;;  %v16185_v12 = vsel %vm5844_vm2, nan, %v5853_v47  ;;  %v6354_v46 = vsel %vm6269_vm12, %v6353_v2, %v15737_v40  ;;  %v16192_v56 = vsel %vm5844_vm2, nan, %v7509_v52 }
 0x92c   : > { %vm6050_vm6 = vweird.f32 %v18204_v14  ;;  %v7708_v1 = vadd.s32 3, %v16163_v0  ;;  %v7604_v20 = vadd.s32 3, %v16167_v25  ;;  %v16197_v62 = vpop.eup %12802  ;;  %v16200_v55 = vand.u32 3, %v7396_v29 }
 0x92d   : > { %v6054_v44 = vxor.u32 2147483648, %v16069_v10  ;;  %v18029_v40 = vxor.u32 2147483648, %v16052_v48  ;;  %v8124_v60 = vadd.s32 3, %v16176_v23  ;;  %12539 = vset.pattern.permute.xlu0 %v18192_v50  ;;  %vm5947_vm8 = vweird.f32 %v18211_v9 }
 0x92e   : > { %v16210_v18 = vsel %vm16030_vm13, 0, %v6354_v46  ;;  %v7709_v3 = vand.u32 3, %v7708_v1  ;;  %v7605_v24 = vand.u32 3, %v7604_v20  ;;  %8385 = vperm.xlu0 %12539, %v16192_v56   ;;  %v18031_v21 = vxor.u32 2147483648, %v16083_v54  ;;  %12522 = vset.pattern.permute.xlu1 %v18192_v50 }
 0x92f   : > { %v18030_v13 = vxor.u32 2147483648, %v16079_v36  ;;  %v6466_v59 = vxor.u32 2147483648, %v16170_v42  ;;  %v8125_v15 = vand.u32 3, %v8124_v60  ;;  %v18034_v7 = vxor.u32 2147483648, %v16156_v6  ;;  %8461 = vperm.xlu1 %12522, %v16004_v22  }
 0x930   : > { %v18033_v52 = vxor.u32 2147483648, %v16197_v62  ;;  %v18032_v47 = vxor.u32 2147483648, %v16178_v30  ;;  %vm7711_vm15 = vcmp.eq.s32.totalorder %v7709_v3, 0  ;;  %vm7710_vm10 = vcmp.lt.s32.totalorder %v7709_v3, 2 }
 0x931   : > { %v7713_v19 = vsel %vm7711_vm15, %v16052_v48, %v6054_v44  ;;  %vm7714_vm9 = vcmp.eq.s32.totalorder %v7709_v3, 2  ;;  %v8020_v29 = vadd.s32 3, %v16210_v18  ;;  %v16223_v2 = vpop.eup %12804  ;;  %vm7606_vm12 = vcmp.lt.s32.totalorder %v7605_v24, 2 }
 0x932   : > { %v7716_v46 = vsel %vm7714_vm9, %v18029_v40, %v16069_v10  ;;  %vm7607_vm13 = vcmp.eq.s32.totalorder %v7605_v24, 0  ;;  %vm7610_vm11 = vcmp.eq.s32.totalorder %v7605_v24, 2  ;;  %12542 = vset.pattern.permute.xlu0 %v18191_v33  ;;  %vm8126_vm3 = vcmp.lt.s32.totalorder %v8125_v15, 2 }
 0x933   : > { %v7717_v1 = vsel %vm7710_vm10, %v7713_v19, %v7716_v46  ;;  %v7609_v20 = vsel %vm7607_vm13, %v16079_v36, %v18031_v21  ;;  %v7612_v60 = vsel %vm7610_vm11, %v18030_v13, %v16083_v54  ;;  %8680 = vperm.xlu0 %12542, %v16185_v12   ;;  %vm8127_vm14 = vcmp.eq.s32.totalorder %v8125_v15, 0  ;;  %12523 = vset.pattern.permute.xlu1 %v18191_v33 }
 0x934   : > { %v12807_v3 = vpop.eup %12806  ;;  %v16240_v24 = vsel %vm6050_vm6, nan, %v7717_v1  ;;  %v7613_v40 = vsel %vm7606_vm12, %v7609_v20, %v7612_v60  ;;  %vm8130_vm7 = vcmp.eq.s32.totalorder %v8125_v15, 2  ;;  %v8129_v46 = vsel %vm8127_vm14, %v16156_v6, %v6466_v59  ;;  %8575 = vperm.xlu1 %12523, %v15967_v32  }
 0x935   : > { %v16244_v19 = vsel %vm5947_vm8, nan, %v7613_v40  ;;  %v8132_v13 = vsel %vm8130_vm7, %v18034_v7, %v16170_v42  ;;  %v8021_v21 = vand.u32 3, %v8020_v29  ;;  %vm11256_vm4 = vcmp.lt.s32.totalorder %v16181_v27, 0 }
 0x936   : > { %v5745_v1 = vxor.u32 2147483648, %v16223_v2  ;;  %vm6462_vm1 = vweird.f32 %v18222_v11  ;;  %v8133_v15 = vsel %vm8126_vm3, %v8129_v46, %v8132_v13  ;;  %v7292_v40 = vadd.s32 3, %v15986_v35 }
 0x937   : > { %v16259_v20 = vsel %vm6462_vm1, nan, %v8133_v15  ;;  %vm8023_vm5 = vcmp.eq.s32.totalorder %v8021_v21, 0  ;;  %vm8026_vm0 = vcmp.eq.s32.totalorder %v8021_v21, 2  ;;  %12544 = vset.pattern.permute.xlu0 %v18194_v31  ;;  %v5748_v29 = vxor.u32 2147483648, %v12807_v3 }
 0x938   : > { %18249 = vst [vmem:[#allocation27_spill] sm:$0xff] %v16259_v20  ;;  %vm8022_vm2 = vcmp.lt.s32.totalorder %v8021_v21, 2  ;;  %v8025_v13 = vsel %vm8023_vm5, %v16178_v30, %v18033_v52  ;;  %v8028_v35 = vsel %vm8026_vm0, %v18032_v47, %v16197_v62  ;;  %8882 = vperm.xlu0 %12544, %v16185_v12   ;;  %vm7399_vm15 = vcmp.eq.s32.totalorder %v16200_v55, 0  ;;  %12526 = vset.pattern.permute.xlu1 %v18194_v31 }
 0x939   : > { %vm7402_vm10 = vcmp.eq.s32.totalorder %v16200_v55, 2  ;;  %vm6359_vm9 = vweird.f32 %v15517_v5  ;;  %v8029_v32 = vsel %vm8022_vm2, %v8025_v13, %v8028_v35  ;;  %v6132_v21 = vsel %vm11256_vm4, 0, %v16181_v27  ;;  %8862 = vperm.xlu1 %12526, %v16004_v22  }
 0x93a   : > { %v5742_v60 = vand.u32 3, %v16138_v39  ;;  %v16279_v46 = vsel %vm6359_vm9, nan, %v8029_v32  ;;  %v7293_v15 = vand.u32 3, %v7292_v40  ;;  %v6247_v47 = vmul.f32 %v6246_v51, %v6244_v26  ;;  %v18251_v39 = vld [vmem:[#allocation31_spill] sm:$0xff] }
 0x93b   : > { %18250 = vst [vmem:[#allocation14_spill] sm:$0xff] %v16279_v46  ;;  %vm7398_vm12 = vcmp.lt.s32.totalorder %v16200_v55, 2  ;;  %v7401_v13 = vsel %vm7399_vm15, %v12807_v3, %v5745_v1  ;;  %v7404_v35 = vsel %vm7402_vm10, %v5748_v29, %v16223_v2  ;;  %v6137_v27 = vsub.s32 4294967266, %v6132_v21 }
 0x93c   : > { %12545 = vset.pattern.permute.xlu0 %v18197_v53  ;;  %vm6166_vm13 = vcmp.lt.s32.totalorder %v18251_v39, 0  ;;  %v6117_v43 = vadd.s32 %v15834_v28, %v15850_v41  ;;  %vm5744_vm11 = vcmp.eq.s32.totalorder %v5742_v60, 0  ;;  %vm5747_vm3 = vcmp.eq.s32.totalorder %v5742_v60, 2 }
 0x93d   : > { %8999 = vperm.xlu0 %12545, %v16192_v56   ;;  %vm5741_vm14 = vweird.f32 %v18207_v58  ;;  %v7405_v45 = vsel %vm7398_vm12, %v7401_v13, %v7404_v35  ;;  %vm7295_vm7 = vcmp.eq.s32.totalorder %v7293_v15, 0  ;;  %vm7298_vm4 = vcmp.eq.s32.totalorder %v7293_v15, 2  ;;  %12528 = vset.pattern.permute.xlu1 %v18197_v53 }
 0x93e   : > { %v6248_v51 = vxor.u32 2147483648, %v6247_v47  ;;  %v6133_v26 = vsub.s32 32, %v6132_v21  ;;  %v18252_v55 = vxor.u32 2147483648, %v18228_v4  ;;  %v18253_v32 = vxor.u32 2147483648, %v18229_v16  ;;  %9064 = vperm.xlu1 %12528, %v16004_v22  }
 0x93f   : > { %v6138_v28 = vadd.s32 127, %v6137_v27  ;;  %vm5743_vm5 = vcmp.lt.s32.totalorder %v5742_v60, 2  ;;  %v5746_v41 = vsel %vm5744_vm11, %v12807_v3, %v5745_v1  ;;  %v5749_v7 = vsel %vm5747_vm3, %v5748_v29, %v16223_v2 }
 0x940   : > { %v7297_v40 = vsel %vm7295_vm7, %v18229_v16, %v18252_v55  ;;  %v7300_v52 = vsel %vm7298_vm4, %v18253_v32, %v18228_v4  ;;  %v16307_v13 = vsel %vm5741_vm14, nan, %v7405_v45  ;;  %vm7294_vm0 = vcmp.lt.s32.totalorder %v7293_v15, 2 }
 0x941   : > { %12547 = vset.pattern.permute.xlu0 %v18192_v50  ;;  %v7301_v16 = vsel %vm7294_vm0, %v7297_v40, %v7300_v52  ;;  %v18254_v4 = vand.u32 2147483647, %v18251_v39  ;;  %v6249_v2 = vsel %vm6166_vm13, %v6248_v51, %v6247_v47  ;;  %v5750_v22 = vsel %vm5743_vm5, %v5746_v41, %v5749_v7 }
 0x942   : > { %8380 = vperm.xlu0 %12547, %v16307_v13   ;;  %v6134_v3 = vshll.u32 %v16064_v63, %v6132_v21  ;;  %v6135_v1 = vshrl.u32 %v6117_v43, %v6133_v26  ;;  %v6139_v29 = vshll.u32 %v6138_v28, 23  ;;  %12529 = vset.pattern.permute.xlu1 %v18192_v50  ;;  %vm18257_vm15 = vweird.f32 %v18217_v49 }
 0x943   : > { %vm16312_vm2 = vcmp.le.f32.partialorder %v18254_v4, 0.7853982  ;;  %v16322_v60 = vsel %vm18257_vm15, nan, %v7301_v16  ;;  %v16331_v7 = vsel %vm5741_vm14, nan, %v5750_v22  ;;  %v6250_v63 = vsub.s32 4, %v15778_v61  ;;  %v18261_v4 = vld [vmem:[#allocation12_spill] sm:$0xff] }
 0x944   : > { %v6252_v52 = vsel %vm16312_vm2, %v18251_v39, %v6249_v2  ;;  %8375 = vperm.xlu1 %12529, %v16322_v60   ;;  %v6136_v47 = vor.u32 %v6135_v1, %v6134_v3  ;;  %v6140_v49 = vor.u32 4788187, %v6139_v29  ;;  %v6051_v21 = vand.u32 3, %v16163_v0 }
 0x945   : > { %12808 = vcosq.f32 %v6252_v52  ;;  %v6251_v15 = vsel %vm6166_vm13, %v6250_v63, %v15778_v61  ;;  %v5948_v45 = vand.u32 3, %v16167_v25  ;;  %v18258_v0 = vxor.u32 2147483648, %v16052_v48 }
 0x946   : > { %12550 = vset.pattern.permute.xlu0 %v18191_v33  ;;  %12810 = vsinq.f32 %v6252_v52  ;;  %v6141_v58 = vand.u32 2147483647, %v6140_v49  ;;  %v6143_v27 = vcvt.s32.f32 %v6136_v47  ;;  %v6253_v43 = vsel %vm16312_vm2, 0, %v6251_v15 }
 0x947   : > { %8676 = vperm.xlu0 %12550, %v16331_v7   ;;  %vm6053_vm10 = vcmp.eq.s32.totalorder %v6051_v21, 0  ;;  %vm6056_vm12 = vcmp.eq.s32.totalorder %v6051_v21, 2  ;;  %v7916_v55 = vadd.s32 3, %v6253_v43  ;;  %vm6052_vm13 = vcmp.lt.s32.totalorder %v6051_v21, 2 }
 0x948   : > { %12531 = vset.pattern.permute.xlu1 %v18191_v33  ;;  %v6055_v61 = vsel %vm6053_vm10, %v16052_v48, %v6054_v44  ;;  %v6058_v51 = vsel %vm6056_vm12, %v18258_v0, %v16069_v10  ;;  %v6144_v26 = vmul.f32 %v6143_v27, %v6141_v58  ;;  %vm5950_vm11 = vcmp.eq.s32.totalorder %v5948_v45, 0 }
 0x949   : > { %8587 = vperm.xlu1 %12531, %v16322_v60   ;;  %v6059_v40 = vsel %vm6052_vm13, %v6055_v61, %v6058_v51  ;;  %vm5953_vm3 = vcmp.eq.s32.totalorder %v5948_v45, 2  ;;  %v18259_v32 = vxor.u32 2147483648, %v16083_v54  ;;  %v18260_v10 = vxor.u32 2147483648, %v16079_v36 }
 0x94a   : > { %v6145_v41 = vxor.u32 2147483648, %v6144_v26  ;;  %v7917_v16 = vand.u32 3, %v7916_v55  ;;  %vm6063_vm14 = vcmp.lt.s32.totalorder %v18261_v4, 0  ;;  %v16367_v35 = vsel %vm6050_vm6, nan, %v6059_v40 }
 0x94b   : > { %12551 = vset.pattern.permute.xlu0 %v18194_v31  ;;  %v5952_v44 = vsel %vm5950_vm11, %v16079_v36, %v18259_v32  ;;  %v5955_v48 = vsel %vm5953_vm3, %v18260_v10, %v16083_v54  ;;  %vm5949_vm7 = vcmp.lt.s32.totalorder %v5948_v45, 2  ;;  %v18262_v54 = vand.u32 2147483647, %v18261_v4  ;;  %v9167_v32 = vld [vmem:[%s17905_s9] sm:$0xff] }
 0x94c   : > { %8793 = vperm.xlu0 %12551, %v16307_v13   ;;  %v5956_v2 = vsel %vm5949_vm7, %v5952_v44, %v5955_v48  ;;  %v6146_v1 = vsel %vm6063_vm14, %v6145_v41, %v6144_v26  ;;  %vm7919_vm5 = vcmp.eq.s32.totalorder %v7917_v16, 0  ;;  %vm7922_vm6 = vcmp.eq.s32.totalorder %v7917_v16, 2  ;;  %v9168_v44 = vld [vmem:[%s17905_s9 + $0x8] sm:$0xff] }
 0x94d   : > { %8672 = vperm.xlu1 %12531, %v16100_v34   ;;  %vm16372_vm4 = vcmp.le.f32.partialorder %v18262_v54, 0.7853982  ;;  %v16381_v14 = vsel %vm5947_vm8, nan, %v5956_v2  ;;  %v6257_v29 = vand.u32 3, %v6253_v43  ;;  %vm7918_vm0 = vcmp.lt.s32.totalorder %v7917_v16, 2 }
 0x94e   : > { %v6149_v52 = vsel %vm16372_vm4, %v18261_v4, %v6146_v1  ;;  %v6147_v49 = vsub.s32 4, %v15998_v38  ;;  %vm6256_vm8 = vweird.f32 %v18251_v39  ;;  %vm6153_vm7 = vweird.f32 %v18261_v4 }
 0x94f   : > { %v12809_v25 = vpop.eup %12808  ;;  %vm6259_vm2 = vcmp.eq.s32.totalorder %v6257_v29, 0  ;;  %vm6262_vm15 = vcmp.eq.s32.totalorder %v6257_v29, 2  ;;  %12812 = vcosq.f32 %v6149_v52  ;;  %vm6258_vm10 = vcmp.lt.s32.totalorder %v6257_v29, 2 }
 0x950   : > { %12553 = vset.pattern.permute.xlu0 %v18197_v53  ;;  %v12811_v28 = vpop.eup %12810  ;;  %v6263_v36 = vxor.u32 2147483648, %v12809_v25  ;;  %12814 = vsinq.f32 %v6149_v52  ;;  %v6148_v58 = vsel %vm6063_vm14, %v6147_v49, %v15998_v38  ;;  %v6360_v4 = vand.u32 3, %v16210_v18 }
 0x951   : > { %8995 = vperm.xlu0 %12553, %v16307_v13   ;;  %12532 = vset.pattern.permute.xlu1 %v18194_v31  ;;  %v6260_v22 = vxor.u32 2147483648, %v12811_v28  ;;  %v6150_v43 = vsel %vm16372_vm4, 0, %v6148_v58 }
 0x952   : > { %8789 = vperm.xlu1 %12532, %v16322_v60   ;;  %v7924_v47 = vsel %vm7922_vm6, %v6263_v36, %v12811_v28  ;;  %v6264_v15 = vsel %vm6262_vm15, %v6263_v36, %v12811_v28  ;;  %v12266_v28 = vpack.c.bf16 %v9168_v44, %v9167_v32  ;;  %vm6365_vm15 = vcmp.eq.s32.totalorder %v6360_v4, 2 }
 0x953   : > { %v7921_v63 = vsel %vm7919_vm5, %v12809_v25, %v6260_v22  ;;  %v6261_v21 = vsel %vm6259_vm2, %v12809_v25, %v6260_v22  ;;  %v6154_v25 = vand.u32 3, %v6150_v43  ;;  %vm6362_vm2 = vcmp.eq.s32.totalorder %v6360_v4, 0 }
 0x954   : > { %v7925_v9 = vsel %vm7918_vm0, %v7921_v63, %v7924_v47  ;;  %v6265_v27 = vsel %vm6258_vm10, %v6261_v21, %v6264_v15  ;;  %12267 = vmatprep.subr.bf16.mxu0 %v12266_v28  ;;  %v6463_v47 = vand.u32 3, %v16176_v23  ;;  %v18267_v23 = vxor.u32 2147483648, %v16156_v6  ;;  %v8561_v15 = vld [vmem:[%s17906_s10 + $0x1] sm:$0x1] }
 0x955   : > { %12556 = vset.pattern.permute.xlu0 %v18192_v50  ;;  %v16411_v38 = vsel %vm6256_vm8, nan, %v6265_v27  ;;  %vm6156_vm3 = vcmp.eq.s32.totalorder %v6154_v25, 0  ;;  %vm6159_vm14 = vcmp.eq.s32.totalorder %v6154_v25, 2  ;;  %12269 = vmatpush3.bf16.msra.mxu0 %v12266_v28  ;;  %vm6155_vm4 = vcmp.lt.s32.totalorder %v6154_v25, 2  ;;  %v18271_v25 = vld [vmem:[#allocation9_spill] sm:$0xff] }
 0x956   : > { %8496 = vperm.xlu0 %12556, %v16367_v35   ;;  %8874 = vperm.xlu1 %12532, %v16100_v34   ;;  %vm6465_vm5 = vcmp.eq.s32.totalorder %v6463_v47, 0  ;;  %vm6468_vm6 = vcmp.eq.s32.totalorder %v6463_v47, 2  ;;  %vm6464_vm0 = vcmp.lt.s32.totalorder %v6463_v47, 2  ;;  %v18269_v27 = vxor.u32 2147483648, %v16178_v30 }
 0x957   : > { %v16501_v32 = vrot.slane %v8561_v15, %v18271_v25 }
 0x959   : > { %v12813_v61 = vpop.eup %12812 }
 0x95a   : > { %8491 = vperm.xlu0 %12556, %v16381_v14   ;;  %12533 = vset.pattern.permute.xlu1 %v18197_v53  ;;  %v12815_v0 = vpop.eup %12814  ;;  %v6160_v39 = vxor.u32 2147483648, %v12813_v61 }
 0x95b   : > { %8991 = vperm.xlu1 %12533, %v16322_v60   ;;  %v16399_v60 = vsel %vm6256_vm8, nan, %v7925_v9  ;;  %v6157_v55 = vxor.u32 2147483648, %v12815_v0  ;;  %v6470_v9 = vsel %vm6468_vm6, %v18267_v23, %v16170_v42  ;;  %vm6361_vm8 = vcmp.lt.s32.totalorder %v6360_v4, 2 }
 0x95c   : > { %v6161_v22 = vsel %vm6159_vm14, %v6160_v39, %v12815_v0 }
 0x95d   : > { %v6158_v2 = vsel %vm6156_vm3, %v12813_v61, %v6157_v55  ;;  %v16437_v36 = vpop.permute.xlu0 %8355 }
 0x95e   : > { %12563 = vset.pattern.permute.xlu0 %v18194_v31  ;;  %v6162_v1 = vsel %vm6155_vm4, %v6158_v2, %v6161_v22 }
 0x95f   : > { %8886 = vperm.xlu0 %12563, %v16381_v14   ;;  %9076 = vperm.xlu1 %12533, %v16100_v34   ;;  %v7812_v34 = vadd.s32 3, %v6150_v43  ;;  %v16454_v52 = vsel %vm6153_vm7, nan, %v6162_v1  ;;  %v6367_v43 = vsel %vm6365_vm15, %v18269_v27, %v16197_v62 }
 0x960   : > { %v16405_v45 = vpop.permute.xlu1 %8456  ;;  %18266 = vst [vmem:[#allocation16_spill] sm:$0xff] %v16454_v52 }
 0x961   : > { %v7813_v26 = vand.u32 3, %v7812_v34  ;;  %v8646_v34 = vsub.f32 1.0, %v8561_v15 }
 0x963   : > { %12565 = vset.pattern.permute.xlu0 %v18192_v50  ;;  %12534 = vset.pattern.permute.xlu1 %v18192_v50  ;;  %vm7815_vm12 = vcmp.eq.s32.totalorder %v7813_v26, 0  ;;  %vm7818_vm13 = vcmp.eq.s32.totalorder %v7813_v26, 2  ;;  %vm7814_vm11 = vcmp.lt.s32.totalorder %v7813_v26, 2  ;;  %v8572_v63 = vpop.permute.xlu0 %8571  ;;  %v16504_v44 = vrot.slane %v8646_v34, %v18271_v25 }
 0x964   : > { %8405 = vperm.xlu0 %12565, %v16399_v60   ;;  %8370 = vperm.xlu1 %12534, %v16092_v57   ;;  %v7817_v10 = vsel %vm7815_vm12, %v12813_v61, %v6157_v55  ;;  %v7820_v48 = vsel %vm7818_vm13, %v6160_v39, %v12815_v0  ;;  %v8763_v0 = vld [vmem:[%s17906_s10 + $0x2] sm:$0x1]  ;;  %v8631_v4 = vmul.f32 %v8572_v63, %v16501_v32 }
 0x965   : > { %v16415_v51 = vpop.permute.xlu1 %8656  ;;  %v7821_v16 = vsel %vm7814_vm11, %v7817_v10, %v7820_v48  ;;  %v8848_v39 = vsub.f32 1.0, %v8763_v0  ;;  %v16524_v22 = vrot.slane %v8763_v0, %v18271_v25 }
 0x966   : > { %v16442_v54 = vsel %vm6153_vm7, nan, %v7821_v16  ;;  %v8716_v47 = vmul.f32 %v16415_v51, %v16504_v44 }
 0x967   : > { %18265 = vst [vmem:[#allocation18_spill] sm:$0xff] %v16442_v54  ;;  %v16519_v2 = vrot.slane %v8848_v39, %v18271_v25  ;;  %18273 = vst [vmem:[#allocation41_spill] sm:$0xff] %v16524_v22 }
 0x968   : > { %12568 = vset.pattern.permute.xlu0 %v18191_v33  ;;  %12535 = vset.pattern.permute.xlu1 %v18191_v33 }
 0x969   : > { %8696 = vperm.xlu0 %12568, %v16411_v38   ;;  %8583 = vperm.xlu1 %12535, %v16092_v57  }
 0x96c   : > { %v16421_v40 = vpop.permute.xlu1 %8773 }
 0x96d   : > { %12570 = vset.pattern.permute.xlu0 %v18194_v31  ;;  %8668 = vperm.xlu1 %12535, %v16120_v8  }
 0x96e   : > { %8898 = vperm.xlu0 %12570, %v16411_v38  }
 0x970   : > { %v16431_v41 = vpop.permute.xlu1 %8858 }
 0x971   : > { %12536 = vset.pattern.permute.xlu1 %v18194_v31  ;;  %v8918_v51 = vmul.f32 %v16431_v41, %v16519_v2 }
 0x972   : > { %12571 = vset.pattern.permute.xlu0 %v18197_v53  ;;  %8785 = vperm.xlu1 %12536, %v16092_v57  }
 0x973   : > { %9015 = vperm.xlu0 %12571, %v16399_v60  }
 0x975   : > { %v16444_v3 = vpop.permute.xlu1 %8975 }
 0x976   : > { %12538 = vset.pattern.permute.xlu1 %v18197_v53 }
 0x977   : > { %12573 = vset.pattern.permute.xlu0 %v18192_v50  ;;  %8987 = vperm.xlu1 %12538, %v16092_v57   ;;  %v8452_v57 = vpop.permute.xlu0 %8451 }
 0x978   : > { %8400 = vperm.xlu0 %12573, %v16442_v54  }
 0x979   : > { %v16449_v29 = vpop.permute.xlu1 %9060 }
 0x97b   : > { %9072 = vperm.xlu1 %12538, %v16120_v8   ;;  %v6467_v8 = vsel %vm6465_vm5, %v16156_v6, %v6466_v59  ;;  %v8343_v6 = vld [vmem:[%s17906_s10] sm:$0x1]  ;;  %v8855_v42 = vpop.permute.xlu0 %8854  ;;  %v18268_v59 = vxor.u32 2147483648, %v16197_v62  ;;  %v8965_v62 = vld [vmem:[%s17906_s10 + $0x3] sm:$0x1] }
 0x97c   : > { %12576 = vset.pattern.permute.xlu0 %v18191_v33  ;;  %v6471_v18 = vsel %vm6464_vm0, %v6467_v8, %v6470_v9  ;;  %v8444_v55 = vsub.f32 1.0, %v8343_v6  ;;  %v9050_v11 = vsub.f32 1.0, %v8965_v62  ;;  %v16513_v28 = vrot.slane %v8343_v6, %v18271_v25 }
 0x97d   : > { %8692 = vperm.xlu0 %12576, %v16454_v52   ;;  %v6364_v58 = vsel %vm6362_vm2, %v16178_v30, %v18268_v59  ;;  %v16493_v26 = vsel %vm6462_vm1, nan, %v6471_v18  ;;  %v16538_v15 = vrot.slane %v8965_v62, %v18271_v25  ;;  %vm9169_vm1 = vcmask 130048  }
 0x97e   : > { %v8351_v49 = vpop.permute.xlu1 %8350  ;;  %18270 = vst [vmem:[#allocation20_spill] sm:$0xff] %v16493_v26  ;;  %v6368_v30 = vsel %vm6361_vm8, %v6364_v58, %v6367_v43  ;;  %v16516_v16 = vrot.slane %v8444_v55, %v18271_v25  ;;  %v16529_v1 = vrot.slane %v9050_v11, %v18271_v25  ;;  %v8429_v18 = vmul.f32 %v16437_v36, %v16513_v28 }
 0x97f   : > { %12540 = vset.pattern.permute.xlu1 %v18192_v50  ;;  %v16506_v10 = vpop.permute.xlu0 %8365  ;;  %v8428_v8 = vmul.f32 %v8351_v49, %v16513_v28  ;;  %v8917_v49 = vmul.f32 %v8855_v42, %v16519_v2  ;;  %v8833_v36 = vmul.f32 %v16421_v40, %v16524_v22  ;;  %v9035_v43 = vmul.f32 %v16444_v3, %v16538_v15 }
 0x980   : > { %8486 = vperm.xlu1 %12540, %v16185_v12   ;;  %v8529_v63 = vmul.f32 %v8452_v57, %v16516_v16  ;;  %v9120_v41 = vmul.f32 %v16449_v29, %v16529_v1 }
 0x981   : > { %12577 = vset.pattern.permute.xlu0 %v18194_v31  ;;  %v8934_v42 = vadd.f32 %v8918_v51, %v8833_v36 }
 0x982   : > { %8809 = vperm.xlu0 %12577, %v16442_v54   ;;  %v8545_v58 = vadd.f32 %v8529_v63, %v8428_v8  ;;  %v9136_v39 = vadd.f32 %v9120_v41, %v9035_v43  ;;  %v8431_v43 = vmul.f32 %v16506_v10, %v16513_v28 }
 0x983   : > { %v8568_v21 = vpop.permute.xlu1 %8567 }
 0x984   : > { %12541 = vset.pattern.permute.xlu1 %v18191_v33  ;;  %v8630_v23 = vmul.f32 %v8568_v21, %v16501_v32  ;;  %v16549_v21 = vpop.permute.xlu0 %8664 }
 0x985   : > { %8595 = vperm.xlu1 %12541, %v16192_v56  }
 0x986   : > { %12579 = vset.pattern.permute.xlu0 %v18197_v53 }
 0x987   : > { %9011 = vperm.xlu0 %12579, %v16442_v54   ;;  %v8653_v61 = vpop.permute.xlu1 %8652 }
 0x988   : > { %v8715_v5 = vmul.f32 %v8653_v61, %v16504_v44  ;;  %v8867_v29 = vpop.permute.xlu0 %8866 }
 0x989   : > { %12543 = vset.pattern.permute.xlu1 %v18194_v31 }
 0x98a   : > { %8797 = vperm.xlu1 %12543, %v16192_v56   ;;  %v16510_v56 = vsel %vm6359_vm9, nan, %v6368_v30  ;;  %v8731_v59 = vadd.f32 %v8715_v5, %v8630_v23 }
 0x98b   : > { %12582 = vset.pattern.permute.xlu0 %v18192_v50  ;;  %18272 = vst [vmem:[#allocation22_spill] sm:$0xff] %v16510_v56 }
 0x98c   : > { %8516 = vperm.xlu0 %12582, %v16493_v26   ;;  %v8770_v48 = vpop.permute.xlu1 %8769  ;;  %v8747_v61 = vmul.f32 %v8731_v59, %v8545_v58  ;;  %v8984_v5 = vpop.permute.xlu0 %8983 }
 0x98d   : > { %v8832_v9 = vmul.f32 %v8770_v48, %v16524_v22 }
 0x98e   : > { %12546 = vset.pattern.permute.xlu1 %v18197_v53 }
 0x98f   : > { %9084 = vperm.xlu1 %12546, %v16185_v12   ;;  %v8530_v12 = vmul.f32 %v16405_v45, %v16516_v16  ;;  %v8732_v45 = vadd.f32 %v8716_v47, %v8631_v4  ;;  %v8933_v57 = vadd.f32 %v8917_v49, %v8832_v9 }
 0x990   : > { %8511 = vperm.xlu0 %12582, %v16510_v56  }
 0x991   : > { %v8972_v6 = vpop.permute.xlu1 %8971  ;;  %v8546_v27 = vadd.f32 %v8530_v12, %v8429_v18  ;;  %v8949_v30 = vmul.f32 %v8933_v57, %v8747_v61 }
 0x992   : > { %v9034_v0 = vmul.f32 %v8972_v6, %v16538_v15 }
 0x993   : > { %12548 = vset.pattern.permute.xlu1 %v18192_v50  ;;  %v8748_v40 = vmul.f32 %v8732_v45, %v8546_v27 }
 0x994   : > { %12589 = vset.pattern.permute.xlu0 %v18194_v31  ;;  %8481 = vperm.xlu1 %12548, %v16331_v7  }
 0x995   : > { %8902 = vperm.xlu0 %12589, %v16510_v56   ;;  %v9057_v34 = vpop.permute.xlu1 %9056  ;;  %v8950_v25 = vmul.f32 %v8934_v42, %v8748_v40  ;;  %v16595_v40 = vmul.f32 %v8867_v29, %v16519_v2 }
 0x996   : > { %v9119_v55 = vmul.f32 %v9057_v34, %v16529_v1  ;;  %v8718_v34 = vmul.f32 %v16549_v21, %v16504_v44 }
 0x997   : > { %v9152_v48 = vmul.f32 %v9136_v39, %v8950_v25  ;;  %v16598_v39 = vmul.f32 %v8984_v5, %v16538_v15 }
 0x998   : > { %12549 = vset.pattern.permute.xlu1 %v18191_v33  ;;  %v9135_v62 = vadd.f32 %v9119_v55, %v9034_v0 }
 0x999   : > { %12591 = vset.pattern.permute.xlu0 %v18192_v50  ;;  %8591 = vperm.xlu1 %12549, %v16307_v13   ;;  %v8361_v13 = vpop.permute.xlu0 %8360 }
 0x99a   : > { %v9151_v3 = vmul.f32 %v9135_v62, %v8949_v30  ;;  %v8467_v11 = vpop.permute.xlu1 %8466  ;;  %v16601_v30 = vmul.f32 %v8361_v13, %v16513_v28 }
 0x99b   : > { %v8532_v27 = vmul.f32 %v8467_v11, %v16516_v16 }
 0x99c   : > { %12152 = vmatprep.mubr.msk.f32.mxu0 %vm9169_vm1, %v9151_v3 }
 0x99d   : > { %12552 = vset.pattern.permute.xlu1 %v18194_v31  ;;  %12153 = vmatmul.mubr.msk.f32.vlgmr.msra.gmra.mrb[168].mxu0 %vm9169_vm1, %v9152_v48  ;;  %v8661_v51 = vpop.permute.xlu0 %8660  ;;  %v16609_v11 = vadd.f32 %v8532_v27, %v8431_v43  ;;  %v18277_v43 = vmov 920167782  }
 0x99e   : > { %8878 = vperm.xlu1 %12552, %v16331_v7   ;;  %v16604_v3 = vmul.f32 %v8661_v51, %v16504_v44 }
 0x99f   : > { %v8580_v47 = vpop.permute.xlu1 %8579 }
 0x9a0   : > { %v8633_v42 = vmul.f32 %v8580_v47, %v16501_v32 }
 0x9a1   : > { %v8778_v0 = vpop.permute.xlu0 %8777 }
 0x9a2   : > { %12554 = vset.pattern.permute.xlu1 %v18197_v53  ;;  %v16607_v21 = vmul.f32 %v8778_v0, %v16524_v22  ;;  %v16611_v29 = vadd.f32 %v8718_v34, %v8633_v42  ;;  %v18276_v42 = vmov 2102212464  }
 0x9a3   : > { %9080 = vperm.xlu1 %12554, %v16331_v7  }
 0x9a4   : > { %v8782_v4 = vpop.permute.xlu1 %8781 }
 0x9a5   : > { %v12147_v8 = vpop.f32.mrb[166].mxu1  ;;  %v16614_v47 = vmul.f32 %v8782_v4, %v16524_v22 }
 0x9a6   : > { %v16573_v23 = vmul.f32 0.5, %v12147_v8  ;;  %v5006_v9 = vpop.f32.mrb[167].mxu1 }
 0x9a7   : > { %12555 = vset.pattern.permute.xlu1 %v18192_v50  ;;  %v16575_v18 = vmul.f32 0.5, %v5006_v9 }
 0x9a8   : > { %8395 = vperm.xlu1 %12555, %v16240_v24   ;;  %v18036_v6 = vand.u32 2147483647, %v16573_v23  ;;  %v6579_v63 = vand.u32 2139095040, %v16573_v23  ;;  %vm6578_vm8 = vcmp.lt.s32.totalorder %v16573_v23, 0 }
 0x9a9   : > { %v9069_v12 = vpop.permute.xlu1 %9068  ;;  %18274 = vst [vmem:[#allocation40_spill] sm:$0xff] %v16575_v18  ;;  %v18035_v7 = vand.u32 2147483647, %v16575_v18  ;;  %v6476_v49 = vand.u32 2139095040, %v16575_v18 }
 0x9aa   : > { %v6580_v59 = vshrl.u32 %v6579_v63, 23  ;;  %v6583_v45 = vand.u32 8388607, %v18036_v6  ;;  %v16617_v13 = vmul.f32 %v9069_v12, %v16529_v1 }
 0x9ab   : > { %v6477_v36 = vshrl.u32 %v6476_v49, 23  ;;  %v6480_v41 = vand.u32 8388607, %v18035_v7 }
 0x9ac   : > { %12557 = vset.pattern.permute.xlu1 %v18191_v33  ;;  %v11273_v57 = vadd.s32 4294967169, %v6580_v59  ;;  %v6584_v62 = vor.u32 8388608, %v6583_v45 }
 0x9ad   : > { %8603 = vperm.xlu1 %12557, %v16240_v24   ;;  %v11269_v61 = vadd.s32 4294967169, %v6477_v36  ;;  %v6481_v25 = vor.u32 8388608, %v6480_v41 }
 0x9ae   : > { %v8462_v58 = vpop.permute.xlu1 %8461  ;;  %v6586_v55 = vadd.s32 1, %v11273_v57  ;;  %v16624_v49 = vshll.u32 %v6584_v62, 8  ;;  %v18275_v57 = vmov 2131351028  }
 0x9af   : > { %v6483_v10 = vadd.s32 1, %v11269_v61  ;;  %v16621_v63 = vmul.f32 %v8462_v58, %v16516_v16  ;;  %v16626_v45 = vshll.u32 %v6481_v25, 8 }
 0x9b0   : > { %vm6587_vm9 = vcmp.gt.s32.totalorder %v6586_v55, 0 }
 0x9b1   : > { %8688 = vperm.xlu1 %12557, %v16367_v35   ;;  %v6588_v5 = vsel %vm6587_vm9, %v6586_v55, 0  ;;  %vm6484_vm10 = vcmp.gt.s32.totalorder %v6483_v10, 0 }
 0x9b2   : > { %v6589_v8 = vshrl.u32 %v6588_v5, 5  ;;  %v6590_v9 = vand.u32 31, %v6588_v5  ;;  %v6485_v51 = vsel %vm6484_vm10, %v6483_v10, 0  ;;  %v18278_v5 = vmov 1326507024  }
 0x9b3   : > { %v8576_v48 = vpop.permute.xlu1 %8575  ;;  %v6487_v59 = vand.u32 31, %v6485_v51  ;;  %v16636_v61 = vshrl.u32 %v6485_v51, 5 }
 0x9b4   : > { %v16629_v4 = vmul.f32 %v8576_v48, %v16501_v32  ;;  %v6591_v12 = vsub.s32 32, %v6590_v9  ;;  %v6593_v36 = vshll.u32 %v18121_v17, %v6590_v9  ;;  %v6596_v41 = vshll.u32 %v18126_v37, %v6590_v9 }
 0x9b5   : > { %12558 = vset.pattern.permute.xlu1 %v18194_v31  ;;  %v6599_v27 = vshll.u32 %v18275_v57, %v6590_v9  ;;  %v6602_v58 = vshll.u32 %v18276_v42, %v6590_v9  ;;  %v6605_v34 = vshll.u32 %v18277_v43, %v6590_v9  ;;  %vm6608_vm12 = vcmp.lt.s32.totalorder %v6589_v8, 1 }
 0x9b6   : > { %8805 = vperm.xlu1 %12558, %v16240_v24   ;;  %v6592_v55 = vshrl.u32 %v18121_v17, %v6591_v12  ;;  %v6594_v62 = vshrl.u32 %v18126_v37, %v6591_v12  ;;  %v6597_v25 = vshrl.u32 %v18275_v57, %v6591_v12  ;;  %v6600_v10 = vshrl.u32 %v18276_v42, %v6591_v12 }
 0x9b7   : > { %v6603_v48 = vshrl.u32 %v18277_v43, %v6591_v12  ;;  %v6606_v7 = vshrl.u32 %v18278_v5, %v6591_v12  ;;  %vm6609_vm13 = vcmp.lt.s32.totalorder %v6589_v8, 2  ;;  %vm6611_vm11 = vcmp.lt.s32.totalorder %v6589_v8, 4 }
 0x9b8   : > { %v16638_v0 = vpop.permute.xlu1 %8862  ;;  %v6595_v9 = vor.u32 %v6594_v62, %v6593_v36  ;;  %v6598_v51 = vor.u32 %v6597_v25, %v6596_v41  ;;  %v6601_v6 = vor.u32 %v6600_v10, %v6599_v27  ;;  %v6488_v56 = vsub.s32 32, %v6487_v59 }
 0x9b9   : > { %v6604_v46 = vor.u32 %v6603_v48, %v6602_v58  ;;  %v6607_v26 = vor.u32 %v6606_v7, %v6605_v34  ;;  %vm6610_vm3 = vcmp.lt.s32.totalorder %v6589_v8, 3  ;;  %v6490_v20 = vshll.u32 %v18121_v17, %v6487_v59 }
 0x9ba   : > { %8890 = vperm.xlu1 %12558, %v16367_v35   ;;  %v6612_v54 = vsel %vm6608_vm12, %v6592_v55, %v6595_v9  ;;  %v6613_v52 = vsel %vm6611_vm11, %v6601_v6, 2102212464  ;;  %v6616_v22 = vsel %vm6608_vm12, %v6595_v9, %v6598_v51  ;;  %v6620_v18 = vsel %vm6608_vm12, %v6598_v51, %v6601_v6 }
 0x9bb   : > { %v6614_v36 = vsel %vm6610_vm3, %v6598_v51, %v6613_v52  ;;  %v6617_v41 = vsel %vm6611_vm11, %v6604_v46, 920167782  ;;  %v6621_v7 = vsel %vm6611_vm11, %v6607_v26, 1326507024  ;;  %v6493_v27 = vshll.u32 %v18126_v37, %v6487_v59 }
 0x9bc   : > { %v6618_v58 = vsel %vm6610_vm3, %v6601_v6, %v6617_v41  ;;  %v6622_v34 = vsel %vm6610_vm3, %v6604_v46, %v6621_v7  ;;  %v6489_v55 = vshrl.u32 %v18121_v17, %v6488_v56  ;;  %v6491_v62 = vshrl.u32 %v18126_v37, %v6488_v56 }
 0x9bd   : > { %v16652_v12 = vpop.permute.xlu1 %9064  ;;  %v6615_v25 = vsel %vm6609_vm13, %v6612_v54, %v6614_v36  ;;  %v6619_v10 = vsel %vm6609_vm13, %v6616_v22, %v6618_v58  ;;  %v6623_v52 = vsel %vm6609_vm13, %v6620_v18, %v6622_v34  ;;  %v6494_v48 = vshrl.u32 %v18275_v57, %v6488_v56 }
 0x9be   : > { %12559 = vset.pattern.permute.xlu1 %v18197_v53  ;;  %v16666_v26 = vmul.u32.u64.low %v16624_v49, %v6623_v52  ;;  %v16667_v9 = vmul.u32.u64.high %v16624_v49, %v6623_v52, %v16666_v26  ;;  %v6492_v17 = vor.u32 %v6491_v62, %v6490_v20  ;;  %v6496_v37 = vshll.u32 %v18275_v57, %v6487_v59 }
 0x9bf   : > { %9007 = vperm.xlu1 %12559, %v16240_v24   ;;  %v16670_v24 = vmul.u32.u64.low %v16624_v49, %v6619_v10  ;;  %v16671_v6 = vmul.u32.u64.high %v16624_v49, %v6619_v10, %v16670_v24  ;;  %v6495_v46 = vor.u32 %v6494_v48, %v6493_v27  ;;  %v6497_v54 = vshrl.u32 %v18276_v42, %v6488_v56  ;;  %v8980_v48 = vpop.permute.xlu0 %8979 }
 0x9c0   : > { %v6499_v18 = vshll.u32 %v18276_v42, %v6487_v59  ;;  %v6500_v8 = vshrl.u32 %v18277_v43, %v6488_v56  ;;  %v6502_v51 = vshll.u32 %v18277_v43, %v6487_v59  ;;  %v6503_v36 = vshrl.u32 %v18278_v5, %v6488_v56 }
 0x9c1   : > { %v6631_v41 = vmul.u32 %v16624_v49, %v6615_v25  ;;  %v6498_v20 = vor.u32 %v6497_v54, %v6496_v37  ;;  %vm6505_vm14 = vcmp.lt.s32.totalorder %v16636_v61, 1  ;;  %vm6506_vm7 = vcmp.lt.s32.totalorder %v16636_v61, 2 }
 0x9c2   : > { %vm6633_vm4 = vc.u32 %v16667_v9, %v16670_v24  ;;  %v6501_v57 = vor.u32 %v6500_v8, %v6499_v18  ;;  %vm6507_vm5 = vcmp.lt.s32.totalorder %v16636_v61, 3  ;;  %v6504_v42 = vor.u32 %v6503_v36, %v6502_v51 }
 0x9c3   : > { %v16676_v22 = vpop.permute.xlu1 %8375  ;;  %9092 = vperm.xlu1 %12559, %v16367_v35   ;;  %v6634_v35 = vadd.s32 1, %v16671_v6  ;;  %vm6508_vm6 = vcmp.lt.s32.totalorder %v16636_v61, 4  ;;  %v6509_v59 = vsel %vm6505_vm14, %v6489_v55, %v6492_v17  ;;  %v6513_v56 = vsel %vm6505_vm14, %v6492_v17, %v6495_v46 }
 0x9c4   : > { %v6510_v43 = vsel %vm6508_vm6, %v6498_v20, 2102212464  ;;  %v6514_v5 = vsel %vm6508_vm6, %v6501_v57, 920167782  ;;  %v6517_v7 = vsel %vm6505_vm14, %v6495_v46, %v6498_v20  ;;  %v6518_v55 = vsel %vm6508_vm6, %v6504_v42, 1326507024 }
 0x9c5   : > { %v6635_v49 = vsel %vm6633_vm4, %v6634_v35, %v16671_v6  ;;  %v6511_v34 = vsel %vm6507_vm5, %v6495_v46, %v6510_v43  ;;  %v6515_v62 = vsel %vm6507_vm5, %v6498_v20, %v6514_v5  ;;  %v6519_v52 = vsel %vm6507_vm5, %v6501_v57, %v6518_v55 }
 0x9c6   : > { %v6636_v58 = vadd.s32 %v6635_v49, %v6631_v41  ;;  %v6512_v25 = vsel %vm6506_vm7, %v6509_v59, %v6511_v34  ;;  %v6516_v10 = vsel %vm6506_vm7, %v6513_v56, %v6515_v62  ;;  %v8733_v26 = vadd.f32 %v16604_v3, %v16629_v4 }
 0x9c7   : > { %12560 = vset.pattern.permute.xlu1 %v18192_v50  ;;  %v6520_v17 = vsel %vm6506_vm7, %v6517_v7, %v6519_v52  ;;  %v16711_v46 = vmul.u32.u64.low %v16626_v45, %v6516_v10  ;;  %v16712_v37 = vmul.u32.u64.high %v16626_v45, %v6516_v10, %v16711_v46  ;;  %v8547_v8 = vadd.f32 %v16621_v63, %v16601_v30 }
 0x9c8   : > { %v16693_v27 = vpop.permute.xlu1 %8587  ;;  %8390 = vperm.xlu1 %12560, %v16244_v19   ;;  %v6637_v6 = vadd.s32 536870912, %v6636_v58  ;;  %v16716_v54 = vmul.u32.u64.low %v16626_v45, %v6520_v17  ;;  %v16717_v18 = vmul.u32.u64.high %v16626_v45, %v6520_v17, %v16716_v54  ;;  %v8919_v51 = vmul.f32 %v16638_v0, %v16519_v2 }
 0x9c9   : > { %v9036_v61 = vmul.f32 %v8980_v48, %v16538_v15  ;;  %v8936_v36 = vadd.f32 %v16595_v40, %v16614_v47  ;;  %v9121_v41 = vmul.f32 %v16652_v12, %v16529_v1  ;;  %v6528_v30 = vmul.u32 %v16626_v45, %v6512_v25 }
 0x9ca   : > { %v16726_v4 = vshrl.u32 %v6637_v6, 30  ;;  %v8750_v63 = vmul.f32 %v16611_v29, %v16609_v11  ;;  %v8749_v0 = vmul.f32 %v8733_v26, %v8547_v8  ;;  %v8935_v20 = vadd.f32 %v8919_v51, %v16607_v21 }
 0x9cb   : > { %v6531_v57 = vadd.s32 1, %v16712_v37  ;;  %v9138_v40 = vadd.f32 %v16617_v13, %v16598_v39  ;;  %v9137_v47 = vadd.f32 %v9121_v41, %v9036_v61  ;;  %vm6530_vm0 = vc.u32 %v16717_v18, %v16711_v46 }
 0x9cc   : > { %v16723_v3 = vpop.permute.xlu1 %8672  ;;  %12561 = vset.pattern.permute.xlu1 %v18191_v33  ;;  %v6639_v35 = vshll.u32 %v16726_v4, 30  ;;  %v8951_v12 = vmul.f32 %v8935_v20, %v8749_v0  ;;  %v8952_v59 = vmul.f32 %v8936_v36, %v8750_v63  ;;  %v6632_v25 = vadd.s32 %v16670_v24, %v16667_v9  ;;  %v8477_v63 = vpop.permute.xlu0 %8476 }
 0x9cd   : > { %8599 = vperm.xlu1 %12561, %v16244_v19   ;;  %v6532_v45 = vsel %vm6530_vm0, %v6531_v57, %v16712_v37  ;;  %vm6668_vm13 = vweird.f32 %v16573_v23 }
 0x9ce   : > { %v6640_v42 = vsub.s32 %v6636_v58, %v6639_v35  ;;  %v6533_v21 = vadd.s32 %v6532_v45, %v6528_v30  ;;  %v9153_v29 = vmul.f32 %v9137_v47, %v8951_v12  ;;  %v9154_v49 = vmul.f32 %v9138_v40, %v8952_v59 }
 0x9d0   : > { %v6642_v56 = vsub.s32 0, %v6640_v42  ;;  %v6534_v43 = vadd.s32 536870912, %v6533_v21  ;;  %12155 = vmatprep.mubr.msk.f32.mxu0 %vm9169_vm1, %v9153_v29 }
 0x9d1   : > { %v16745_v11 = vpop.permute.xlu1 %8789  ;;  %8684 = vperm.xlu1 %12561, %v16381_v14   ;;  %12156 = vmatmul.mubr.msk.f32.gmra.mrb[170].mxu0 %vm9169_vm1, %v9154_v49 }
 0x9d2   : > { %v11274_v39 = vmin.u32 %v6642_v56, %v6640_v42  ;;  %v16753_v5 = vshrl.u32 %v6534_v43, 30  ;;  %v8472_v56 = vpop.permute.xlu0 %8471  ;;  %v8720_v43 = vmul.f32 %v16723_v3, %v16504_v44  ;;  %v8534_v3 = vmul.f32 %v8477_v63, %v16516_v16  ;;  %v18284_v63 = vld [vmem:[#allocation41_spill] sm:$0xff] }
 0x9d4   : > { %v6644_v7 = vclz %v11274_v39  ;;  %v6536_v58 = vshll.u32 %v16753_v5, 30 }
 0x9d5   : > { %v16750_v13 = vpop.permute.xlu1 %8874  ;;  %12562 = vset.pattern.permute.xlu1 %v18194_v31 }
 0x9d6   : > { %8801 = vperm.xlu1 %12562, %v16244_v19   ;;  %v11275_v34 = vadd.s32 4294967294, %v6644_v7  ;;  %v6537_v62 = vsub.s32 %v6533_v21, %v6536_v58 }
 0x9d8   : > { %vm11276_vm2 = vcmp.lt.s32.totalorder %v11275_v34, 0  ;;  %v6539_v52 = vsub.s32 0, %v6537_v62 }
 0x9d9   : > { %v6647_v10 = vsel %vm11276_vm2, 0, %v11275_v34 }
 0x9da   : > { %v16757_v55 = vpop.permute.xlu1 %8991  ;;  %12564 = vset.pattern.permute.xlu1 %v18197_v53  ;;  %v6648_v48 = vsub.s32 32, %v6647_v10  ;;  %v6649_v26 = vshll.u32 %v6640_v42, %v6647_v10  ;;  %v6652_v6 = vsub.s32 4294967266, %v6647_v10  ;;  %v11270_v17 = vmin.u32 %v6539_v52, %v6537_v62 }
 0x9db   : > { %9003 = vperm.xlu1 %12564, %v16244_v19   ;;  %v6529_v19 = vadd.s32 %v16711_v46, %v16717_v18  ;;  %v18279_v46 = vand.u32 2147483647, %v16573_v23  ;;  %v8635_v10 = vmul.f32 %v16693_v27, %v16501_v32  ;;  %v6559_v52 = vsub.s32 4, %v16753_v5 }
 0x9dc   : > { %v6650_v54 = vshrl.u32 %v6632_v25, %v6648_v48  ;;  %v6653_v8 = vadd.s32 127, %v6652_v6  ;;  %v6541_v51 = vclz %v11270_v17  ;;  %v8433_v25 = vmul.f32 %v16676_v22, %v16513_v28  ;;  %v8871_v6 = vpop.permute.xlu0 %8870  ;;  %v18286_v22 = vld [vmem:[#allocation18_spill] sm:$0xff] }
 0x9dd   : > { %vm6577_vm9 = vcmp.le.f32.partialorder %v18279_v46, 0.7853982  ;;  %v8736_v17 = vadd.f32 %v8720_v43, %v8635_v10  ;;  %v8533_v27 = vmul.f32 %v8472_v56, %v16516_v16 }
 0x9de   : > { %v16763_v37 = vpop.permute.xlu1 %9076  ;;  %v6651_v61 = vor.u32 %v6650_v54, %v6649_v26  ;;  %v6654_v36 = vshll.u32 %v6653_v8, 23  ;;  %v11271_v41 = vadd.s32 4294967294, %v6541_v51  ;;  %v18280_v54 = vld [vmem:[#allocation40_spill] sm:$0xff]  ;;  %v8550_v51 = vadd.f32 %v8534_v3, %v8433_v25 }
 0x9df   : > { %9088 = vperm.xlu1 %12564, %v16381_v14   ;;  %v6662_v14 = vsub.s32 4, %v16726_v4  ;;  %v18281_v8 = vand.u32 2147483647, %v18280_v54  ;;  %vm6475_vm12 = vcmp.lt.s32.totalorder %v18280_v54, 0  ;;  %v9124_v46 = vmul.f32 %v16763_v37, %v16529_v1 }
 0x9e0   : > { %v6655_v9 = vor.u32 4788187, %v6654_v36  ;;  %v6658_v24 = vcvt.s32.f32 %v6651_v61  ;;  %vm11272_vm15 = vcmp.lt.s32.totalorder %v11271_v41, 0 }
 0x9e1   : > { %v6544_v20 = vsel %vm11272_vm15, 0, %v11271_v41  ;;  %v6663_v59 = vsel %vm6578_vm8, %v6662_v14, %v16726_v4  ;;  %vm16790_vm10 = vcmp.le.f32.partialorder %v18281_v8, 0.7853982  ;;  %v6560_v41 = vsel %vm6475_vm12, %v6559_v52, %v16753_v5 }
 0x9e2   : > { %v6656_v0 = vand.u32 2147483647, %v6655_v9  ;;  %v6545_v35 = vsub.s32 32, %v6544_v20  ;;  %v6546_v57 = vshll.u32 %v6537_v62, %v6544_v20  ;;  %v6549_v40 = vsub.s32 4294967266, %v6544_v20 }
 0x9e3   : > { %v8371_v30 = vpop.permute.xlu1 %8370  ;;  %12566 = vset.pattern.permute.xlu1 %v18192_v50  ;;  %v6665_v34 = vsel %vm6577_vm9, 0, %v6663_v59  ;;  %v8752_v14 = vmul.f32 %v8736_v17, %v8550_v51 }
 0x9e4   : > { %8506 = vperm.xlu1 %12566, %v16411_v38   ;;  %v6659_v47 = vmul.f32 %v6658_v24, %v6656_v0  ;;  %v6547_v12 = vshrl.u32 %v6529_v19, %v6545_v35  ;;  %v6550_v42 = vadd.s32 127, %v6549_v40  ;;  %v8332_v48 = vadd.s32 3, %v6665_v34 }
 0x9e5   : > { %v8921_v24 = vmul.f32 %v8871_v6, %v16519_v2  ;;  %v8837_v0 = vmul.f32 %v16745_v11, %v18284_v63  ;;  %v8432_v35 = vmul.f32 %v8371_v30, %v16513_v28  ;;  %v8922_v40 = vmul.f32 %v16750_v13, %v16519_v2 }
 0x9e6   : > { %v6660_v18 = vxor.u32 2147483648, %v6659_v47  ;;  %v6548_v21 = vor.u32 %v6547_v12, %v6546_v57  ;;  %v6551_v29 = vshll.u32 %v6550_v42, 23  ;;  %v8333_v19 = vand.u32 3, %v8332_v48 }
 0x9e7   : > { %v8549_v59 = vadd.f32 %v8533_v27, %v8432_v35  ;;  %v8938_v56 = vadd.f32 %v8922_v40, %v8837_v0  ;;  %v9380_v40 = vld [vmem:[%s17907_s11 + $0x8] sm:$0xff] }
 0x9e8   : > { %v8584_v45 = vpop.permute.xlu1 %8583  ;;  %12567 = vset.pattern.permute.xlu1 %v18191_v33  ;;  %v6661_v49 = vsel %vm6578_vm8, %v6660_v18, %v6659_v47  ;;  %v6552_v7 = vor.u32 4788187, %v6551_v29  ;;  %v6555_v58 = vcvt.s32.f32 %v6548_v21  ;;  %v6562_v47 = vsel %vm16790_vm10, 0, %v6560_v41  ;;  %v18285_v21 = vld [vmem:[#allocation16_spill] sm:$0xff] }
 0x9e9   : > { %8611 = vperm.xlu1 %12567, %v16399_v60   ;;  %v6664_v39 = vsel %vm6577_vm9, %v16573_v23, %v6661_v49  ;;  %v8634_v5 = vmul.f32 %v8584_v45, %v16501_v32  ;;  %vm8335_vm14 = vcmp.eq.s32.totalorder %v8333_v19, 0  ;;  %vm8338_vm7 = vcmp.eq.s32.totalorder %v8333_v19, 2 }
 0x9ea   : > { %12816 = vcosq.f32 %v6664_v39  ;;  %v6553_v4 = vand.u32 2147483647, %v6552_v7  ;;  %v8228_v18 = vadd.s32 3, %v6562_v47  ;;  %vm8334_vm5 = vcmp.lt.s32.totalorder %v8333_v19, 2 }
 0x9eb   : > { %12818 = vsinq.f32 %v6664_v39  ;;  %v9039_v7 = vmul.f32 %v16757_v55, %v16538_v15  ;;  %v8954_v27 = vmul.f32 %v8938_v56, %v8752_v14  ;;  %v6566_v19 = vand.u32 3, %v6562_v47  ;;  %v18288_v56 = vld [vmem:[#allocation20_spill] sm:$0xff] }
 0x9ec   : > { %v8669_v62 = vpop.permute.xlu1 %8668  ;;  %v6556_v26 = vmul.f32 %v6555_v58, %v6553_v4  ;;  %vm6565_vm9 = vweird.f32 %v18280_v54 }
 0x9ed   : > { %12569 = vset.pattern.permute.xlu1 %v18194_v31  ;;  %v8719_v9 = vmul.f32 %v8669_v62, %v16504_v44  ;;  %v9140_v48 = vadd.f32 %v9124_v46, %v9039_v7  ;;  %vm6568_vm15 = vcmp.eq.s32.totalorder %v6566_v19, 0  ;;  %vm6571_vm8 = vcmp.eq.s32.totalorder %v6566_v19, 2 }
 0x9ee   : > { %8813 = vperm.xlu1 %12569, %v16399_v60   ;;  %v6557_v36 = vxor.u32 2147483648, %v6556_v26  ;;  %v6669_v60 = vand.u32 3, %v6665_v34 }
 0x9ef   : > { %v8735_v30 = vadd.f32 %v8719_v9, %v8634_v5  ;;  %v9156_v41 = vmul.f32 %v9140_v48, %v8954_v27 }
 0x9f0   : > { %v6558_v20 = vsel %vm6475_vm12, %v6557_v36, %v6556_v26  ;;  %vm6670_vm11 = vcmp.lt.s32.totalorder %v6669_v60, 2  ;;  %vm6671_vm3 = vcmp.eq.s32.totalorder %v6669_v60, 0  ;;  %vm6674_vm4 = vcmp.eq.s32.totalorder %v6669_v60, 2 }
 0x9f1   : > { %v8786_v61 = vpop.permute.xlu1 %8785  ;;  %v6561_v57 = vsel %vm16790_vm10, %v18280_v54, %v6558_v20  ;;  %v8751_v58 = vmul.f32 %v8735_v30, %v8549_v59  ;;  %v8229_v26 = vand.u32 3, %v8228_v18  ;;  %vm6567_vm10 = vcmp.lt.s32.totalorder %v6566_v19, 2 }
 0x9f2   : > { %12572 = vset.pattern.permute.xlu1 %v18197_v53  ;;  %v8836_v11 = vmul.f32 %v8786_v61, %v18284_v63  ;;  %12820 = vcosq.f32 %v6561_v57  ;;  %vm10311_vm12 = vcmask 31744  }
 0x9f3   : > { %9100 = vperm.xlu1 %12572, %v16411_v38   ;;  %v16814_v38 = vpop.permute.xlu0 %8385  ;;  %12822 = vsinq.f32 %v6561_v57  ;;  %vm8231_vm6 = vcmp.eq.s32.totalorder %v8229_v26, 0  ;;  %vm8234_vm0 = vcmp.eq.s32.totalorder %v8229_v26, 2  ;;  %vm8230_vm2 = vcmp.lt.s32.totalorder %v8229_v26, 2  ;;  %v9379_v57 = vld [vmem:[%s17907_s11] sm:$0xff] }
 0x9f4   : > { %v12817_v42 = vpop.eup %12816  ;;  %v8937_v49 = vadd.f32 %v8921_v24, %v8836_v11  ;;  %v8435_v26 = vmul.f32 %v16814_v38, %v16513_v28 }
 0x9f5   : > { %v12819_v13 = vpop.eup %12818  ;;  %v6675_v45 = vxor.u32 2147483648, %v12817_v42 }
 0x9f6   : > { %v8988_v12 = vpop.permute.xlu1 %8987  ;;  %v6672_v29 = vxor.u32 2147483648, %v12819_v13  ;;  %v8953_v17 = vmul.f32 %v8937_v49, %v8751_v58 }
 0x9f7   : > { %12574 = vset.pattern.permute.xlu1 %v18192_v50  ;;  %v8340_v43 = vsel %vm8338_vm7, %v6675_v45, %v12819_v13  ;;  %v6676_v39 = vsel %vm6674_vm4, %v6675_v45, %v12819_v13  ;;  %v9038_v37 = vmul.f32 %v8988_v12, %v16538_v15  ;;  %v16826_v10 = vpop.permute.xlu0 %8680  ;;  %v12270_v12 = vpack.c.bf16 %v9380_v40, %v9379_v57  ;;  %v18287_v45 = vld [vmem:[#allocation27_spill] sm:$0xff] }
 0x9f8   : > { %8501 = vperm.xlu1 %12574, %v18285_v21   ;;  %v8337_v62 = vsel %vm8335_vm14, %v12817_v42, %v6672_v29  ;;  %v6673_v25 = vsel %vm6671_vm3, %v12817_v42, %v6672_v29  ;;  %vm10378_vm3 = vcmask 162816   ;;  %vm10395_vm14 = vcmask 195584  }
 0x9f9   : > { %v8341_v52 = vsel %vm8334_vm5, %v8337_v62, %v8340_v43  ;;  %v6677_v3 = vsel %vm6670_vm11, %v6673_v25, %v6676_v39  ;;  %12271 = vmatprep.subr.bf16.mxu1 %v12270_v12  ;;  %v8722_v62 = vmul.f32 %v16826_v10, %v16504_v44  ;;  %vm10345_vm11 = vcmask 97280  }
 0x9fa   : > { %v9073_v34 = vpop.permute.xlu1 %9072  ;;  %v16832_v55 = vsel %vm6668_vm13, nan, %v8341_v52  ;;  %v16836_v6 = vsel %vm6668_vm13, nan, %v6677_v3  ;;  %12273 = vmatpush3.bf16.msra.mxu1 %v12270_v12  ;;  %v18290_v12 = vld [vmem:[#allocation22_spill] sm:$0xff]  ;;  %vm10328_vm13 = vcmask 64512   ;;  %vm10412_vm7 = vcmask 228352  }
 0x9fb   : > { %v9123_v4 = vmul.f32 %v9073_v34, %v16529_v1  ;;  %8425 = vperm.xlu0 %12591, %v16832_v55   ;;  %v16844_v23 = vpop.permute.xlu0 %8882  ;;  %vm10445_vm4 = vcmask 293888   ;;  %vm10462_vm5 = vcmask 326656  }
 0x9fc   : > { %12575 = vset.pattern.permute.xlu1 %v18191_v33  ;;  %v12821_v36 = vpop.eup %12820  ;;  %v8924_v10 = vmul.f32 %v16844_v23, %v16519_v2 }
 0x9fd   : > { %v9139_v8 = vadd.f32 %v9123_v4, %v9038_v37  ;;  %8607 = vperm.xlu1 %12575, %v18286_v22   ;;  %v12823_v60 = vpop.eup %12822  ;;  %v6572_v9 = vxor.u32 2147483648, %v12821_v36 }
 0x9fe   : > { %v6569_v24 = vxor.u32 2147483648, %v12823_v60 }
 0x9ff   : > { %v9155_v51 = vmul.f32 %v9139_v8, %v8953_v17  ;;  %v16840_v61 = vpop.permute.xlu1 %8486  ;;  %12594 = vset.pattern.permute.xlu0 %v18191_v33  ;;  %v8236_v20 = vsel %vm8234_vm0, %v6572_v9, %v12823_v60  ;;  %v9000_v5 = vpop.permute.xlu0 %8999  ;;  %v6573_v11 = vsel %vm6571_vm8, %v6572_v9, %v12823_v60  ;;  %vm10479_vm0 = vcmask 359424  }
 0xa00   : > { %8712 = vperm.xlu0 %12594, %v16836_v6   ;;  %v8233_v0 = vsel %vm8231_vm6, %v12821_v36, %v6569_v24  ;;  %v6570_v47 = vsel %vm6568_vm15, %v12821_v36, %v6569_v24  ;;  %v8536_v25 = vmul.f32 %v16840_v61, %v16516_v16  ;;  %v9041_v61 = vmul.f32 %v9000_v5, %v16538_v15 }
 0xa01   : > { %12578 = vset.pattern.permute.xlu1 %v18194_v31  ;;  %12158 = vmatprep.mubr.msk.f32.mxu0 %vm9169_vm1, %v9155_v51  ;;  %v8237_v35 = vsel %vm8230_vm2, %v8233_v0, %v8236_v20  ;;  %v6574_v13 = vsel %vm6567_vm10, %v6570_v47, %v6573_v11  ;;  %v18289_v47 = vld [vmem:[#allocation14_spill] sm:$0xff]  ;;  %vm18291_vm6 = vcmask 261120   ;;  %vm10496_vm15 = vcmask 392192  }
 0xa02   : > { %8894 = vperm.xlu1 %12578, %v18285_v21   ;;  %12159 = vmatmul.mubr.msk.f32.gmra.mrb[172].mxu0 %vm9169_vm1, %v9156_v41  ;;  %v16863_v42 = vsel %vm6565_vm9, nan, %v8237_v35  ;;  %v16871_v59 = vsel %vm6565_vm9, nan, %v6574_v13  ;;  %v8552_v36 = vadd.f32 %v8536_v25, %v8435_v26  ;;  %vm18292_vm2 = vmmov %vm18291_vm6  ;;  %vm10513_vm8 = vcmask 424960  }
 0xa03   : > { %v8381_v46 = vpop.permute.xlu0 %8380  ;;  %vm10530_vm9 = vcmask 457728   ;;  %vm10547_vm10 = vcmask 490496  }
 0xa04   : > { %v8596_v14 = vpop.permute.xlu1 %8595  ;;  %12596 = vset.pattern.permute.xlu0 %v18194_v31  ;;  %v8434_v52 = vmul.f32 %v8381_v46, %v16513_v28 }
 0xa05   : > { %8914 = vperm.xlu0 %12596, %v16836_v6   ;;  %v8637_v39 = vmul.f32 %v8596_v14, %v16501_v32 }
 0xa06   : > { %12580 = vset.pattern.permute.xlu1 %v18197_v53 }
 0xa07   : > { %9096 = vperm.xlu1 %12580, %v18285_v21   ;;  %v8677_v29 = vpop.permute.xlu0 %8676  ;;  %v8738_v8 = vadd.f32 %v8722_v62, %v8637_v39 }
 0xa08   : > { %v8721_v7 = vmul.f32 %v8677_v29, %v16504_v44 }
 0xa09   : > { %v8798_v30 = vpop.permute.xlu1 %8797  ;;  %12597 = vset.pattern.permute.xlu0 %v18192_v50  ;;  %v8754_v23 = vmul.f32 %v8738_v8, %v8552_v36 }
 0xa0a   : > { %8420 = vperm.xlu0 %12597, %v16863_v42   ;;  %v8839_v37 = vmul.f32 %v8798_v30, %v18284_v63 }
 0xa0b   : > { %12581 = vset.pattern.permute.xlu1 %v18192_v50  ;;  %v8794_v54 = vpop.permute.xlu0 %8793 }
 0xa0c   : > { %8415 = vperm.xlu1 %12581, %v18287_v45   ;;  %v8838_v3 = vmul.f32 %v8794_v54, %v18284_v63  ;;  %v8940_v60 = vadd.f32 %v8924_v10, %v8839_v37 }
 0xa0e   : > { %v9085_v18 = vpop.permute.xlu1 %9084  ;;  %12600 = vset.pattern.permute.xlu0 %v18191_v33  ;;  %v8956_v14 = vmul.f32 %v8940_v60, %v8754_v23 }
 0xa0f   : > { %8708 = vperm.xlu0 %12600, %v16871_v59   ;;  %v8996_v17 = vpop.permute.xlu0 %8995  ;;  %v9126_v22 = vmul.f32 %v9085_v18, %v16529_v1 }
 0xa10   : > { %12583 = vset.pattern.permute.xlu1 %v18191_v33  ;;  %v9040_v9 = vmul.f32 %v8996_v17, %v16538_v15 }
 0xa11   : > { %8619 = vperm.xlu1 %12583, %v18287_v45   ;;  %v9142_v19 = vadd.f32 %v9126_v22, %v9041_v61 }
 0xa13   : > { %v8482_v21 = vpop.permute.xlu1 %8481  ;;  %12601 = vset.pattern.permute.xlu0 %v18194_v31  ;;  %v9158_v5 = vmul.f32 %v9142_v19, %v8956_v14 }
 0xa14   : > { %8825 = vperm.xlu0 %12601, %v16863_v42   ;;  %v8535_v58 = vmul.f32 %v8482_v21, %v16516_v16  ;;  %v8497_v21 = vpop.permute.xlu0 %8496 }
 0xa15   : > { %8704 = vperm.xlu1 %12583, %v18288_v56   ;;  %v8538_v10 = vmul.f32 %v8497_v21, %v16516_v16 }
 0xa16   : > { %v8551_v27 = vadd.f32 %v8535_v58, %v8434_v52 }
 0xa18   : > { %v8592_v49 = vpop.permute.xlu1 %8591  ;;  %12604 = vset.pattern.permute.xlu0 %v18197_v53 }
 0xa19   : > { %12584 = vset.pattern.permute.xlu1 %v18194_v31  ;;  %v8636_v43 = vmul.f32 %v8592_v49, %v16501_v32  ;;  %9112 = vperm.xlu0 %12604, %v16871_v59  }
 0xa1a   : > { %8821 = vperm.xlu1 %12584, %v18287_v45  }
 0xa1b   : > { %v8737_v48 = vadd.f32 %v8721_v7, %v8636_v43 }
 0xa1d   : > { %v8879_v34 = vpop.permute.xlu1 %8878  ;;  %v8753_v24 = vmul.f32 %v8737_v48, %v8551_v27 }
 0xa1e   : > { %v8923_v4 = vmul.f32 %v8879_v34, %v16519_v2  ;;  %8906 = vperm.xlu1 %12584, %v18288_v56  }
 0xa20   : > { %v8939_v51 = vadd.f32 %v8923_v4, %v8838_v3 }
 0xa22   : > { %v9081_v41 = vpop.permute.xlu1 %9080  ;;  %12585 = vset.pattern.permute.xlu1 %v18197_v53  ;;  %v8955_v0 = vmul.f32 %v8939_v51, %v8753_v24 }
 0xa23   : > { %v9125_v38 = vmul.f32 %v9081_v41, %v16529_v1  ;;  %9023 = vperm.xlu1 %12585, %v18287_v45  }
 0xa25   : > { %v9141_v20 = vadd.f32 %v9125_v38, %v9040_v9 }
 0xa27   : > { %v9157_v35 = vmul.f32 %v9141_v20, %v8955_v0  ;;  %v8396_v57 = vpop.permute.xlu1 %8395  ;;  %9108 = vperm.xlu1 %12585, %v18288_v56   ;;  %v8492_v56 = vpop.permute.xlu0 %8491 }
 0xa28   : > { %v8437_v37 = vmul.f32 %v8396_v57, %v16513_v28  ;;  %v8537_v3 = vmul.f32 %v8492_v56, %v16516_v16 }
 0xa29   : > { %12161 = vmatprep.mubr.msk.f32.mxu0 %vm9169_vm1, %v9157_v35 }
 0xa2a   : > { %12162 = vmatmul.mubr.msk.f32.gmra.mrb[174].mxu0 %vm9169_vm1, %v9158_v5  ;;  %v8554_v61 = vadd.f32 %v8538_v10, %v8437_v37 }
 0xa2b   : > { %12586 = vset.pattern.permute.xlu1 %v18192_v50  ;;  %v8887_v54 = vpop.permute.xlu0 %8886 }
 0xa2c   : > { %v8604_v40 = vpop.permute.xlu1 %8603  ;;  %8410 = vperm.xlu1 %12586, %v18289_v47   ;;  %v8925_v48 = vmul.f32 %v8887_v54, %v16519_v2 }
 0xa2d   : > { %v8639_v4 = vmul.f32 %v8604_v40, %v16501_v32 }
 0xa2f   : > { %v16930_v58 = vpop.permute.xlu0 %8405 }
 0xa30   : > { %v8689_v11 = vpop.permute.xlu1 %8688  ;;  %12587 = vset.pattern.permute.xlu1 %v18191_v33  ;;  %v8439_v37 = vmul.f32 %v16930_v58, %v16513_v28 }
 0xa31   : > { %8615 = vperm.xlu1 %12587, %v18289_v47   ;;  %v8724_v7 = vmul.f32 %v8689_v11, %v16504_v44 }
 0xa33   : > { %v8740_v17 = vadd.f32 %v8724_v7, %v8639_v4  ;;  %v8697_v9 = vpop.permute.xlu0 %8696 }
 0xa34   : > { %v8726_v54 = vmul.f32 %v8697_v9, %v16504_v44 }
 0xa35   : > { %v8806_v30 = vpop.permute.xlu1 %8805  ;;  %8700 = vperm.xlu1 %12587, %v18290_v12   ;;  %v8756_v23 = vmul.f32 %v8740_v17, %v8554_v61 }
 0xa36   : > { %v8841_v8 = vmul.f32 %v8806_v30, %v18284_v63 }
 0xa37   : > { %v8899_v40 = vpop.permute.xlu0 %8898 }
 0xa38   : > { %v8928_v4 = vmul.f32 %v8899_v40, %v16519_v2 }
 0xa39   : > { %v8891_v13 = vpop.permute.xlu1 %8890  ;;  %12588 = vset.pattern.permute.xlu1 %v18194_v31 }
 0xa3a   : > { %8817 = vperm.xlu1 %12588, %v18289_v47  }
 0xa3e   : > { %v9008_v45 = vpop.permute.xlu1 %9007  ;;  %12590 = vset.pattern.permute.xlu1 %v18197_v53 }
 0xa3f   : > { %9019 = vperm.xlu1 %12590, %v18289_v47   ;;  %v9043_v60 = vmul.f32 %v9008_v45, %v16538_v15 }
 0xa42   : > { %v9093_v46 = vpop.permute.xlu1 %9092 }
 0xa43   : > { %9104 = vperm.xlu1 %12590, %v18290_v12   ;;  %v9128_v22 = vmul.f32 %v9093_v46, %v16529_v1 }
 0xa45   : > { %v9144_v19 = vadd.f32 %v9128_v22, %v9043_v60 }
 0xa47   : > { %v8391_v18 = vpop.permute.xlu1 %8390  ;;  %12592 = vset.pattern.permute.xlu1 %v18192_v50 }
 0xa48   : > { %8526 = vperm.xlu1 %12592, %v16836_v6   ;;  %v8436_v34 = vmul.f32 %v8391_v18, %v16513_v28 }
 0xa4a   : > { %v8553_v27 = vadd.f32 %v8537_v3, %v8436_v34 }
 0xa4c   : > { %v8600_v29 = vpop.permute.xlu1 %8599  ;;  %12593 = vset.pattern.permute.xlu1 %v18191_v33 }
 0xa4d   : > { %8627 = vperm.xlu1 %12593, %v16832_v55   ;;  %v8638_v62 = vmul.f32 %v8600_v29, %v16501_v32 }
 0xa50   : > { %v8685_v49 = vpop.permute.xlu1 %8684 }
 0xa51   : > { %12595 = vset.pattern.permute.xlu1 %v18194_v31  ;;  %v8723_v39 = vmul.f32 %v8685_v49, %v16504_v44 }
 0xa52   : > { %8829 = vperm.xlu1 %12595, %v16832_v55  }
 0xa53   : > { %v8739_v26 = vadd.f32 %v8723_v39, %v8638_v62 }
 0xa55   : > { %v8802_v43 = vpop.permute.xlu1 %8801  ;;  %v8755_v24 = vmul.f32 %v8739_v26, %v8553_v27 }
 0xa56   : > { %12598 = vset.pattern.permute.xlu1 %v18192_v50  ;;  %v8840_v25 = vmul.f32 %v8802_v43, %v18284_v63  ;;  %v8926_v50 = vmul.f32 %v8891_v13, %v16519_v2 }
 0xa57   : > { %8521 = vperm.xlu1 %12598, %v16871_v59  }
 0xa58   : > { %v8941_v51 = vadd.f32 %v8925_v48, %v8840_v25  ;;  %v8942_v36 = vadd.f32 %v8926_v50, %v8841_v8 }
 0xa5a   : > { %v9004_v52 = vpop.permute.xlu1 %9003  ;;  %v8957_v0 = vmul.f32 %v8941_v51, %v8755_v24  ;;  %v8958_v14 = vmul.f32 %v8942_v36, %v8756_v23 }
 0xa5b   : > { %12599 = vset.pattern.permute.xlu1 %v18191_v33  ;;  %v9042_v33 = vmul.f32 %v9004_v52, %v16538_v15 }
 0xa5c   : > { %8623 = vperm.xlu1 %12599, %v16863_v42   ;;  %v9160_v5 = vmul.f32 %v9144_v19, %v8958_v14 }
 0xa5e   : > { %v9089_v41 = vpop.permute.xlu1 %9088 }
 0xa5f   : > { %v9127_v38 = vmul.f32 %v9089_v41, %v16529_v1 }
 0xa60   : > { %12602 = vset.pattern.permute.xlu1 %v18194_v31  ;;  %v9016_v31 = vpop.permute.xlu0 %9015 }
 0xa61   : > { %v9143_v20 = vadd.f32 %v9127_v38, %v9042_v33  ;;  %8910 = vperm.xlu1 %12602, %v16871_v59   ;;  %v9045_v10 = vmul.f32 %v9016_v31, %v16538_v15 }
 0xa63   : > { %v9159_v35 = vmul.f32 %v9143_v20, %v8957_v0  ;;  %v8507_v57 = vpop.permute.xlu1 %8506 }
 0xa64   : > { %v8401_v59 = vpop.permute.xlu0 %8400  ;;  %v8540_v43 = vmul.f32 %v8507_v57, %v16516_v16 }
 0xa65   : > { %12603 = vset.pattern.permute.xlu1 %v18197_v53  ;;  %12164 = vmatprep.mubr.msk.f32.mxu0 %vm9169_vm1, %v9159_v35  ;;  %v8438_v34 = vmul.f32 %v8401_v59, %v16513_v28 }
 0xa66   : > { %9027 = vperm.xlu1 %12603, %v16863_v42   ;;  %12165 = vmatmul.mubr.msk.f32.gmra.mrb[176].mxu0 %vm9169_vm1, %v9160_v5  ;;  %v8556_v17 = vadd.f32 %v8540_v43, %v8439_v37 }
 0xa68   : > { %v8612_v47 = vpop.permute.xlu1 %8611  ;;  %v8693_v42 = vpop.permute.xlu0 %8692 }
 0xa69   : > { %v8641_v29 = vmul.f32 %v8612_v47, %v16501_v32 }
 0xa6a   : > { %9031 = vperm.xlu1 %12603, %v16832_v55  }
 0xa6b   : > { %v8742_v52 = vadd.f32 %v8726_v54, %v8641_v29 }
 0xa6c   : > { %v8810_v21 = vpop.permute.xlu0 %8809 }
 0xa6d   : > { %v8814_v11 = vpop.permute.xlu1 %8813  ;;  %v8842_v62 = vmul.f32 %v8810_v21, %v18284_v63  ;;  %v8758_v36 = vmul.f32 %v8742_v52, %v8556_v17 }
 0xa6e   : > { %9116 = vperm.xlu1 %12603, %v16836_v6   ;;  %v8725_v6 = vmul.f32 %v8693_v42, %v16504_v44  ;;  %v8843_v39 = vmul.f32 %v8814_v11, %v18284_v63 }
 0xa70   : > { %v12154_v30 = vpop.f32.mrb[168].mxu0  ;;  %v9012_v50 = vpop.permute.xlu0 %9011  ;;  %v8944_v8 = vadd.f32 %v8928_v4, %v8843_v39 }
 0xa71   : > { %v9284_v13 = vpop.f32.mrb[169].mxu0  ;;  %v9364_v46 = vmul.f32 %v12154_v30, %v12154_v30  ;;  %v9044_v27 = vmul.f32 %v9012_v50, %v16538_v15 }
 0xa72   : > { %v9101_v12 = vpop.permute.xlu1 %9100  ;;  %v9363_v45 = vmul.f32 %v9284_v13, %v9284_v13  ;;  %v8960_v9 = vmul.f32 %v8944_v8, %v8758_v36 }
 0xa73   : > { %v9130_v3 = vmul.f32 %v9101_v12, %v16529_v1 }
 0xa74   : > { %12180 = vmatprep.mubr.msk.f32.mxu1 %vm9169_vm1, %v9363_v45  ;;  %v8517_v11 = vpop.permute.xlu0 %8516 }
 0xa75   : > { %12181 = vmatmul.mubr.msk.f32.vlgmr.msra.gmra.mrb[168].mxu1 %vm9169_vm1, %v9364_v46  ;;  %v9146_v58 = vadd.f32 %v9130_v3, %v9045_v10 }
 0xa77   : > { %v8502_v53 = vpop.permute.xlu1 %8501  ;;  %v9162_v38 = vmul.f32 %v9146_v58, %v8960_v9 }
 0xa78   : > { %v8539_v56 = vmul.f32 %v8502_v53, %v16516_v16  ;;  %v8512_v12 = vpop.permute.xlu0 %8511 }
 0xa7a   : > { %v8555_v48 = vadd.f32 %v8539_v56, %v8438_v34 }
 0xa7c   : > { %v8608_v18 = vpop.permute.xlu1 %8607  ;;  %v8903_v45 = vpop.permute.xlu0 %8902 }
 0xa7d   : > { %v8640_v55 = vmul.f32 %v8608_v18, %v16501_v32  ;;  %v8929_v54 = vmul.f32 %v8903_v45, %v16519_v2 }
 0xa7f   : > { %v8741_v25 = vadd.f32 %v8725_v6, %v8640_v55 }
 0xa80   : > { %v8426_v43 = vpop.permute.xlu0 %8425 }
 0xa81   : > { %v8895_v49 = vpop.permute.xlu1 %8894  ;;  %v8757_v51 = vmul.f32 %v8741_v25, %v8555_v48 }
 0xa82   : > { %v8927_v7 = vmul.f32 %v8895_v49, %v16519_v2  ;;  %v8541_v49 = vmul.f32 %v8512_v12, %v16516_v16 }
 0xa84   : > { %v8943_v26 = vadd.f32 %v8927_v7, %v8842_v62  ;;  %v8542_v7 = vmul.f32 %v8517_v11, %v16516_v16 }
 0xa86   : > { %v9097_v22 = vpop.permute.xlu1 %9096  ;;  %v8959_v60 = vmul.f32 %v8943_v26, %v8757_v51 }
 0xa87   : > { %v9129_v61 = vmul.f32 %v9097_v22, %v16529_v1 }
 0xa89   : > { %v9145_v41 = vadd.f32 %v9129_v61, %v9044_v27  ;;  %v8713_v27 = vpop.permute.xlu0 %8712 }
 0xa8b   : > { %v9161_v24 = vmul.f32 %v9145_v41, %v8959_v60  ;;  %v8416_v33 = vpop.permute.xlu1 %8415 }
 0xa8c   : > { %v8441_v55 = vmul.f32 %v8416_v33, %v16513_v28 }
 0xa8d   : > { %12167 = vmatprep.mubr.msk.f32.mxu0 %vm9169_vm1, %v9161_v24  ;;  %v8915_v9 = vpop.permute.xlu0 %8914 }
 0xa8e   : > { %12168 = vmatmul.mubr.msk.f32.gmra.mrb[178].mxu0 %vm9169_vm1, %v9162_v38  ;;  %v8558_v50 = vadd.f32 %v8542_v7, %v8441_v55 }
 0xa90   : > { %v8620_v23 = vpop.permute.xlu1 %8619 }
 0xa91   : > { %v8643_v29 = vmul.f32 %v8620_v23, %v16501_v32  ;;  %v8421_v33 = vpop.permute.xlu0 %8420 }
 0xa94   : > { %v8705_v19 = vpop.permute.xlu1 %8704 }
 0xa95   : > { %v8728_v53 = vmul.f32 %v8705_v19, %v16504_v44 }
 0xa97   : > { %v8744_v34 = vadd.f32 %v8728_v53, %v8643_v29 }
 0xa99   : > { %v8822_v0 = vpop.permute.xlu1 %8821  ;;  %v8760_v8 = vmul.f32 %v8744_v34, %v8558_v50  ;;  %v8443_v34 = vmul.f32 %v8426_v43, %v16513_v28 }
 0xa9a   : > { %v8845_v62 = vmul.f32 %v8822_v0, %v18284_v63  ;;  %v8709_v0 = vpop.permute.xlu0 %8708 }
 0xa9d   : > { %v8907_v20 = vpop.permute.xlu1 %8906 }
 0xa9e   : > { %v8930_v6 = vmul.f32 %v8907_v20, %v16519_v2 }
 0xaa0   : > { %v8946_v52 = vadd.f32 %v8930_v6, %v8845_v62  ;;  %v8730_v6 = vmul.f32 %v8713_v27, %v16504_v44  ;;  %v8932_v62 = vmul.f32 %v8915_v9, %v16519_v2 }
 0xaa2   : > { %v9024_v14 = vpop.permute.xlu1 %9023  ;;  %v8962_v36 = vmul.f32 %v8946_v52, %v8760_v8 }
 0xaa3   : > { %v9047_v3 = vmul.f32 %v9024_v14, %v16538_v15 }
 0xaa4   : > { %v12157_v57 = vpop.f32.mrb[170].mxu0 }
 0xaa5   : > { %v9294_v5 = vpop.f32.mrb[171].mxu0  ;;  %v9366_v47 = vmul.f32 %v12157_v57, %v12157_v57 }
 0xaa6   : > { %v9109_v35 = vpop.permute.xlu1 %9108  ;;  %v9365_v40 = vmul.f32 %v9294_v5, %v9294_v5  ;;  %v8826_v5 = vpop.permute.xlu0 %8825 }
 0xaa7   : > { %v9132_v25 = vmul.f32 %v9109_v35, %v16529_v1  ;;  %v8846_v12 = vmul.f32 %v8826_v5, %v18284_v63 }
 0xaa8   : > { %12183 = vmatprep.mubr.msk.f32.mxu1 %vm9169_vm1, %v9365_v40 }
 0xaa9   : > { %12184 = vmatmul.mubr.msk.f32.gmra.mrb[170].mxu1 %vm9169_vm1, %v9366_v47  ;;  %v9148_v22 = vadd.f32 %v9132_v25, %v9047_v3  ;;  %v8729_v47 = vmul.f32 %v8709_v0, %v16504_v44 }
 0xaaa   : > { %v9113_v45 = vpop.permute.xlu0 %9112 }
 0xaab   : > { %v8411_v31 = vpop.permute.xlu1 %8410  ;;  %v9164_v41 = vmul.f32 %v9148_v22, %v8962_v36 }
 0xaac   : > { %v8440_v42 = vmul.f32 %v8411_v31, %v16513_v28 }
 0xaae   : > { %v8557_v37 = vadd.f32 %v8541_v49, %v8440_v42 }
 0xab0   : > { %v8616_v59 = vpop.permute.xlu1 %8615 }
 0xab1   : > { %v8642_v18 = vmul.f32 %v8616_v59, %v16501_v32 }
 0xab4   : > { %v8701_v30 = vpop.permute.xlu1 %8700 }
 0xab5   : > { %v8727_v46 = vmul.f32 %v8701_v30, %v16504_v44  ;;  %v8442_v30 = vmul.f32 %v8421_v33, %v16513_v28 }
 0xab7   : > { %v8743_v39 = vadd.f32 %v8727_v46, %v8642_v18  ;;  %v9133_v18 = vmul.f32 %v9113_v45, %v16529_v1 }
 0xab9   : > { %v8818_v13 = vpop.permute.xlu1 %8817  ;;  %v8759_v26 = vmul.f32 %v8743_v39, %v8557_v37 }
 0xaba   : > { %v8844_v21 = vmul.f32 %v8818_v13, %v18284_v63 }
 0xabc   : > { %v8945_v4 = vadd.f32 %v8929_v54, %v8844_v21 }
 0xabe   : > { %v9020_v56 = vpop.permute.xlu1 %9019  ;;  %v8961_v51 = vmul.f32 %v8945_v4, %v8759_v26 }
 0xabf   : > { %v9046_v10 = vmul.f32 %v9020_v56, %v16538_v15 }
 0xac2   : > { %v9105_v48 = vpop.permute.xlu1 %9104 }
 0xac3   : > { %v9131_v17 = vmul.f32 %v9105_v48, %v16529_v1 }
 0xac5   : > { %v9147_v61 = vadd.f32 %v9131_v17, %v9046_v10 }
 0xac7   : > { %v9163_v58 = vmul.f32 %v9147_v61, %v8961_v51  ;;  %v8527_v60 = vpop.permute.xlu1 %8526 }
 0xac8   : > { %v8544_v56 = vmul.f32 %v8527_v60, %v16516_v16 }
 0xac9   : > { %12170 = vmatprep.mubr.msk.f32.mxu0 %vm9169_vm1, %v9163_v58  ;;  %v12975_v58 = vmov 0.0|0.0  }
 0xaca   : > { %12171 = vmatmul.mubr.msk.f32.gmra.mrb[180].mxu0 %vm9169_vm1, %v9164_v41  ;;  %v8560_v4 = vadd.f32 %v8544_v56, %v8443_v34  ;;  %12274 = vmatprep.subr.bf16.mxu0 %v12975_v58 }
 0xacb   : > { %12298 = vmatprep.subr.bf16.mxu1 %v12975_v58 }
 0xacc   : > { %v8628_v24 = vpop.permute.xlu1 %8627 }
 0xacd   : > { %v8645_v21 = vmul.f32 %v8628_v24, %v16501_v32 }
 0xacf   : > { %v8746_v25 = vadd.f32 %v8730_v6, %v8645_v21 }
 0xad1   : > { %v8830_v38 = vpop.permute.xlu1 %8829  ;;  %v8762_v52 = vmul.f32 %v8746_v25, %v8560_v4 }
 0xad2   : > { %v8847_v49 = vmul.f32 %v8830_v38, %v18284_v63 }
 0xad5   : > { %v12160_v23 = vpop.f32.mrb[172].mxu0 }
 0xad6   : > { %v8522_v19 = vpop.permute.xlu1 %8521  ;;  %v9304_v20 = vpop.f32.mrb[173].mxu0  ;;  %v9368_v35 = vmul.f32 %v12160_v23, %v12160_v23 }
 0xad7   : > { %v9367_v14 = vmul.f32 %v9304_v20, %v9304_v20  ;;  %v8543_v31 = vmul.f32 %v8522_v19, %v16516_v16 }
 0xad9   : > { %12186 = vmatprep.mubr.msk.f32.mxu1 %vm9169_vm1, %v9367_v14  ;;  %v8559_v46 = vadd.f32 %v8543_v31, %v8442_v30 }
 0xada   : > { %12187 = vmatmul.mubr.msk.f32.gmra.mrb[172].mxu1 %vm9169_vm1, %v9368_v35 }
 0xadb   : > { %v8624_v57 = vpop.permute.xlu1 %8623 }
 0xadc   : > { %v8644_v40 = vmul.f32 %v8624_v57, %v16501_v32  ;;  %v8948_v32 = vadd.f32 %v8932_v62, %v8847_v49 }
 0xade   : > { %v8745_v13 = vadd.f32 %v8729_v47, %v8644_v40  ;;  %v8964_v63 = vmul.f32 %v8948_v32, %v8762_v52 }
 0xae0   : > { %v8911_v11 = vpop.permute.xlu1 %8910  ;;  %v8761_v55 = vmul.f32 %v8745_v13, %v8559_v46 }
 0xae1   : > { %v8931_v59 = vmul.f32 %v8911_v11, %v16519_v2 }
 0xae3   : > { %v8947_v53 = vadd.f32 %v8931_v59, %v8846_v12 }
 0xae5   : > { %v9028_v42 = vpop.permute.xlu1 %9027  ;;  %v8963_v54 = vmul.f32 %v8947_v53, %v8761_v55 }
 0xae6   : > { %v9048_v29 = vmul.f32 %v9028_v42, %v16538_v15 }
 0xae8   : > { %v9149_v39 = vadd.f32 %v9133_v18, %v9048_v29 }
 0xae9   : > { %v9032_v7 = vpop.permute.xlu1 %9031 }
 0xaea   : > { %v9165_v37 = vmul.f32 %v9149_v39, %v8963_v54  ;;  %v9049_v44 = vmul.f32 %v9032_v7, %v16538_v15 }
 0xaec   : > { %12173 = vmatprep.mubr.msk.f32.mxu0 %vm9169_vm1, %v9165_v37 }
 0xaed   : > { %v9117_v50 = vpop.permute.xlu1 %9116 }
 0xaee   : > { %v9134_v16 = vmul.f32 %v9117_v50, %v16529_v1 }
 0xaf0   : > { %v9150_v3 = vadd.f32 %v9134_v16, %v9049_v44 }
 0xaf2   : > { %v9166_v48 = vmul.f32 %v9150_v3, %v8964_v63 }
 0xaf4   : > { %12174 = vmatmul.mubr.msk.f32.gmra.mrb[182].mxu0 %vm9169_vm1, %v9166_v48 }
 0xafd   : > { %v12163_v28 = vpop.f32.mrb[174].mxu0 }
 0xafe   : > { %v9314_v43 = vpop.f32.mrb[175].mxu0  ;;  %v9370_v26 = vmul.f32 %v12163_v28, %v12163_v28 }
 0xaff   : > { %v9369_v2 = vmul.f32 %v9314_v43, %v9314_v43 }
 0xb01   : > { %12189 = vmatprep.mubr.msk.f32.mxu1 %vm9169_vm1, %v9369_v2 }
 0xb02   : > { %12190 = vmatmul.mubr.msk.f32.gmra.mrb[174].mxu1 %vm9169_vm1, %v9370_v26 }
 0xb39   : > { %v12166_v10 = vpop.f32.mrb[176].mxu0 }
 0xb3a   : > { %v9324_v17 = vpop.f32.mrb[177].mxu0  ;;  %v9372_v22 = vmul.f32 %v12166_v10, %v12166_v10 }
 0xb3b   : > { %v9371_v8 = vmul.f32 %v9324_v17, %v9324_v17 }
 0xb3d   : > { %12192 = vmatprep.mubr.msk.f32.mxu1 %vm9169_vm1, %v9371_v8 }
 0xb3e   : > { %12193 = vmatmul.mubr.msk.f32.gmra.mrb[176].mxu1 %vm9169_vm1, %v9372_v22 }
 0xb48   : > { %v17021_v1 = vpop.f32.mrb[168].mxu1 }
 0xb49   : > { %9593 = vrot.lane.b32.xlu1 %v17021_v1, %s18072_s18  ;;  %v17025_v15 = vpop.f32.mrb[169].mxu1 }
 0xb4a   : > { %9591 = vrot.lane.b32.xlu0 %v17025_v15, %s18072_s18 }
 0xb4d   : > { %9641 = vrot.lane.b32.xlu1 %v17021_v1, %s18070_s30 }
 0xb4e   : > { %9639 = vrot.lane.b32.xlu0 %v17025_v15, %s18070_s30 }
 0xb51   : > { %9689 = vrot.lane.b32.xlu1 %v17021_v1, %s18068_s28 }
 0xb52   : > { %9687 = vrot.lane.b32.xlu0 %v17025_v15, %s18068_s28 }
 0xb55   : > { %9737 = vrot.lane.b32.xlu1 %v17021_v1, %s18066_s0 }
 0xb56   : > { %9735 = vrot.lane.b32.xlu0 %v17025_v15, %s18066_s0 }
 0xb59   : > { %9785 = vrot.lane.b32.xlu1 %v17021_v1, %s18064_s19 }
 0xb5a   : > { %9783 = vrot.lane.b32.xlu0 %v17025_v15, %s18064_s19 }
 0xb5d   : > { %9833 = vrot.lane.b32.xlu1 %v17021_v1, %s18062_s20 }
 0xb5e   : > { %9831 = vrot.lane.b32.xlu0 %v17025_v15, %s18062_s20 }
 0xb61   : > { %v12169_v27 = vpop.f32.mrb[178].mxu0  ;;  %9881 = vrot.lane.b32.xlu1 %v17021_v1, %s18060_s21 }
 0xb62   : > { %v9334_v51 = vpop.f32.mrb[179].mxu0  ;;  %9879 = vrot.lane.b32.xlu0 %v17025_v15, %s18060_s21  ;;  %v9374_v36 = vmul.f32 %v12169_v27, %v12169_v27 }
 0xb63   : > { %v9373_v61 = vmul.f32 %v9334_v51, %v9334_v51 }
 0xb65   : > { %12195 = vmatprep.mubr.msk.f32.mxu1 %vm9169_vm1, %v9373_v61  ;;  %9929 = vrot.lane.b32.xlu1 %v17021_v1, %s18058_s22 }
 0xb66   : > { %12196 = vmatmul.mubr.msk.f32.gmra.mrb[178].mxu1 %vm9169_vm1, %v9374_v36  ;;  %9927 = vrot.lane.b32.xlu0 %v17025_v15, %s18058_s22 }
 0xb69   : > { %9977 = vrot.lane.b32.xlu1 %v17021_v1, %s18056_s23 }
 0xb6a   : > { %9975 = vrot.lane.b32.xlu0 %v17025_v15, %s18056_s23 }
 0xb6d   : > { %10025 = vrot.lane.b32.xlu1 %v17021_v1, %s18054_s25 }
 0xb6e   : > { %10023 = vrot.lane.b32.xlu0 %v17025_v15, %s18054_s25 }
 0xb71   : > { %10073 = vrot.lane.b32.xlu1 %v17021_v1, %s18052_s29 }
 0xb72   : > { %10071 = vrot.lane.b32.xlu0 %v17025_v15, %s18052_s29 }
 0xb75   : > { %10121 = vrot.lane.b32.xlu1 %v17021_v1, %s18050_s26 }
 0xb76   : > { %10119 = vrot.lane.b32.xlu0 %v17025_v15, %s18050_s26 }
 0xb79   : > { %10169 = vrot.lane.b32.xlu1 %v17021_v1, %s18079_s15 }
 0xb7a   : > { %10167 = vrot.lane.b32.xlu0 %v17025_v15, %s18079_s15 }
 0xb7c   : > { %v17085_v60 = vpop.f32.mrb[170].mxu1 }
 0xb7d   : > { %10217 = vrot.lane.b32.xlu1 %v17021_v1, %s18076_s17  ;;  %v17087_v41 = vpop.f32.mrb[171].mxu1 }
 0xb7e   : > { %10215 = vrot.lane.b32.xlu0 %v17025_v15, %s18076_s17 }
 0xb81   : > { %10265 = vrot.lane.b32.xlu1 %v17021_v1, %s18074_s24 }
 0xb82   : > { %10263 = vrot.lane.b32.xlu0 %v17025_v15, %s18074_s24 }
 0xb85   : > { %9597 = vrot.lane.b32.xlu1 %v17085_v60, %s18072_s18 }
 0xb86   : > { %9595 = vrot.lane.b32.xlu0 %v17087_v41, %s18072_s18 }
 0xb89   : > { %9645 = vrot.lane.b32.xlu1 %v17085_v60, %s18070_s30 }
 0xb8a   : > { %9643 = vrot.lane.b32.xlu0 %v17087_v41, %s18070_s30 }
 0xb8d   : > { %9693 = vrot.lane.b32.xlu1 %v17085_v60, %s18068_s28 }
 0xb8e   : > { %9691 = vrot.lane.b32.xlu0 %v17087_v41, %s18068_s28 }
 0xb91   : > { %9741 = vrot.lane.b32.xlu1 %v17085_v60, %s18066_s0 }
 0xb92   : > { %9739 = vrot.lane.b32.xlu0 %v17087_v41, %s18066_s0 }
 0xb95   : > { %9789 = vrot.lane.b32.xlu1 %v17085_v60, %s18064_s19 }
 0xb96   : > { %9787 = vrot.lane.b32.xlu0 %v17087_v41, %s18064_s19 }
 0xb99   : > { %9837 = vrot.lane.b32.xlu1 %v17085_v60, %s18062_s20 }
 0xb9a   : > { %9835 = vrot.lane.b32.xlu0 %v17087_v41, %s18062_s20 }
 0xb9d   : > { %v12172_v9 = vpop.f32.mrb[180].mxu0  ;;  %9885 = vrot.lane.b32.xlu1 %v17085_v60, %s18060_s21 }
 0xb9e   : > { %v9344_v24 = vpop.f32.mrb[181].mxu0  ;;  %9883 = vrot.lane.b32.xlu0 %v17087_v41, %s18060_s21  ;;  %v9376_v38 = vmul.f32 %v12172_v9, %v12172_v9 }
 0xb9f   : > { %v9375_v33 = vmul.f32 %v9344_v24, %v9344_v24 }
 0xba1   : > { %12198 = vmatprep.mubr.msk.f32.mxu1 %vm9169_vm1, %v9375_v33  ;;  %9933 = vrot.lane.b32.xlu1 %v17085_v60, %s18058_s22 }
 0xba2   : > { %12199 = vmatmul.mubr.msk.f32.gmra.mrb[180].mxu1 %vm9169_vm1, %v9376_v38  ;;  %9931 = vrot.lane.b32.xlu0 %v17087_v41, %s18058_s22 }
 0xba5   : > { %9981 = vrot.lane.b32.xlu1 %v17085_v60, %s18056_s23 }
 0xba6   : > { %9979 = vrot.lane.b32.xlu0 %v17087_v41, %s18056_s23 }
 0xba9   : > { %10029 = vrot.lane.b32.xlu1 %v17085_v60, %s18054_s25 }
 0xbaa   : > { %10027 = vrot.lane.b32.xlu0 %v17087_v41, %s18054_s25 }
 0xbad   : > { %v17135_v23 = vpop.f32.mrb[172].mxu1  ;;  %10077 = vrot.lane.b32.xlu1 %v17085_v60, %s18052_s29 }
 0xbae   : > { %v17139_v19 = vpop.f32.mrb[173].mxu1  ;;  %10075 = vrot.lane.b32.xlu0 %v17087_v41, %s18052_s29 }
 0xbb1   : > { %10125 = vrot.lane.b32.xlu1 %v17085_v60, %s18050_s26 }
 0xbb2   : > { %10123 = vrot.lane.b32.xlu0 %v17087_v41, %s18050_s26 }
 0xbb5   : > { %10173 = vrot.lane.b32.xlu1 %v17085_v60, %s18079_s15 }
 0xbb6   : > { %10171 = vrot.lane.b32.xlu0 %v17087_v41, %s18079_s15 }
 0xbb9   : > { %10221 = vrot.lane.b32.xlu1 %v17085_v60, %s18076_s17 }
 0xbba   : > { %10219 = vrot.lane.b32.xlu0 %v17087_v41, %s18076_s17 }
 0xbbb   : > { %v9594_v0 = vpop.permute.xlu1 %9593 }
 0xbbc   : > { %v9592_v20 = vpop.permute.xlu0 %9591  ;;  %v10313_v34 = vsel %vm10311_vm12, %v17021_v1, %v9594_v0  ;;  %v10565_v0 = vld [vmem:[%s17908_s12 + $0x8] sm:$0xff] }
 0xbbd   : > { %10269 = vrot.lane.b32.xlu1 %v17085_v60, %s18074_s24  ;;  %v10312_v62 = vsel %vm10311_vm12, %v17025_v15, %v9592_v20 }
 0xbbe   : > { %10267 = vrot.lane.b32.xlu0 %v17087_v41, %s18074_s24 }
 0xbbf   : > { %v9642_v14 = vpop.permute.xlu1 %9641 }
 0xbc0   : > { %v9640_v35 = vpop.permute.xlu0 %9639  ;;  %v10330_v25 = vsel %vm10328_vm13, %v10313_v34, %v9642_v14 }
 0xbc1   : > { %9601 = vrot.lane.b32.xlu1 %v17135_v23, %s18072_s18  ;;  %v10329_v4 = vsel %vm10328_vm13, %v10312_v62, %v9640_v35 }
 0xbc2   : > { %9599 = vrot.lane.b32.xlu0 %v17139_v19, %s18072_s18 }
 0xbc3   : > { %v9690_v57 = vpop.permute.xlu1 %9689 }
 0xbc4   : > { %v9688_v5 = vpop.permute.xlu0 %9687  ;;  %v10347_v32 = vsel %vm10345_vm11, %v10330_v25, %v9690_v57  ;;  %v10564_v57 = vld [vmem:[%s17908_s12] sm:$0xff] }
 0xbc5   : > { %9649 = vrot.lane.b32.xlu1 %v17135_v23, %s18070_s30  ;;  %v10346_v52 = vsel %vm10345_vm11, %v10329_v4, %v9688_v5 }
 0xbc6   : > { %9647 = vrot.lane.b32.xlu0 %v17139_v19, %s18070_s30 }
 0xbc7   : > { %v12175_v40 = vpop.f32.mrb[182].mxu0  ;;  %v9738_v47 = vpop.permute.xlu1 %9737 }
 0xbc8   : > { %v9354_v31 = vpop.f32.mrb[183].mxu0  ;;  %v9736_v59 = vpop.permute.xlu0 %9735  ;;  %v9378_v30 = vmul.f32 %v12175_v40, %v12175_v40  ;;  %v10363_v44 = vsel %vm9169_vm1, %v10347_v32, %v9738_v47 }
 0xbc9   : > { %v9377_v11 = vmul.f32 %v9354_v31, %v9354_v31  ;;  %9697 = vrot.lane.b32.xlu1 %v17135_v23, %s18068_s28  ;;  %v10362_v16 = vsel %vm9169_vm1, %v10346_v52, %v9736_v59 }
 0xbca   : > { %9695 = vrot.lane.b32.xlu0 %v17139_v19, %s18068_s28 }
 0xbcb   : > { %12201 = vmatprep.mubr.msk.f32.mxu1 %vm9169_vm1, %v9377_v11  ;;  %v9786_v12 = vpop.permute.xlu1 %9785 }
 0xbcc   : > { %12202 = vmatmul.mubr.msk.f32.gmra.mrb[182].mxu1 %vm9169_vm1, %v9378_v30  ;;  %v9784_v13 = vpop.permute.xlu0 %9783  ;;  %v10380_v63 = vsel %vm10378_vm3, %v10363_v44, %v9786_v12 }
 0xbcd   : > { %9745 = vrot.lane.b32.xlu1 %v17135_v23, %s18066_s0  ;;  %v10379_v3 = vsel %vm10378_vm3, %v10362_v16, %v9784_v13 }
 0xbce   : > { %9743 = vrot.lane.b32.xlu0 %v17139_v19, %s18066_s0 }
 0xbcf   : > { %v9834_v45 = vpop.permute.xlu1 %9833 }
 0xbd0   : > { %v9832_v46 = vpop.permute.xlu0 %9831  ;;  %v10397_v48 = vsel %vm10395_vm14, %v10380_v63, %v9834_v45 }
 0xbd1   : > { %9793 = vrot.lane.b32.xlu1 %v17135_v23, %s18064_s19  ;;  %v10396_v43 = vsel %vm10395_vm14, %v10379_v3, %v9832_v46 }
 0xbd2   : > { %9791 = vrot.lane.b32.xlu0 %v17139_v19, %s18064_s19 }
 0xbd3   : > { %v9882_v53 = vpop.permute.xlu1 %9881 }
 0xbd4   : > { %v9880_v18 = vpop.permute.xlu0 %9879  ;;  %v10414_v2 = vsel %vm10412_vm7, %v10397_v48, %v9882_v53 }
 0xbd5   : > { %v17181_v42 = vpop.f32.mrb[174].mxu1  ;;  %9841 = vrot.lane.b32.xlu1 %v17135_v23, %s18062_s20  ;;  %v10413_v10 = vsel %vm10412_vm7, %v10396_v43, %v9880_v18 }
 0xbd6   : > { %v17185_v21 = vpop.f32.mrb[175].mxu1  ;;  %9839 = vrot.lane.b32.xlu0 %v17139_v19, %s18062_s20 }
 0xbd7   : > { %v9930_v55 = vpop.permute.xlu1 %9929 }
 0xbd8   : > { %v9928_v29 = vpop.permute.xlu0 %9927  ;;  %v10430_v17 = vsel %vm18291_vm6, %v10414_v2, %v9930_v55  ;;  %vm18296_vm6 = vmmov %vm18292_vm2 }
 0xbd9   : > { %9889 = vrot.lane.b32.xlu1 %v17135_v23, %s18060_s21  ;;  %v10429_v8 = vsel %vm18292_vm2, %v10413_v10, %v9928_v29 }
 0xbda   : > { %9887 = vrot.lane.b32.xlu0 %v17139_v19, %s18060_s21 }
 0xbdb   : > { %v9978_v6 = vpop.permute.xlu1 %9977 }
 0xbdc   : > { %v9976_v56 = vpop.permute.xlu0 %9975  ;;  %v10447_v22 = vsel %vm10445_vm4, %v10430_v17, %v9978_v6 }
 0xbdd   : > { %9937 = vrot.lane.b32.xlu1 %v17135_v23, %s18058_s22  ;;  %v10446_v1 = vsel %vm10445_vm4, %v10429_v8, %v9976_v56 }
 0xbde   : > { %9935 = vrot.lane.b32.xlu0 %v17139_v19, %s18058_s22 }
 0xbdf   : > { %v10026_v49 = vpop.permute.xlu1 %10025 }
 0xbe0   : > { %v10024_v54 = vpop.permute.xlu0 %10023  ;;  %v10464_v15 = vsel %vm10462_vm5, %v10447_v22, %v10026_v49 }
 0xbe1   : > { %9985 = vrot.lane.b32.xlu1 %v17135_v23, %s18056_s23  ;;  %v10463_v51 = vsel %vm10462_vm5, %v10446_v1, %v10024_v54 }
 0xbe2   : > { %9983 = vrot.lane.b32.xlu0 %v17139_v19, %s18056_s23  ;;  %s18293_s23 = smov 36  }
 0xbe3   : > { %v10074_v39 = vpop.permute.xlu1 %10073 }
 0xbe4   : > { %v10072_v7 = vpop.permute.xlu0 %10071  ;;  %v10481_v61 = vsel %vm10479_vm0, %v10464_v15, %v10074_v39 }
 0xbe5   : > { %10033 = vrot.lane.b32.xlu1 %v17135_v23, %s18054_s25  ;;  %v10480_v9 = vsel %vm10479_vm0, %v10463_v51, %v10072_v7 }
 0xbe6   : > { %10031 = vrot.lane.b32.xlu0 %v17139_v19, %s18054_s25  ;;  %s18294_s25 = smov 40  }
 0xbe7   : > { %v10122_v37 = vpop.permute.xlu1 %10121 }
 0xbe8   : > { %v10120_v50 = vpop.permute.xlu0 %10119  ;;  %v10498_v24 = vsel %vm10496_vm15, %v10481_v61, %v10122_v37 }
 0xbe9   : > { %10081 = vrot.lane.b32.xlu1 %v17135_v23, %s18052_s29  ;;  %v10497_v33 = vsel %vm10496_vm15, %v10480_v9, %v10120_v50 }
 0xbea   : > { %10079 = vrot.lane.b32.xlu0 %v17139_v19, %s18052_s29  ;;  %s18295_s29 = smov 44  }
 0xbeb   : > { %v10170_v28 = vpop.permute.xlu1 %10169 }
 0xbec   : > { %v10168_v26 = vpop.permute.xlu0 %10167  ;;  %v10515_v38 = vsel %vm10513_vm8, %v10498_v24, %v10170_v28 }
 0xbed   : > { %10129 = vrot.lane.b32.xlu1 %v17135_v23, %s18050_s26  ;;  %v10514_v20 = vsel %vm10513_vm8, %v10497_v33, %v10168_v26 }
 0xbee   : > { %10127 = vrot.lane.b32.xlu0 %v17139_v19, %s18050_s26  ;;  %s18297_s26 = smov 48  }
 0xbef   : > { %v10218_v27 = vpop.permute.xlu1 %10217 }
 0xbf0   : > { %v10216_v36 = vpop.permute.xlu0 %10215  ;;  %v10532_v14 = vsel %vm10530_vm9, %v10515_v38, %v10218_v27 }
 0xbf1   : > { %10177 = vrot.lane.b32.xlu1 %v17135_v23, %s18079_s15  ;;  %v10531_v5 = vsel %vm10530_vm9, %v10514_v20, %v10216_v36 }
 0xbf2   : > { %10175 = vrot.lane.b32.xlu0 %v17139_v19, %s18079_s15 }
 0xbf3   : > { %v10266_v35 = vpop.permute.xlu1 %10265 }
 0xbf4   : > { %v10549_v40 = vsel %vm10547_vm10, %v10532_v14, %v10266_v35  ;;  %v10264_v47 = vpop.permute.xlu0 %10263 }
 0xbf5   : > { %v10581_v31 = vmul.f32 %v10565_v0, %v10549_v40  ;;  %v10548_v11 = vsel %vm10547_vm10, %v10531_v5, %v10264_v47  ;;  %10225 = vrot.lane.b32.xlu1 %v17135_v23, %s18076_s17 }
 0xbf6   : > { %v10580_v59 = vmul.f32 %v10564_v57, %v10548_v11  ;;  %10223 = vrot.lane.b32.xlu0 %v17139_v19, %s18076_s17 }
 0xbf7   : > { %v9598_v30 = vpop.permute.xlu1 %9597 }
 0xbf8   : > { %v12275_v12 = vpack.c.bf16 %v10581_v31, %v10580_v59  ;;  %v9596_v13 = vpop.permute.xlu0 %9595  ;;  %v10315_v63 = vsel %vm10311_vm12, %v17085_v60, %v9598_v30  ;;  %v10567_v31 = vld [vmem:[%s17908_s12 + $0x18] sm:$0xff] }
 0xbf9   : > { %10273 = vrot.lane.b32.xlu1 %v17135_v23, %s18074_s24  ;;  %v10314_v3 = vsel %vm10311_vm12, %v17087_v41, %v9596_v13 }
 0xbfa   : > { %10271 = vrot.lane.b32.xlu0 %v17139_v19, %s18074_s24  ;;  %12276 = vmatpush3.bf16.msra.mxu0 %v12275_v12  ;;  %v10566_v12 = vld [vmem:[%s17908_s12 + $0x10] sm:$0xff] }
 0xbfb   : > { %v9646_v45 = vpop.permute.xlu1 %9645  ;;  %12277 = vmatprep.subr.bf16.mxu0 %v12975_v58 }
 0xbfc   : > { %v9644_v46 = vpop.permute.xlu0 %9643  ;;  %v10332_v48 = vsel %vm10328_vm13, %v10315_v63, %v9646_v45 }
 0xbfd   : > { %9605 = vrot.lane.b32.xlu1 %v17181_v42, %s18072_s18  ;;  %v10331_v43 = vsel %vm10328_vm13, %v10314_v3, %v9644_v46 }
 0xbfe   : > { %9603 = vrot.lane.b32.xlu0 %v17185_v21, %s18072_s18 }
 0xbff   : > { %v9694_v53 = vpop.permute.xlu1 %9693 }
 0xc00   : > { %v9692_v18 = vpop.permute.xlu0 %9691  ;;  %v10349_v2 = vsel %vm10345_vm11, %v10332_v48, %v9694_v53 }
 0xc01   : > { %9653 = vrot.lane.b32.xlu1 %v17181_v42, %s18070_s30  ;;  %v10348_v10 = vsel %vm10345_vm11, %v10331_v43, %v9692_v18 }
 0xc02   : > { %9651 = vrot.lane.b32.xlu0 %v17185_v21, %s18070_s30 }
 0xc03   : > { %v9742_v55 = vpop.permute.xlu1 %9741 }
 0xc04   : > { %v9740_v29 = vpop.permute.xlu0 %9739  ;;  %v10365_v17 = vsel %vm9169_vm1, %v10349_v2, %v9742_v55 }
 0xc05   : > { %9701 = vrot.lane.b32.xlu1 %v17181_v42, %s18068_s28  ;;  %v10364_v60 = vsel %vm9169_vm1, %v10348_v10, %v9740_v29 }
 0xc06   : > { %9699 = vrot.lane.b32.xlu0 %v17185_v21, %s18068_s28 }
 0xc07   : > { %v9790_v6 = vpop.permute.xlu1 %9789 }
 0xc08   : > { %v9788_v56 = vpop.permute.xlu0 %9787  ;;  %v10382_v8 = vsel %vm10378_vm3, %v10365_v17, %v9790_v6 }
 0xc09   : > { %9749 = vrot.lane.b32.xlu1 %v17181_v42, %s18066_s0  ;;  %v10381_v41 = vsel %vm10378_vm3, %v10364_v60, %v9788_v56 }
 0xc0a   : > { %9747 = vrot.lane.b32.xlu0 %v17185_v21, %s18066_s0 }
 0xc0b   : > { %v9838_v49 = vpop.permute.xlu1 %9837 }
 0xc0c   : > { %v9836_v54 = vpop.permute.xlu0 %9835  ;;  %v10399_v22 = vsel %vm10395_vm14, %v10382_v8, %v9838_v49 }
 0xc0d   : > { %9797 = vrot.lane.b32.xlu1 %v17181_v42, %s18064_s19  ;;  %v10398_v15 = vsel %vm10395_vm14, %v10381_v41, %v9836_v54 }
 0xc0e   : > { %9795 = vrot.lane.b32.xlu0 %v17185_v21, %s18064_s19  ;;  %s18298_s19 = smov 20  }
 0xc0f   : > { %v9886_v39 = vpop.permute.xlu1 %9885 }
 0xc10   : > { %v9884_v34 = vpop.permute.xlu0 %9883  ;;  %v10416_v27 = vsel %vm10412_vm7, %v10399_v22, %v9886_v39 }
 0xc11   : > { %v17284_v7 = vpop.f32.mrb[176].mxu1  ;;  %9845 = vrot.lane.b32.xlu1 %v17181_v42, %s18062_s20  ;;  %v10415_v61 = vsel %vm10412_vm7, %v10398_v15, %v9884_v34 }
 0xc12   : > { %v17288_v62 = vpop.f32.mrb[177].mxu1  ;;  %9843 = vrot.lane.b32.xlu0 %v17185_v21, %s18062_s20  ;;  %s18299_s20 = smov 24  }
 0xc13   : > { %v9934_v25 = vpop.permute.xlu1 %9933 }
 0xc14   : > { %v9932_v37 = vpop.permute.xlu0 %9931  ;;  %v10432_v36 = vsel %vm18296_vm6, %v10416_v27, %v9934_v25  ;;  %vm18302_vm6 = vmmov %vm18292_vm2 }
 0xc15   : > { %9893 = vrot.lane.b32.xlu1 %v17181_v42, %s18060_s21  ;;  %v10431_v9 = vsel %vm18292_vm2, %v10415_v61, %v9932_v37 }
 0xc16   : > { %9891 = vrot.lane.b32.xlu0 %v17185_v21, %s18060_s21  ;;  %s18300_s21 = smov 28  }
 0xc17   : > { %v9982_v4 = vpop.permute.xlu1 %9981 }
 0xc18   : > { %v9980_v32 = vpop.permute.xlu0 %9979  ;;  %v10449_v24 = vsel %vm10445_vm4, %v10432_v36, %v9982_v4 }
 0xc19   : > { %9941 = vrot.lane.b32.xlu1 %v17181_v42, %s18058_s22  ;;  %v10448_v33 = vsel %vm10445_vm4, %v10431_v9, %v9980_v32 }
 0xc1a   : > { %9939 = vrot.lane.b32.xlu0 %v17185_v21, %s18058_s22  ;;  %s18301_s22 = smov 32  }
 0xc1b   : > { %v10030_v50 = vpop.permute.xlu1 %10029 }
 0xc1c   : > { %v10028_v52 = vpop.permute.xlu0 %10027  ;;  %v10466_v38 = vsel %vm10462_vm5, %v10449_v24, %v10030_v50 }
 0xc1d   : > { %9989 = vrot.lane.b32.xlu1 %v17181_v42, %s18293_s23  ;;  %v10465_v20 = vsel %vm10462_vm5, %v10448_v33, %v10028_v52 }
 0xc1e   : > { %9987 = vrot.lane.b32.xlu0 %v17185_v21, %s18293_s23 }
 0xc1f   : > { %v10078_v44 = vpop.permute.xlu1 %10077 }
 0xc20   : > { %v10076_v16 = vpop.permute.xlu0 %10075  ;;  %v10483_v14 = vsel %vm10479_vm0, %v10466_v38, %v10078_v44 }
 0xc21   : > { %10037 = vrot.lane.b32.xlu1 %v17181_v42, %s18294_s25  ;;  %v10482_v57 = vsel %vm10479_vm0, %v10465_v20, %v10076_v16 }
 0xc22   : > { %10035 = vrot.lane.b32.xlu0 %v17185_v21, %s18294_s25 }
 0xc23   : > { %v10126_v28 = vpop.permute.xlu1 %10125 }
 0xc24   : > { %v10124_v26 = vpop.permute.xlu0 %10123  ;;  %v10500_v5 = vsel %vm10496_vm15, %v10483_v14, %v10126_v28 }
 0xc25   : > { %10085 = vrot.lane.b32.xlu1 %v17181_v42, %s18295_s29  ;;  %v10499_v40 = vsel %vm10496_vm15, %v10482_v57, %v10124_v26 }
 0xc26   : > { %10083 = vrot.lane.b32.xlu0 %v17185_v21, %s18295_s29 }
 0xc27   : > { %v10174_v1 = vpop.permute.xlu1 %10173 }
 0xc28   : > { %v10172_v51 = vpop.permute.xlu0 %10171  ;;  %v10517_v47 = vsel %vm10513_vm8, %v10500_v5, %v10174_v1 }
 0xc29   : > { %10133 = vrot.lane.b32.xlu1 %v17181_v42, %s18297_s26  ;;  %v10516_v11 = vsel %vm10513_vm8, %v10499_v40, %v10172_v51 }
 0xc2a   : > { %10131 = vrot.lane.b32.xlu0 %v17185_v21, %s18297_s26 }
 0xc2b   : > { %v10222_v0 = vpop.permute.xlu1 %10221 }
 0xc2c   : > { %v10220_v35 = vpop.permute.xlu0 %10219  ;;  %v10534_v59 = vsel %vm10530_vm9, %v10517_v47, %v10222_v0 }
 0xc2d   : > { %10181 = vrot.lane.b32.xlu1 %v17181_v42, %s18079_s15  ;;  %v10533_v13 = vsel %vm10530_vm9, %v10516_v11, %v10220_v35 }
 0xc2e   : > { %10179 = vrot.lane.b32.xlu0 %v17185_v21, %s18079_s15 }
 0xc2f   : > { %v10270_v30 = vpop.permute.xlu1 %10269 }
 0xc30   : > { %v10551_v45 = vsel %vm10547_vm10, %v10534_v59, %v10270_v30  ;;  %v10268_v46 = vpop.permute.xlu0 %10267 }
 0xc31   : > { %v10583_v53 = vmul.f32 %v10567_v31, %v10551_v45  ;;  %v10550_v18 = vsel %vm10547_vm10, %v10533_v13, %v10268_v46  ;;  %10229 = vrot.lane.b32.xlu1 %v17181_v42, %s18076_s17 }
 0xc32   : > { %v10582_v55 = vmul.f32 %v10566_v12, %v10550_v18  ;;  %10227 = vrot.lane.b32.xlu0 %v17185_v21, %s18076_s17 }
 0xc33   : > { %v9602_v29 = vpop.permute.xlu1 %9601 }
 0xc34   : > { %v12278_v6 = vpack.c.bf16 %v10583_v53, %v10582_v55  ;;  %v9600_v56 = vpop.permute.xlu0 %9599  ;;  %v10317_v8 = vsel %vm10311_vm12, %v17135_v23, %v9602_v29  ;;  %v10569_v53 = vld [vmem:[%s17908_s12 + $0x28] sm:$0xff] }
 0xc35   : > { %10277 = vrot.lane.b32.xlu1 %v17181_v42, %s18074_s24  ;;  %v10316_v41 = vsel %vm10311_vm12, %v17139_v19, %v9600_v56 }
 0xc36   : > { %10275 = vrot.lane.b32.xlu0 %v17185_v21, %s18074_s24  ;;  %12279 = vmatpush3.bf16.msra.mxu0 %v12278_v6  ;;  %v10568_v6 = vld [vmem:[%s17908_s12 + $0x20] sm:$0xff] }
 0xc37   : > { %v9650_v49 = vpop.permute.xlu1 %9649  ;;  %12280 = vmatprep.subr.bf16.mxu0 %v12975_v58 }
 0xc38   : > { %v9648_v39 = vpop.permute.xlu0 %9647  ;;  %v10334_v22 = vsel %vm10328_vm13, %v10317_v8, %v9650_v49 }
 0xc39   : > { %v17367_v54 = vpop.f32.mrb[178].mxu1  ;;  %9609 = vrot.lane.b32.xlu1 %v17284_v7, %s18072_s18  ;;  %v10333_v15 = vsel %vm10328_vm13, %v10316_v41, %v9648_v39 }
 0xc3a   : > { %v17371_v34 = vpop.f32.mrb[179].mxu1  ;;  %9607 = vrot.lane.b32.xlu0 %v17288_v62, %s18072_s18  ;;  %s18303_s18 = smov 4  }
 0xc3b   : > { %v9698_v25 = vpop.permute.xlu1 %9697 }
 0xc3c   : > { %v9696_v37 = vpop.permute.xlu0 %9695  ;;  %v10351_v27 = vsel %vm10345_vm11, %v10334_v22, %v9698_v25 }
 0xc3d   : > { %9657 = vrot.lane.b32.xlu1 %v17284_v7, %s18070_s30  ;;  %v10350_v61 = vsel %vm10345_vm11, %v10333_v15, %v9696_v37 }
 0xc3e   : > { %9655 = vrot.lane.b32.xlu0 %v17288_v62, %s18070_s30  ;;  %s18304_s30 = smov 8  }
 0xc3f   : > { %v9746_v4 = vpop.permute.xlu1 %9745 }
 0xc40   : > { %v9744_v32 = vpop.permute.xlu0 %9743  ;;  %v10367_v36 = vsel %vm9169_vm1, %v10351_v27, %v9746_v4 }
 0xc41   : > { %9705 = vrot.lane.b32.xlu1 %v17284_v7, %s18068_s28  ;;  %v10366_v23 = vsel %vm9169_vm1, %v10350_v61, %v9744_v32 }
 0xc42   : > { %9703 = vrot.lane.b32.xlu0 %v17288_v62, %s18068_s28  ;;  %s18305_s28 = smov 12  }
 0xc43   : > { %v9794_v50 = vpop.permute.xlu1 %9793 }
 0xc44   : > { %v9792_v52 = vpop.permute.xlu0 %9791  ;;  %v10384_v9 = vsel %vm10378_vm3, %v10367_v36, %v9794_v50 }
 0xc45   : > { %9753 = vrot.lane.b32.xlu1 %v17284_v7, %s18066_s0  ;;  %v10383_v19 = vsel %vm10378_vm3, %v10366_v23, %v9792_v52 }
 0xc46   : > { %9751 = vrot.lane.b32.xlu0 %v17288_v62, %s18066_s0  ;;  %s18306_s0 = smov 16  }
 0xc47   : > { %v9842_v44 = vpop.permute.xlu1 %9841 }
 0xc48   : > { %v9840_v16 = vpop.permute.xlu0 %9839  ;;  %v10401_v24 = vsel %vm10395_vm14, %v10384_v9, %v9842_v44 }
 0xc49   : > { %9801 = vrot.lane.b32.xlu1 %v17284_v7, %s18298_s19  ;;  %v10400_v38 = vsel %vm10395_vm14, %v10383_v19, %v9840_v16 }
 0xc4a   : > { %9799 = vrot.lane.b32.xlu0 %v17288_v62, %s18298_s19 }
 0xc4b   : > { %v9890_v63 = vpop.permute.xlu1 %9889 }
 0xc4c   : > { %v9888_v3 = vpop.permute.xlu0 %9887  ;;  %v10418_v0 = vsel %vm10412_vm7, %v10401_v24, %v9890_v63 }
 0xc4d   : > { %9849 = vrot.lane.b32.xlu1 %v17284_v7, %s18299_s20  ;;  %v10417_v14 = vsel %vm10412_vm7, %v10400_v38, %v9888_v3 }
 0xc4e   : > { %9847 = vrot.lane.b32.xlu0 %v17288_v62, %s18299_s20 }
 0xc4f   : > { %v9938_v48 = vpop.permute.xlu1 %9937 }
 0xc50   : > { %v9936_v28 = vpop.permute.xlu0 %9935  ;;  %v10434_v35 = vsel %vm18302_vm6, %v10418_v0, %v9938_v48  ;;  %vm18307_vm6 = vmmov %vm18292_vm2 }
 0xc51   : > { %9897 = vrot.lane.b32.xlu1 %v17284_v7, %s18300_s21  ;;  %v10433_v57 = vsel %vm18292_vm2, %v10417_v14, %v9936_v28 }
 0xc52   : > { %9895 = vrot.lane.b32.xlu0 %v17288_v62, %s18300_s21 }
 0xc53   : > { %v9986_v43 = vpop.permute.xlu1 %9985 }
 0xc54   : > { %v9984_v2 = vpop.permute.xlu0 %9983  ;;  %v10451_v5 = vsel %vm10445_vm4, %v10434_v35, %v9986_v43 }
 0xc55   : > { %9945 = vrot.lane.b32.xlu1 %v17284_v7, %s18301_s22  ;;  %v10450_v40 = vsel %vm10445_vm4, %v10433_v57, %v9984_v2 }
 0xc56   : > { %9943 = vrot.lane.b32.xlu0 %v17288_v62, %s18301_s22 }
 0xc57   : > { %v10034_v26 = vpop.permute.xlu1 %10033 }
 0xc58   : > { %v10032_v10 = vpop.permute.xlu0 %10031  ;;  %v10468_v47 = vsel %vm10462_vm5, %v10451_v5, %v10034_v26 }
 0xc59   : > { %9993 = vrot.lane.b32.xlu1 %v17284_v7, %s18293_s23  ;;  %v10467_v11 = vsel %vm10462_vm5, %v10450_v40, %v10032_v10 }
 0xc5a   : > { %9991 = vrot.lane.b32.xlu0 %v17288_v62, %s18293_s23 }
 0xc5b   : > { %v10082_v17 = vpop.permute.xlu1 %10081 }
 0xc5c   : > { %v10080_v60 = vpop.permute.xlu0 %10079  ;;  %v10485_v59 = vsel %vm10479_vm0, %v10468_v47, %v10082_v17 }
 0xc5d   : > { %10041 = vrot.lane.b32.xlu1 %v17284_v7, %s18294_s25  ;;  %v10484_v12 = vsel %vm10479_vm0, %v10467_v11, %v10080_v60 }
 0xc5e   : > { %10039 = vrot.lane.b32.xlu0 %v17288_v62, %s18294_s25 }
 0xc5f   : > { %v10130_v1 = vpop.permute.xlu1 %10129 }
 0xc60   : > { %v10128_v51 = vpop.permute.xlu0 %10127  ;;  %v10502_v13 = vsel %vm10496_vm15, %v10485_v59, %v10130_v1 }
 0xc61   : > { %10089 = vrot.lane.b32.xlu1 %v17284_v7, %s18295_s29  ;;  %v10501_v45 = vsel %vm10496_vm15, %v10484_v12, %v10128_v51 }
 0xc62   : > { %10087 = vrot.lane.b32.xlu0 %v17288_v62, %s18295_s29 }
 0xc63   : > { %v10178_v33 = vpop.permute.xlu1 %10177 }
 0xc64   : > { %v10176_v20 = vpop.permute.xlu0 %10175  ;;  %v10519_v46 = vsel %vm10513_vm8, %v10502_v13, %v10178_v33 }
 0xc65   : > { %10137 = vrot.lane.b32.xlu1 %v17284_v7, %s18297_s26  ;;  %v10518_v18 = vsel %vm10513_vm8, %v10501_v45, %v10176_v20 }
 0xc66   : > { %10135 = vrot.lane.b32.xlu0 %v17288_v62, %s18297_s26 }
 0xc67   : > { %v10226_v31 = vpop.permute.xlu1 %10225 }
 0xc68   : > { %v10224_v30 = vpop.permute.xlu0 %10223  ;;  %v10536_v55 = vsel %vm10530_vm9, %v10519_v46, %v10226_v31 }
 0xc69   : > { %10185 = vrot.lane.b32.xlu1 %v17284_v7, %s18079_s15  ;;  %v10535_v56 = vsel %vm10530_vm9, %v10518_v18, %v10224_v30 }
 0xc6a   : > { %10183 = vrot.lane.b32.xlu0 %v17288_v62, %s18079_s15 }
 0xc6b   : > { %v10274_v29 = vpop.permute.xlu1 %10273 }
 0xc6c   : > { %v10553_v49 = vsel %vm10547_vm10, %v10536_v55, %v10274_v29  ;;  %v10272_v39 = vpop.permute.xlu0 %10271 }
 0xc6d   : > { %v10585_v25 = vmul.f32 %v10569_v53, %v10553_v49  ;;  %v10552_v37 = vsel %vm10547_vm10, %v10535_v56, %v10272_v39  ;;  %10233 = vrot.lane.b32.xlu1 %v17284_v7, %s18076_s17 }
 0xc6e   : > { %v10584_v4 = vmul.f32 %v10568_v6, %v10552_v37  ;;  %10231 = vrot.lane.b32.xlu0 %v17288_v62, %s18076_s17 }
 0xc6f   : > { %v9606_v32 = vpop.permute.xlu1 %9605 }
 0xc70   : > { %v12281_v50 = vpack.c.bf16 %v10585_v25, %v10584_v4  ;;  %v9604_v52 = vpop.permute.xlu0 %9603  ;;  %v10319_v9 = vsel %vm10311_vm12, %v17181_v42, %v9606_v32  ;;  %v10571_v4 = vld [vmem:[%s17908_s12 + $0x38] sm:$0xff] }
 0xc71   : > { %10281 = vrot.lane.b32.xlu1 %v17284_v7, %s18074_s24  ;;  %v10318_v19 = vsel %vm10311_vm12, %v17185_v21, %v9604_v52 }
 0xc72   : > { %10279 = vrot.lane.b32.xlu0 %v17288_v62, %s18074_s24  ;;  %12282 = vmatpush3.bf16.msra.mxu0 %v12281_v50  ;;  %s18316_s24 = sld [smem:[#allocation49_spill]] }
 0xc73   : > { %v9654_v44 = vpop.permute.xlu1 %9653  ;;  %12283 = vmatprep.subr.bf16.mxu0 %v12975_v58 }
 0xc74   : > { %v9652_v63 = vpop.permute.xlu0 %9651  ;;  %v10336_v24 = vsel %vm10328_vm13, %v10319_v9, %v9654_v44  ;;  %v10570_v44 = vld [vmem:[%s17908_s12 + $0x30] sm:$0xff] }
 0xc75   : > { %v17470_v16 = vpop.f32.mrb[180].mxu1  ;;  %9613 = vrot.lane.b32.xlu1 %v17367_v54, %s18303_s18  ;;  %v10335_v38 = vsel %vm10328_vm13, %v10318_v19, %v9652_v63 }
 0xc76   : > { %v17474_v3 = vpop.f32.mrb[181].mxu1  ;;  %9611 = vrot.lane.b32.xlu0 %v17371_v34, %s18303_s18 }
 0xc77   : > { %v9702_v48 = vpop.permute.xlu1 %9701 }
 0xc78   : > { %v9700_v28 = vpop.permute.xlu0 %9699  ;;  %v10353_v0 = vsel %vm10345_vm11, %v10336_v24, %v9702_v48 }
 0xc79   : > { %9661 = vrot.lane.b32.xlu1 %v17367_v54, %s18304_s30  ;;  %v10352_v14 = vsel %vm10345_vm11, %v10335_v38, %v9700_v28 }
 0xc7a   : > { %9659 = vrot.lane.b32.xlu0 %v17371_v34, %s18304_s30 }
 0xc7b   : > { %v9750_v43 = vpop.permute.xlu1 %9749 }
 0xc7c   : > { %v9748_v2 = vpop.permute.xlu0 %9747  ;;  %v10369_v35 = vsel %vm9169_vm1, %v10353_v0, %v9750_v43 }
 0xc7d   : > { %9709 = vrot.lane.b32.xlu1 %v17367_v54, %s18305_s28  ;;  %v10368_v42 = vsel %vm9169_vm1, %v10352_v14, %v9748_v2 }
 0xc7e   : > { %9707 = vrot.lane.b32.xlu0 %v17371_v34, %s18305_s28 }
 0xc7f   : > { %v9798_v26 = vpop.permute.xlu1 %9797 }
 0xc80   : > { %v9796_v10 = vpop.permute.xlu0 %9795  ;;  %v10386_v57 = vsel %vm10378_vm3, %v10369_v35, %v9798_v26 }
 0xc81   : > { %9757 = vrot.lane.b32.xlu1 %v17367_v54, %s18306_s0  ;;  %v10385_v5 = vsel %vm10378_vm3, %v10368_v42, %v9796_v10 }
 0xc82   : > { %9755 = vrot.lane.b32.xlu0 %v17371_v34, %s18306_s0 }
 0xc83   : > { %v9846_v17 = vpop.permute.xlu1 %9845 }
 0xc84   : > { %v9844_v60 = vpop.permute.xlu0 %9843  ;;  %v10403_v40 = vsel %vm10395_vm14, %v10386_v57, %v9846_v17 }
 0xc85   : > { %9805 = vrot.lane.b32.xlu1 %v17367_v54, %s18298_s19  ;;  %v10402_v11 = vsel %vm10395_vm14, %v10385_v5, %v9844_v60 }
 0xc86   : > { %9803 = vrot.lane.b32.xlu0 %v17371_v34, %s18298_s19 }
 0xc87   : > { %v9894_v8 = vpop.permute.xlu1 %9893 }
 0xc88   : > { %v9892_v41 = vpop.permute.xlu0 %9891  ;;  %v10420_v59 = vsel %vm10412_vm7, %v10403_v40, %v9894_v8 }
 0xc89   : > { %9853 = vrot.lane.b32.xlu1 %v17367_v54, %s18299_s20  ;;  %v10419_v12 = vsel %vm10412_vm7, %v10402_v11, %v9892_v41 }
 0xc8a   : > { %9851 = vrot.lane.b32.xlu0 %v17371_v34, %s18299_s20 }
 0xc8b   : > { %v9942_v22 = vpop.permute.xlu1 %9941 }
 0xc8c   : > { %v9940_v1 = vpop.permute.xlu0 %9939  ;;  %v10436_v13 = vsel %vm18307_vm6, %v10420_v59, %v9942_v22  ;;  %vm18310_vm6 = vmmov %vm18292_vm2 }
 0xc8d   : > { %9901 = vrot.lane.b32.xlu1 %v17367_v54, %s18300_s21  ;;  %v10435_v45 = vsel %vm18292_vm2, %v10419_v12, %v9940_v1 }
 0xc8e   : > { %9899 = vrot.lane.b32.xlu0 %v17371_v34, %s18300_s21 }
 0xc8f   : > { %v9990_v15 = vpop.permute.xlu1 %9989 }
 0xc90   : > { %v9988_v27 = vpop.permute.xlu0 %9987  ;;  %v10453_v46 = vsel %vm10445_vm4, %v10436_v13, %v9990_v15 }
 0xc91   : > { %9949 = vrot.lane.b32.xlu1 %v17367_v54, %s18301_s22  ;;  %v10452_v53 = vsel %vm10445_vm4, %v10435_v45, %v9988_v27 }
 0xc92   : > { %9947 = vrot.lane.b32.xlu0 %v17371_v34, %s18301_s22 }
 0xc93   : > { %v10038_v51 = vpop.permute.xlu1 %10037 }
 0xc94   : > { %v10036_v61 = vpop.permute.xlu0 %10035  ;;  %v10470_v18 = vsel %vm10462_vm5, %v10453_v46, %v10038_v51 }
 0xc95   : > { %9997 = vrot.lane.b32.xlu1 %v17367_v54, %s18293_s23  ;;  %v10469_v29 = vsel %vm10462_vm5, %v10452_v53, %v10036_v61 }
 0xc96   : > { %9995 = vrot.lane.b32.xlu0 %v17371_v34, %s18293_s23 }
 0xc97   : > { %v10086_v36 = vpop.permute.xlu1 %10085 }
 0xc98   : > { %v10084_v23 = vpop.permute.xlu0 %10083  ;;  %v10487_v6 = vsel %vm10479_vm0, %v10470_v18, %v10086_v36 }
 0xc99   : > { %10045 = vrot.lane.b32.xlu1 %v17367_v54, %s18294_s25  ;;  %v10486_v49 = vsel %vm10479_vm0, %v10469_v29, %v10084_v23 }
 0xc9a   : > { %10043 = vrot.lane.b32.xlu0 %v17371_v34, %s18294_s25 }
 0xc9b   : > { %v10134_v33 = vpop.permute.xlu1 %10133 }
 0xc9c   : > { %v10132_v20 = vpop.permute.xlu0 %10131  ;;  %v10504_v39 = vsel %vm10496_vm15, %v10487_v6, %v10134_v33 }
 0xc9d   : > { %10093 = vrot.lane.b32.xlu1 %v17367_v54, %s18295_s29  ;;  %v10503_v25 = vsel %vm10496_vm15, %v10486_v49, %v10132_v20 }
 0xc9e   : > { %10091 = vrot.lane.b32.xlu0 %v17371_v34, %s18295_s29 }
 0xc9f   : > { %v17527_v21 = vpop.f32.mrb[182].mxu1  ;;  %v10182_v47 = vpop.permute.xlu1 %10181 }
 0xca0   : > { %v17533_v31 = vpop.f32.mrb[183].mxu1  ;;  %v10180_v30 = vpop.permute.xlu0 %10179  ;;  %v10521_v37 = vsel %vm10513_vm8, %v10504_v39, %v10182_v47 }
 0xca1   : > { %10141 = vrot.lane.b32.xlu1 %v17367_v54, %s18297_s26  ;;  %v10520_v32 = vsel %vm10513_vm8, %v10503_v25, %v10180_v30 }
 0xca2   : > { %10139 = vrot.lane.b32.xlu0 %v17371_v34, %s18297_s26 }
 0xca3   : > { %v10230_v55 = vpop.permute.xlu1 %10229 }
 0xca4   : > { %v10228_v56 = vpop.permute.xlu0 %10227  ;;  %v10538_v50 = vsel %vm10530_vm9, %v10521_v37, %v10230_v55 }
 0xca5   : > { %10189 = vrot.lane.b32.xlu1 %v17367_v54, %s18079_s15  ;;  %v10537_v63 = vsel %vm10530_vm9, %v10520_v32, %v10228_v56 }
 0xca6   : > { %10187 = vrot.lane.b32.xlu0 %v17371_v34, %s18079_s15  ;;  %s18308_s15 = smov 56  }
 0xca7   : > { %v10278_v52 = vpop.permute.xlu1 %10277 }
 0xca8   : > { %v10555_v48 = vsel %vm10547_vm10, %v10538_v50, %v10278_v52  ;;  %v10276_v28 = vpop.permute.xlu0 %10275 }
 0xca9   : > { %v10587_v43 = vmul.f32 %v10571_v4, %v10555_v48  ;;  %v10554_v2 = vsel %vm10547_vm10, %v10537_v63, %v10276_v28  ;;  %10237 = vrot.lane.b32.xlu1 %v17367_v54, %s18308_s15 }
 0xcaa   : > { %v10586_v26 = vmul.f32 %v10570_v44, %v10554_v2  ;;  %10235 = vrot.lane.b32.xlu0 %v17371_v34, %s18308_s15 }
 0xcab   : > { %v9610_v10 = vpop.permute.xlu1 %9609 }
 0xcac   : > { %v12284_v17 = vpack.c.bf16 %v10587_v43, %v10586_v26  ;;  %v9608_v60 = vpop.permute.xlu0 %9607  ;;  %v10321_v57 = vsel %vm10311_vm12, %v17284_v7, %v9610_v10  ;;  %v10573_v43 = vld [vmem:[%s17908_s12 + $0x48] sm:$0xff] }
 0xcad   : > { %10285 = vrot.lane.b32.xlu1 %v17367_v54, %s18309_s2  ;;  %v10320_v5 = vsel %vm10311_vm12, %v17288_v62, %v9608_v60 }
 0xcae   : > { %10283 = vrot.lane.b32.xlu0 %v17371_v34, %s18309_s2  ;;  %12285 = vmatpush3.bf16.msra.mxu0 %v12284_v17  ;;  %v10572_v17 = vld [vmem:[%s17908_s12 + $0x40] sm:$0xff] }
 0xcaf   : > { %v9658_v8 = vpop.permute.xlu1 %9657  ;;  %12286 = vmatprep.subr.bf16.mxu0 %v12975_v58 }
 0xcb0   : > { %v9656_v41 = vpop.permute.xlu0 %9655  ;;  %v10338_v40 = vsel %vm10328_vm13, %v10321_v57, %v9658_v8 }
 0xcb1   : > { %9617 = vrot.lane.b32.xlu1 %v17470_v16, %s18303_s18  ;;  %v10337_v11 = vsel %vm10328_vm13, %v10320_v5, %v9656_v41 }
 0xcb2   : > { %9615 = vrot.lane.b32.xlu0 %v17474_v3, %s18303_s18 }
 0xcb3   : > { %v9706_v22 = vpop.permute.xlu1 %9705 }
 0xcb4   : > { %v9704_v1 = vpop.permute.xlu0 %9703  ;;  %v10355_v59 = vsel %vm10345_vm11, %v10338_v40, %v9706_v22 }
 0xcb5   : > { %9665 = vrot.lane.b32.xlu1 %v17470_v16, %s18304_s30  ;;  %v10354_v12 = vsel %vm10345_vm11, %v10337_v11, %v9704_v1 }
 0xcb6   : > { %9663 = vrot.lane.b32.xlu0 %v17474_v3, %s18304_s30 }
 0xcb7   : > { %v9754_v15 = vpop.permute.xlu1 %9753 }
 0xcb8   : > { %v9752_v27 = vpop.permute.xlu0 %9751  ;;  %v10371_v13 = vsel %vm9169_vm1, %v10355_v59, %v9754_v15 }
 0xcb9   : > { %9713 = vrot.lane.b32.xlu1 %v17470_v16, %s18305_s28  ;;  %v10370_v7 = vsel %vm9169_vm1, %v10354_v12, %v9752_v27 }
 0xcba   : > { %9711 = vrot.lane.b32.xlu0 %v17474_v3, %s18305_s28 }
 0xcbb   : > { %v9802_v51 = vpop.permute.xlu1 %9801 }
 0xcbc   : > { %v9800_v61 = vpop.permute.xlu0 %9799  ;;  %v10388_v45 = vsel %vm10378_vm3, %v10371_v13, %v9802_v51 }
 0xcbd   : > { %9761 = vrot.lane.b32.xlu1 %v17470_v16, %s18306_s0  ;;  %v10387_v62 = vsel %vm10378_vm3, %v10370_v7, %v9800_v61 }
 0xcbe   : > { %9759 = vrot.lane.b32.xlu0 %v17474_v3, %s18306_s0 }
 0xcbf   : > { %v9850_v36 = vpop.permute.xlu1 %9849 }
 0xcc0   : > { %v9848_v23 = vpop.permute.xlu0 %9847  ;;  %v10405_v46 = vsel %vm10395_vm14, %v10388_v45, %v9850_v36 }
 0xcc1   : > { %9809 = vrot.lane.b32.xlu1 %v17470_v16, %s18298_s19  ;;  %v10404_v18 = vsel %vm10395_vm14, %v10387_v62, %v9848_v23 }
 0xcc2   : > { %9807 = vrot.lane.b32.xlu0 %v17474_v3, %s18298_s19 }
 0xcc3   : > { %v9898_v9 = vpop.permute.xlu1 %9897 }
 0xcc4   : > { %v9896_v19 = vpop.permute.xlu0 %9895  ;;  %v10422_v55 = vsel %vm10412_vm7, %v10405_v46, %v9898_v9 }
 0xcc5   : > { %9857 = vrot.lane.b32.xlu1 %v17470_v16, %s18299_s20  ;;  %v10421_v6 = vsel %vm10412_vm7, %v10404_v18, %v9896_v19 }
 0xcc6   : > { %9855 = vrot.lane.b32.xlu0 %v17474_v3, %s18299_s20 }
 0xcc7   : > { %v9946_v24 = vpop.permute.xlu1 %9945 }
 0xcc8   : > { %v9944_v33 = vpop.permute.xlu0 %9943  ;;  %v10438_v56 = vsel %vm18310_vm6, %v10422_v55, %v9946_v24  ;;  %vm18312_vm6 = vmmov %vm18292_vm2 }
 0xcc9   : > { %9905 = vrot.lane.b32.xlu1 %v17470_v16, %s18300_s21  ;;  %v10437_v49 = vsel %vm18292_vm2, %v10421_v6, %v9944_v33 }
 0xcca   : > { %9903 = vrot.lane.b32.xlu0 %v17474_v3, %s18300_s21 }
 0xccb   : > { %v9994_v38 = vpop.permute.xlu1 %9993 }
 0xccc   : > { %v9992_v0 = vpop.permute.xlu0 %9991  ;;  %v10455_v39 = vsel %vm10445_vm4, %v10438_v56, %v9994_v38 }
 0xccd   : > { %9953 = vrot.lane.b32.xlu1 %v17470_v16, %s18301_s22  ;;  %v10454_v25 = vsel %vm10445_vm4, %v10437_v49, %v9992_v0 }
 0xcce   : > { %9951 = vrot.lane.b32.xlu0 %v17474_v3, %s18301_s22 }
 0xccf   : > { %v10042_v20 = vpop.permute.xlu1 %10041 }
 0xcd0   : > { %v10040_v14 = vpop.permute.xlu0 %10039  ;;  %v10472_v37 = vsel %vm10462_vm5, %v10455_v39, %v10042_v20 }
 0xcd1   : > { %10001 = vrot.lane.b32.xlu1 %v17470_v16, %s18293_s23  ;;  %v10471_v32 = vsel %vm10462_vm5, %v10454_v25, %v10040_v14 }
 0xcd2   : > { %9999 = vrot.lane.b32.xlu0 %v17474_v3, %s18293_s23 }
 0xcd3   : > { %v10090_v35 = vpop.permute.xlu1 %10089 }
 0xcd4   : > { %v10088_v42 = vpop.permute.xlu0 %10087  ;;  %v10489_v50 = vsel %vm10479_vm0, %v10472_v37, %v10090_v35 }
 0xcd5   : > { %10049 = vrot.lane.b32.xlu1 %v17470_v16, %s18294_s25  ;;  %v10488_v44 = vsel %vm10479_vm0, %v10471_v32, %v10088_v42 }
 0xcd6   : > { %10047 = vrot.lane.b32.xlu0 %v17474_v3, %s18294_s25 }
 0xcd7   : > { %v10138_v47 = vpop.permute.xlu1 %10137 }
 0xcd8   : > { %v10136_v30 = vpop.permute.xlu0 %10135  ;;  %v10506_v63 = vsel %vm10496_vm15, %v10489_v50, %v10138_v47 }
 0xcd9   : > { %10097 = vrot.lane.b32.xlu1 %v17470_v16, %s18295_s29  ;;  %v10505_v48 = vsel %vm10496_vm15, %v10488_v44, %v10136_v30 }
 0xcda   : > { %10095 = vrot.lane.b32.xlu0 %v17474_v3, %s18295_s29 }
 0xcdb   : > { %v10186_v53 = vpop.permute.xlu1 %10185 }
 0xcdc   : > { %v10184_v29 = vpop.permute.xlu0 %10183  ;;  %v10523_v28 = vsel %vm10513_vm8, %v10506_v63, %v10186_v53 }
 0xcdd   : > { %10145 = vrot.lane.b32.xlu1 %v17470_v16, %s18297_s26  ;;  %v10522_v2 = vsel %vm10513_vm8, %v10505_v48, %v10184_v29 }
 0xcde   : > { %10143 = vrot.lane.b32.xlu0 %v17474_v3, %s18297_s26 }
 0xcdf   : > { %v10234_v4 = vpop.permute.xlu1 %10233 }
 0xce0   : > { %v10232_v52 = vpop.permute.xlu0 %10231  ;;  %v10540_v26 = vsel %vm10530_vm9, %v10523_v28, %v10234_v4 }
 0xce1   : > { %10193 = vrot.lane.b32.xlu1 %v17470_v16, %s18311_s1  ;;  %v10539_v60 = vsel %vm10530_vm9, %v10522_v2, %v10232_v52 }
 0xce2   : > { %10191 = vrot.lane.b32.xlu0 %v17474_v3, %s18311_s1 }
 0xce3   : > { %v10282_v10 = vpop.permute.xlu1 %10281 }
 0xce4   : > { %v10557_v8 = vsel %vm10547_vm10, %v10540_v26, %v10282_v10  ;;  %v10280_v41 = vpop.permute.xlu0 %10279 }
 0xce5   : > { %v10589_v22 = vmul.f32 %v10573_v43, %v10557_v8  ;;  %v10556_v1 = vsel %vm10547_vm10, %v10539_v60, %v10280_v41  ;;  %10241 = vrot.lane.b32.xlu1 %v17470_v16, %s18308_s15  ;;  %v10575_v8 = vld [vmem:[%s17908_s12 + $0x58] sm:$0xff] }
 0xce6   : > { %v10588_v15 = vmul.f32 %v10572_v17, %v10556_v1  ;;  %10239 = vrot.lane.b32.xlu0 %v17474_v3, %s18308_s15 }
 0xce7   : > { %v9614_v27 = vpop.permute.xlu1 %9613 }
 0xce8   : > { %v12287_v51 = vpack.c.bf16 %v10589_v22, %v10588_v15  ;;  %v9612_v61 = vpop.permute.xlu0 %9611  ;;  %v10323_v13 = vsel %vm10311_vm12, %v17367_v54, %v9614_v27  ;;  %v10574_v15 = vld [vmem:[%s17908_s12 + $0x50] sm:$0xff]  ;;  %v12979_v27 = vmov 0.0  }
 0xce9   : > { %10289 = vrot.lane.b32.xlu1 %v17470_v16, %s18309_s2  ;;  %v10322_v7 = vsel %vm10311_vm12, %v17371_v34, %v9612_v61 }
 0xcea   : > { %10287 = vrot.lane.b32.xlu0 %v17474_v3, %s18309_s2  ;;  %12288 = vmatpush3.bf16.msra.mxu0 %v12287_v51 }
 0xceb   : > { %v9662_v36 = vpop.permute.xlu1 %9661  ;;  %12289 = vmatprep.subr.bf16.mxu0 %v12975_v58 }
 0xcec   : > { %v9660_v23 = vpop.permute.xlu0 %9659  ;;  %v10340_v45 = vsel %vm10328_vm13, %v10323_v13, %v9662_v36 }
 0xced   : > { %9621 = vrot.lane.b32.xlu1 %v17527_v21, %s18303_s18  ;;  %v10339_v46 = vsel %vm10328_vm13, %v10322_v7, %v9660_v23 }
 0xcee   : > { %9619 = vrot.lane.b32.xlu0 %v17533_v31, %s18303_s18 }
 0xcef   : > { %v9710_v9 = vpop.permute.xlu1 %9709 }
 0xcf0   : > { %v9708_v19 = vpop.permute.xlu0 %9707  ;;  %v10357_v53 = vsel %vm10345_vm11, %v10340_v45, %v9710_v9 }
 0xcf1   : > { %9669 = vrot.lane.b32.xlu1 %v17527_v21, %s18304_s30  ;;  %v10356_v55 = vsel %vm10345_vm11, %v10339_v46, %v9708_v19  ;;  %v10668_v19 = vld [vmem:[%s17910_s14] sm:$0xff] }
 0xcf2   : > { %9667 = vrot.lane.b32.xlu0 %v17533_v31, %s18304_s30  ;;  %s10876_s30 = sshll.u32 %s18322_s27, 3 }
 0xcf3   : > { %v9758_v24 = vpop.permute.xlu1 %9757 }
 0xcf4   : > { %v9756_v33 = vpop.permute.xlu0 %9755  ;;  %v10373_v29 = vsel %vm9169_vm1, %v10357_v53, %v9758_v24  ;;  %v10669_v24 = vld [vmem:[%s17910_s14 + $0x8] sm:$0xff] }
 0xcf5   : > { %9717 = vrot.lane.b32.xlu1 %v17527_v21, %s18305_s28  ;;  %v10372_v54 = vsel %vm9169_vm1, %v10356_v55, %v9756_v33  ;;  %v10670_v33 = vld [vmem:[%s17910_s14 + $0x10] sm:$0xff] }
 0xcf6   : > { %9715 = vrot.lane.b32.xlu0 %v17533_v31, %s18305_s28 }
 0xcf7   : > { %v9806_v38 = vpop.permute.xlu1 %9805 }
 0xcf8   : > { %v9804_v0 = vpop.permute.xlu0 %9803  ;;  %v10390_v6 = vsel %vm10378_vm3, %v10373_v29, %v9806_v38 }
 0xcf9   : > { %9765 = vrot.lane.b32.xlu1 %v17527_v21, %s18306_s0  ;;  %v10389_v34 = vsel %vm10378_vm3, %v10372_v54, %v9804_v0  ;;  %v12299_v0 = vpack.c.bf16 %v10669_v24, %v10668_v19 }
 0xcfa   : > { %9763 = vrot.lane.b32.xlu0 %v17533_v31, %s18306_s0 }
 0xcfb   : > { %v9854_v20 = vpop.permute.xlu1 %9853  ;;  %12300 = vmatpush3.bf16.msra.mxu1 %v12299_v0 }
 0xcfc   : > { %v9852_v14 = vpop.permute.xlu0 %9851  ;;  %v10407_v56 = vsel %vm10395_vm14, %v10390_v6, %v9854_v20  ;;  %v10671_v20 = vld [vmem:[%s17910_s14 + $0x18] sm:$0xff]  ;;  %12301 = vmatprep.subr.bf16.mxu1 %v12975_v58 }
 0xcfd   : > { %9813 = vrot.lane.b32.xlu1 %v17527_v21, %s18298_s19  ;;  %v10406_v39 = vsel %vm10395_vm14, %v10389_v34, %v9852_v14 }
 0xcfe   : > { %9811 = vrot.lane.b32.xlu0 %v17533_v31, %s18298_s19 }
 0xcff   : > { %v9902_v35 = vpop.permute.xlu1 %9901 }
 0xd00   : > { %v9900_v42 = vpop.permute.xlu0 %9899  ;;  %v10424_v25 = vsel %vm10412_vm7, %v10407_v56, %v9902_v35 }
 0xd01   : > { %9861 = vrot.lane.b32.xlu1 %v17527_v21, %s18299_s20  ;;  %v10423_v4 = vsel %vm10412_vm7, %v10406_v39, %v9900_v42 }
 0xd02   : > { %9859 = vrot.lane.b32.xlu0 %v17533_v31, %s18299_s20 }
 0xd03   : > { %v9950_v57 = vpop.permute.xlu1 %9949 }
 0xd04   : > { %v9948_v5 = vpop.permute.xlu0 %9947  ;;  %v10440_v32 = vsel %vm18312_vm6, %v10424_v25, %v9950_v57  ;;  %vm12978_vm6 = vmmov 0   ;;  %v12302_v57 = vpack.c.bf16 %v10671_v20, %v10670_v33 }
 0xd05   : > { %9909 = vrot.lane.b32.xlu1 %v17527_v21, %s18300_s21  ;;  %v10439_v50 = vsel %vm18292_vm2, %v10423_v4, %v9948_v5  ;;  %12236 = vmatprep.mubr.msk.f32.mxu0 %vm12978_vm6, %v12979_v27  ;;  %v10672_v5 = vld [vmem:[%s17910_s14 + $0x20] sm:$0xff] }
 0xd06   : > { %9907 = vrot.lane.b32.xlu0 %v17533_v31, %s18300_s21  ;;  %12255 = vmatprep.mubr.msk.f32.mxu1 %vm12978_vm6, %v12979_v27  ;;  %vm18313_vm6 = vmmov %vm18292_vm2 }
 0xd07   : > { %v9998_v40 = vpop.permute.xlu1 %9997  ;;  %12303 = vmatpush3.bf16.msra.mxu1 %v12302_v57 }
 0xd08   : > { %v9996_v47 = vpop.permute.xlu0 %9995  ;;  %v10457_v52 = vsel %vm10445_vm4, %v10440_v32, %v9998_v40  ;;  %v10673_v40 = vld [vmem:[%s17910_s14 + $0x28] sm:$0xff]  ;;  %12304 = vmatprep.subr.bf16.mxu1 %v12975_v58 }
 0xd09   : > { %9957 = vrot.lane.b32.xlu1 %v17527_v21, %s18301_s22  ;;  %v10456_v44 = vsel %vm10445_vm4, %v10439_v50, %v9996_v47 }
 0xd0a   : > { %9955 = vrot.lane.b32.xlu0 %v17533_v31, %s18301_s22 }
 0xd0b   : > { %v10046_v11 = vpop.permute.xlu1 %10045 }
 0xd0c   : > { %v10044_v59 = vpop.permute.xlu0 %10043  ;;  %v10474_v63 = vsel %vm10462_vm5, %v10457_v52, %v10046_v11 }
 0xd0d   : > { %10005 = vrot.lane.b32.xlu1 %v17527_v21, %s18293_s23  ;;  %v10473_v28 = vsel %vm10462_vm5, %v10456_v44, %v10044_v59  ;;  %v12305_v59 = vpack.c.bf16 %v10673_v40, %v10672_v5  ;;  %v10576_v5 = vld [vmem:[%s17908_s12 + $0x60] sm:$0xff] }
 0xd0e   : > { %10003 = vrot.lane.b32.xlu0 %v17533_v31, %s18293_s23 }
 0xd0f   : > { %v10094_v30 = vpop.permute.xlu1 %10093  ;;  %12306 = vmatpush3.bf16.msra.mxu1 %v12305_v59 }
 0xd10   : > { %v10092_v12 = vpop.permute.xlu0 %10091  ;;  %v10491_v43 = vsel %vm10479_vm0, %v10474_v63, %v10094_v30  ;;  %v10674_v30 = vld [vmem:[%s17910_s14 + $0x30] sm:$0xff]  ;;  %12307 = vmatprep.subr.bf16.mxu1 %v12975_v58 }
 0xd11   : > { %10053 = vrot.lane.b32.xlu1 %v17527_v21, %s18294_s25  ;;  %v10490_v26 = vsel %vm10479_vm0, %v10473_v28, %v10092_v12  ;;  %v10675_v12 = vld [vmem:[%s17910_s14 + $0x38] sm:$0xff] }
 0xd12   : > { %10051 = vrot.lane.b32.xlu0 %v17533_v31, %s18294_s25  ;;  %v12308_v45 = vpack.c.bf16 %v10675_v12, %v10674_v30 }
 0xd13   : > { %v10142_v62 = vpop.permute.xlu1 %10141 }
 0xd14   : > { %v10140_v18 = vpop.permute.xlu0 %10139  ;;  %v10508_v10 = vsel %vm10496_vm15, %v10491_v43, %v10142_v62  ;;  %12309 = vmatpush3.bf16.msra.mxu1 %v12308_v45 }
 0xd15   : > { %10101 = vrot.lane.b32.xlu1 %v17527_v21, %s18295_s29  ;;  %v10507_v17 = vsel %vm10496_vm15, %v10490_v26, %v10140_v18 }
 0xd16   : > { %10099 = vrot.lane.b32.xlu0 %v17533_v31, %s18295_s29 }
 0xd17   : > { %v10190_v49 = vpop.permute.xlu1 %10189 }
 0xd18   : > { %v10188_v37 = vpop.permute.xlu0 %10187  ;;  %v10525_v60 = vsel %vm10513_vm8, %v10508_v10, %v10190_v49 }
 0xd19   : > { %10149 = vrot.lane.b32.xlu1 %v17527_v21, %s18297_s26  ;;  %v10524_v41 = vsel %vm10513_vm8, %v10507_v17, %v10188_v37 }
 0xd1a   : > { %10147 = vrot.lane.b32.xlu0 %v17533_v31, %s18297_s26 }
 0xd1b   : > { %v10238_v48 = vpop.permute.xlu1 %10237 }
 0xd1c   : > { %v10236_v2 = vpop.permute.xlu0 %10235  ;;  %v10542_v22 = vsel %vm10530_vm9, %v10525_v60, %v10238_v48 }
 0xd1d   : > { %10197 = vrot.lane.b32.xlu1 %v17527_v21, %s18311_s1  ;;  %v10541_v51 = vsel %vm10530_vm9, %v10524_v41, %v10236_v2 }
 0xd1e   : > { %10195 = vrot.lane.b32.xlu0 %v17533_v31, %s18311_s1 }
 0xd1f   : > { %v10286_v1 = vpop.permute.xlu1 %10285 }
 0xd20   : > { %v10559_v61 = vsel %vm10547_vm10, %v10542_v22, %v10286_v1  ;;  %v10284_v36 = vpop.permute.xlu0 %10283 }
 0xd21   : > { %v10591_v23 = vmul.f32 %v10575_v8, %v10559_v61  ;;  %v10558_v9 = vsel %vm10547_vm10, %v10541_v51, %v10284_v36  ;;  %10245 = vrot.lane.b32.xlu1 %v17527_v21, %s18308_s15 }
 0xd22   : > { %v10590_v38 = vmul.f32 %v10574_v15, %v10558_v9  ;;  %10243 = vrot.lane.b32.xlu0 %v17533_v31, %s18308_s15  ;;  %s588_s15 = scalar_lea.vmem %s17912_s16, %s10876_s30 }
 0xd23   : > { %v9618_v14 = vpop.permute.xlu1 %9617 }
 0xd24   : > { %v12290_v35 = vpack.c.bf16 %v10591_v23, %v10590_v38  ;;  %v9616_v42 = vpop.permute.xlu0 %9615  ;;  %v10325_v50 = vsel %vm10311_vm12, %v17470_v16, %v9618_v14  ;;  %v10577_v14 = vld [vmem:[%s17908_s12 + $0x68] sm:$0xff] }
 0xd25   : > { %10293 = vrot.lane.b32.xlu1 %v17527_v21, %s18309_s2  ;;  %v10324_v52 = vsel %vm10311_vm12, %v17474_v3, %v9616_v42 }
 0xd26   : > { %10291 = vrot.lane.b32.xlu0 %v17533_v31, %s18309_s2  ;;  %12291 = vmatpush3.bf16.msra.mxu0 %v12290_v35  ;;  %s18317_s2 = sld [smem:[#allocation50_spill]] }
 0xd27   : > { %v9666_v47 = vpop.permute.xlu1 %9665  ;;  %12292 = vmatprep.subr.bf16.mxu0 %v12975_v58 }
 0xd28   : > { %v9664_v11 = vpop.permute.xlu0 %9663  ;;  %v10342_v44 = vsel %vm10328_vm13, %v10325_v50, %v9666_v47 }
 0xd29   : > { %v10341_v48 = vsel %vm10328_vm13, %v10324_v52, %v9664_v11 }
 0xd2b   : > { %v9714_v13 = vpop.permute.xlu1 %9713 }
 0xd2c   : > { %v9712_v7 = vpop.permute.xlu0 %9711  ;;  %v10359_v28 = vsel %vm10345_vm11, %v10342_v44, %v9714_v13  ;;  %s592_s23 = scalar_lea.vmem %s18317_s2, %s10876_s30 }
 0xd2d   : > { %v10358_v2 = vsel %vm10345_vm11, %v10341_v48, %v9712_v7 }
 0xd2f   : > { %v9762_v62 = vpop.permute.xlu1 %9761 }
 0xd30   : > { %v9760_v46 = vpop.permute.xlu0 %9759  ;;  %v10375_v26 = vsel %vm9169_vm1, %v10359_v28, %v9762_v62 }
 0xd31   : > { %v10374_v10 = vsel %vm9169_vm1, %v10358_v2, %v9760_v46 }
 0xd33   : > { %v9810_v53 = vpop.permute.xlu1 %9809 }
 0xd34   : > { %v9808_v18 = vpop.permute.xlu0 %9807  ;;  %v10392_v17 = vsel %vm10378_vm3, %v10375_v26, %v9810_v53 }
 0xd35   : > { %v10391_v16 = vsel %vm10378_vm3, %v10374_v10, %v9808_v18 }
 0xd37   : > { %v9858_v55 = vpop.permute.xlu1 %9857 }
 0xd38   : > { %v9856_v29 = vpop.permute.xlu0 %9855  ;;  %v10409_v3 = vsel %vm10395_vm14, %v10392_v17, %v9858_v55 }
 0xd39   : > { %v10408_v8 = vsel %vm10395_vm14, %v10391_v16, %v9856_v29 }
 0xd3b   : > { %v9906_v54 = vpop.permute.xlu1 %9905 }
 0xd3c   : > { %v9904_v6 = vpop.permute.xlu0 %9903  ;;  %v10426_v41 = vsel %vm10412_vm7, %v10409_v3, %v9906_v54 }
 0xd3d   : > { %v10425_v1 = vsel %vm10412_vm7, %v10408_v8, %v9904_v6 }
 0xd3f   : > { %v9954_v34 = vpop.permute.xlu1 %9953 }
 0xd40   : > { %v9952_v56 = vpop.permute.xlu0 %9951  ;;  %v10442_v15 = vsel %vm18292_vm2, %v10426_v41, %v9954_v34 }
 0xd41   : > { %v10441_v27 = vsel %vm18313_vm6, %v10425_v1, %v9952_v56 }
 0xd43   : > { %v10002_v49 = vpop.permute.xlu1 %10001 }
 0xd44   : > { %v10000_v39 = vpop.permute.xlu0 %9999  ;;  %v10459_v51 = vsel %vm10445_vm4, %v10442_v15, %v10002_v49 }
 0xd45   : > { %v10458_v61 = vsel %vm10445_vm4, %v10441_v27, %v10000_v39 }
 0xd47   : > { %v10050_v25 = vpop.permute.xlu1 %10049 }
 0xd48   : > { %v10048_v37 = vpop.permute.xlu0 %10047  ;;  %v10476_v36 = vsel %vm10462_vm5, %v10459_v51, %v10050_v25 }
 0xd49   : > { %v10475_v9 = vsel %vm10462_vm5, %v10458_v61, %v10048_v37 }
 0xd4b   : > { %v10098_v4 = vpop.permute.xlu1 %10097 }
 0xd4c   : > { %v10096_v32 = vpop.permute.xlu0 %10095  ;;  %v10493_v19 = vsel %vm10479_vm0, %v10476_v36, %v10098_v4 }
 0xd4d   : > { %v10492_v33 = vsel %vm10479_vm0, %v10475_v9, %v10096_v32 }
 0xd4f   : > { %v10146_v63 = vpop.permute.xlu1 %10145 }
 0xd50   : > { %v10144_v43 = vpop.permute.xlu0 %10143  ;;  %v10510_v38 = vsel %vm10496_vm15, %v10493_v19, %v10146_v63 }
 0xd51   : > { %v10509_v0 = vsel %vm10496_vm15, %v10492_v33, %v10144_v43 }
 0xd53   : > { %v10194_v60 = vpop.permute.xlu1 %10193 }
 0xd54   : > { %v10192_v22 = vpop.permute.xlu0 %10191  ;;  %v10527_v20 = vsel %vm10513_vm8, %v10510_v38, %v10194_v60 }
 0xd55   : > { %v10526_v35 = vsel %vm10513_vm8, %v10509_v0, %v10192_v22 }
 0xd57   : > { %v10242_v23 = vpop.permute.xlu1 %10241 }
 0xd58   : > { %v10240_v24 = vpop.permute.xlu0 %10239  ;;  %v10544_v42 = vsel %vm10530_vm9, %v10527_v20, %v10242_v23 }
 0xd59   : > { %v10543_v40 = vsel %vm10530_vm9, %v10526_v35, %v10240_v24  ;;  %v10579_v35 = vld [vmem:[%s17908_s12 + $0x78] sm:$0xff] }
 0xd5b   : > { %v10290_v57 = vpop.permute.xlu1 %10289 }
 0xd5c   : > { %v10561_v47 = vsel %vm10547_vm10, %v10544_v42, %v10290_v57  ;;  %v10288_v11 = vpop.permute.xlu0 %10287 }
 0xd5d   : > { %v10593_v59 = vmul.f32 %v10577_v14, %v10561_v47  ;;  %v10560_v30 = vsel %vm10547_vm10, %v10543_v40, %v10288_v11  ;;  %v10578_v40 = vld [vmem:[%s17908_s12 + $0x70] sm:$0xff] }
 0xd5e   : > { %v10592_v12 = vmul.f32 %v10576_v5, %v10560_v30 }
 0xd5f   : > { %v9622_v13 = vpop.permute.xlu1 %9621 }
 0xd60   : > { %v12293_v7 = vpack.c.bf16 %v10593_v59, %v10592_v12  ;;  %v9620_v45 = vpop.permute.xlu0 %9619 }
 0xd61   : > { %v10326_v48 = vsel %vm10311_vm12, %v17533_v31, %v9620_v45  ;;  %v9574_v45 = vld [vmem:[%s17909_s13] sm:$0xff] }
 0xd62   : > { %12294 = vmatpush3.bf16.msra.mxu0 %v12293_v7 }
 0xd63   : > { %v9670_v62 = vpop.permute.xlu1 %9669  ;;  %12295 = vmatprep.subr.bf16.mxu0 %v12975_v58  ;;  %v10327_v58 = vsel %vm10311_vm12, %v17527_v21, %v9622_v13  ;;  %vm18314_vm12 = vmmov %vm18292_vm2 }
 0xd64   : > { %v9668_v46 = vpop.permute.xlu0 %9667  ;;  %v10344_v28 = vsel %vm10328_vm13, %v10327_v58, %v9670_v62 }
 0xd65   : > { %v10343_v2 = vsel %vm10328_vm13, %v10326_v48, %v9668_v46  ;;  %vm18315_vm13 = vmmov %vm18292_vm2 }
 0xd67   : > { %v9718_v53 = vpop.permute.xlu1 %9717 }
 0xd68   : > { %v9716_v18 = vpop.permute.xlu0 %9715  ;;  %v10361_v26 = vsel %vm10345_vm11, %v10344_v28, %v9718_v53  ;;  %v11373_v53 = vld [vmem:[%s18316_s24] ss:$0 sm:$0xff] }
 0xd69   : > { %v10360_v17 = vsel %vm10345_vm11, %v10343_v2, %v9716_v18  ;;  %vm10756_vm11 = vcmask 15360  }
 0xd6b   : > { %v9766_v55 = vpop.permute.xlu1 %9765 }
 0xd6c   : > { %v9764_v29 = vpop.permute.xlu0 %9763  ;;  %v10377_v16 = vsel %vm9169_vm1, %v10361_v26, %v9766_v55 }
 0xd6d   : > { %v10376_v3 = vsel %vm9169_vm1, %v10360_v17, %v9764_v29  ;;  %vm10666_vm1 = vcmask 523264  }
 0xd6f   : > { %v9814_v54 = vpop.permute.xlu1 %9813 }
 0xd70   : > { %v9812_v6 = vpop.permute.xlu0 %9811  ;;  %v10394_v60 = vsel %vm10378_vm3, %v10377_v16, %v9814_v54 }
 0xd71   : > { %v10393_v21 = vsel %vm10378_vm3, %v10376_v3, %v9812_v6 }
 0xd73   : > { %v9862_v34 = vpop.permute.xlu1 %9861 }
 0xd74   : > { %v9860_v56 = vpop.permute.xlu0 %9859  ;;  %v10411_v31 = vsel %vm10395_vm14, %v10394_v60, %v9862_v34 }
 0xd75   : > { %v10410_v41 = vsel %vm10395_vm14, %v10393_v21, %v9860_v56 }
 0xd77   : > { %v9910_v49 = vpop.permute.xlu1 %9909 }
 0xd78   : > { %v9908_v39 = vpop.permute.xlu0 %9907  ;;  %v10428_v22 = vsel %vm10412_vm7, %v10411_v31, %v9910_v49 }
 0xd79   : > { %v10427_v15 = vsel %vm10412_vm7, %v10410_v41, %v9908_v39 }
 0xd7b   : > { %v9958_v25 = vpop.permute.xlu1 %9957 }
 0xd7c   : > { %v9956_v37 = vpop.permute.xlu0 %9955  ;;  %v10444_v27 = vsel %vm18314_vm12, %v10428_v22, %v9958_v25 }
 0xd7d   : > { %v10443_v51 = vsel %vm18315_vm13, %v10427_v15, %v9956_v37 }
 0xd7f   : > { %v10006_v4 = vpop.permute.xlu1 %10005 }
 0xd80   : > { %v10004_v32 = vpop.permute.xlu0 %10003  ;;  %v10461_v61 = vsel %vm10445_vm4, %v10444_v27, %v10006_v4 }
 0xd81   : > { %v10460_v36 = vsel %vm10445_vm4, %v10443_v51, %v10004_v32 }
 0xd83   : > { %v10054_v50 = vpop.permute.xlu1 %10053 }
 0xd84   : > { %v10052_v52 = vpop.permute.xlu0 %10051  ;;  %v10478_v23 = vsel %vm10462_vm5, %v10461_v61, %v10054_v50 }
 0xd85   : > { %v10477_v19 = vsel %vm10462_vm5, %v10460_v36, %v10052_v52 }
 0xd87   : > { %v10102_v44 = vpop.permute.xlu1 %10101 }
 0xd88   : > { %v10100_v63 = vpop.permute.xlu0 %10099  ;;  %v10495_v24 = vsel %vm10479_vm0, %v10478_v23, %v10102_v44 }
 0xd89   : > { %v10494_v38 = vsel %vm10479_vm0, %v10477_v19, %v10100_v63 }
 0xd8b   : > { %v10150_v43 = vpop.permute.xlu1 %10149 }
 0xd8c   : > { %v10148_v10 = vpop.permute.xlu0 %10147  ;;  %v10512_v0 = vsel %vm10496_vm15, %v10495_v24, %v10150_v43 }
 0xd8d   : > { %v10511_v20 = vsel %vm10496_vm15, %v10494_v38, %v10148_v10 }
 0xd8f   : > { %v10198_v8 = vpop.permute.xlu1 %10197 }
 0xd90   : > { %v10196_v1 = vpop.permute.xlu0 %10195  ;;  %v10529_v14 = vsel %vm10513_vm8, %v10512_v0, %v10198_v8 }
 0xd91   : > { %v10528_v42 = vsel %vm10513_vm8, %v10511_v20, %v10196_v1 }
 0xd93   : > { %v10246_v9 = vpop.permute.xlu1 %10245 }
 0xd94   : > { %v10244_v33 = vpop.permute.xlu0 %10243  ;;  %v10546_v57 = vsel %vm10530_vm9, %v10529_v14, %v10246_v9 }
 0xd95   : > { %v10545_v47 = vsel %vm10530_vm9, %v10528_v42, %v10244_v33 }
 0xd97   : > { %v10294_v5 = vpop.permute.xlu1 %10293 }
 0xd98   : > { %v10563_v11 = vsel %vm10547_vm10, %v10546_v57, %v10294_v5  ;;  %v10292_v59 = vpop.permute.xlu0 %10291 }
 0xd99   : > { %v10595_v30 = vmul.f32 %v10579_v35, %v10563_v11  ;;  %v10562_v12 = vsel %vm10547_vm10, %v10545_v47, %v10292_v59 }
 0xd9a   : > { %v10594_v13 = vmul.f32 %v10578_v40, %v10562_v12 }
 0xd9c   : > { %v12296_v7 = vpack.c.bf16 %v10595_v30, %v10594_v13 }
 0xd9e   : > { %12297 = vmatpush3.bf16.msra.mxu0 %v12296_v7 }
 0xda1   : > { %12237 = vmatmul.mubr.f32.vlgmr.msra.gmra.mrb[184].mxu0 %v9574_v45 }
 0xe74   : > { %v10662_v62 = vpop.f32.mrb[184].mxu0 }
 0xe75   : > { %10667 = vst.msk [vmem:[%s588_s15] sm:$0xff] %vm10666_vm1, %v10662_v62  ;;  %v12238_v46 = vpop.f32.mrb[185].mxu0  ;;  %12256 = vmatmul.mubr.msk.f32.vlgmr.msra.gmra.mrb[184].mxu1 %vm10666_vm1, %v10662_v62 }
 0xf48   : > { %v10752_v18 = vpop.f32.mrb[184].mxu1 }
 0xf49   : > { %v10753_v55 = vadd.f32 %v11373_v53, %v10752_v18  ;;  %v12257_v29 = vpop.f32.mrb[185].mxu1 }
 0xf4b   : > { %10757 = vst.msk [vmem:[%s592_s23] sm:$0xff] %vm10756_vm11, %v10753_v55 }
 0xf4c PF: > { %s18318_s27 = sld [smem:[#allocation8_spill]] }
 0xf52   : > { %s30_s24 = sadd.s32 1, %s18318_s27  }
 0xf53   : > { %p27_p10 = scmp.ge.s32.totalorder %s30_s24, 4  }
 0xf55   :  { %29 = sbr.rel (!%p27_p10) target bundleno = 10 (0xa), region = 136 }
 0xf5c   :  { %10791 = vsyncpa [#allocation3], 1 }
 0xf5d   :  { %10793 = vsyncpa [#allocation3 + $0x1], 1 }
 0xf5e   :  { %10794 = vsyncpa [#allocation5], 1 }

</bundles_post_ra>
